<compile_context>
chip_gen: v5e
topology: v5e:2x2
jax: 0.10.0
libtpu: 0.0.40
codegen_flags: <defaults>
</compile_context>

<pallas_src>
import math
from functools import partial

import jax
import jax.numpy as jnp
from jax.experimental import pallas as pl
from jax.experimental.pallas import tpu as pltpu


_VMEM_LIMIT = 48 * 1024 * 1024   # < v7x 64 MiB physical, << v5e/v6e 128 MiB


def _pick_tile(n, cap):
    """Largest tile <= cap that is the full dim or a multiple-of-8 divisor of n."""
    if n <= cap:
        return n
    start = cap - (cap % 8)
    for t in range(start, 7, -8):
        if n % t == 0:
            return t
    if n > 8 * cap:
        raise ValueError(
            f"axis of size {n} has no multiple-of-8 divisor <= {cap}; pad the axis")
    return n


# ---------------------------------------------------------------------------
# In-kernel helpers (operate on jnp values / VMEM refs)
# ---------------------------------------------------------------------------

def _layernorm(x, g, b, eps):
    mean = jnp.mean(x, axis=-1, keepdims=True)
    var = jnp.mean(jnp.square(x - mean), axis=-1, keepdims=True)
    return (x - mean) * jax.lax.rsqrt(var + eps) * g + b


def _mha_single(qp, kp, vp, num_heads, scale, cd):
    """Plain multi-head softmax attention; qp/kp/vp are (rows, internal) f32."""
    internal = qp.shape[-1]
    hd = internal // num_heads
    parts = []
    for h in range(num_heads):
        sl = slice(h * hd, (h + 1) * hd)
        s = jax.lax.dot_general(qp[:, sl].astype(cd), kp[:, sl].astype(cd),
                                (((1,), (1,)), ((), ())),
                                preferred_element_type=jnp.float32) * scale
        s = s - jnp.max(s, axis=-1, keepdims=True)
        p = jnp.exp(s)
        p = p / jnp.sum(p, axis=-1, keepdims=True)          # exact divide
        parts.append(jnp.dot(p.astype(cd), vp[:, sl].astype(cd),
                             preferred_element_type=jnp.float32))
    return jnp.concatenate(parts, axis=-1)                   # (rows, internal)


def _flash_update(qp_sc, kp, vp, acc_sc, m_sc, l_sc, num_heads, scale, cd):
    """One online-softmax step over a key tile, all heads, lane-dense scratch."""
    qp = qp_sc[...]
    acc = acc_sc[...]
    m_all = m_sc[...]
    l_all = l_sc[...]
    internal = qp.shape[-1]
    hd = internal // num_heads
    new_m, new_l, new_acc = [], [], []
    for h in range(num_heads):
        sl = slice(h * hd, (h + 1) * hd)
        s = jax.lax.dot_general(qp[:, sl].astype(cd), kp[:, sl].astype(cd),
                                (((1,), (1,)), ((), ())),
                                preferred_element_type=jnp.float32) * scale
        m_prev = m_all[:, h:h + 1]
        m_h = jnp.maximum(m_prev, jnp.max(s, axis=-1, keepdims=True))
        alpha = jnp.exp(m_prev - m_h)
        p = jnp.exp(s - m_h)
        new_l.append(alpha * l_all[:, h:h + 1] + jnp.sum(p, axis=-1, keepdims=True))
        new_acc.append(alpha * acc[:, sl]
                       + jnp.dot(p.astype(cd), vp[:, sl].astype(cd),
                                 preferred_element_type=jnp.float32))
        new_m.append(m_h)
    # one full-width store per scratch (no per-head masked stores)
    m_sc[...] = jnp.concatenate(new_m, axis=-1)
    l_sc[...] = jnp.concatenate(new_l, axis=-1)
    acc_sc[...] = jnp.concatenate(new_acc, axis=-1)


def _flash_finalize(acc_sc, l_sc, num_heads):
    acc = acc_sc[...]
    l_all = l_sc[...]
    internal = acc.shape[-1]
    hd = internal // num_heads
    parts = []
    for h in range(num_heads):
        sl = slice(h * hd, (h + 1) * hd)
        parts.append(acc[:, sl] / l_all[:, h:h + 1])          # exact divide
    return jnp.concatenate(parts, axis=-1)


# ---------------------------------------------------------------------------
# Kernel 1: attention + residual + LayerNorm, single key tile (plain softmax)
# ---------------------------------------------------------------------------

def _attn_ln_single_kernel(*refs, num_heads, scale, use_pe, add_residual, eps, cd):
    if use_pe:
        (q_ref, qpe_ref, k_ref, kpe_ref,
         wq, bq, wk, bk, wv, bv, wo, bo, g, bt, o_ref) = refs
    else:
        (q_ref, k_ref, wq, bq, wk, bk, wv, bv, wo, bo, g, bt, o_ref) = refs
        qpe_ref = kpe_ref = None

    q_base = q_ref[0]
    q_in = q_base + qpe_ref[0] if use_pe else q_base
    k_base = k_ref[0]
    k_in = k_base + kpe_ref[0] if use_pe else k_base

    qp = jnp.dot(q_in.astype(cd), wq[...], preferred_element_type=jnp.float32) + bq[...]
    kp = jnp.dot(k_in.astype(cd), wk[...], preferred_element_type=jnp.float32) + bk[...]
    vp = jnp.dot(k_base.astype(cd), wv[...], preferred_element_type=jnp.float32) + bv[...]

    attn = _mha_single(qp, kp, vp, num_heads, scale, cd)
    out = jnp.dot(attn.astype(cd), wo[...], preferred_element_type=jnp.float32) + bo[...]
    if add_residual:
        out = out + q_base
    o_ref[0] = _layernorm(out, g[...], bt[...], eps).astype(o_ref.dtype)


# ---------------------------------------------------------------------------
# Kernel 2: attention + residual + LayerNorm, key axis tiled (online softmax)
# ---------------------------------------------------------------------------

def _attn_ln_flash_kernel(*refs, num_heads, scale, use_pe, add_residual, eps, cd):
    if use_pe:
        (q_ref, qpe_ref, k_ref, kpe_ref,
         wq, bq, wk, bk, wv, bv, wo, bo, g, bt,
         o_ref, qp_sc, acc_sc, m_sc, l_sc) = refs
    else:
        (q_ref, k_ref, wq, bq, wk, bk, wv, bv, wo, bo, g, bt,
         o_ref, qp_sc, acc_sc, m_sc, l_sc) = refs
        qpe_ref = kpe_ref = None

    ki = pl.program_id(2)
    nk = pl.num_programs(2)

    @pl.when(ki == 0)
    def _init():
        q_in = q_ref[0]
        if use_pe:
            q_in = q_in + qpe_ref[0]
        qp_sc[...] = (jnp.dot(q_in.astype(cd), wq[...],
                              preferred_element_type=jnp.float32) + bq[...])
        m_sc[...] = jnp.full(m_sc.shape, -jnp.inf, m_sc.dtype)
        l_sc[...] = jnp.zeros(l_sc.shape, l_sc.dtype)
        acc_sc[...] = jnp.zeros(acc_sc.shape, acc_sc.dtype)

    k_base = k_ref[0]
    k_in = k_base + kpe_ref[0] if use_pe else k_base
    kp = jnp.dot(k_in.astype(cd), wk[...], preferred_element_type=jnp.float32) + bk[...]
    vp = jnp.dot(k_base.astype(cd), wv[...], preferred_element_type=jnp.float32) + bv[...]
    _flash_update(qp_sc, kp, vp, acc_sc, m_sc, l_sc, num_heads, scale, cd)

    @pl.when(ki == nk - 1)
    def _epilogue():
        attn = _flash_finalize(acc_sc, l_sc, num_heads)
        out = jnp.dot(attn.astype(cd), wo[...],
                      preferred_element_type=jnp.float32) + bo[...]
        if add_residual:
            out = out + q_ref[0]
        o_ref[0] = _layernorm(out, g[...], bt[...], eps).astype(o_ref.dtype)


def fused_attention_ln(q_base, k_base, attn_p, ln_g, ln_b, num_heads,
                       q_pe=None, k_pe=None, add_residual=True,
                       tq_cap=256, tk_cap=1024, eps=1e-5,
                       compute_dtype=jnp.float32):
    """out = LayerNorm([q_base +] Attn(Q=q_base(+q_pe), K=k_base(+k_pe), V=k_base))."""
    B, Nq, D = q_base.shape
    Nk = k_base.shape[1]
    internal = attn_p["wq"].shape[1]
    hd = internal // num_heads
    scale = 1.0 / math.sqrt(hd)
    use_pe = q_pe is not None
    cd = compute_dtype

    tq = _pick_tile(Nq, tq_cap)
    tk = _pick_tile(Nk, tk_cap)
    single = (tk == Nk)

    def cw(w):
        return w.astype(cd)

    weights = [cw(attn_p["wq"]), attn_p["bq"], cw(attn_p["wk"]), attn_p["bk"],
               cw(attn_p["wv"]), attn_p["bv"], cw(attn_p["wo"]), attn_p["bo"],
               ln_g, ln_b]

    flops = 2 * B * internal * (2 * Nq * D + 2 * Nk * D + 2 * Nq * Nk)
    transcendentals = B * Nq * Nk
    bytes_accessed = 4 * (2 * B * Nq * D + B * Nk * D
                          + (B * (Nq + Nk) * D if use_pe else 0)
                          + 4 * D * internal + 3 * internal + 3 * D)

    if single:
        grid = (B, Nq // tq)
        tok_q = pl.BlockSpec((1, tq, D), lambda b, qi: (b, qi, 0))
        tok_k = pl.BlockSpec((1, Nk, D), lambda b, qi: (b, 0, 0))

        def whole(a):
            zeros = (0,) * a.ndim
            return pl.BlockSpec(a.shape, lambda b, qi: zeros)

        out_spec = pl.BlockSpec((1, tq, D), lambda b, qi: (b, qi, 0))
        kernel = partial(_attn_ln_single_kernel, num_heads=num_heads, scale=scale,
                         use_pe=use_pe, add_residual=add_residual, eps=eps, cd=cd)
        scratch = []
        dims = ("parallel", "parallel")
    else:
        grid = (B, Nq // tq, Nk // tk)
        tok_q = pl.BlockSpec((1, tq, D), lambda b, qi, ki: (b, qi, 0))
        tok_k = pl.BlockSpec((1, tk, D), lambda b, qi, ki: (b, ki, 0))

        def whole(a):
            zeros = (0,) * a.ndim
            return pl.BlockSpec(a.shape, lambda b, qi, ki: zeros)

        out_spec = pl.BlockSpec((1, tq, D), lambda b, qi, ki: (b, qi, 0))
        kernel = partial(_attn_ln_flash_kernel, num_heads=num_heads, scale=scale,
                         use_pe=use_pe, add_residual=add_residual, eps=eps, cd=cd)
        scratch = [
            pltpu.VMEM((tq, internal), jnp.float32),   # projected Q (lane-dense)
            pltpu.VMEM((tq, internal), jnp.float32),   # online-softmax accumulator
            pltpu.VMEM((tq, num_heads), jnp.float32),  # running max per head
            pltpu.VMEM((tq, num_heads), jnp.float32),  # running sum per head
        ]
        dims = ("parallel", "parallel", "arbitrary")

    inputs = ([q_base] + ([q_pe] if use_pe else [])
              + [k_base] + ([k_pe] if use_pe else []) + weights)
    in_specs = ([tok_q] + ([tok_q] if use_pe else [])
                + [tok_k] + ([tok_k] if use_pe else [])
                + [whole(a) for a in weights])

    return pl.pallas_call(
        kernel,
        out_shape=jax.ShapeDtypeStruct((B, Nq, D), q_base.dtype),
        grid=grid,
        in_specs=in_specs,
        out_specs=out_spec,
        scratch_shapes=scratch,
        compiler_params=pltpu.CompilerParams(
            dimension_semantics=dims, vmem_limit_bytes=_VMEM_LIMIT),
        cost_estimate=pl.CostEstimate(flops=flops, transcendentals=transcendentals,
                                      bytes_accessed=bytes_accessed),
    )(*inputs)


# ---------------------------------------------------------------------------
# Kernel 3: fused token path of a TwoWayAttentionBlock
#   (self-attn + norm1) -> (token->image cross-attn + norm2) -> (MLP + norm3)
#   One pallas_call; grid = (batch, image-key tiles).
# ---------------------------------------------------------------------------

def _token_path_kernel(*refs, num_heads, scale1, scale2, skip_first_pe, eps, cd):
    (q_ref, qpe_ref, k_ref, kpe_ref,
     wq1, bq1, wk1, bk1, wv1, bv1, wo1, bo1, g1, be1,
     wq2, bq2, wk2, bk2, wv2, bv2, wo2, bo2, g2, be2,
     mw1, mb1, mw2, mb2, g3, be3,
     o_ref, qwork_sc, qp_sc, acc_sc, m_sc, l_sc) = refs

    ki = pl.program_id(1)
    nk = pl.num_programs(1)

    @pl.when(ki == 0)
    def _init():
        q0 = q_ref[0]
        qpe = qpe_ref[0]
        # (1) self-attention over the sparse tokens (single tile) + residual + norm1
        a_in = q0 if skip_first_pe else q0 + qpe
        qp = jnp.dot(a_in.astype(cd), wq1[...],
                     preferred_element_type=jnp.float32) + bq1[...]
        kp = jnp.dot(a_in.astype(cd), wk1[...],
                     preferred_element_type=jnp.float32) + bk1[...]
        vp = jnp.dot(q0.astype(cd), wv1[...],
                     preferred_element_type=jnp.float32) + bv1[...]
        attn = _mha_single(qp, kp, vp, num_heads, scale1, cd)
        attn_out = jnp.dot(attn.astype(cd), wo1[...],
                           preferred_element_type=jnp.float32) + bo1[...]
        x = attn_out if skip_first_pe else q0 + attn_out
        qwork = _layernorm(x, g1[...], be1[...], eps)
        qwork_sc[...] = qwork
        # (2) token->image cross-attention: project Q once, reset flash state
        qp_sc[...] = (jnp.dot((qwork + qpe).astype(cd), wq2[...],
                              preferred_element_type=jnp.float32) + bq2[...])
        m_sc[...] = jnp.full(m_sc.shape, -jnp.inf, m_sc.dtype)
        l_sc[...] = jnp.zeros(l_sc.shape, l_sc.dtype)
        acc_sc[...] = jnp.zeros(acc_sc.shape, acc_sc.dtype)

    # (2) online-softmax update over the current image key tile
    k_base = k_ref[0]
    k_in = k_base + kpe_ref[0]
    kp = jnp.dot(k_in.astype(cd), wk2[...],
                 preferred_element_type=jnp.float32) + bk2[...]
    vp = jnp.dot(k_base.astype(cd), wv2[...],
                 preferred_element_type=jnp.float32) + bv2[...]
    _flash_update(qp_sc, kp, vp, acc_sc, m_sc, l_sc, num_heads, scale2, cd)

    @pl.when(ki == nk - 1)
    def _epilogue():
        # finish (2): output projection + residual + norm2
        attn = _flash_finalize(acc_sc, l_sc, num_heads)
        attn_out = jnp.dot(attn.astype(cd), wo2[...],
                           preferred_element_type=jnp.float32) + bo2[...]
        q2 = _layernorm(qwork_sc[...] + attn_out, g2[...], be2[...], eps)
        # (3) MLP + residual + norm3
        h = jnp.dot(q2.astype(cd), mw1[...],
                    preferred_element_type=jnp.float32) + mb1[...]
        h = jnp.maximum(h, 0.0)
        y = jnp.dot(h.astype(cd), mw2[...],
                    preferred_element_type=jnp.float32) + mb2[...]
        o_ref[0] = _layernorm(q2 + y, g3[...], be3[...], eps).astype(o_ref.dtype)


def fused_token_path(queries, keys, query_pe, key_pe, p, num_heads,
                     skip_first_layer_pe, tk_cap=1024, eps=1e-5,
                     compute_dtype=jnp.float32):
    B, Nq, D = queries.shape
    Nk = keys.shape[1]
    sa, ca = p["self_attn"], p["cross_t2i"]
    internal1 = sa["wq"].shape[1]
    internal2 = ca["wq"].shape[1]
    mlp_dim = p["mlp_w1"].shape[1]
    scale1 = 1.0 / math.sqrt(internal1 // num_heads)
    scale2 = 1.0 / math.sqrt(internal2 // num_heads)
    cd = compute_dtype

    tk = _pick_tile(Nk, tk_cap)
    grid = (B, Nk // tk)

    def cw(w):
        return w.astype(cd)

    weights = [cw(sa["wq"]), sa["bq"], cw(sa["wk"]), sa["bk"],
               cw(sa["wv"]), sa["bv"], cw(sa["wo"]), sa["bo"],
               p["ln1_g"], p["ln1_b"],
               cw(ca["wq"]), ca["bq"], cw(ca["wk"]), ca["bk"],
               cw(ca["wv"]), ca["bv"], cw(ca["wo"]), ca["bo"],
               p["ln2_g"], p["ln2_b"],
               cw(p["mlp_w1"]), p["mlp_b1"], cw(p["mlp_w2"]), p["mlp_b2"],
               p["ln3_g"], p["ln3_b"]]

    tok = pl.BlockSpec((1, Nq, D), lambda b, ki: (b, 0, 0))
    img = pl.BlockSpec((1, tk, D), lambda b, ki: (b, ki, 0))

    def whole(a):
        zeros = (0,) * a.ndim
        return pl.BlockSpec(a.shape, lambda b, ki: zeros)

    inputs = [queries, query_pe, keys, key_pe] + weights
    in_specs = [tok, tok, img, img] + [whole(a) for a in weights]
    out_spec = pl.BlockSpec((1, Nq, D), lambda b, ki: (b, 0, 0))

    flops = 2 * B * (3 * Nq * D * internal1 + 2 * Nq * Nq * internal1
                     + Nq * internal1 * D
                     + Nq * D * internal2 + 2 * Nk * D * internal2
                     + 2 * Nq * Nk * internal2 + Nq * internal2 * D
                     + 2 * Nq * D * mlp_dim)
    transcendentals = B * Nq * (Nq + Nk)
    bytes_accessed = 4 * (3 * B * Nq * D + 2 * B * Nk * D
                          + 4 * D * internal1 + 4 * D * internal2
                          + 2 * D * mlp_dim + 12 * D)

    kernel = partial(_token_path_kernel, num_heads=num_heads, scale1=scale1,
                     scale2=scale2, skip_first_pe=skip_first_layer_pe,
                     eps=eps, cd=cd)

    return pl.pallas_call(
        kernel,
        out_shape=jax.ShapeDtypeStruct((B, Nq, D), queries.dtype),
        grid=grid,
        in_specs=in_specs,
        out_specs=out_spec,
        scratch_shapes=[
            pltpu.VMEM((Nq, D), jnp.float32),          # tokens after self-attn+norm1
            pltpu.VMEM((Nq, internal2), jnp.float32),  # projected t2i Q (lane-dense)
            pltpu.VMEM((Nq, internal2), jnp.float32),  # online-softmax accumulator
            pltpu.VMEM((Nq, num_heads), jnp.float32),  # running max
            pltpu.VMEM((Nq, num_heads), jnp.float32),  # running sum
        ],
        compiler_params=pltpu.CompilerParams(
            dimension_semantics=("parallel", "arbitrary"),
            vmem_limit_bytes=_VMEM_LIMIT),
        cost_estimate=pl.CostEstimate(flops=flops, transcendentals=transcendentals,
                                      bytes_accessed=bytes_accessed),
    )(*inputs)


# ---------------------------------------------------------------------------
# TwoWayAttentionBlock / TwoWayTransformer forward
# ---------------------------------------------------------------------------

def two_way_attention_block(queries, keys, query_pe, key_pe, p, num_heads,
                            skip_first_layer_pe=False, tq_cap=256, tk_cap=1024,
                            compute_dtype=jnp.float32):
    # (1)+(2)+(3): whole sparse-token path in a single fused pallas_call
    queries = fused_token_path(queries, keys, query_pe, key_pe, p, num_heads,
                               skip_first_layer_pe, tk_cap=tk_cap,
                               compute_dtype=compute_dtype)
    # (4) cross attention: image -> tokens (+ residual + norm4).  The key axis is
    #     the (small) token axis, so this hits the single-key-tile kernel with a
    #     >= B * (Nk/tq)-wide parallel grid (good for dual-TC chips).
    keys = fused_attention_ln(keys, queries, p["cross_i2t"],
                              p["ln4_g"], p["ln4_b"], num_heads,
                              q_pe=key_pe, k_pe=query_pe, add_residual=True,
                              tq_cap=tq_cap, tk_cap=tk_cap,
                              compute_dtype=compute_dtype)
    return queries, keys


def two_way_transformer(image_embedding, image_pe, point_embedding, params,
                        num_heads, tq_cap=256, tk_cap=1024,
                        compute_dtype=jnp.float32):
    B, C, H, W = image_embedding.shape
    # flatten(2).permute(0,2,1): (B, C, H, W) -> (B, HW, C)  [plain-JAX layout glue]
    keys = image_embedding.reshape(B, C, H * W).transpose(0, 2, 1)
    key_pe = image_pe.reshape(B, C, H * W).transpose(0, 2, 1)
    queries = point_embedding
    query_pe = point_embedding

    for li, layer_p in enumerate(params["layers"]):
        queries, keys = two_way_attention_block(queries, keys, query_pe, key_pe,
                                                layer_p, num_heads,
                                                skip_first_layer_pe=(li == 0),
                                                tq_cap=tq_cap, tk_cap=tk_cap,
                                                compute_dtype=compute_dtype)

    # final attention: tokens -> image (+ residual + final LayerNorm), fused
    queries = fused_attention_ln(queries, keys, params["final_attn"],
                                 params["final_ln_g"], params["final_ln_b"],
                                 num_heads, q_pe=query_pe, k_pe=key_pe,
                                 add_residual=True, tq_cap=tq_cap, tk_cap=tk_cap,
                                 compute_dtype=compute_dtype)
    return queries, keys


# ---------------------------------------------------------------------------
# Deterministic parameter initialization (synthetic weights)
# ---------------------------------------------------------------------------

def init_params(key, depth, embedding_dim, num_heads, mlp_dim, downsample_rate):
    def lin(k, din, dout, scale=0.05):
        kw, kb = jax.random.split(k)
        return (jax.random.normal(kw, (din, dout), jnp.float32) * scale,
                jax.random.normal(kb, (1, dout), jnp.float32) * scale)

    def attn_params(k, internal):
        ks = jax.random.split(k, 4)
        wq, bq = lin(ks[0], embedding_dim, internal)
        wk, bk = lin(ks[1], embedding_dim, internal)
        wv, bv = lin(ks[2], embedding_dim, internal)
        wo, bo = lin(ks[3], internal, embedding_dim)
        return dict(wq=wq, bq=bq, wk=wk, bk=bk, wv=wv, bv=bv, wo=wo, bo=bo)

    internal_ds = embedding_dim // downsample_rate
    keys = jax.random.split(key, depth + 1)
    layers = []
    for d in range(depth):
        ks = jax.random.split(keys[d], 5)
        lp = {
            "self_attn": attn_params(ks[0], embedding_dim),
            "cross_t2i": attn_params(ks[1], internal_ds),
            "cross_i2t": attn_params(ks[2], internal_ds),
        }
        lp["mlp_w1"], lp["mlp_b1"] = lin(ks[3], embedding_dim, mlp_dim)
        lp["mlp_w2"], lp["mlp_b2"] = lin(ks[4], mlp_dim, embedding_dim)
        for name in ("ln1", "ln2", "ln3", "ln4"):
            lp[f"{name}_g"] = jnp.ones((1, embedding_dim), jnp.float32)
            lp[f"{name}_b"] = jnp.zeros((1, embedding_dim), jnp.float32)
        layers.append(lp)

    return {
        "layers": layers,
        "final_attn": attn_params(keys[depth], internal_ds),
        "final_ln_g": jnp.ones((1, embedding_dim), jnp.float32),
        "final_ln_b": jnp.zeros((1, embedding_dim), jnp.float32),
    }


# ---------------------------------------------------------------------------
# Pure-JAX reference (for correctness checking)
# ---------------------------------------------------------------------------

def _ref_attn(q, k, v, p, num_heads):
    B, Nq, D = q.shape
    Nk = k.shape[1]
    internal = p["wq"].shape[1]
    hd = internal // num_heads
    qp = q @ p["wq"] + p["bq"][0]
    kp = k @ p["wk"] + p["bk"][0]
    vp = v @ p["wv"] + p["bv"][0]
    qh = qp.reshape(B, Nq, num_heads, hd).transpose(0, 2, 1, 3)
    kh = kp.reshape(B, Nk, num_heads, hd).transpose(0, 2, 1, 3)
    vh = vp.reshape(B, Nk, num_heads, hd).transpose(0, 2, 1, 3)
    s = jnp.einsum("bhqd,bhkd->bhqk", qh, kh) / math.sqrt(hd)
    a = jax.nn.softmax(s, axis=-1)
    o = jnp.einsum("bhqk,bhkd->bhqd", a, vh).transpose(0, 2, 1, 3)
    o = o.reshape(B, Nq, internal)
    return o @ p["wo"] + p["bo"][0]


def _ref_ln(x, g, b, eps=1e-5):
    mean = x.mean(-1, keepdims=True)
    var = ((x - mean) ** 2).mean(-1, keepdims=True)
    return (x - mean) / jnp.sqrt(var + eps) * g[0] + b[0]


def _ref_block(queries, keys, query_pe, key_pe, p, num_heads, skip_first_layer_pe=False):
    if skip_first_layer_pe:
        queries = _ref_attn(queries, queries, queries, p["self_attn"], num_heads)
    else:
        q = queries + query_pe
        queries = queries + _ref_attn(q, q, queries, p["self_attn"], num_heads)
    queries = _ref_ln(queries, p["ln1_g"], p["ln1_b"])
    q = queries + query_pe
    k = keys + key_pe
    queries = queries + _ref_attn(q, k, keys, p["cross_t2i"], num_heads)
    queries = _ref_ln(queries, p["ln2_g"], p["ln2_b"])
    h = jnp.maximum(queries @ p["mlp_w1"] + p["mlp_b1"][0], 0.0)
    queries = queries + (h @ p["mlp_w2"] + p["mlp_b2"][0])
    queries = _ref_ln(queries, p["ln3_g"], p["ln3_b"])
    q = queries + query_pe
    k = keys + key_pe
    keys = keys + _ref_attn(k, q, queries, p["cross_i2t"], num_heads)
    keys = _ref_ln(keys, p["ln4_g"], p["ln4_b"])
    return queries, keys


def _ref_transformer(image_embedding, image_pe, point_embedding, params, num_heads):
    B, C, H, W = image_embedding.shape
    keys = image_embedding.reshape(B, C, H * W).transpose(0, 2, 1)
    key_pe = image_pe.reshape(B, C, H * W).transpose(0, 2, 1)
    queries = point_embedding
    query_pe = point_embedding
    for li, lp in enumerate(params["layers"]):
        queries, keys = _ref_block(queries, keys, query_pe, key_pe, lp, num_heads,
                                   skip_first_layer_pe=(li == 0))
    q = queries + query_pe
    k = keys + key_pe
    queries = queries + _ref_attn(q, k, keys, params["final_attn"], num_heads)
    queries = _ref_ln(queries, params["final_ln_g"], params["final_ln_b"])
    return queries, keys


# ---------------------------------------------------------------------------

if __name__ == "__main__":
    depth, embedding_dim, num_heads, mlp_dim, downsample_rate = 2, 32, 4, 64, 2
    B, N_points, Hs, Ws = 2, 8, 8, 8          # 64 dense image tokens, 8 sparse tokens

    root = jax.random.PRNGKey(0)
    kp, kim, kipe, kpt = jax.random.split(root, 4)
    params = init_params(kp, depth, embedding_dim, num_heads, mlp_dim, downsample_rate)

    image_embedding = jax.random.normal(kim, (B, embedding_dim, Hs, Ws), jnp.float32)
    image_pe = jax.random.normal(kipe, (B, embedding_dim, Hs, Ws), jnp.float32)
    point_embedding = jax.random.normal(kpt, (B, N_points, embedding_dim), jnp.float32)

    # Small tile caps so the 64-token image axis exercises both the multi-tile
    # online-softmax path (token->image, final) and q-tiling (image->token),
    # while self-attn / image->token hit the single-key-tile specialization.
    # Production would use tq_cap=256, tk_cap=1024 (defaults) and, on v6e/v7x,
    # compute_dtype=jnp.bfloat16.
    fwd = jax.jit(partial(two_way_transformer, num_heads=num_heads,
                          tq_cap=32, tk_cap=32, compute_dtype=jnp.float32))
    out_q, out_k = fwd(image_embedding, image_pe, point_embedding, params)
    jax.block_until_ready((out_q, out_k))

    ref_q, ref_k = _ref_transformer(image_embedding, image_pe, point_embedding,
                                    params, num_heads)
    assert out_q.shape == (B, N_points, embedding_dim)
    assert out_k.shape == (B, Hs * Ws, embedding_dim)
    assert jnp.allclose(out_q, ref_q, atol=2e-3, rtol=2e-3), "queries mismatch vs reference"
    assert jnp.allclose(out_k, ref_k, atol=2e-3, rtol=2e-3), "keys mismatch vs reference"

    print("KERNEL_OK")
</pallas_src>

<mosaic_0001>
module attributes {stable_mosaic.version = 11 : i64} {
  func.func @_token_path_kernel(%arg0: i32, %arg1: i32, %arg2: memref<1x8x32xf32, #tpu.memory_space<vmem>>, %arg3: memref<1x8x32xf32, #tpu.memory_space<vmem>>, %arg4: memref<1x32x32xf32, #tpu.memory_space<vmem>>, %arg5: memref<1x32x32xf32, #tpu.memory_space<vmem>>, %arg6: memref<32x32xf32, #tpu.memory_space<vmem>>, %arg7: memref<1x32xf32, #tpu.memory_space<vmem>>, %arg8: memref<32x32xf32, #tpu.memory_space<vmem>>, %arg9: memref<1x32xf32, #tpu.memory_space<vmem>>, %arg10: memref<32x32xf32, #tpu.memory_space<vmem>>, %arg11: memref<1x32xf32, #tpu.memory_space<vmem>>, %arg12: memref<32x32xf32, #tpu.memory_space<vmem>>, %arg13: memref<1x32xf32, #tpu.memory_space<vmem>>, %arg14: memref<1x32xf32, #tpu.memory_space<vmem>>, %arg15: memref<1x32xf32, #tpu.memory_space<vmem>>, %arg16: memref<32x16xf32, #tpu.memory_space<vmem>>, %arg17: memref<1x16xf32, #tpu.memory_space<vmem>>, %arg18: memref<32x16xf32, #tpu.memory_space<vmem>>, %arg19: memref<1x16xf32, #tpu.memory_space<vmem>>, %arg20: memref<32x16xf32, #tpu.memory_space<vmem>>, %arg21: memref<1x16xf32, #tpu.memory_space<vmem>>, %arg22: memref<16x32xf32, #tpu.memory_space<vmem>>, %arg23: memref<1x32xf32, #tpu.memory_space<vmem>>, %arg24: memref<1x32xf32, #tpu.memory_space<vmem>>, %arg25: memref<1x32xf32, #tpu.memory_space<vmem>>, %arg26: memref<32x64xf32, #tpu.memory_space<vmem>>, %arg27: memref<1x64xf32, #tpu.memory_space<vmem>>, %arg28: memref<64x32xf32, #tpu.memory_space<vmem>>, %arg29: memref<1x32xf32, #tpu.memory_space<vmem>>, %arg30: memref<1x32xf32, #tpu.memory_space<vmem>>, %arg31: memref<1x32xf32, #tpu.memory_space<vmem>>, %arg32: memref<1x8x32xf32, #tpu.memory_space<vmem>>, %arg33: memref<8x32xf32, #tpu.memory_space<vmem>>, %arg34: memref<8x16xf32, #tpu.memory_space<vmem>>, %arg35: memref<8x16xf32, #tpu.memory_space<vmem>>, %arg36: memref<8x4xf32, #tpu.memory_space<vmem>>, %arg37: memref<8x4xf32, #tpu.memory_space<vmem>>) attributes {dimension_semantics = [#tpu.dimension_semantics<parallel>, #tpu.dimension_semantics<arbitrary>], iteration_bounds = array<i64: 2, 2>, scalar_prefetch = 0 : i64, scratch_operands = 5 : i64, tpu.core_type = #tpu.core_type<tc>, window_params = [{transform_indices = @transform_0, window_bounds = array<i64: 1, 8, 32>}, {transform_indices = @transform_1, window_bounds = array<i64: 1, 8, 32>}, {transform_indices = @transform_2, window_bounds = array<i64: 1, 32, 32>}, {transform_indices = @transform_3, window_bounds = array<i64: 1, 32, 32>}, {pipeline_mode = #tpu.pipeline_mode<synchronous>, transform_indices = @transform_4, window_bounds = array<i64: 32, 32>}, {pipeline_mode = #tpu.pipeline_mode<synchronous>, transform_indices = @transform_5, window_bounds = array<i64: 1, 32>}, {pipeline_mode = #tpu.pipeline_mode<synchronous>, transform_indices = @transform_6, window_bounds = array<i64: 32, 32>}, {pipeline_mode = #tpu.pipeline_mode<synchronous>, transform_indices = @transform_7, window_bounds = array<i64: 1, 32>}, {pipeline_mode = #tpu.pipeline_mode<synchronous>, transform_indices = @transform_8, window_bounds = array<i64: 32, 32>}, {pipeline_mode = #tpu.pipeline_mode<synchronous>, transform_indices = @transform_9, window_bounds = array<i64: 1, 32>}, {pipeline_mode = #tpu.pipeline_mode<synchronous>, transform_indices = @transform_10, window_bounds = array<i64: 32, 32>}, {pipeline_mode = #tpu.pipeline_mode<synchronous>, transform_indices = @transform_11, window_bounds = array<i64: 1, 32>}, {pipeline_mode = #tpu.pipeline_mode<synchronous>, transform_indices = @transform_12, window_bounds = array<i64: 1, 32>}, {pipeline_mode = #tpu.pipeline_mode<synchronous>, transform_indices = @transform_13, window_bounds = array<i64: 1, 32>}, {pipeline_mode = #tpu.pipeline_mode<synchronous>, transform_indices = @transform_14, window_bounds = array<i64: 32, 16>}, {pipeline_mode = #tpu.pipeline_mode<synchronous>, transform_indices = @transform_15, window_bounds = array<i64: 1, 16>}, {pipeline_mode = #tpu.pipeline_mode<synchronous>, transform_indices = @transform_16, window_bounds = array<i64: 32, 16>}, {pipeline_mode = #tpu.pipeline_mode<synchronous>, transform_indices = @transform_17, window_bounds = array<i64: 1, 16>}, {pipeline_mode = #tpu.pipeline_mode<synchronous>, transform_indices = @transform_18, window_bounds = array<i64: 32, 16>}, {pipeline_mode = #tpu.pipeline_mode<synchronous>, transform_indices = @transform_19, window_bounds = array<i64: 1, 16>}, {pipeline_mode = #tpu.pipeline_mode<synchronous>, transform_indices = @transform_20, window_bounds = array<i64: 16, 32>}, {pipeline_mode = #tpu.pipeline_mode<synchronous>, transform_indices = @transform_21, window_bounds = array<i64: 1, 32>}, {pipeline_mode = #tpu.pipeline_mode<synchronous>, transform_indices = @transform_22, window_bounds = array<i64: 1, 32>}, {pipeline_mode = #tpu.pipeline_mode<synchronous>, transform_indices = @transform_23, window_bounds = array<i64: 1, 32>}, {pipeline_mode = #tpu.pipeline_mode<synchronous>, transform_indices = @transform_24, window_bounds = array<i64: 32, 64>}, {pipeline_mode = #tpu.pipeline_mode<synchronous>, transform_indices = @transform_25, window_bounds = array<i64: 1, 64>}, {pipeline_mode = #tpu.pipeline_mode<synchronous>, transform_indices = @transform_26, window_bounds = array<i64: 64, 32>}, {pipeline_mode = #tpu.pipeline_mode<synchronous>, transform_indices = @transform_27, window_bounds = array<i64: 1, 32>}, {pipeline_mode = #tpu.pipeline_mode<synchronous>, transform_indices = @transform_28, window_bounds = array<i64: 1, 32>}, {pipeline_mode = #tpu.pipeline_mode<synchronous>, transform_indices = @transform_29, window_bounds = array<i64: 1, 32>}, {transform_indices = @transform_30, window_bounds = array<i64: 1, 8, 32>}]} {
    %c0_i32 = arith.constant 0 : i32
    %0 = arith.cmpi eq, %arg1, %c0_i32 : i32
    %1 = arith.extui %0 : i1 to i32
    %c0_i32_0 = arith.constant 0 : i32
    %2 = arith.cmpi ne, %1, %c0_i32_0 : i32
    scf.if %2 {
      %c0_50 = arith.constant 0 : index
      %c0_51 = arith.constant 0 : index
      %c0_52 = arith.constant 0 : index
      %131 = vector.load %arg2[%c0_50, %c0_51, %c0_52] : memref<1x8x32xf32, #tpu.memory_space<vmem>>, vector<1x8x32xf32>
      %132 = vector.shape_cast %131 : vector<1x8x32xf32> to vector<8x32xf32>
      %c0_53 = arith.constant 0 : index
      %c0_54 = arith.constant 0 : index
      %c0_55 = arith.constant 0 : index
      %133 = vector.load %arg3[%c0_53, %c0_54, %c0_55] : memref<1x8x32xf32, #tpu.memory_space<vmem>>, vector<1x8x32xf32>
      %134 = vector.shape_cast %133 : vector<1x8x32xf32> to vector<8x32xf32>
      %c0_56 = arith.constant 0 : index
      %c0_57 = arith.constant 0 : index
      %135 = vector.load %arg6[%c0_56, %c0_57] : memref<32x32xf32, #tpu.memory_space<vmem>>, vector<32x32xf32>
      %cst_58 = arith.constant dense<0.000000e+00> : vector<8x32xf32>
      %136 = tpu.matmul %132, %135, %cst_58 {dimension_numbers = #tpu.dot_dimension_numbers<[1], [0], [0], [1], [0, 0, 1, 1], [], []>} : vector<8x32xf32>, vector<32x32xf32>, vector<8x32xf32> -> vector<8x32xf32>
      %c0_59 = arith.constant 0 : index
      %c0_60 = arith.constant 0 : index
      %137 = vector.load %arg7[%c0_59, %c0_60] : memref<1x32xf32, #tpu.memory_space<vmem>>, vector<1x32xf32>
      %138 = vector.broadcast %137 : vector<1x32xf32> to vector<8x32xf32>
      %139 = arith.addf %136, %138 : vector<8x32xf32>
      %c0_61 = arith.constant 0 : index
      %c0_62 = arith.constant 0 : index
      %140 = vector.load %arg8[%c0_61, %c0_62] : memref<32x32xf32, #tpu.memory_space<vmem>>, vector<32x32xf32>
      %cst_63 = arith.constant dense<0.000000e+00> : vector<8x32xf32>
      %141 = tpu.matmul %132, %140, %cst_63 {dimension_numbers = #tpu.dot_dimension_numbers<[1], [0], [0], [1], [0, 0, 1, 1], [], []>} : vector<8x32xf32>, vector<32x32xf32>, vector<8x32xf32> -> vector<8x32xf32>
      %c0_64 = arith.constant 0 : index
      %c0_65 = arith.constant 0 : index
      %142 = vector.load %arg9[%c0_64, %c0_65] : memref<1x32xf32, #tpu.memory_space<vmem>>, vector<1x32xf32>
      %143 = vector.broadcast %142 : vector<1x32xf32> to vector<8x32xf32>
      %144 = arith.addf %141, %143 : vector<8x32xf32>
      %c0_66 = arith.constant 0 : index
      %c0_67 = arith.constant 0 : index
      %145 = vector.load %arg10[%c0_66, %c0_67] : memref<32x32xf32, #tpu.memory_space<vmem>>, vector<32x32xf32>
      %cst_68 = arith.constant dense<0.000000e+00> : vector<8x32xf32>
      %146 = tpu.matmul %132, %145, %cst_68 {dimension_numbers = #tpu.dot_dimension_numbers<[1], [0], [0], [1], [0, 0, 1, 1], [], []>} : vector<8x32xf32>, vector<32x32xf32>, vector<8x32xf32> -> vector<8x32xf32>
      %c0_69 = arith.constant 0 : index
      %c0_70 = arith.constant 0 : index
      %147 = vector.load %arg11[%c0_69, %c0_70] : memref<1x32xf32, #tpu.memory_space<vmem>>, vector<1x32xf32>
      %148 = vector.broadcast %147 : vector<1x32xf32> to vector<8x32xf32>
      %149 = arith.addf %146, %148 : vector<8x32xf32>
      %150 = vector.extract_strided_slice %139 {offsets = [0, 0], sizes = [8, 8], strides = [1, 1]} : vector<8x32xf32> to vector<8x8xf32>
      %151 = vector.extract_strided_slice %144 {offsets = [0, 0], sizes = [8, 8], strides = [1, 1]} : vector<8x32xf32> to vector<8x8xf32>
      %cst_71 = arith.constant dense<0.000000e+00> : vector<8x8xf32>
      %152 = tpu.matmul %150, %151, %cst_71 {dimension_numbers = #tpu.dot_dimension_numbers<[1], [1], [0], [0], [0, 0, 1, 0], [], []>} : vector<8x8xf32>, vector<8x8xf32>, vector<8x8xf32> -> vector<8x8xf32>
      %cst_72 = arith.constant 0.353553385 : f32
      %153 = vector.broadcast %cst_72 : f32 to vector<8x8xf32>
      %154 = arith.mulf %152, %153 : vector<8x8xf32>
      %cst_73 = arith.constant dense<0xFF800000> : vector<8xf32>
      %155 = vector.multi_reduction <maximumf>, %154, %cst_73 [1] : vector<8x8xf32> to vector<8xf32>
      %156 = vector.shape_cast %155 : vector<8xf32> to vector<8x1xf32>
      %157 = vector.broadcast %156 : vector<8x1xf32> to vector<8x8xf32>
      %158 = arith.subf %154, %157 : vector<8x8xf32>
      %159 = math.exp %158 : vector<8x8xf32>
      %cst_74 = arith.constant dense<0.000000e+00> : vector<8xf32>
      %160 = vector.multi_reduction <add>, %159, %cst_74 [1] : vector<8x8xf32> to vector<8xf32>
      %161 = vector.shape_cast %160 : vector<8xf32> to vector<8x1xf32>
      %162 = vector.broadcast %161 : vector<8x1xf32> to vector<8x8xf32>
      %163 = arith.divf %159, %162 : vector<8x8xf32>
      %164 = vector.extract_strided_slice %149 {offsets = [0, 0], sizes = [8, 8], strides = [1, 1]} : vector<8x32xf32> to vector<8x8xf32>
      %cst_75 = arith.constant dense<0.000000e+00> : vector<8x8xf32>
      %165 = tpu.matmul %163, %164, %cst_75 {dimension_numbers = #tpu.dot_dimension_numbers<[1], [0], [0], [1], [0, 0, 1, 1], [], []>} : vector<8x8xf32>, vector<8x8xf32>, vector<8x8xf32> -> vector<8x8xf32>
      %166 = vector.extract_strided_slice %139 {offsets = [0, 8], sizes = [8, 8], strides = [1, 1]} : vector<8x32xf32> to vector<8x8xf32>
      %167 = vector.extract_strided_slice %144 {offsets = [0, 8], sizes = [8, 8], strides = [1, 1]} : vector<8x32xf32> to vector<8x8xf32>
      %cst_76 = arith.constant dense<0.000000e+00> : vector<8x8xf32>
      %168 = tpu.matmul %166, %167, %cst_76 {dimension_numbers = #tpu.dot_dimension_numbers<[1], [1], [0], [0], [0, 0, 1, 0], [], []>} : vector<8x8xf32>, vector<8x8xf32>, vector<8x8xf32> -> vector<8x8xf32>
      %cst_77 = arith.constant 0.353553385 : f32
      %169 = vector.broadcast %cst_77 : f32 to vector<8x8xf32>
      %170 = arith.mulf %168, %169 : vector<8x8xf32>
      %cst_78 = arith.constant dense<0xFF800000> : vector<8xf32>
      %171 = vector.multi_reduction <maximumf>, %170, %cst_78 [1] : vector<8x8xf32> to vector<8xf32>
      %172 = vector.shape_cast %171 : vector<8xf32> to vector<8x1xf32>
      %173 = vector.broadcast %172 : vector<8x1xf32> to vector<8x8xf32>
      %174 = arith.subf %170, %173 : vector<8x8xf32>
      %175 = math.exp %174 : vector<8x8xf32>
      %cst_79 = arith.constant dense<0.000000e+00> : vector<8xf32>
      %176 = vector.multi_reduction <add>, %175, %cst_79 [1] : vector<8x8xf32> to vector<8xf32>
      %177 = vector.shape_cast %176 : vector<8xf32> to vector<8x1xf32>
      %178 = vector.broadcast %177 : vector<8x1xf32> to vector<8x8xf32>
      %179 = arith.divf %175, %178 : vector<8x8xf32>
      %180 = vector.extract_strided_slice %149 {offsets = [0, 8], sizes = [8, 8], strides = [1, 1]} : vector<8x32xf32> to vector<8x8xf32>
      %cst_80 = arith.constant dense<0.000000e+00> : vector<8x8xf32>
      %181 = tpu.matmul %179, %180, %cst_80 {dimension_numbers = #tpu.dot_dimension_numbers<[1], [0], [0], [1], [0, 0, 1, 1], [], []>} : vector<8x8xf32>, vector<8x8xf32>, vector<8x8xf32> -> vector<8x8xf32>
      %182 = vector.extract_strided_slice %139 {offsets = [0, 16], sizes = [8, 8], strides = [1, 1]} : vector<8x32xf32> to vector<8x8xf32>
      %183 = vector.extract_strided_slice %144 {offsets = [0, 16], sizes = [8, 8], strides = [1, 1]} : vector<8x32xf32> to vector<8x8xf32>
      %cst_81 = arith.constant dense<0.000000e+00> : vector<8x8xf32>
      %184 = tpu.matmul %182, %183, %cst_81 {dimension_numbers = #tpu.dot_dimension_numbers<[1], [1], [0], [0], [0, 0, 1, 0], [], []>} : vector<8x8xf32>, vector<8x8xf32>, vector<8x8xf32> -> vector<8x8xf32>
      %cst_82 = arith.constant 0.353553385 : f32
      %185 = vector.broadcast %cst_82 : f32 to vector<8x8xf32>
      %186 = arith.mulf %184, %185 : vector<8x8xf32>
      %cst_83 = arith.constant dense<0xFF800000> : vector<8xf32>
      %187 = vector.multi_reduction <maximumf>, %186, %cst_83 [1] : vector<8x8xf32> to vector<8xf32>
      %188 = vector.shape_cast %187 : vector<8xf32> to vector<8x1xf32>
      %189 = vector.broadcast %188 : vector<8x1xf32> to vector<8x8xf32>
      %190 = arith.subf %186, %189 : vector<8x8xf32>
      %191 = math.exp %190 : vector<8x8xf32>
      %cst_84 = arith.constant dense<0.000000e+00> : vector<8xf32>
      %192 = vector.multi_reduction <add>, %191, %cst_84 [1] : vector<8x8xf32> to vector<8xf32>
      %193 = vector.shape_cast %192 : vector<8xf32> to vector<8x1xf32>
      %194 = vector.broadcast %193 : vector<8x1xf32> to vector<8x8xf32>
      %195 = arith.divf %191, %194 : vector<8x8xf32>
      %196 = vector.extract_strided_slice %149 {offsets = [0, 16], sizes = [8, 8], strides = [1, 1]} : vector<8x32xf32> to vector<8x8xf32>
      %cst_85 = arith.constant dense<0.000000e+00> : vector<8x8xf32>
      %197 = tpu.matmul %195, %196, %cst_85 {dimension_numbers = #tpu.dot_dimension_numbers<[1], [0], [0], [1], [0, 0, 1, 1], [], []>} : vector<8x8xf32>, vector<8x8xf32>, vector<8x8xf32> -> vector<8x8xf32>
      %198 = vector.extract_strided_slice %139 {offsets = [0, 24], sizes = [8, 8], strides = [1, 1]} : vector<8x32xf32> to vector<8x8xf32>
      %199 = vector.extract_strided_slice %144 {offsets = [0, 24], sizes = [8, 8], strides = [1, 1]} : vector<8x32xf32> to vector<8x8xf32>
      %cst_86 = arith.constant dense<0.000000e+00> : vector<8x8xf32>
      %200 = tpu.matmul %198, %199, %cst_86 {dimension_numbers = #tpu.dot_dimension_numbers<[1], [1], [0], [0], [0, 0, 1, 0], [], []>} : vector<8x8xf32>, vector<8x8xf32>, vector<8x8xf32> -> vector<8x8xf32>
      %cst_87 = arith.constant 0.353553385 : f32
      %201 = vector.broadcast %cst_87 : f32 to vector<8x8xf32>
      %202 = arith.mulf %200, %201 : vector<8x8xf32>
      %cst_88 = arith.constant dense<0xFF800000> : vector<8xf32>
      %203 = vector.multi_reduction <maximumf>, %202, %cst_88 [1] : vector<8x8xf32> to vector<8xf32>
      %204 = vector.shape_cast %203 : vector<8xf32> to vector<8x1xf32>
      %205 = vector.broadcast %204 : vector<8x1xf32> to vector<8x8xf32>
      %206 = arith.subf %202, %205 : vector<8x8xf32>
      %207 = math.exp %206 : vector<8x8xf32>
      %cst_89 = arith.constant dense<0.000000e+00> : vector<8xf32>
      %208 = vector.multi_reduction <add>, %207, %cst_89 [1] : vector<8x8xf32> to vector<8xf32>
      %209 = vector.shape_cast %208 : vector<8xf32> to vector<8x1xf32>
      %210 = vector.broadcast %209 : vector<8x1xf32> to vector<8x8xf32>
      %211 = arith.divf %207, %210 : vector<8x8xf32>
      %212 = vector.extract_strided_slice %149 {offsets = [0, 24], sizes = [8, 8], strides = [1, 1]} : vector<8x32xf32> to vector<8x8xf32>
      %cst_90 = arith.constant dense<0.000000e+00> : vector<8x8xf32>
      %213 = tpu.matmul %211, %212, %cst_90 {dimension_numbers = #tpu.dot_dimension_numbers<[1], [0], [0], [1], [0, 0, 1, 1], [], []>} : vector<8x8xf32>, vector<8x8xf32>, vector<8x8xf32> -> vector<8x8xf32>
      %214 = tpu.concatenate %165, %181, %197, %213 in 1 : vector<8x8xf32>, vector<8x8xf32>, vector<8x8xf32>, vector<8x8xf32> -> vector<8x32xf32>
      %c0_91 = arith.constant 0 : index
      %c0_92 = arith.constant 0 : index
      %215 = vector.load %arg12[%c0_91, %c0_92] : memref<32x32xf32, #tpu.memory_space<vmem>>, vector<32x32xf32>
      %cst_93 = arith.constant dense<0.000000e+00> : vector<8x32xf32>
      %216 = tpu.matmul %214, %215, %cst_93 {dimension_numbers = #tpu.dot_dimension_numbers<[1], [0], [0], [1], [0, 0, 1, 1], [], []>} : vector<8x32xf32>, vector<32x32xf32>, vector<8x32xf32> -> vector<8x32xf32>
      %c0_94 = arith.constant 0 : index
      %c0_95 = arith.constant 0 : index
      %217 = vector.load %arg13[%c0_94, %c0_95] : memref<1x32xf32, #tpu.memory_space<vmem>>, vector<1x32xf32>
      %218 = vector.broadcast %217 : vector<1x32xf32> to vector<8x32xf32>
      %219 = arith.addf %216, %218 : vector<8x32xf32>
      %c0_96 = arith.constant 0 : index
      %c0_97 = arith.constant 0 : index
      %220 = vector.load %arg14[%c0_96, %c0_97] : memref<1x32xf32, #tpu.memory_space<vmem>>, vector<1x32xf32>
      %c0_98 = arith.constant 0 : index
      %c0_99 = arith.constant 0 : index
      %221 = vector.load %arg15[%c0_98, %c0_99] : memref<1x32xf32, #tpu.memory_space<vmem>>, vector<1x32xf32>
      %cst_100 = arith.constant dense<0.000000e+00> : vector<8xf32>
      %222 = vector.multi_reduction <add>, %219, %cst_100 [1] : vector<8x32xf32> to vector<8xf32>
      %223 = vector.shape_cast %222 : vector<8xf32> to vector<8x1xf32>
      %cst_101 = arith.constant 3.200000e+01 : f32
      %224 = vector.broadcast %cst_101 : f32 to vector<8x1xf32>
      %225 = arith.divf %223, %224 : vector<8x1xf32>
      %226 = vector.broadcast %225 : vector<8x1xf32> to vector<8x32xf32>
      %227 = arith.subf %219, %226 : vector<8x32xf32>
      %228 = arith.mulf %227, %227 : vector<8x32xf32>
      %cst_102 = arith.constant dense<0.000000e+00> : vector<8xf32>
      %229 = vector.multi_reduction <add>, %228, %cst_102 [1] : vector<8x32xf32> to vector<8xf32>
      %230 = vector.shape_cast %229 : vector<8xf32> to vector<8x1xf32>
      %cst_103 = arith.constant 3.200000e+01 : f32
      %231 = vector.broadcast %cst_103 : f32 to vector<8x1xf32>
      %232 = arith.divf %230, %231 : vector<8x1xf32>
      %233 = vector.broadcast %225 : vector<8x1xf32> to vector<8x32xf32>
      %234 = arith.subf %219, %233 : vector<8x32xf32>
      %cst_104 = arith.constant 9.99999974E-6 : f32
      %235 = vector.broadcast %cst_104 : f32 to vector<8x1xf32>
      %236 = arith.addf %232, %235 : vector<8x1xf32>
      %237 = math.rsqrt %236 : vector<8x1xf32>
      %238 = vector.broadcast %237 : vector<8x1xf32> to vector<8x32xf32>
      %239 = arith.mulf %234, %238 : vector<8x32xf32>
      %240 = vector.broadcast %220 : vector<1x32xf32> to vector<8x32xf32>
      %241 = arith.mulf %239, %240 : vector<8x32xf32>
      %242 = vector.broadcast %221 : vector<1x32xf32> to vector<8x32xf32>
      %243 = arith.addf %241, %242 : vector<8x32xf32>
      %c0_105 = arith.constant 0 : index
      %c0_106 = arith.constant 0 : index
      %244 = vector.load %arg33[%c0_105, %c0_106] : memref<8x32xf32, #tpu.memory_space<vmem>>, vector<8x32xf32>
      tpu.vector_store %arg33[%c0_105, %c0_106], %243 {strides = array<i32>} : memref<8x32xf32, #tpu.memory_space<vmem>>, vector<8x32xf32>,
      %245 = arith.addf %243, %134 : vector<8x32xf32>
      %c0_107 = arith.constant 0 : index
      %c0_108 = arith.constant 0 : index
      %246 = vector.load %arg16[%c0_107, %c0_108] : memref<32x16xf32, #tpu.memory_space<vmem>>, vector<32x16xf32>
      %cst_109 = arith.constant dense<0.000000e+00> : vector<8x16xf32>
      %247 = tpu.matmul %245, %246, %cst_109 {dimension_numbers = #tpu.dot_dimension_numbers<[1], [0], [0], [1], [0, 0, 1, 1], [], []>} : vector<8x32xf32>, vector<32x16xf32>, vector<8x16xf32> -> vector<8x16xf32>
      %c0_110 = arith.constant 0 : index
      %c0_111 = arith.constant 0 : index
      %248 = vector.load %arg17[%c0_110, %c0_111] : memref<1x16xf32, #tpu.memory_space<vmem>>, vector<1x16xf32>
      %249 = vector.broadcast %248 : vector<1x16xf32> to vector<8x16xf32>
      %250 = arith.addf %247, %249 : vector<8x16xf32>
      %c0_112 = arith.constant 0 : index
      %c0_113 = arith.constant 0 : index
      %251 = vector.load %arg34[%c0_112, %c0_113] : memref<8x16xf32, #tpu.memory_space<vmem>>, vector<8x16xf32>
      tpu.vector_store %arg34[%c0_112, %c0_113], %250 {strides = array<i32>} : memref<8x16xf32, #tpu.memory_space<vmem>>, vector<8x16xf32>,
      %cst_114 = arith.constant 0xFF800000 : f32
      %252 = vector.broadcast %cst_114 : f32 to vector<8x4xf32>
      %c0_115 = arith.constant 0 : index
      %c0_116 = arith.constant 0 : index
      %253 = vector.load %arg36[%c0_115, %c0_116] : memref<8x4xf32, #tpu.memory_space<vmem>>, vector<8x4xf32>
      tpu.vector_store %arg36[%c0_115, %c0_116], %252 {strides = array<i32>} : memref<8x4xf32, #tpu.memory_space<vmem>>, vector<8x4xf32>,
      %cst_117 = arith.constant 0.000000e+00 : f32
      %254 = vector.broadcast %cst_117 : f32 to vector<8x4xf32>
      %c0_118 = arith.constant 0 : index
      %c0_119 = arith.constant 0 : index
      %255 = vector.load %arg37[%c0_118, %c0_119] : memref<8x4xf32, #tpu.memory_space<vmem>>, vector<8x4xf32>
      tpu.vector_store %arg37[%c0_118, %c0_119], %254 {strides = array<i32>} : memref<8x4xf32, #tpu.memory_space<vmem>>, vector<8x4xf32>,
      %cst_120 = arith.constant 0.000000e+00 : f32
      %256 = vector.broadcast %cst_120 : f32 to vector<8x16xf32>
      %c0_121 = arith.constant 0 : index
      %c0_122 = arith.constant 0 : index
      %257 = vector.load %arg35[%c0_121, %c0_122] : memref<8x16xf32, #tpu.memory_space<vmem>>, vector<8x16xf32>
      tpu.vector_store %arg35[%c0_121, %c0_122], %256 {strides = array<i32>} : memref<8x16xf32, #tpu.memory_space<vmem>>, vector<8x16xf32>,
    } else {
    }
    %c0 = arith.constant 0 : index
    %c0_1 = arith.constant 0 : index
    %c0_2 = arith.constant 0 : index
    %3 = vector.load %arg4[%c0, %c0_1, %c0_2] : memref<1x32x32xf32, #tpu.memory_space<vmem>>, vector<1x32x32xf32>
    %4 = vector.shape_cast %3 : vector<1x32x32xf32> to vector<32x32xf32>
    %c0_3 = arith.constant 0 : index
    %c0_4 = arith.constant 0 : index
    %c0_5 = arith.constant 0 : index
    %5 = vector.load %arg5[%c0_3, %c0_4, %c0_5] : memref<1x32x32xf32, #tpu.memory_space<vmem>>, vector<1x32x32xf32>
    %6 = vector.shape_cast %5 : vector<1x32x32xf32> to vector<32x32xf32>
    %7 = arith.addf %4, %6 : vector<32x32xf32>
    %c0_6 = arith.constant 0 : index
    %c0_7 = arith.constant 0 : index
    %8 = vector.load %arg18[%c0_6, %c0_7] : memref<32x16xf32, #tpu.memory_space<vmem>>, vector<32x16xf32>
    %cst = arith.constant dense<0.000000e+00> : vector<32x16xf32>
    %9 = tpu.matmul %7, %8, %cst {dimension_numbers = #tpu.dot_dimension_numbers<[1], [0], [0], [1], [0, 0, 1, 1], [], []>} : vector<32x32xf32>, vector<32x16xf32>, vector<32x16xf32> -> vector<32x16xf32>
    %c0_8 = arith.constant 0 : index
    %c0_9 = arith.constant 0 : index
    %10 = vector.load %arg19[%c0_8, %c0_9] : memref<1x16xf32, #tpu.memory_space<vmem>>, vector<1x16xf32>
    %11 = vector.broadcast %10 : vector<1x16xf32> to vector<32x16xf32>
    %12 = arith.addf %9, %11 : vector<32x16xf32>
    %c0_10 = arith.constant 0 : index
    %c0_11 = arith.constant 0 : index
    %13 = vector.load %arg20[%c0_10, %c0_11] : memref<32x16xf32, #tpu.memory_space<vmem>>, vector<32x16xf32>
    %cst_12 = arith.constant dense<0.000000e+00> : vector<32x16xf32>
    %14 = tpu.matmul %4, %13, %cst_12 {dimension_numbers = #tpu.dot_dimension_numbers<[1], [0], [0], [1], [0, 0, 1, 1], [], []>} : vector<32x32xf32>, vector<32x16xf32>, vector<32x16xf32> -> vector<32x16xf32>
    %c0_13 = arith.constant 0 : index
    %c0_14 = arith.constant 0 : index
    %15 = vector.load %arg21[%c0_13, %c0_14] : memref<1x16xf32, #tpu.memory_space<vmem>>, vector<1x16xf32>
    %16 = vector.broadcast %15 : vector<1x16xf32> to vector<32x16xf32>
    %17 = arith.addf %14, %16 : vector<32x16xf32>
    %c0_15 = arith.constant 0 : index
    %c0_16 = arith.constant 0 : index
    %18 = vector.load %arg34[%c0_15, %c0_16] : memref<8x16xf32, #tpu.memory_space<vmem>>, vector<8x16xf32>
    %c0_17 = arith.constant 0 : index
    %c0_18 = arith.constant 0 : index
    %19 = vector.load %arg35[%c0_17, %c0_18] : memref<8x16xf32, #tpu.memory_space<vmem>>, vector<8x16xf32>
    %c0_19 = arith.constant 0 : index
    %c0_20 = arith.constant 0 : index
    %20 = vector.load %arg36[%c0_19, %c0_20] : memref<8x4xf32, #tpu.memory_space<vmem>>, vector<8x4xf32>
    %c0_21 = arith.constant 0 : index
    %c0_22 = arith.constant 0 : index
    %21 = vector.load %arg37[%c0_21, %c0_22] : memref<8x4xf32, #tpu.memory_space<vmem>>, vector<8x4xf32>
    %22 = vector.extract_strided_slice %18 {offsets = [0, 0], sizes = [8, 4], strides = [1, 1]} : vector<8x16xf32> to vector<8x4xf32>
    %23 = vector.extract_strided_slice %12 {offsets = [0, 0], sizes = [32, 4], strides = [1, 1]} : vector<32x16xf32> to vector<32x4xf32>
    %cst_23 = arith.constant dense<0.000000e+00> : vector<8x32xf32>
    %24 = tpu.matmul %22, %23, %cst_23 {dimension_numbers = #tpu.dot_dimension_numbers<[1], [1], [0], [0], [0, 0, 1, 0], [], []>} : vector<8x4xf32>, vector<32x4xf32>, vector<8x32xf32> -> vector<8x32xf32>
    %cst_24 = arith.constant 5.000000e-01 : f32
    %25 = vector.broadcast %cst_24 : f32 to vector<8x32xf32>
    %26 = arith.mulf %24, %25 : vector<8x32xf32>
    %27 = vector.extract_strided_slice %20 {offsets = [0, 0], sizes = [8, 1], strides = [1, 1]} : vector<8x4xf32> to vector<8x1xf32>
    %cst_25 = arith.constant dense<0xFF800000> : vector<8xf32>
    %28 = vector.multi_reduction <maximumf>, %26, %cst_25 [1] : vector<8x32xf32> to vector<8xf32>
    %29 = vector.shape_cast %28 : vector<8xf32> to vector<8x1xf32>
    %30 = arith.maximumf %27, %29 : vector<8x1xf32>
    %31 = arith.subf %27, %30 : vector<8x1xf32>
    %32 = math.exp %31 : vector<8x1xf32>
    %33 = vector.broadcast %30 : vector<8x1xf32> to vector<8x32xf32>
    %34 = arith.subf %26, %33 : vector<8x32xf32>
    %35 = math.exp %34 : vector<8x32xf32>
    %36 = vector.extract_strided_slice %21 {offsets = [0, 0], sizes = [8, 1], strides = [1, 1]} : vector<8x4xf32> to vector<8x1xf32>
    %37 = arith.mulf %32, %36 : vector<8x1xf32>
    %cst_26 = arith.constant dense<0.000000e+00> : vector<8xf32>
    %38 = vector.multi_reduction <add>, %35, %cst_26 [1] : vector<8x32xf32> to vector<8xf32>
    %39 = vector.shape_cast %38 : vector<8xf32> to vector<8x1xf32>
    %40 = arith.addf %37, %39 : vector<8x1xf32>
    %41 = vector.extract_strided_slice %19 {offsets = [0, 0], sizes = [8, 4], strides = [1, 1]} : vector<8x16xf32> to vector<8x4xf32>
    %42 = vector.broadcast %32 : vector<8x1xf32> to vector<8x4xf32>
    %43 = arith.mulf %42, %41 : vector<8x4xf32>
    %44 = vector.extract_strided_slice %17 {offsets = [0, 0], sizes = [32, 4], strides = [1, 1]} : vector<32x16xf32> to vector<32x4xf32>
    %cst_27 = arith.constant dense<0.000000e+00> : vector<8x4xf32>
    %45 = tpu.matmul %35, %44, %cst_27 {dimension_numbers = #tpu.dot_dimension_numbers<[1], [0], [0], [1], [0, 0, 1, 1], [], []>} : vector<8x32xf32>, vector<32x4xf32>, vector<8x4xf32> -> vector<8x4xf32>
    %46 = arith.addf %43, %45 : vector<8x4xf32>
    %47 = vector.extract_strided_slice %18 {offsets = [0, 4], sizes = [8, 4], strides = [1, 1]} : vector<8x16xf32> to vector<8x4xf32>
    %48 = vector.extract_strided_slice %12 {offsets = [0, 4], sizes = [32, 4], strides = [1, 1]} : vector<32x16xf32> to vector<32x4xf32>
    %cst_28 = arith.constant dense<0.000000e+00> : vector<8x32xf32>
    %49 = tpu.matmul %47, %48, %cst_28 {dimension_numbers = #tpu.dot_dimension_numbers<[1], [1], [0], [0], [0, 0, 1, 0], [], []>} : vector<8x4xf32>, vector<32x4xf32>, vector<8x32xf32> -> vector<8x32xf32>
    %cst_29 = arith.constant 5.000000e-01 : f32
    %50 = vector.broadcast %cst_29 : f32 to vector<8x32xf32>
    %51 = arith.mulf %49, %50 : vector<8x32xf32>
    %52 = vector.extract_strided_slice %20 {offsets = [0, 1], sizes = [8, 1], strides = [1, 1]} : vector<8x4xf32> to vector<8x1xf32>
    %cst_30 = arith.constant dense<0xFF800000> : vector<8xf32>
    %53 = vector.multi_reduction <maximumf>, %51, %cst_30 [1] : vector<8x32xf32> to vector<8xf32>
    %54 = vector.shape_cast %53 : vector<8xf32> to vector<8x1xf32>
    %55 = arith.maximumf %52, %54 : vector<8x1xf32>
    %56 = arith.subf %52, %55 : vector<8x1xf32>
    %57 = math.exp %56 : vector<8x1xf32>
    %58 = vector.broadcast %55 : vector<8x1xf32> to vector<8x32xf32>
    %59 = arith.subf %51, %58 : vector<8x32xf32>
    %60 = math.exp %59 : vector<8x32xf32>
    %61 = vector.extract_strided_slice %21 {offsets = [0, 1], sizes = [8, 1], strides = [1, 1]} : vector<8x4xf32> to vector<8x1xf32>
    %62 = arith.mulf %57, %61 : vector<8x1xf32>
    %cst_31 = arith.constant dense<0.000000e+00> : vector<8xf32>
    %63 = vector.multi_reduction <add>, %60, %cst_31 [1] : vector<8x32xf32> to vector<8xf32>
    %64 = vector.shape_cast %63 : vector<8xf32> to vector<8x1xf32>
    %65 = arith.addf %62, %64 : vector<8x1xf32>
    %66 = vector.extract_strided_slice %19 {offsets = [0, 4], sizes = [8, 4], strides = [1, 1]} : vector<8x16xf32> to vector<8x4xf32>
    %67 = vector.broadcast %57 : vector<8x1xf32> to vector<8x4xf32>
    %68 = arith.mulf %67, %66 : vector<8x4xf32>
    %69 = vector.extract_strided_slice %17 {offsets = [0, 4], sizes = [32, 4], strides = [1, 1]} : vector<32x16xf32> to vector<32x4xf32>
    %cst_32 = arith.constant dense<0.000000e+00> : vector<8x4xf32>
    %70 = tpu.matmul %60, %69, %cst_32 {dimension_numbers = #tpu.dot_dimension_numbers<[1], [0], [0], [1], [0, 0, 1, 1], [], []>} : vector<8x32xf32>, vector<32x4xf32>, vector<8x4xf32> -> vector<8x4xf32>
    %71 = arith.addf %68, %70 : vector<8x4xf32>
    %72 = vector.extract_strided_slice %18 {offsets = [0, 8], sizes = [8, 4], strides = [1, 1]} : vector<8x16xf32> to vector<8x4xf32>
    %73 = vector.extract_strided_slice %12 {offsets = [0, 8], sizes = [32, 4], strides = [1, 1]} : vector<32x16xf32> to vector<32x4xf32>
    %cst_33 = arith.constant dense<0.000000e+00> : vector<8x32xf32>
    %74 = tpu.matmul %72, %73, %cst_33 {dimension_numbers = #tpu.dot_dimension_numbers<[1], [1], [0], [0], [0, 0, 1, 0], [], []>} : vector<8x4xf32>, vector<32x4xf32>, vector<8x32xf32> -> vector<8x32xf32>
    %cst_34 = arith.constant 5.000000e-01 : f32
    %75 = vector.broadcast %cst_34 : f32 to vector<8x32xf32>
    %76 = arith.mulf %74, %75 : vector<8x32xf32>
    %77 = vector.extract_strided_slice %20 {offsets = [0, 2], sizes = [8, 1], strides = [1, 1]} : vector<8x4xf32> to vector<8x1xf32>
    %cst_35 = arith.constant dense<0xFF800000> : vector<8xf32>
    %78 = vector.multi_reduction <maximumf>, %76, %cst_35 [1] : vector<8x32xf32> to vector<8xf32>
    %79 = vector.shape_cast %78 : vector<8xf32> to vector<8x1xf32>
    %80 = arith.maximumf %77, %79 : vector<8x1xf32>
    %81 = arith.subf %77, %80 : vector<8x1xf32>
    %82 = math.exp %81 : vector<8x1xf32>
    %83 = vector.broadcast %80 : vector<8x1xf32> to vector<8x32xf32>
    %84 = arith.subf %76, %83 : vector<8x32xf32>
    %85 = math.exp %84 : vector<8x32xf32>
    %86 = vector.extract_strided_slice %21 {offsets = [0, 2], sizes = [8, 1], strides = [1, 1]} : vector<8x4xf32> to vector<8x1xf32>
    %87 = arith.mulf %82, %86 : vector<8x1xf32>
    %cst_36 = arith.constant dense<0.000000e+00> : vector<8xf32>
    %88 = vector.multi_reduction <add>, %85, %cst_36 [1] : vector<8x32xf32> to vector<8xf32>
    %89 = vector.shape_cast %88 : vector<8xf32> to vector<8x1xf32>
    %90 = arith.addf %87, %89 : vector<8x1xf32>
    %91 = vector.extract_strided_slice %19 {offsets = [0, 8], sizes = [8, 4], strides = [1, 1]} : vector<8x16xf32> to vector<8x4xf32>
    %92 = vector.broadcast %82 : vector<8x1xf32> to vector<8x4xf32>
    %93 = arith.mulf %92, %91 : vector<8x4xf32>
    %94 = vector.extract_strided_slice %17 {offsets = [0, 8], sizes = [32, 4], strides = [1, 1]} : vector<32x16xf32> to vector<32x4xf32>
    %cst_37 = arith.constant dense<0.000000e+00> : vector<8x4xf32>
    %95 = tpu.matmul %85, %94, %cst_37 {dimension_numbers = #tpu.dot_dimension_numbers<[1], [0], [0], [1], [0, 0, 1, 1], [], []>} : vector<8x32xf32>, vector<32x4xf32>, vector<8x4xf32> -> vector<8x4xf32>
    %96 = arith.addf %93, %95 : vector<8x4xf32>
    %97 = vector.extract_strided_slice %18 {offsets = [0, 12], sizes = [8, 4], strides = [1, 1]} : vector<8x16xf32> to vector<8x4xf32>
    %98 = vector.extract_strided_slice %12 {offsets = [0, 12], sizes = [32, 4], strides = [1, 1]} : vector<32x16xf32> to vector<32x4xf32>
    %cst_38 = arith.constant dense<0.000000e+00> : vector<8x32xf32>
    %99 = tpu.matmul %97, %98, %cst_38 {dimension_numbers = #tpu.dot_dimension_numbers<[1], [1], [0], [0], [0, 0, 1, 0], [], []>} : vector<8x4xf32>, vector<32x4xf32>, vector<8x32xf32> -> vector<8x32xf32>
    %cst_39 = arith.constant 5.000000e-01 : f32
    %100 = vector.broadcast %cst_39 : f32 to vector<8x32xf32>
    %101 = arith.mulf %99, %100 : vector<8x32xf32>
    %102 = vector.extract_strided_slice %20 {offsets = [0, 3], sizes = [8, 1], strides = [1, 1]} : vector<8x4xf32> to vector<8x1xf32>
    %cst_40 = arith.constant dense<0xFF800000> : vector<8xf32>
    %103 = vector.multi_reduction <maximumf>, %101, %cst_40 [1] : vector<8x32xf32> to vector<8xf32>
    %104 = vector.shape_cast %103 : vector<8xf32> to vector<8x1xf32>
    %105 = arith.maximumf %102, %104 : vector<8x1xf32>
    %106 = arith.subf %102, %105 : vector<8x1xf32>
    %107 = math.exp %106 : vector<8x1xf32>
    %108 = vector.broadcast %105 : vector<8x1xf32> to vector<8x32xf32>
    %109 = arith.subf %101, %108 : vector<8x32xf32>
    %110 = math.exp %109 : vector<8x32xf32>
    %111 = vector.extract_strided_slice %21 {offsets = [0, 3], sizes = [8, 1], strides = [1, 1]} : vector<8x4xf32> to vector<8x1xf32>
    %112 = arith.mulf %107, %111 : vector<8x1xf32>
    %cst_41 = arith.constant dense<0.000000e+00> : vector<8xf32>
    %113 = vector.multi_reduction <add>, %110, %cst_41 [1] : vector<8x32xf32> to vector<8xf32>
    %114 = vector.shape_cast %113 : vector<8xf32> to vector<8x1xf32>
    %115 = arith.addf %112, %114 : vector<8x1xf32>
    %116 = vector.extract_strided_slice %19 {offsets = [0, 12], sizes = [8, 4], strides = [1, 1]} : vector<8x16xf32> to vector<8x4xf32>
    %117 = vector.broadcast %107 : vector<8x1xf32> to vector<8x4xf32>
    %118 = arith.mulf %117, %116 : vector<8x4xf32>
    %119 = vector.extract_strided_slice %17 {offsets = [0, 12], sizes = [32, 4], strides = [1, 1]} : vector<32x16xf32> to vector<32x4xf32>
    %cst_42 = arith.constant dense<0.000000e+00> : vector<8x4xf32>
    %120 = tpu.matmul %110, %119, %cst_42 {dimension_numbers = #tpu.dot_dimension_numbers<[1], [0], [0], [1], [0, 0, 1, 1], [], []>} : vector<8x32xf32>, vector<32x4xf32>, vector<8x4xf32> -> vector<8x4xf32>
    %121 = arith.addf %118, %120 : vector<8x4xf32>
    %122 = tpu.concatenate %30, %55, %80, %105 in 1 : vector<8x1xf32>, vector<8x1xf32>, vector<8x1xf32>, vector<8x1xf32> -> vector<8x4xf32>
    %c0_43 = arith.constant 0 : index
    %c0_44 = arith.constant 0 : index
    %123 = vector.load %arg36[%c0_43, %c0_44] : memref<8x4xf32, #tpu.memory_space<vmem>>, vector<8x4xf32>
    tpu.vector_store %arg36[%c0_43, %c0_44], %122 {strides = array<i32>} : memref<8x4xf32, #tpu.memory_space<vmem>>, vector<8x4xf32>,
    %124 = tpu.concatenate %40, %65, %90, %115 in 1 : vector<8x1xf32>, vector<8x1xf32>, vector<8x1xf32>, vector<8x1xf32> -> vector<8x4xf32>
    %c0_45 = arith.constant 0 : index
    %c0_46 = arith.constant 0 : index
    %125 = vector.load %arg37[%c0_45, %c0_46] : memref<8x4xf32, #tpu.memory_space<vmem>>, vector<8x4xf32>
    tpu.vector_store %arg37[%c0_45, %c0_46], %124 {strides = array<i32>} : memref<8x4xf32, #tpu.memory_space<vmem>>, vector<8x4xf32>,
    %126 = tpu.concatenate %46, %71, %96, %121 in 1 : vector<8x4xf32>, vector<8x4xf32>, vector<8x4xf32>, vector<8x4xf32> -> vector<8x16xf32>
    %c0_47 = arith.constant 0 : index
    %c0_48 = arith.constant 0 : index
    %127 = vector.load %arg35[%c0_47, %c0_48] : memref<8x16xf32, #tpu.memory_space<vmem>>, vector<8x16xf32>
    tpu.vector_store %arg35[%c0_47, %c0_48], %126 {strides = array<i32>} : memref<8x16xf32, #tpu.memory_space<vmem>>, vector<8x16xf32>,
    %c1_i32 = arith.constant 1 : i32
    %128 = arith.cmpi eq, %arg1, %c1_i32 : i32
    %129 = arith.extui %128 : i1 to i32
    %c0_i32_49 = arith.constant 0 : i32
    %130 = arith.cmpi ne, %129, %c0_i32_49 : i32
    scf.if %130 {
      %c0_50 = arith.constant 0 : index
      %c0_51 = arith.constant 0 : index
      %131 = vector.load %arg35[%c0_50, %c0_51] : memref<8x16xf32, #tpu.memory_space<vmem>>, vector<8x16xf32>
      %c0_52 = arith.constant 0 : index
      %c0_53 = arith.constant 0 : index
      %132 = vector.load %arg37[%c0_52, %c0_53] : memref<8x4xf32, #tpu.memory_space<vmem>>, vector<8x4xf32>
      %133 = vector.extract_strided_slice %131 {offsets = [0, 0], sizes = [8, 4], strides = [1, 1]} : vector<8x16xf32> to vector<8x4xf32>
      %134 = vector.extract_strided_slice %132 {offsets = [0, 0], sizes = [8, 1], strides = [1, 1]} : vector<8x4xf32> to vector<8x1xf32>
      %135 = vector.broadcast %134 : vector<8x1xf32> to vector<8x4xf32>
      %136 = arith.divf %133, %135 : vector<8x4xf32>
      %137 = vector.extract_strided_slice %131 {offsets = [0, 4], sizes = [8, 4], strides = [1, 1]} : vector<8x16xf32> to vector<8x4xf32>
      %138 = vector.extract_strided_slice %132 {offsets = [0, 1], sizes = [8, 1], strides = [1, 1]} : vector<8x4xf32> to vector<8x1xf32>
      %139 = vector.broadcast %138 : vector<8x1xf32> to vector<8x4xf32>
      %140 = arith.divf %137, %139 : vector<8x4xf32>
      %141 = vector.extract_strided_slice %131 {offsets = [0, 8], sizes = [8, 4], strides = [1, 1]} : vector<8x16xf32> to vector<8x4xf32>
      %142 = vector.extract_strided_slice %132 {offsets = [0, 2], sizes = [8, 1], strides = [1, 1]} : vector<8x4xf32> to vector<8x1xf32>
      %143 = vector.broadcast %142 : vector<8x1xf32> to vector<8x4xf32>
      %144 = arith.divf %141, %143 : vector<8x4xf32>
      %145 = vector.extract_strided_slice %131 {offsets = [0, 12], sizes = [8, 4], strides = [1, 1]} : vector<8x16xf32> to vector<8x4xf32>
      %146 = vector.extract_strided_slice %132 {offsets = [0, 3], sizes = [8, 1], strides = [1, 1]} : vector<8x4xf32> to vector<8x1xf32>
      %147 = vector.broadcast %146 : vector<8x1xf32> to vector<8x4xf32>
      %148 = arith.divf %145, %147 : vector<8x4xf32>
      %149 = tpu.concatenate %136, %140, %144, %148 in 1 : vector<8x4xf32>, vector<8x4xf32>, vector<8x4xf32>, vector<8x4xf32> -> vector<8x16xf32>
      %c0_54 = arith.constant 0 : index
      %c0_55 = arith.constant 0 : index
      %150 = vector.load %arg22[%c0_54, %c0_55] : memref<16x32xf32, #tpu.memory_space<vmem>>, vector<16x32xf32>
      %cst_56 = arith.constant dense<0.000000e+00> : vector<8x32xf32>
      %151 = tpu.matmul %149, %150, %cst_56 {dimension_numbers = #tpu.dot_dimension_numbers<[1], [0], [0], [1], [0, 0, 1, 1], [], []>} : vector<8x16xf32>, vector<16x32xf32>, vector<8x32xf32> -> vector<8x32xf32>
      %c0_57 = arith.constant 0 : index
      %c0_58 = arith.constant 0 : index
      %152 = vector.load %arg23[%c0_57, %c0_58] : memref<1x32xf32, #tpu.memory_space<vmem>>, vector<1x32xf32>
      %153 = vector.broadcast %152 : vector<1x32xf32> to vector<8x32xf32>
      %154 = arith.addf %151, %153 : vector<8x32xf32>
      %c0_59 = arith.constant 0 : index
      %c0_60 = arith.constant 0 : index
      %155 = vector.load %arg33[%c0_59, %c0_60] : memref<8x32xf32, #tpu.memory_space<vmem>>, vector<8x32xf32>
      %156 = arith.addf %155, %154 : vector<8x32xf32>
      %c0_61 = arith.constant 0 : index
      %c0_62 = arith.constant 0 : index
      %157 = vector.load %arg24[%c0_61, %c0_62] : memref<1x32xf32, #tpu.memory_space<vmem>>, vector<1x32xf32>
      %c0_63 = arith.constant 0 : index
      %c0_64 = arith.constant 0 : index
      %158 = vector.load %arg25[%c0_63, %c0_64] : memref<1x32xf32, #tpu.memory_space<vmem>>, vector<1x32xf32>
      %cst_65 = arith.constant dense<0.000000e+00> : vector<8xf32>
      %159 = vector.multi_reduction <add>, %156, %cst_65 [1] : vector<8x32xf32> to vector<8xf32>
      %160 = vector.shape_cast %159 : vector<8xf32> to vector<8x1xf32>
      %cst_66 = arith.constant 3.200000e+01 : f32
      %161 = vector.broadcast %cst_66 : f32 to vector<8x1xf32>
      %162 = arith.divf %160, %161 : vector<8x1xf32>
      %163 = vector.broadcast %162 : vector<8x1xf32> to vector<8x32xf32>
      %164 = arith.subf %156, %163 : vector<8x32xf32>
      %165 = arith.mulf %164, %164 : vector<8x32xf32>
      %cst_67 = arith.constant dense<0.000000e+00> : vector<8xf32>
      %166 = vector.multi_reduction <add>, %165, %cst_67 [1] : vector<8x32xf32> to vector<8xf32>
      %167 = vector.shape_cast %166 : vector<8xf32> to vector<8x1xf32>
      %cst_68 = arith.constant 3.200000e+01 : f32
      %168 = vector.broadcast %cst_68 : f32 to vector<8x1xf32>
      %169 = arith.divf %167, %168 : vector<8x1xf32>
      %170 = vector.broadcast %162 : vector<8x1xf32> to vector<8x32xf32>
      %171 = arith.subf %156, %170 : vector<8x32xf32>
      %cst_69 = arith.constant 9.99999974E-6 : f32
      %172 = vector.broadcast %cst_69 : f32 to vector<8x1xf32>
      %173 = arith.addf %169, %172 : vector<8x1xf32>
      %174 = math.rsqrt %173 : vector<8x1xf32>
      %175 = vector.broadcast %174 : vector<8x1xf32> to vector<8x32xf32>
      %176 = arith.mulf %171, %175 : vector<8x32xf32>
      %177 = vector.broadcast %157 : vector<1x32xf32> to vector<8x32xf32>
      %178 = arith.mulf %176, %177 : vector<8x32xf32>
      %179 = vector.broadcast %158 : vector<1x32xf32> to vector<8x32xf32>
      %180 = arith.addf %178, %179 : vector<8x32xf32>
      %c0_70 = arith.constant 0 : index
      %c0_71 = arith.constant 0 : index
      %181 = vector.load %arg26[%c0_70, %c0_71] : memref<32x64xf32, #tpu.memory_space<vmem>>, vector<32x64xf32>
      %cst_72 = arith.constant dense<0.000000e+00> : vector<8x64xf32>
      %182 = tpu.matmul %180, %181, %cst_72 {dimension_numbers = #tpu.dot_dimension_numbers<[1], [0], [0], [1], [0, 0, 1, 1], [], []>} : vector<8x32xf32>, vector<32x64xf32>, vector<8x64xf32> -> vector<8x64xf32>
      %c0_73 = arith.constant 0 : index
      %c0_74 = arith.constant 0 : index
      %183 = vector.load %arg27[%c0_73, %c0_74] : memref<1x64xf32, #tpu.memory_space<vmem>>, vector<1x64xf32>
      %184 = vector.broadcast %183 : vector<1x64xf32> to vector<8x64xf32>
      %185 = arith.addf %182, %184 : vector<8x64xf32>
      %cst_75 = arith.constant 0.000000e+00 : f32
      %186 = vector.broadcast %cst_75 : f32 to vector<8x64xf32>
      %187 = arith.maximumf %185, %186 : vector<8x64xf32>
      %c0_76 = arith.constant 0 : index
      %c0_77 = arith.constant 0 : index
      %188 = vector.load %arg28[%c0_76, %c0_77] : memref<64x32xf32, #tpu.memory_space<vmem>>, vector<64x32xf32>
      %cst_78 = arith.constant dense<0.000000e+00> : vector<8x32xf32>
      %189 = tpu.matmul %187, %188, %cst_78 {dimension_numbers = #tpu.dot_dimension_numbers<[1], [0], [0], [1], [0, 0, 1, 1], [], []>} : vector<8x64xf32>, vector<64x32xf32>, vector<8x32xf32> -> vector<8x32xf32>
      %c0_79 = arith.constant 0 : index
      %c0_80 = arith.constant 0 : index
      %190 = vector.load %arg29[%c0_79, %c0_80] : memref<1x32xf32, #tpu.memory_space<vmem>>, vector<1x32xf32>
      %191 = vector.broadcast %190 : vector<1x32xf32> to vector<8x32xf32>
      %192 = arith.addf %189, %191 : vector<8x32xf32>
      %193 = arith.addf %180, %192 : vector<8x32xf32>
      %c0_81 = arith.constant 0 : index
      %c0_82 = arith.constant 0 : index
      %194 = vector.load %arg30[%c0_81, %c0_82] : memref<1x32xf32, #tpu.memory_space<vmem>>, vector<1x32xf32>
      %c0_83 = arith.constant 0 : index
      %c0_84 = arith.constant 0 : index
      %195 = vector.load %arg31[%c0_83, %c0_84] : memref<1x32xf32, #tpu.memory_space<vmem>>, vector<1x32xf32>
      %cst_85 = arith.constant dense<0.000000e+00> : vector<8xf32>
      %196 = vector.multi_reduction <add>, %193, %cst_85 [1] : vector<8x32xf32> to vector<8xf32>
      %197 = vector.shape_cast %196 : vector<8xf32> to vector<8x1xf32>
      %cst_86 = arith.constant 3.200000e+01 : f32
      %198 = vector.broadcast %cst_86 : f32 to vector<8x1xf32>
      %199 = arith.divf %197, %198 : vector<8x1xf32>
      %200 = vector.broadcast %199 : vector<8x1xf32> to vector<8x32xf32>
      %201 = arith.subf %193, %200 : vector<8x32xf32>
      %202 = arith.mulf %201, %201 : vector<8x32xf32>
      %cst_87 = arith.constant dense<0.000000e+00> : vector<8xf32>
      %203 = vector.multi_reduction <add>, %202, %cst_87 [1] : vector<8x32xf32> to vector<8xf32>
      %204 = vector.shape_cast %203 : vector<8xf32> to vector<8x1xf32>
      %cst_88 = arith.constant 3.200000e+01 : f32
      %205 = vector.broadcast %cst_88 : f32 to vector<8x1xf32>
      %206 = arith.divf %204, %205 : vector<8x1xf32>
      %207 = vector.broadcast %199 : vector<8x1xf32> to vector<8x32xf32>
      %208 = arith.subf %193, %207 : vector<8x32xf32>
      %cst_89 = arith.constant 9.99999974E-6 : f32
      %209 = vector.broadcast %cst_89 : f32 to vector<8x1xf32>
      %210 = arith.addf %206, %209 : vector<8x1xf32>
      %211 = math.rsqrt %210 : vector<8x1xf32>
      %212 = vector.broadcast %211 : vector<8x1xf32> to vector<8x32xf32>
      %213 = arith.mulf %208, %212 : vector<8x32xf32>
      %214 = vector.broadcast %194 : vector<1x32xf32> to vector<8x32xf32>
      %215 = arith.mulf %213, %214 : vector<8x32xf32>
      %216 = vector.broadcast %195 : vector<1x32xf32> to vector<8x32xf32>
      %217 = arith.addf %215, %216 : vector<8x32xf32>
      %c0_90 = arith.constant 0 : index
      %c0_91 = arith.constant 0 : index
      %c0_92 = arith.constant 0 : index
      %218 = vector.load %arg32[%c0_90, %c0_91, %c0_92] : memref<1x8x32xf32, #tpu.memory_space<vmem>>, vector<1x8x32xf32>
      %219 = vector.shape_cast %218 : vector<1x8x32xf32> to vector<8x32xf32>
      %220 = vector.shape_cast %217 : vector<8x32xf32> to vector<1x8x32xf32>
      tpu.vector_store %arg32[%c0_90, %c0_91, %c0_92], %220 {strides = array<i32>} : memref<1x8x32xf32, #tpu.memory_space<vmem>>, vector<1x8x32xf32>,
    } else {
    }
    return
  }
  func.func @transform_0(%arg0: i32, %arg1: i32) -> (i32, i32, i32) {
    %c0_i32 = arith.constant 0 : i32
    %c0_i32_0 = arith.constant 0 : i32
    %c0_i32_1 = arith.constant 0 : i32
    return %arg0, %c0_i32, %c0_i32_0 : i32, i32, i32
  }
  func.func @transform_1(%arg0: i32, %arg1: i32) -> (i32, i32, i32) {
    %c0_i32 = arith.constant 0 : i32
    %c0_i32_0 = arith.constant 0 : i32
    %c0_i32_1 = arith.constant 0 : i32
    return %arg0, %c0_i32, %c0_i32_0 : i32, i32, i32
  }
  func.func @transform_2(%arg0: i32, %arg1: i32) -> (i32, i32, i32) {
    %c0_i32 = arith.constant 0 : i32
    %c0_i32_0 = arith.constant 0 : i32
    return %arg0, %arg1, %c0_i32 : i32, i32, i32
  }
  func.func @transform_3(%arg0: i32, %arg1: i32) -> (i32, i32, i32) {
    %c0_i32 = arith.constant 0 : i32
    %c0_i32_0 = arith.constant 0 : i32
    return %arg0, %arg1, %c0_i32 : i32, i32, i32
  }
  func.func @transform_4(%arg0: i32, %arg1: i32) -> (i32, i32) {
    %c0_i32 = arith.constant 0 : i32
    %c0_i32_0 = arith.constant 0 : i32
    %c0_i32_1 = arith.constant 0 : i32
    return %c0_i32, %c0_i32_0 : i32, i32
  }
  func.func @transform_5(%arg0: i32, %arg1: i32) -> (i32, i32) {
    %c0_i32 = arith.constant 0 : i32
    %c0_i32_0 = arith.constant 0 : i32
    %c0_i32_1 = arith.constant 0 : i32
    return %c0_i32, %c0_i32_0 : i32, i32
  }
  func.func @transform_6(%arg0: i32, %arg1: i32) -> (i32, i32) {
    %c0_i32 = arith.constant 0 : i32
    %c0_i32_0 = arith.constant 0 : i32
    %c0_i32_1 = arith.constant 0 : i32
    return %c0_i32, %c0_i32_0 : i32, i32
  }
  func.func @transform_7(%arg0: i32, %arg1: i32) -> (i32, i32) {
    %c0_i32 = arith.constant 0 : i32
    %c0_i32_0 = arith.constant 0 : i32
    %c0_i32_1 = arith.constant 0 : i32
    return %c0_i32, %c0_i32_0 : i32, i32
  }
  func.func @transform_8(%arg0: i32, %arg1: i32) -> (i32, i32) {
    %c0_i32 = arith.constant 0 : i32
    %c0_i32_0 = arith.constant 0 : i32
    %c0_i32_1 = arith.constant 0 : i32
    return %c0_i32, %c0_i32_0 : i32, i32
  }
  func.func @transform_9(%arg0: i32, %arg1: i32) -> (i32, i32) {
    %c0_i32 = arith.constant 0 : i32
    %c0_i32_0 = arith.constant 0 : i32
    %c0_i32_1 = arith.constant 0 : i32
    return %c0_i32, %c0_i32_0 : i32, i32
  }
  func.func @transform_10(%arg0: i32, %arg1: i32) -> (i32, i32) {
    %c0_i32 = arith.constant 0 : i32
    %c0_i32_0 = arith.constant 0 : i32
    %c0_i32_1 = arith.constant 0 : i32
    return %c0_i32, %c0_i32_0 : i32, i32
  }
  func.func @transform_11(%arg0: i32, %arg1: i32) -> (i32, i32) {
    %c0_i32 = arith.constant 0 : i32
    %c0_i32_0 = arith.constant 0 : i32
    %c0_i32_1 = arith.constant 0 : i32
    return %c0_i32, %c0_i32_0 : i32, i32
  }
  func.func @transform_12(%arg0: i32, %arg1: i32) -> (i32, i32) {
    %c0_i32 = arith.constant 0 : i32
    %c0_i32_0 = arith.constant 0 : i32
    %c0_i32_1 = arith.constant 0 : i32
    return %c0_i32, %c0_i32_0 : i32, i32
  }
  func.func @transform_13(%arg0: i32, %arg1: i32) -> (i32, i32) {
    %c0_i32 = arith.constant 0 : i32
    %c0_i32_0 = arith.constant 0 : i32
    %c0_i32_1 = arith.constant 0 : i32
    return %c0_i32, %c0_i32_0 : i32, i32
  }
  func.func @transform_14(%arg0: i32, %arg1: i32) -> (i32, i32) {
    %c0_i32 = arith.constant 0 : i32
    %c0_i32_0 = arith.constant 0 : i32
    %c0_i32_1 = arith.constant 0 : i32
    return %c0_i32, %c0_i32_0 : i32, i32
  }
  func.func @transform_15(%arg0: i32, %arg1: i32) -> (i32, i32) {
    %c0_i32 = arith.constant 0 : i32
    %c0_i32_0 = arith.constant 0 : i32
    %c0_i32_1 = arith.constant 0 : i32
    return %c0_i32, %c0_i32_0 : i32, i32
  }
  func.func @transform_16(%arg0: i32, %arg1: i32) -> (i32, i32) {
    %c0_i32 = arith.constant 0 : i32
    %c0_i32_0 = arith.constant 0 : i32
    %c0_i32_1 = arith.constant 0 : i32
    return %c0_i32, %c0_i32_0 : i32, i32
  }
  func.func @transform_17(%arg0: i32, %arg1: i32) -> (i32, i32) {
    %c0_i32 = arith.constant 0 : i32
    %c0_i32_0 = arith.constant 0 : i32
    %c0_i32_1 = arith.constant 0 : i32
    return %c0_i32, %c0_i32_0 : i32, i32
  }
  func.func @transform_18(%arg0: i32, %arg1: i32) -> (i32, i32) {
    %c0_i32 = arith.constant 0 : i32
    %c0_i32_0 = arith.constant 0 : i32
    %c0_i32_1 = arith.constant 0 : i32
    return %c0_i32, %c0_i32_0 : i32, i32
  }
  func.func @transform_19(%arg0: i32, %arg1: i32) -> (i32, i32) {
    %c0_i32 = arith.constant 0 : i32
    %c0_i32_0 = arith.constant 0 : i32
    %c0_i32_1 = arith.constant 0 : i32
    return %c0_i32, %c0_i32_0 : i32, i32
  }
  func.func @transform_20(%arg0: i32, %arg1: i32) -> (i32, i32) {
    %c0_i32 = arith.constant 0 : i32
    %c0_i32_0 = arith.constant 0 : i32
    %c0_i32_1 = arith.constant 0 : i32
    return %c0_i32, %c0_i32_0 : i32, i32
  }
  func.func @transform_21(%arg0: i32, %arg1: i32) -> (i32, i32) {
    %c0_i32 = arith.constant 0 : i32
    %c0_i32_0 = arith.constant 0 : i32
    %c0_i32_1 = arith.constant 0 : i32
    return %c0_i32, %c0_i32_0 : i32, i32
  }
  func.func @transform_22(%arg0: i32, %arg1: i32) -> (i32, i32) {
    %c0_i32 = arith.constant 0 : i32
    %c0_i32_0 = arith.constant 0 : i32
    %c0_i32_1 = arith.constant 0 : i32
    return %c0_i32, %c0_i32_0 : i32, i32
  }
  func.func @transform_23(%arg0: i32, %arg1: i32) -> (i32, i32) {
    %c0_i32 = arith.constant 0 : i32
    %c0_i32_0 = arith.constant 0 : i32
    %c0_i32_1 = arith.constant 0 : i32
    return %c0_i32, %c0_i32_0 : i32, i32
  }
  func.func @transform_24(%arg0: i32, %arg1: i32) -> (i32, i32) {
    %c0_i32 = arith.constant 0 : i32
    %c0_i32_0 = arith.constant 0 : i32
    %c0_i32_1 = arith.constant 0 : i32
    return %c0_i32, %c0_i32_0 : i32, i32
  }
  func.func @transform_25(%arg0: i32, %arg1: i32) -> (i32, i32) {
    %c0_i32 = arith.constant 0 : i32
    %c0_i32_0 = arith.constant 0 : i32
    %c0_i32_1 = arith.constant 0 : i32
    return %c0_i32, %c0_i32_0 : i32, i32
  }
  func.func @transform_26(%arg0: i32, %arg1: i32) -> (i32, i32) {
    %c0_i32 = arith.constant 0 : i32
    %c0_i32_0 = arith.constant 0 : i32
    %c0_i32_1 = arith.constant 0 : i32
    return %c0_i32, %c0_i32_0 : i32, i32
  }
  func.func @transform_27(%arg0: i32, %arg1: i32) -> (i32, i32) {
    %c0_i32 = arith.constant 0 : i32
    %c0_i32_0 = arith.constant 0 : i32
    %c0_i32_1 = arith.constant 0 : i32
    return %c0_i32, %c0_i32_0 : i32, i32
  }
  func.func @transform_28(%arg0: i32, %arg1: i32) -> (i32, i32) {
    %c0_i32 = arith.constant 0 : i32
    %c0_i32_0 = arith.constant 0 : i32
    %c0_i32_1 = arith.constant 0 : i32
    return %c0_i32, %c0_i32_0 : i32, i32
  }
  func.func @transform_29(%arg0: i32, %arg1: i32) -> (i32, i32) {
    %c0_i32 = arith.constant 0 : i32
    %c0_i32_0 = arith.constant 0 : i32
    %c0_i32_1 = arith.constant 0 : i32
    return %c0_i32, %c0_i32_0 : i32, i32
  }
  func.func @transform_30(%arg0: i32, %arg1: i32) -> (i32, i32, i32) {
    %c0_i32 = arith.constant 0 : i32
    %c0_i32_0 = arith.constant 0 : i32
    %c0_i32_1 = arith.constant 0 : i32
    return %arg0, %c0_i32, %c0_i32_0 : i32, i32, i32
  }
}

module attributes {stable_mosaic.version = 11 : i64} {
  func.func @_attn_ln_single_kernel(%arg0: i32, %arg1: i32, %arg2: memref<1x32x32xf32, #tpu.memory_space<vmem>>, %arg3: memref<1x32x32xf32, #tpu.memory_space<vmem>>, %arg4: memref<1x8x32xf32, #tpu.memory_space<vmem>>, %arg5: memref<1x8x32xf32, #tpu.memory_space<vmem>>, %arg6: memref<32x16xf32, #tpu.memory_space<vmem>>, %arg7: memref<1x16xf32, #tpu.memory_space<vmem>>, %arg8: memref<32x16xf32, #tpu.memory_space<vmem>>, %arg9: memref<1x16xf32, #tpu.memory_space<vmem>>, %arg10: memref<32x16xf32, #tpu.memory_space<vmem>>, %arg11: memref<1x16xf32, #tpu.memory_space<vmem>>, %arg12: memref<16x32xf32, #tpu.memory_space<vmem>>, %arg13: memref<1x32xf32, #tpu.memory_space<vmem>>, %arg14: memref<1x32xf32, #tpu.memory_space<vmem>>, %arg15: memref<1x32xf32, #tpu.memory_space<vmem>>, %arg16: memref<1x32x32xf32, #tpu.memory_space<vmem>>) attributes {dimension_semantics = [#tpu.dimension_semantics<parallel>, #tpu.dimension_semantics<parallel>], iteration_bounds = array<i64: 2, 2>, scalar_prefetch = 0 : i64, scratch_operands = 0 : i64, tpu.core_type = #tpu.core_type<tc>, window_params = [{transform_indices = @transform_0, window_bounds = array<i64: 1, 32, 32>}, {transform_indices = @transform_1, window_bounds = array<i64: 1, 32, 32>}, {transform_indices = @transform_2, window_bounds = array<i64: 1, 8, 32>}, {transform_indices = @transform_3, window_bounds = array<i64: 1, 8, 32>}, {pipeline_mode = #tpu.pipeline_mode<synchronous>, transform_indices = @transform_4, window_bounds = array<i64: 32, 16>}, {pipeline_mode = #tpu.pipeline_mode<synchronous>, transform_indices = @transform_5, window_bounds = array<i64: 1, 16>}, {pipeline_mode = #tpu.pipeline_mode<synchronous>, transform_indices = @transform_6, window_bounds = array<i64: 32, 16>}, {pipeline_mode = #tpu.pipeline_mode<synchronous>, transform_indices = @transform_7, window_bounds = array<i64: 1, 16>}, {pipeline_mode = #tpu.pipeline_mode<synchronous>, transform_indices = @transform_8, window_bounds = array<i64: 32, 16>}, {pipeline_mode = #tpu.pipeline_mode<synchronous>, transform_indices = @transform_9, window_bounds = array<i64: 1, 16>}, {pipeline_mode = #tpu.pipeline_mode<synchronous>, transform_indices = @transform_10, window_bounds = array<i64: 16, 32>}, {pipeline_mode = #tpu.pipeline_mode<synchronous>, transform_indices = @transform_11, window_bounds = array<i64: 1, 32>}, {pipeline_mode = #tpu.pipeline_mode<synchronous>, transform_indices = @transform_12, window_bounds = array<i64: 1, 32>}, {pipeline_mode = #tpu.pipeline_mode<synchronous>, transform_indices = @transform_13, window_bounds = array<i64: 1, 32>}, {transform_indices = @transform_14, window_bounds = array<i64: 1, 32, 32>}]} {
    %c0 = arith.constant 0 : index
    %c0_0 = arith.constant 0 : index
    %c0_1 = arith.constant 0 : index
    %0 = vector.load %arg2[%c0, %c0_0, %c0_1] : memref<1x32x32xf32, #tpu.memory_space<vmem>>, vector<1x32x32xf32>
    %1 = vector.shape_cast %0 : vector<1x32x32xf32> to vector<32x32xf32>
    %c0_2 = arith.constant 0 : index
    %c0_3 = arith.constant 0 : index
    %c0_4 = arith.constant 0 : index
    %2 = vector.load %arg3[%c0_2, %c0_3, %c0_4] : memref<1x32x32xf32, #tpu.memory_space<vmem>>, vector<1x32x32xf32>
    %3 = vector.shape_cast %2 : vector<1x32x32xf32> to vector<32x32xf32>
    %4 = arith.addf %1, %3 : vector<32x32xf32>
    %c0_5 = arith.constant 0 : index
    %c0_6 = arith.constant 0 : index
    %c0_7 = arith.constant 0 : index
    %5 = vector.load %arg4[%c0_5, %c0_6, %c0_7] : memref<1x8x32xf32, #tpu.memory_space<vmem>>, vector<1x8x32xf32>
    %6 = vector.shape_cast %5 : vector<1x8x32xf32> to vector<8x32xf32>
    %c0_8 = arith.constant 0 : index
    %c0_9 = arith.constant 0 : index
    %c0_10 = arith.constant 0 : index
    %7 = vector.load %arg5[%c0_8, %c0_9, %c0_10] : memref<1x8x32xf32, #tpu.memory_space<vmem>>, vector<1x8x32xf32>
    %8 = vector.shape_cast %7 : vector<1x8x32xf32> to vector<8x32xf32>
    %9 = arith.addf %6, %8 : vector<8x32xf32>
    %c0_11 = arith.constant 0 : index
    %c0_12 = arith.constant 0 : index
    %10 = vector.load %arg6[%c0_11, %c0_12] : memref<32x16xf32, #tpu.memory_space<vmem>>, vector<32x16xf32>
    %cst = arith.constant dense<0.000000e+00> : vector<32x16xf32>
    %11 = tpu.matmul %4, %10, %cst {dimension_numbers = #tpu.dot_dimension_numbers<[1], [0], [0], [1], [0, 0, 1, 1], [], []>} : vector<32x32xf32>, vector<32x16xf32>, vector<32x16xf32> -> vector<32x16xf32>
    %c0_13 = arith.constant 0 : index
    %c0_14 = arith.constant 0 : index
    %12 = vector.load %arg7[%c0_13, %c0_14] : memref<1x16xf32, #tpu.memory_space<vmem>>, vector<1x16xf32>
    %13 = vector.broadcast %12 : vector<1x16xf32> to vector<32x16xf32>
    %14 = arith.addf %11, %13 : vector<32x16xf32>
    %c0_15 = arith.constant 0 : index
    %c0_16 = arith.constant 0 : index
    %15 = vector.load %arg8[%c0_15, %c0_16] : memref<32x16xf32, #tpu.memory_space<vmem>>, vector<32x16xf32>
    %cst_17 = arith.constant dense<0.000000e+00> : vector<8x16xf32>
    %16 = tpu.matmul %9, %15, %cst_17 {dimension_numbers = #tpu.dot_dimension_numbers<[1], [0], [0], [1], [0, 0, 1, 1], [], []>} : vector<8x32xf32>, vector<32x16xf32>, vector<8x16xf32> -> vector<8x16xf32>
    %c0_18 = arith.constant 0 : index
    %c0_19 = arith.constant 0 : index
    %17 = vector.load %arg9[%c0_18, %c0_19] : memref<1x16xf32, #tpu.memory_space<vmem>>, vector<1x16xf32>
    %18 = vector.broadcast %17 : vector<1x16xf32> to vector<8x16xf32>
    %19 = arith.addf %16, %18 : vector<8x16xf32>
    %c0_20 = arith.constant 0 : index
    %c0_21 = arith.constant 0 : index
    %20 = vector.load %arg10[%c0_20, %c0_21] : memref<32x16xf32, #tpu.memory_space<vmem>>, vector<32x16xf32>
    %cst_22 = arith.constant dense<0.000000e+00> : vector<8x16xf32>
    %21 = tpu.matmul %6, %20, %cst_22 {dimension_numbers = #tpu.dot_dimension_numbers<[1], [0], [0], [1], [0, 0, 1, 1], [], []>} : vector<8x32xf32>, vector<32x16xf32>, vector<8x16xf32> -> vector<8x16xf32>
    %c0_23 = arith.constant 0 : index
    %c0_24 = arith.constant 0 : index
    %22 = vector.load %arg11[%c0_23, %c0_24] : memref<1x16xf32, #tpu.memory_space<vmem>>, vector<1x16xf32>
    %23 = vector.broadcast %22 : vector<1x16xf32> to vector<8x16xf32>
    %24 = arith.addf %21, %23 : vector<8x16xf32>
    %25 = vector.extract_strided_slice %14 {offsets = [0, 0], sizes = [32, 4], strides = [1, 1]} : vector<32x16xf32> to vector<32x4xf32>
    %26 = vector.extract_strided_slice %19 {offsets = [0, 0], sizes = [8, 4], strides = [1, 1]} : vector<8x16xf32> to vector<8x4xf32>
    %cst_25 = arith.constant dense<0.000000e+00> : vector<32x8xf32>
    %27 = tpu.matmul %25, %26, %cst_25 {dimension_numbers = #tpu.dot_dimension_numbers<[1], [1], [0], [0], [0, 0, 1, 0], [], []>} : vector<32x4xf32>, vector<8x4xf32>, vector<32x8xf32> -> vector<32x8xf32>
    %cst_26 = arith.constant 5.000000e-01 : f32
    %28 = vector.broadcast %cst_26 : f32 to vector<32x8xf32>
    %29 = arith.mulf %27, %28 : vector<32x8xf32>
    %cst_27 = arith.constant dense<0xFF800000> : vector<32xf32>
    %30 = vector.multi_reduction <maximumf>, %29, %cst_27 [1] : vector<32x8xf32> to vector<32xf32>
    %31 = vector.shape_cast %30 : vector<32xf32> to vector<32x1xf32>
    %32 = vector.broadcast %31 : vector<32x1xf32> to vector<32x8xf32>
    %33 = arith.subf %29, %32 : vector<32x8xf32>
    %34 = math.exp %33 : vector<32x8xf32>
    %cst_28 = arith.constant dense<0.000000e+00> : vector<32xf32>
    %35 = vector.multi_reduction <add>, %34, %cst_28 [1] : vector<32x8xf32> to vector<32xf32>
    %36 = vector.shape_cast %35 : vector<32xf32> to vector<32x1xf32>
    %37 = vector.broadcast %36 : vector<32x1xf32> to vector<32x8xf32>
    %38 = arith.divf %34, %37 : vector<32x8xf32>
    %39 = vector.extract_strided_slice %24 {offsets = [0, 0], sizes = [8, 4], strides = [1, 1]} : vector<8x16xf32> to vector<8x4xf32>
    %cst_29 = arith.constant dense<0.000000e+00> : vector<32x4xf32>
    %40 = tpu.matmul %38, %39, %cst_29 {dimension_numbers = #tpu.dot_dimension_numbers<[1], [0], [0], [1], [0, 0, 1, 1], [], []>} : vector<32x8xf32>, vector<8x4xf32>, vector<32x4xf32> -> vector<32x4xf32>
    %41 = vector.extract_strided_slice %14 {offsets = [0, 4], sizes = [32, 4], strides = [1, 1]} : vector<32x16xf32> to vector<32x4xf32>
    %42 = vector.extract_strided_slice %19 {offsets = [0, 4], sizes = [8, 4], strides = [1, 1]} : vector<8x16xf32> to vector<8x4xf32>
    %cst_30 = arith.constant dense<0.000000e+00> : vector<32x8xf32>
    %43 = tpu.matmul %41, %42, %cst_30 {dimension_numbers = #tpu.dot_dimension_numbers<[1], [1], [0], [0], [0, 0, 1, 0], [], []>} : vector<32x4xf32>, vector<8x4xf32>, vector<32x8xf32> -> vector<32x8xf32>
    %cst_31 = arith.constant 5.000000e-01 : f32
    %44 = vector.broadcast %cst_31 : f32 to vector<32x8xf32>
    %45 = arith.mulf %43, %44 : vector<32x8xf32>
    %cst_32 = arith.constant dense<0xFF800000> : vector<32xf32>
    %46 = vector.multi_reduction <maximumf>, %45, %cst_32 [1] : vector<32x8xf32> to vector<32xf32>
    %47 = vector.shape_cast %46 : vector<32xf32> to vector<32x1xf32>
    %48 = vector.broadcast %47 : vector<32x1xf32> to vector<32x8xf32>
    %49 = arith.subf %45, %48 : vector<32x8xf32>
    %50 = math.exp %49 : vector<32x8xf32>
    %cst_33 = arith.constant dense<0.000000e+00> : vector<32xf32>
    %51 = vector.multi_reduction <add>, %50, %cst_33 [1] : vector<32x8xf32> to vector<32xf32>
    %52 = vector.shape_cast %51 : vector<32xf32> to vector<32x1xf32>
    %53 = vector.broadcast %52 : vector<32x1xf32> to vector<32x8xf32>
    %54 = arith.divf %50, %53 : vector<32x8xf32>
    %55 = vector.extract_strided_slice %24 {offsets = [0, 4], sizes = [8, 4], strides = [1, 1]} : vector<8x16xf32> to vector<8x4xf32>
    %cst_34 = arith.constant dense<0.000000e+00> : vector<32x4xf32>
    %56 = tpu.matmul %54, %55, %cst_34 {dimension_numbers = #tpu.dot_dimension_numbers<[1], [0], [0], [1], [0, 0, 1, 1], [], []>} : vector<32x8xf32>, vector<8x4xf32>, vector<32x4xf32> -> vector<32x4xf32>
    %57 = vector.extract_strided_slice %14 {offsets = [0, 8], sizes = [32, 4], strides = [1, 1]} : vector<32x16xf32> to vector<32x4xf32>
    %58 = vector.extract_strided_slice %19 {offsets = [0, 8], sizes = [8, 4], strides = [1, 1]} : vector<8x16xf32> to vector<8x4xf32>
    %cst_35 = arith.constant dense<0.000000e+00> : vector<32x8xf32>
    %59 = tpu.matmul %57, %58, %cst_35 {dimension_numbers = #tpu.dot_dimension_numbers<[1], [1], [0], [0], [0, 0, 1, 0], [], []>} : vector<32x4xf32>, vector<8x4xf32>, vector<32x8xf32> -> vector<32x8xf32>
    %cst_36 = arith.constant 5.000000e-01 : f32
    %60 = vector.broadcast %cst_36 : f32 to vector<32x8xf32>
    %61 = arith.mulf %59, %60 : vector<32x8xf32>
    %cst_37 = arith.constant dense<0xFF800000> : vector<32xf32>
    %62 = vector.multi_reduction <maximumf>, %61, %cst_37 [1] : vector<32x8xf32> to vector<32xf32>
    %63 = vector.shape_cast %62 : vector<32xf32> to vector<32x1xf32>
    %64 = vector.broadcast %63 : vector<32x1xf32> to vector<32x8xf32>
    %65 = arith.subf %61, %64 : vector<32x8xf32>
    %66 = math.exp %65 : vector<32x8xf32>
    %cst_38 = arith.constant dense<0.000000e+00> : vector<32xf32>
    %67 = vector.multi_reduction <add>, %66, %cst_38 [1] : vector<32x8xf32> to vector<32xf32>
    %68 = vector.shape_cast %67 : vector<32xf32> to vector<32x1xf32>
    %69 = vector.broadcast %68 : vector<32x1xf32> to vector<32x8xf32>
    %70 = arith.divf %66, %69 : vector<32x8xf32>
    %71 = vector.extract_strided_slice %24 {offsets = [0, 8], sizes = [8, 4], strides = [1, 1]} : vector<8x16xf32> to vector<8x4xf32>
    %cst_39 = arith.constant dense<0.000000e+00> : vector<32x4xf32>
    %72 = tpu.matmul %70, %71, %cst_39 {dimension_numbers = #tpu.dot_dimension_numbers<[1], [0], [0], [1], [0, 0, 1, 1], [], []>} : vector<32x8xf32>, vector<8x4xf32>, vector<32x4xf32> -> vector<32x4xf32>
    %73 = vector.extract_strided_slice %14 {offsets = [0, 12], sizes = [32, 4], strides = [1, 1]} : vector<32x16xf32> to vector<32x4xf32>
    %74 = vector.extract_strided_slice %19 {offsets = [0, 12], sizes = [8, 4], strides = [1, 1]} : vector<8x16xf32> to vector<8x4xf32>
    %cst_40 = arith.constant dense<0.000000e+00> : vector<32x8xf32>
    %75 = tpu.matmul %73, %74, %cst_40 {dimension_numbers = #tpu.dot_dimension_numbers<[1], [1], [0], [0], [0, 0, 1, 0], [], []>} : vector<32x4xf32>, vector<8x4xf32>, vector<32x8xf32> -> vector<32x8xf32>
    %cst_41 = arith.constant 5.000000e-01 : f32
    %76 = vector.broadcast %cst_41 : f32 to vector<32x8xf32>
    %77 = arith.mulf %75, %76 : vector<32x8xf32>
    %cst_42 = arith.constant dense<0xFF800000> : vector<32xf32>
    %78 = vector.multi_reduction <maximumf>, %77, %cst_42 [1] : vector<32x8xf32> to vector<32xf32>
    %79 = vector.shape_cast %78 : vector<32xf32> to vector<32x1xf32>
    %80 = vector.broadcast %79 : vector<32x1xf32> to vector<32x8xf32>
    %81 = arith.subf %77, %80 : vector<32x8xf32>
    %82 = math.exp %81 : vector<32x8xf32>
    %cst_43 = arith.constant dense<0.000000e+00> : vector<32xf32>
    %83 = vector.multi_reduction <add>, %82, %cst_43 [1] : vector<32x8xf32> to vector<32xf32>
    %84 = vector.shape_cast %83 : vector<32xf32> to vector<32x1xf32>
    %85 = vector.broadcast %84 : vector<32x1xf32> to vector<32x8xf32>
    %86 = arith.divf %82, %85 : vector<32x8xf32>
    %87 = vector.extract_strided_slice %24 {offsets = [0, 12], sizes = [8, 4], strides = [1, 1]} : vector<8x16xf32> to vector<8x4xf32>
    %cst_44 = arith.constant dense<0.000000e+00> : vector<32x4xf32>
    %88 = tpu.matmul %86, %87, %cst_44 {dimension_numbers = #tpu.dot_dimension_numbers<[1], [0], [0], [1], [0, 0, 1, 1], [], []>} : vector<32x8xf32>, vector<8x4xf32>, vector<32x4xf32> -> vector<32x4xf32>
    %89 = tpu.concatenate %40, %56, %72, %88 in 1 : vector<32x4xf32>, vector<32x4xf32>, vector<32x4xf32>, vector<32x4xf32> -> vector<32x16xf32>
    %c0_45 = arith.constant 0 : index
    %c0_46 = arith.constant 0 : index
    %90 = vector.load %arg12[%c0_45, %c0_46] : memref<16x32xf32, #tpu.memory_space<vmem>>, vector<16x32xf32>
    %cst_47 = arith.constant dense<0.000000e+00> : vector<32x32xf32>
    %91 = tpu.matmul %89, %90, %cst_47 {dimension_numbers = #tpu.dot_dimension_numbers<[1], [0], [0], [1], [0, 0, 1, 1], [], []>} : vector<32x16xf32>, vector<16x32xf32>, vector<32x32xf32> -> vector<32x32xf32>
    %c0_48 = arith.constant 0 : index
    %c0_49 = arith.constant 0 : index
    %92 = vector.load %arg13[%c0_48, %c0_49] : memref<1x32xf32, #tpu.memory_space<vmem>>, vector<1x32xf32>
    %93 = vector.broadcast %92 : vector<1x32xf32> to vector<32x32xf32>
    %94 = arith.addf %91, %93 : vector<32x32xf32>
    %95 = arith.addf %94, %1 : vector<32x32xf32>
    %c0_50 = arith.constant 0 : index
    %c0_51 = arith.constant 0 : index
    %96 = vector.load %arg14[%c0_50, %c0_51] : memref<1x32xf32, #tpu.memory_space<vmem>>, vector<1x32xf32>
    %c0_52 = arith.constant 0 : index
    %c0_53 = arith.constant 0 : index
    %97 = vector.load %arg15[%c0_52, %c0_53] : memref<1x32xf32, #tpu.memory_space<vmem>>, vector<1x32xf32>
    %cst_54 = arith.constant dense<0.000000e+00> : vector<32xf32>
    %98 = vector.multi_reduction <add>, %95, %cst_54 [1] : vector<32x32xf32> to vector<32xf32>
    %99 = vector.shape_cast %98 : vector<32xf32> to vector<32x1xf32>
    %cst_55 = arith.constant 3.200000e+01 : f32
    %100 = vector.broadcast %cst_55 : f32 to vector<32x1xf32>
    %101 = arith.divf %99, %100 : vector<32x1xf32>
    %102 = vector.broadcast %101 : vector<32x1xf32> to vector<32x32xf32>
    %103 = arith.subf %95, %102 : vector<32x32xf32>
    %104 = arith.mulf %103, %103 : vector<32x32xf32>
    %cst_56 = arith.constant dense<0.000000e+00> : vector<32xf32>
    %105 = vector.multi_reduction <add>, %104, %cst_56 [1] : vector<32x32xf32> to vector<32xf32>
    %106 = vector.shape_cast %105 : vector<32xf32> to vector<32x1xf32>
    %cst_57 = arith.constant 3.200000e+01 : f32
    %107 = vector.broadcast %cst_57 : f32 to vector<32x1xf32>
    %108 = arith.divf %106, %107 : vector<32x1xf32>
    %109 = vector.broadcast %101 : vector<32x1xf32> to vector<32x32xf32>
    %110 = arith.subf %95, %109 : vector<32x32xf32>
    %cst_58 = arith.constant 9.99999974E-6 : f32
    %111 = vector.broadcast %cst_58 : f32 to vector<32x1xf32>
    %112 = arith.addf %108, %111 : vector<32x1xf32>
    %113 = math.rsqrt %112 : vector<32x1xf32>
    %114 = vector.broadcast %113 : vector<32x1xf32> to vector<32x32xf32>
    %115 = arith.mulf %110, %114 : vector<32x32xf32>
    %116 = vector.broadcast %96 : vector<1x32xf32> to vector<32x32xf32>
    %117 = arith.mulf %115, %116 : vector<32x32xf32>
    %118 = vector.broadcast %97 : vector<1x32xf32> to vector<32x32xf32>
    %119 = arith.addf %117, %118 : vector<32x32xf32>
    %c0_59 = arith.constant 0 : index
    %c0_60 = arith.constant 0 : index
    %c0_61 = arith.constant 0 : index
    %120 = vector.load %arg16[%c0_59, %c0_60, %c0_61] : memref<1x32x32xf32, #tpu.memory_space<vmem>>, vector<1x32x32xf32>
    %121 = vector.shape_cast %120 : vector<1x32x32xf32> to vector<32x32xf32>
    %122 = vector.shape_cast %119 : vector<32x32xf32> to vector<1x32x32xf32>
    tpu.vector_store %arg16[%c0_59, %c0_60, %c0_61], %122 {strides = array<i32>} : memref<1x32x32xf32, #tpu.memory_space<vmem>>, vector<1x32x32xf32>,
    return
  }
  func.func @transform_0(%arg0: i32, %arg1: i32) -> (i32, i32, i32) {
    %c0_i32 = arith.constant 0 : i32
    %c0_i32_0 = arith.constant 0 : i32
    return %arg0, %arg1, %c0_i32 : i32, i32, i32
  }
  func.func @transform_1(%arg0: i32, %arg1: i32) -> (i32, i32, i32) {
    %c0_i32 = arith.constant 0 : i32
    %c0_i32_0 = arith.constant 0 : i32
    return %arg0, %arg1, %c0_i32 : i32, i32, i32
  }
  func.func @transform_2(%arg0: i32, %arg1: i32) -> (i32, i32, i32) {
    %c0_i32 = arith.constant 0 : i32
    %c0_i32_0 = arith.constant 0 : i32
    %c0_i32_1 = arith.constant 0 : i32
    return %arg0, %c0_i32, %c0_i32_0 : i32, i32, i32
  }
  func.func @transform_3(%arg0: i32, %arg1: i32) -> (i32, i32, i32) {
    %c0_i32 = arith.constant 0 : i32
    %c0_i32_0 = arith.constant 0 : i32
    %c0_i32_1 = arith.constant 0 : i32
    return %arg0, %c0_i32, %c0_i32_0 : i32, i32, i32
  }
  func.func @transform_4(%arg0: i32, %arg1: i32) -> (i32, i32) {
    %c0_i32 = arith.constant 0 : i32
    %c0_i32_0 = arith.constant 0 : i32
    %c0_i32_1 = arith.constant 0 : i32
    return %c0_i32, %c0_i32_0 : i32, i32
  }
  func.func @transform_5(%arg0: i32, %arg1: i32) -> (i32, i32) {
    %c0_i32 = arith.constant 0 : i32
    %c0_i32_0 = arith.constant 0 : i32
    %c0_i32_1 = arith.constant 0 : i32
    return %c0_i32, %c0_i32_0 : i32, i32
  }
  func.func @transform_6(%arg0: i32, %arg1: i32) -> (i32, i32) {
    %c0_i32 = arith.constant 0 : i32
    %c0_i32_0 = arith.constant 0 : i32
    %c0_i32_1 = arith.constant 0 : i32
    return %c0_i32, %c0_i32_0 : i32, i32
  }
  func.func @transform_7(%arg0: i32, %arg1: i32) -> (i32, i32) {
    %c0_i32 = arith.constant 0 : i32
    %c0_i32_0 = arith.constant 0 : i32
    %c0_i32_1 = arith.constant 0 : i32
    return %c0_i32, %c0_i32_0 : i32, i32
  }
  func.func @transform_8(%arg0: i32, %arg1: i32) -> (i32, i32) {
    %c0_i32 = arith.constant 0 : i32
    %c0_i32_0 = arith.constant 0 : i32
    %c0_i32_1 = arith.constant 0 : i32
    return %c0_i32, %c0_i32_0 : i32, i32
  }
  func.func @transform_9(%arg0: i32, %arg1: i32) -> (i32, i32) {
    %c0_i32 = arith.constant 0 : i32
    %c0_i32_0 = arith.constant 0 : i32
    %c0_i32_1 = arith.constant 0 : i32
    return %c0_i32, %c0_i32_0 : i32, i32
  }
  func.func @transform_10(%arg0: i32, %arg1: i32) -> (i32, i32) {
    %c0_i32 = arith.constant 0 : i32
    %c0_i32_0 = arith.constant 0 : i32
    %c0_i32_1 = arith.constant 0 : i32
    return %c0_i32, %c0_i32_0 : i32, i32
  }
  func.func @transform_11(%arg0: i32, %arg1: i32) -> (i32, i32) {
    %c0_i32 = arith.constant 0 : i32
    %c0_i32_0 = arith.constant 0 : i32
    %c0_i32_1 = arith.constant 0 : i32
    return %c0_i32, %c0_i32_0 : i32, i32
  }
  func.func @transform_12(%arg0: i32, %arg1: i32) -> (i32, i32) {
    %c0_i32 = arith.constant 0 : i32
    %c0_i32_0 = arith.constant 0 : i32
    %c0_i32_1 = arith.constant 0 : i32
    return %c0_i32, %c0_i32_0 : i32, i32
  }
  func.func @transform_13(%arg0: i32, %arg1: i32) -> (i32, i32) {
    %c0_i32 = arith.constant 0 : i32
    %c0_i32_0 = arith.constant 0 : i32
    %c0_i32_1 = arith.constant 0 : i32
    return %c0_i32, %c0_i32_0 : i32, i32
  }
  func.func @transform_14(%arg0: i32, %arg1: i32) -> (i32, i32, i32) {
    %c0_i32 = arith.constant 0 : i32
    %c0_i32_0 = arith.constant 0 : i32
    return %arg0, %arg1, %c0_i32 : i32, i32, i32
  }
}

module attributes {stable_mosaic.version = 11 : i64} {
  func.func @_attn_ln_flash_kernel(%arg0: i32, %arg1: i32, %arg2: i32, %arg3: memref<1x8x32xf32, #tpu.memory_space<vmem>>, %arg4: memref<1x8x32xf32, #tpu.memory_space<vmem>>, %arg5: memref<1x32x32xf32, #tpu.memory_space<vmem>>, %arg6: memref<1x32x32xf32, #tpu.memory_space<vmem>>, %arg7: memref<32x16xf32, #tpu.memory_space<vmem>>, %arg8: memref<1x16xf32, #tpu.memory_space<vmem>>, %arg9: memref<32x16xf32, #tpu.memory_space<vmem>>, %arg10: memref<1x16xf32, #tpu.memory_space<vmem>>, %arg11: memref<32x16xf32, #tpu.memory_space<vmem>>, %arg12: memref<1x16xf32, #tpu.memory_space<vmem>>, %arg13: memref<16x32xf32, #tpu.memory_space<vmem>>, %arg14: memref<1x32xf32, #tpu.memory_space<vmem>>, %arg15: memref<1x32xf32, #tpu.memory_space<vmem>>, %arg16: memref<1x32xf32, #tpu.memory_space<vmem>>, %arg17: memref<1x8x32xf32, #tpu.memory_space<vmem>>, %arg18: memref<8x16xf32, #tpu.memory_space<vmem>>, %arg19: memref<8x16xf32, #tpu.memory_space<vmem>>, %arg20: memref<8x4xf32, #tpu.memory_space<vmem>>, %arg21: memref<8x4xf32, #tpu.memory_space<vmem>>) attributes {dimension_semantics = [#tpu.dimension_semantics<parallel>, #tpu.dimension_semantics<parallel>, #tpu.dimension_semantics<arbitrary>], iteration_bounds = array<i64: 2, 1, 2>, scalar_prefetch = 0 : i64, scratch_operands = 4 : i64, tpu.core_type = #tpu.core_type<tc>, window_params = [{transform_indices = @transform_0, window_bounds = array<i64: 1, 8, 32>}, {transform_indices = @transform_1, window_bounds = array<i64: 1, 8, 32>}, {transform_indices = @transform_2, window_bounds = array<i64: 1, 32, 32>}, {transform_indices = @transform_3, window_bounds = array<i64: 1, 32, 32>}, {pipeline_mode = #tpu.pipeline_mode<synchronous>, transform_indices = @transform_4, window_bounds = array<i64: 32, 16>}, {pipeline_mode = #tpu.pipeline_mode<synchronous>, transform_indices = @transform_5, window_bounds = array<i64: 1, 16>}, {pipeline_mode = #tpu.pipeline_mode<synchronous>, transform_indices = @transform_6, window_bounds = array<i64: 32, 16>}, {pipeline_mode = #tpu.pipeline_mode<synchronous>, transform_indices = @transform_7, window_bounds = array<i64: 1, 16>}, {pipeline_mode = #tpu.pipeline_mode<synchronous>, transform_indices = @transform_8, window_bounds = array<i64: 32, 16>}, {pipeline_mode = #tpu.pipeline_mode<synchronous>, transform_indices = @transform_9, window_bounds = array<i64: 1, 16>}, {pipeline_mode = #tpu.pipeline_mode<synchronous>, transform_indices = @transform_10, window_bounds = array<i64: 16, 32>}, {pipeline_mode = #tpu.pipeline_mode<synchronous>, transform_indices = @transform_11, window_bounds = array<i64: 1, 32>}, {pipeline_mode = #tpu.pipeline_mode<synchronous>, transform_indices = @transform_12, window_bounds = array<i64: 1, 32>}, {pipeline_mode = #tpu.pipeline_mode<synchronous>, transform_indices = @transform_13, window_bounds = array<i64: 1, 32>}, {transform_indices = @transform_14, window_bounds = array<i64: 1, 8, 32>}]} {
    %c0_i32 = arith.constant 0 : i32
    %0 = arith.cmpi eq, %arg2, %c0_i32 : i32
    %1 = arith.extui %0 : i1 to i32
    %c0_i32_0 = arith.constant 0 : i32
    %2 = arith.cmpi ne, %1, %c0_i32_0 : i32
    scf.if %2 {
      %c0_50 = arith.constant 0 : index
      %c0_51 = arith.constant 0 : index
      %c0_52 = arith.constant 0 : index
      %131 = vector.load %arg3[%c0_50, %c0_51, %c0_52] : memref<1x8x32xf32, #tpu.memory_space<vmem>>, vector<1x8x32xf32>
      %132 = vector.shape_cast %131 : vector<1x8x32xf32> to vector<8x32xf32>
      %c0_53 = arith.constant 0 : index
      %c0_54 = arith.constant 0 : index
      %c0_55 = arith.constant 0 : index
      %133 = vector.load %arg4[%c0_53, %c0_54, %c0_55] : memref<1x8x32xf32, #tpu.memory_space<vmem>>, vector<1x8x32xf32>
      %134 = vector.shape_cast %133 : vector<1x8x32xf32> to vector<8x32xf32>
      %135 = arith.addf %132, %134 : vector<8x32xf32>
      %c0_56 = arith.constant 0 : index
      %c0_57 = arith.constant 0 : index
      %136 = vector.load %arg7[%c0_56, %c0_57] : memref<32x16xf32, #tpu.memory_space<vmem>>, vector<32x16xf32>
      %cst_58 = arith.constant dense<0.000000e+00> : vector<8x16xf32>
      %137 = tpu.matmul %135, %136, %cst_58 {dimension_numbers = #tpu.dot_dimension_numbers<[1], [0], [0], [1], [0, 0, 1, 1], [], []>} : vector<8x32xf32>, vector<32x16xf32>, vector<8x16xf32> -> vector<8x16xf32>
      %c0_59 = arith.constant 0 : index
      %c0_60 = arith.constant 0 : index
      %138 = vector.load %arg8[%c0_59, %c0_60] : memref<1x16xf32, #tpu.memory_space<vmem>>, vector<1x16xf32>
      %139 = vector.broadcast %138 : vector<1x16xf32> to vector<8x16xf32>
      %140 = arith.addf %137, %139 : vector<8x16xf32>
      %c0_61 = arith.constant 0 : index
      %c0_62 = arith.constant 0 : index
      %141 = vector.load %arg18[%c0_61, %c0_62] : memref<8x16xf32, #tpu.memory_space<vmem>>, vector<8x16xf32>
      tpu.vector_store %arg18[%c0_61, %c0_62], %140 {strides = array<i32>} : memref<8x16xf32, #tpu.memory_space<vmem>>, vector<8x16xf32>,
      %cst_63 = arith.constant 0xFF800000 : f32
      %142 = vector.broadcast %cst_63 : f32 to vector<8x4xf32>
      %c0_64 = arith.constant 0 : index
      %c0_65 = arith.constant 0 : index
      %143 = vector.load %arg20[%c0_64, %c0_65] : memref<8x4xf32, #tpu.memory_space<vmem>>, vector<8x4xf32>
      tpu.vector_store %arg20[%c0_64, %c0_65], %142 {strides = array<i32>} : memref<8x4xf32, #tpu.memory_space<vmem>>, vector<8x4xf32>,
      %cst_66 = arith.constant 0.000000e+00 : f32
      %144 = vector.broadcast %cst_66 : f32 to vector<8x4xf32>
      %c0_67 = arith.constant 0 : index
      %c0_68 = arith.constant 0 : index
      %145 = vector.load %arg21[%c0_67, %c0_68] : memref<8x4xf32, #tpu.memory_space<vmem>>, vector<8x4xf32>
      tpu.vector_store %arg21[%c0_67, %c0_68], %144 {strides = array<i32>} : memref<8x4xf32, #tpu.memory_space<vmem>>, vector<8x4xf32>,
      %cst_69 = arith.constant 0.000000e+00 : f32
      %146 = vector.broadcast %cst_69 : f32 to vector<8x16xf32>
      %c0_70 = arith.constant 0 : index
      %c0_71 = arith.constant 0 : index
      %147 = vector.load %arg19[%c0_70, %c0_71] : memref<8x16xf32, #tpu.memory_space<vmem>>, vector<8x16xf32>
      tpu.vector_store %arg19[%c0_70, %c0_71], %146 {strides = array<i32>} : memref<8x16xf32, #tpu.memory_space<vmem>>, vector<8x16xf32>,
    } else {
    }
    %c0 = arith.constant 0 : index
    %c0_1 = arith.constant 0 : index
    %c0_2 = arith.constant 0 : index
    %3 = vector.load %arg5[%c0, %c0_1, %c0_2] : memref<1x32x32xf32, #tpu.memory_space<vmem>>, vector<1x32x32xf32>
    %4 = vector.shape_cast %3 : vector<1x32x32xf32> to vector<32x32xf32>
    %c0_3 = arith.constant 0 : index
    %c0_4 = arith.constant 0 : index
    %c0_5 = arith.constant 0 : index
    %5 = vector.load %arg6[%c0_3, %c0_4, %c0_5] : memref<1x32x32xf32, #tpu.memory_space<vmem>>, vector<1x32x32xf32>
    %6 = vector.shape_cast %5 : vector<1x32x32xf32> to vector<32x32xf32>
    %7 = arith.addf %4, %6 : vector<32x32xf32>
    %c0_6 = arith.constant 0 : index
    %c0_7 = arith.constant 0 : index
    %8 = vector.load %arg9[%c0_6, %c0_7] : memref<32x16xf32, #tpu.memory_space<vmem>>, vector<32x16xf32>
    %cst = arith.constant dense<0.000000e+00> : vector<32x16xf32>
    %9 = tpu.matmul %7, %8, %cst {dimension_numbers = #tpu.dot_dimension_numbers<[1], [0], [0], [1], [0, 0, 1, 1], [], []>} : vector<32x32xf32>, vector<32x16xf32>, vector<32x16xf32> -> vector<32x16xf32>
    %c0_8 = arith.constant 0 : index
    %c0_9 = arith.constant 0 : index
    %10 = vector.load %arg10[%c0_8, %c0_9] : memref<1x16xf32, #tpu.memory_space<vmem>>, vector<1x16xf32>
    %11 = vector.broadcast %10 : vector<1x16xf32> to vector<32x16xf32>
    %12 = arith.addf %9, %11 : vector<32x16xf32>
    %c0_10 = arith.constant 0 : index
    %c0_11 = arith.constant 0 : index
    %13 = vector.load %arg11[%c0_10, %c0_11] : memref<32x16xf32, #tpu.memory_space<vmem>>, vector<32x16xf32>
    %cst_12 = arith.constant dense<0.000000e+00> : vector<32x16xf32>
    %14 = tpu.matmul %4, %13, %cst_12 {dimension_numbers = #tpu.dot_dimension_numbers<[1], [0], [0], [1], [0, 0, 1, 1], [], []>} : vector<32x32xf32>, vector<32x16xf32>, vector<32x16xf32> -> vector<32x16xf32>
    %c0_13 = arith.constant 0 : index
    %c0_14 = arith.constant 0 : index
    %15 = vector.load %arg12[%c0_13, %c0_14] : memref<1x16xf32, #tpu.memory_space<vmem>>, vector<1x16xf32>
    %16 = vector.broadcast %15 : vector<1x16xf32> to vector<32x16xf32>
    %17 = arith.addf %14, %16 : vector<32x16xf32>
    %c0_15 = arith.constant 0 : index
    %c0_16 = arith.constant 0 : index
    %18 = vector.load %arg18[%c0_15, %c0_16] : memref<8x16xf32, #tpu.memory_space<vmem>>, vector<8x16xf32>
    %c0_17 = arith.constant 0 : index
    %c0_18 = arith.constant 0 : index
    %19 = vector.load %arg19[%c0_17, %c0_18] : memref<8x16xf32, #tpu.memory_space<vmem>>, vector<8x16xf32>
    %c0_19 = arith.constant 0 : index
    %c0_20 = arith.constant 0 : index
    %20 = vector.load %arg20[%c0_19, %c0_20] : memref<8x4xf32, #tpu.memory_space<vmem>>, vector<8x4xf32>
    %c0_21 = arith.constant 0 : index
    %c0_22 = arith.constant 0 : index
    %21 = vector.load %arg21[%c0_21, %c0_22] : memref<8x4xf32, #tpu.memory_space<vmem>>, vector<8x4xf32>
    %22 = vector.extract_strided_slice %18 {offsets = [0, 0], sizes = [8, 4], strides = [1, 1]} : vector<8x16xf32> to vector<8x4xf32>
    %23 = vector.extract_strided_slice %12 {offsets = [0, 0], sizes = [32, 4], strides = [1, 1]} : vector<32x16xf32> to vector<32x4xf32>
    %cst_23 = arith.constant dense<0.000000e+00> : vector<8x32xf32>
    %24 = tpu.matmul %22, %23, %cst_23 {dimension_numbers = #tpu.dot_dimension_numbers<[1], [1], [0], [0], [0, 0, 1, 0], [], []>} : vector<8x4xf32>, vector<32x4xf32>, vector<8x32xf32> -> vector<8x32xf32>
    %cst_24 = arith.constant 5.000000e-01 : f32
    %25 = vector.broadcast %cst_24 : f32 to vector<8x32xf32>
    %26 = arith.mulf %24, %25 : vector<8x32xf32>
    %27 = vector.extract_strided_slice %20 {offsets = [0, 0], sizes = [8, 1], strides = [1, 1]} : vector<8x4xf32> to vector<8x1xf32>
    %cst_25 = arith.constant dense<0xFF800000> : vector<8xf32>
    %28 = vector.multi_reduction <maximumf>, %26, %cst_25 [1] : vector<8x32xf32> to vector<8xf32>
    %29 = vector.shape_cast %28 : vector<8xf32> to vector<8x1xf32>
    %30 = arith.maximumf %27, %29 : vector<8x1xf32>
    %31 = arith.subf %27, %30 : vector<8x1xf32>
    %32 = math.exp %31 : vector<8x1xf32>
    %33 = vector.broadcast %30 : vector<8x1xf32> to vector<8x32xf32>
    %34 = arith.subf %26, %33 : vector<8x32xf32>
    %35 = math.exp %34 : vector<8x32xf32>
    %36 = vector.extract_strided_slice %21 {offsets = [0, 0], sizes = [8, 1], strides = [1, 1]} : vector<8x4xf32> to vector<8x1xf32>
    %37 = arith.mulf %32, %36 : vector<8x1xf32>
    %cst_26 = arith.constant dense<0.000000e+00> : vector<8xf32>
    %38 = vector.multi_reduction <add>, %35, %cst_26 [1] : vector<8x32xf32> to vector<8xf32>
    %39 = vector.shape_cast %38 : vector<8xf32> to vector<8x1xf32>
    %40 = arith.addf %37, %39 : vector<8x1xf32>
    %41 = vector.extract_strided_slice %19 {offsets = [0, 0], sizes = [8, 4], strides = [1, 1]} : vector<8x16xf32> to vector<8x4xf32>
    %42 = vector.broadcast %32 : vector<8x1xf32> to vector<8x4xf32>
    %43 = arith.mulf %42, %41 : vector<8x4xf32>
    %44 = vector.extract_strided_slice %17 {offsets = [0, 0], sizes = [32, 4], strides = [1, 1]} : vector<32x16xf32> to vector<32x4xf32>
    %cst_27 = arith.constant dense<0.000000e+00> : vector<8x4xf32>
    %45 = tpu.matmul %35, %44, %cst_27 {dimension_numbers = #tpu.dot_dimension_numbers<[1], [0], [0], [1], [0, 0, 1, 1], [], []>} : vector<8x32xf32>, vector<32x4xf32>, vector<8x4xf32> -> vector<8x4xf32>
    %46 = arith.addf %43, %45 : vector<8x4xf32>
    %47 = vector.extract_strided_slice %18 {offsets = [0, 4], sizes = [8, 4], strides = [1, 1]} : vector<8x16xf32> to vector<8x4xf32>
    %48 = vector.extract_strided_slice %12 {offsets = [0, 4], sizes = [32, 4], strides = [1, 1]} : vector<32x16xf32> to vector<32x4xf32>
    %cst_28 = arith.constant dense<0.000000e+00> : vector<8x32xf32>
    %49 = tpu.matmul %47, %48, %cst_28 {dimension_numbers = #tpu.dot_dimension_numbers<[1], [1], [0], [0], [0, 0, 1, 0], [], []>} : vector<8x4xf32>, vector<32x4xf32>, vector<8x32xf32> -> vector<8x32xf32>
    %cst_29 = arith.constant 5.000000e-01 : f32
    %50 = vector.broadcast %cst_29 : f32 to vector<8x32xf32>
    %51 = arith.mulf %49, %50 : vector<8x32xf32>
    %52 = vector.extract_strided_slice %20 {offsets = [0, 1], sizes = [8, 1], strides = [1, 1]} : vector<8x4xf32> to vector<8x1xf32>
    %cst_30 = arith.constant dense<0xFF800000> : vector<8xf32>
    %53 = vector.multi_reduction <maximumf>, %51, %cst_30 [1] : vector<8x32xf32> to vector<8xf32>
    %54 = vector.shape_cast %53 : vector<8xf32> to vector<8x1xf32>
    %55 = arith.maximumf %52, %54 : vector<8x1xf32>
    %56 = arith.subf %52, %55 : vector<8x1xf32>
    %57 = math.exp %56 : vector<8x1xf32>
    %58 = vector.broadcast %55 : vector<8x1xf32> to vector<8x32xf32>
    %59 = arith.subf %51, %58 : vector<8x32xf32>
    %60 = math.exp %59 : vector<8x32xf32>
    %61 = vector.extract_strided_slice %21 {offsets = [0, 1], sizes = [8, 1], strides = [1, 1]} : vector<8x4xf32> to vector<8x1xf32>
    %62 = arith.mulf %57, %61 : vector<8x1xf32>
    %cst_31 = arith.constant dense<0.000000e+00> : vector<8xf32>
    %63 = vector.multi_reduction <add>, %60, %cst_31 [1] : vector<8x32xf32> to vector<8xf32>
    %64 = vector.shape_cast %63 : vector<8xf32> to vector<8x1xf32>
    %65 = arith.addf %62, %64 : vector<8x1xf32>
    %66 = vector.extract_strided_slice %19 {offsets = [0, 4], sizes = [8, 4], strides = [1, 1]} : vector<8x16xf32> to vector<8x4xf32>
    %67 = vector.broadcast %57 : vector<8x1xf32> to vector<8x4xf32>
    %68 = arith.mulf %67, %66 : vector<8x4xf32>
    %69 = vector.extract_strided_slice %17 {offsets = [0, 4], sizes = [32, 4], strides = [1, 1]} : vector<32x16xf32> to vector<32x4xf32>
    %cst_32 = arith.constant dense<0.000000e+00> : vector<8x4xf32>
    %70 = tpu.matmul %60, %69, %cst_32 {dimension_numbers = #tpu.dot_dimension_numbers<[1], [0], [0], [1], [0, 0, 1, 1], [], []>} : vector<8x32xf32>, vector<32x4xf32>, vector<8x4xf32> -> vector<8x4xf32>
    %71 = arith.addf %68, %70 : vector<8x4xf32>
    %72 = vector.extract_strided_slice %18 {offsets = [0, 8], sizes = [8, 4], strides = [1, 1]} : vector<8x16xf32> to vector<8x4xf32>
    %73 = vector.extract_strided_slice %12 {offsets = [0, 8], sizes = [32, 4], strides = [1, 1]} : vector<32x16xf32> to vector<32x4xf32>
    %cst_33 = arith.constant dense<0.000000e+00> : vector<8x32xf32>
    %74 = tpu.matmul %72, %73, %cst_33 {dimension_numbers = #tpu.dot_dimension_numbers<[1], [1], [0], [0], [0, 0, 1, 0], [], []>} : vector<8x4xf32>, vector<32x4xf32>, vector<8x32xf32> -> vector<8x32xf32>
    %cst_34 = arith.constant 5.000000e-01 : f32
    %75 = vector.broadcast %cst_34 : f32 to vector<8x32xf32>
    %76 = arith.mulf %74, %75 : vector<8x32xf32>
    %77 = vector.extract_strided_slice %20 {offsets = [0, 2], sizes = [8, 1], strides = [1, 1]} : vector<8x4xf32> to vector<8x1xf32>
    %cst_35 = arith.constant dense<0xFF800000> : vector<8xf32>
    %78 = vector.multi_reduction <maximumf>, %76, %cst_35 [1] : vector<8x32xf32> to vector<8xf32>
    %79 = vector.shape_cast %78 : vector<8xf32> to vector<8x1xf32>
    %80 = arith.maximumf %77, %79 : vector<8x1xf32>
    %81 = arith.subf %77, %80 : vector<8x1xf32>
    %82 = math.exp %81 : vector<8x1xf32>
    %83 = vector.broadcast %80 : vector<8x1xf32> to vector<8x32xf32>
    %84 = arith.subf %76, %83 : vector<8x32xf32>
    %85 = math.exp %84 : vector<8x32xf32>
    %86 = vector.extract_strided_slice %21 {offsets = [0, 2], sizes = [8, 1], strides = [1, 1]} : vector<8x4xf32> to vector<8x1xf32>
    %87 = arith.mulf %82, %86 : vector<8x1xf32>
    %cst_36 = arith.constant dense<0.000000e+00> : vector<8xf32>
    %88 = vector.multi_reduction <add>, %85, %cst_36 [1] : vector<8x32xf32> to vector<8xf32>
    %89 = vector.shape_cast %88 : vector<8xf32> to vector<8x1xf32>
    %90 = arith.addf %87, %89 : vector<8x1xf32>
    %91 = vector.extract_strided_slice %19 {offsets = [0, 8], sizes = [8, 4], strides = [1, 1]} : vector<8x16xf32> to vector<8x4xf32>
    %92 = vector.broadcast %82 : vector<8x1xf32> to vector<8x4xf32>
    %93 = arith.mulf %92, %91 : vector<8x4xf32>
    %94 = vector.extract_strided_slice %17 {offsets = [0, 8], sizes = [32, 4], strides = [1, 1]} : vector<32x16xf32> to vector<32x4xf32>
    %cst_37 = arith.constant dense<0.000000e+00> : vector<8x4xf32>
    %95 = tpu.matmul %85, %94, %cst_37 {dimension_numbers = #tpu.dot_dimension_numbers<[1], [0], [0], [1], [0, 0, 1, 1], [], []>} : vector<8x32xf32>, vector<32x4xf32>, vector<8x4xf32> -> vector<8x4xf32>
    %96 = arith.addf %93, %95 : vector<8x4xf32>
    %97 = vector.extract_strided_slice %18 {offsets = [0, 12], sizes = [8, 4], strides = [1, 1]} : vector<8x16xf32> to vector<8x4xf32>
    %98 = vector.extract_strided_slice %12 {offsets = [0, 12], sizes = [32, 4], strides = [1, 1]} : vector<32x16xf32> to vector<32x4xf32>
    %cst_38 = arith.constant dense<0.000000e+00> : vector<8x32xf32>
    %99 = tpu.matmul %97, %98, %cst_38 {dimension_numbers = #tpu.dot_dimension_numbers<[1], [1], [0], [0], [0, 0, 1, 0], [], []>} : vector<8x4xf32>, vector<32x4xf32>, vector<8x32xf32> -> vector<8x32xf32>
    %cst_39 = arith.constant 5.000000e-01 : f32
    %100 = vector.broadcast %cst_39 : f32 to vector<8x32xf32>
    %101 = arith.mulf %99, %100 : vector<8x32xf32>
    %102 = vector.extract_strided_slice %20 {offsets = [0, 3], sizes = [8, 1], strides = [1, 1]} : vector<8x4xf32> to vector<8x1xf32>
    %cst_40 = arith.constant dense<0xFF800000> : vector<8xf32>
    %103 = vector.multi_reduction <maximumf>, %101, %cst_40 [1] : vector<8x32xf32> to vector<8xf32>
    %104 = vector.shape_cast %103 : vector<8xf32> to vector<8x1xf32>
    %105 = arith.maximumf %102, %104 : vector<8x1xf32>
    %106 = arith.subf %102, %105 : vector<8x1xf32>
    %107 = math.exp %106 : vector<8x1xf32>
    %108 = vector.broadcast %105 : vector<8x1xf32> to vector<8x32xf32>
    %109 = arith.subf %101, %108 : vector<8x32xf32>
    %110 = math.exp %109 : vector<8x32xf32>
    %111 = vector.extract_strided_slice %21 {offsets = [0, 3], sizes = [8, 1], strides = [1, 1]} : vector<8x4xf32> to vector<8x1xf32>
    %112 = arith.mulf %107, %111 : vector<8x1xf32>
    %cst_41 = arith.constant dense<0.000000e+00> : vector<8xf32>
    %113 = vector.multi_reduction <add>, %110, %cst_41 [1] : vector<8x32xf32> to vector<8xf32>
    %114 = vector.shape_cast %113 : vector<8xf32> to vector<8x1xf32>
    %115 = arith.addf %112, %114 : vector<8x1xf32>
    %116 = vector.extract_strided_slice %19 {offsets = [0, 12], sizes = [8, 4], strides = [1, 1]} : vector<8x16xf32> to vector<8x4xf32>
    %117 = vector.broadcast %107 : vector<8x1xf32> to vector<8x4xf32>
    %118 = arith.mulf %117, %116 : vector<8x4xf32>
    %119 = vector.extract_strided_slice %17 {offsets = [0, 12], sizes = [32, 4], strides = [1, 1]} : vector<32x16xf32> to vector<32x4xf32>
    %cst_42 = arith.constant dense<0.000000e+00> : vector<8x4xf32>
    %120 = tpu.matmul %110, %119, %cst_42 {dimension_numbers = #tpu.dot_dimension_numbers<[1], [0], [0], [1], [0, 0, 1, 1], [], []>} : vector<8x32xf32>, vector<32x4xf32>, vector<8x4xf32> -> vector<8x4xf32>
    %121 = arith.addf %118, %120 : vector<8x4xf32>
    %122 = tpu.concatenate %30, %55, %80, %105 in 1 : vector<8x1xf32>, vector<8x1xf32>, vector<8x1xf32>, vector<8x1xf32> -> vector<8x4xf32>
    %c0_43 = arith.constant 0 : index
    %c0_44 = arith.constant 0 : index
    %123 = vector.load %arg20[%c0_43, %c0_44] : memref<8x4xf32, #tpu.memory_space<vmem>>, vector<8x4xf32>
    tpu.vector_store %arg20[%c0_43, %c0_44], %122 {strides = array<i32>} : memref<8x4xf32, #tpu.memory_space<vmem>>, vector<8x4xf32>,
    %124 = tpu.concatenate %40, %65, %90, %115 in 1 : vector<8x1xf32>, vector<8x1xf32>, vector<8x1xf32>, vector<8x1xf32> -> vector<8x4xf32>
    %c0_45 = arith.constant 0 : index
    %c0_46 = arith.constant 0 : index
    %125 = vector.load %arg21[%c0_45, %c0_46] : memref<8x4xf32, #tpu.memory_space<vmem>>, vector<8x4xf32>
    tpu.vector_store %arg21[%c0_45, %c0_46], %124 {strides = array<i32>} : memref<8x4xf32, #tpu.memory_space<vmem>>, vector<8x4xf32>,
    %126 = tpu.concatenate %46, %71, %96, %121 in 1 : vector<8x4xf32>, vector<8x4xf32>, vector<8x4xf32>, vector<8x4xf32> -> vector<8x16xf32>
    %c0_47 = arith.constant 0 : index
    %c0_48 = arith.constant 0 : index
    %127 = vector.load %arg19[%c0_47, %c0_48] : memref<8x16xf32, #tpu.memory_space<vmem>>, vector<8x16xf32>
    tpu.vector_store %arg19[%c0_47, %c0_48], %126 {strides = array<i32>} : memref<8x16xf32, #tpu.memory_space<vmem>>, vector<8x16xf32>,
    %c1_i32 = arith.constant 1 : i32
    %128 = arith.cmpi eq, %arg2, %c1_i32 : i32
    %129 = arith.extui %128 : i1 to i32
    %c0_i32_49 = arith.constant 0 : i32
    %130 = arith.cmpi ne, %129, %c0_i32_49 : i32
    scf.if %130 {
      %c0_50 = arith.constant 0 : index
      %c0_51 = arith.constant 0 : index
      %131 = vector.load %arg19[%c0_50, %c0_51] : memref<8x16xf32, #tpu.memory_space<vmem>>, vector<8x16xf32>
      %c0_52 = arith.constant 0 : index
      %c0_53 = arith.constant 0 : index
      %132 = vector.load %arg21[%c0_52, %c0_53] : memref<8x4xf32, #tpu.memory_space<vmem>>, vector<8x4xf32>
      %133 = vector.extract_strided_slice %131 {offsets = [0, 0], sizes = [8, 4], strides = [1, 1]} : vector<8x16xf32> to vector<8x4xf32>
      %134 = vector.extract_strided_slice %132 {offsets = [0, 0], sizes = [8, 1], strides = [1, 1]} : vector<8x4xf32> to vector<8x1xf32>
      %135 = vector.broadcast %134 : vector<8x1xf32> to vector<8x4xf32>
      %136 = arith.divf %133, %135 : vector<8x4xf32>
      %137 = vector.extract_strided_slice %131 {offsets = [0, 4], sizes = [8, 4], strides = [1, 1]} : vector<8x16xf32> to vector<8x4xf32>
      %138 = vector.extract_strided_slice %132 {offsets = [0, 1], sizes = [8, 1], strides = [1, 1]} : vector<8x4xf32> to vector<8x1xf32>
      %139 = vector.broadcast %138 : vector<8x1xf32> to vector<8x4xf32>
      %140 = arith.divf %137, %139 : vector<8x4xf32>
      %141 = vector.extract_strided_slice %131 {offsets = [0, 8], sizes = [8, 4], strides = [1, 1]} : vector<8x16xf32> to vector<8x4xf32>
      %142 = vector.extract_strided_slice %132 {offsets = [0, 2], sizes = [8, 1], strides = [1, 1]} : vector<8x4xf32> to vector<8x1xf32>
      %143 = vector.broadcast %142 : vector<8x1xf32> to vector<8x4xf32>
      %144 = arith.divf %141, %143 : vector<8x4xf32>
      %145 = vector.extract_strided_slice %131 {offsets = [0, 12], sizes = [8, 4], strides = [1, 1]} : vector<8x16xf32> to vector<8x4xf32>
      %146 = vector.extract_strided_slice %132 {offsets = [0, 3], sizes = [8, 1], strides = [1, 1]} : vector<8x4xf32> to vector<8x1xf32>
      %147 = vector.broadcast %146 : vector<8x1xf32> to vector<8x4xf32>
      %148 = arith.divf %145, %147 : vector<8x4xf32>
      %149 = tpu.concatenate %136, %140, %144, %148 in 1 : vector<8x4xf32>, vector<8x4xf32>, vector<8x4xf32>, vector<8x4xf32> -> vector<8x16xf32>
      %c0_54 = arith.constant 0 : index
      %c0_55 = arith.constant 0 : index
      %150 = vector.load %arg13[%c0_54, %c0_55] : memref<16x32xf32, #tpu.memory_space<vmem>>, vector<16x32xf32>
      %cst_56 = arith.constant dense<0.000000e+00> : vector<8x32xf32>
      %151 = tpu.matmul %149, %150, %cst_56 {dimension_numbers = #tpu.dot_dimension_numbers<[1], [0], [0], [1], [0, 0, 1, 1], [], []>} : vector<8x16xf32>, vector<16x32xf32>, vector<8x32xf32> -> vector<8x32xf32>
      %c0_57 = arith.constant 0 : index
      %c0_58 = arith.constant 0 : index
      %152 = vector.load %arg14[%c0_57, %c0_58] : memref<1x32xf32, #tpu.memory_space<vmem>>, vector<1x32xf32>
      %153 = vector.broadcast %152 : vector<1x32xf32> to vector<8x32xf32>
      %154 = arith.addf %151, %153 : vector<8x32xf32>
      %c0_59 = arith.constant 0 : index
      %c0_60 = arith.constant 0 : index
      %c0_61 = arith.constant 0 : index
      %155 = vector.load %arg3[%c0_59, %c0_60, %c0_61] : memref<1x8x32xf32, #tpu.memory_space<vmem>>, vector<1x8x32xf32>
      %156 = vector.shape_cast %155 : vector<1x8x32xf32> to vector<8x32xf32>
      %157 = arith.addf %154, %156 : vector<8x32xf32>
      %c0_62 = arith.constant 0 : index
      %c0_63 = arith.constant 0 : index
      %158 = vector.load %arg15[%c0_62, %c0_63] : memref<1x32xf32, #tpu.memory_space<vmem>>, vector<1x32xf32>
      %c0_64 = arith.constant 0 : index
      %c0_65 = arith.constant 0 : index
      %159 = vector.load %arg16[%c0_64, %c0_65] : memref<1x32xf32, #tpu.memory_space<vmem>>, vector<1x32xf32>
      %cst_66 = arith.constant dense<0.000000e+00> : vector<8xf32>
      %160 = vector.multi_reduction <add>, %157, %cst_66 [1] : vector<8x32xf32> to vector<8xf32>
      %161 = vector.shape_cast %160 : vector<8xf32> to vector<8x1xf32>
      %cst_67 = arith.constant 3.200000e+01 : f32
      %162 = vector.broadcast %cst_67 : f32 to vector<8x1xf32>
      %163 = arith.divf %161, %162 : vector<8x1xf32>
      %164 = vector.broadcast %163 : vector<8x1xf32> to vector<8x32xf32>
      %165 = arith.subf %157, %164 : vector<8x32xf32>
      %166 = arith.mulf %165, %165 : vector<8x32xf32>
      %cst_68 = arith.constant dense<0.000000e+00> : vector<8xf32>
      %167 = vector.multi_reduction <add>, %166, %cst_68 [1] : vector<8x32xf32> to vector<8xf32>
      %168 = vector.shape_cast %167 : vector<8xf32> to vector<8x1xf32>
      %cst_69 = arith.constant 3.200000e+01 : f32
      %169 = vector.broadcast %cst_69 : f32 to vector<8x1xf32>
      %170 = arith.divf %168, %169 : vector<8x1xf32>
      %171 = vector.broadcast %163 : vector<8x1xf32> to vector<8x32xf32>
      %172 = arith.subf %157, %171 : vector<8x32xf32>
      %cst_70 = arith.constant 9.99999974E-6 : f32
      %173 = vector.broadcast %cst_70 : f32 to vector<8x1xf32>
      %174 = arith.addf %170, %173 : vector<8x1xf32>
      %175 = math.rsqrt %174 : vector<8x1xf32>
      %176 = vector.broadcast %175 : vector<8x1xf32> to vector<8x32xf32>
      %177 = arith.mulf %172, %176 : vector<8x32xf32>
      %178 = vector.broadcast %158 : vector<1x32xf32> to vector<8x32xf32>
      %179 = arith.mulf %177, %178 : vector<8x32xf32>
      %180 = vector.broadcast %159 : vector<1x32xf32> to vector<8x32xf32>
      %181 = arith.addf %179, %180 : vector<8x32xf32>
      %c0_71 = arith.constant 0 : index
      %c0_72 = arith.constant 0 : index
      %c0_73 = arith.constant 0 : index
      %182 = vector.load %arg17[%c0_71, %c0_72, %c0_73] : memref<1x8x32xf32, #tpu.memory_space<vmem>>, vector<1x8x32xf32>
      %183 = vector.shape_cast %182 : vector<1x8x32xf32> to vector<8x32xf32>
      %184 = vector.shape_cast %181 : vector<8x32xf32> to vector<1x8x32xf32>
      tpu.vector_store %arg17[%c0_71, %c0_72, %c0_73], %184 {strides = array<i32>} : memref<1x8x32xf32, #tpu.memory_space<vmem>>, vector<1x8x32xf32>,
    } else {
    }
    return
  }
  func.func @transform_0(%arg0: i32, %arg1: i32, %arg2: i32) -> (i32, i32, i32) {
    %c0_i32 = arith.constant 0 : i32
    %c0_i32_0 = arith.constant 0 : i32
    return %arg0, %arg1, %c0_i32 : i32, i32, i32
  }
  func.func @transform_1(%arg0: i32, %arg1: i32, %arg2: i32) -> (i32, i32, i32) {
    %c0_i32 = arith.constant 0 : i32
    %c0_i32_0 = arith.constant 0 : i32
    return %arg0, %arg1, %c0_i32 : i32, i32, i32
  }
  func.func @transform_2(%arg0: i32, %arg1: i32, %arg2: i32) -> (i32, i32, i32) {
    %c0_i32 = arith.constant 0 : i32
    %c0_i32_0 = arith.constant 0 : i32
    return %arg0, %arg2, %c0_i32 : i32, i32, i32
  }
  func.func @transform_3(%arg0: i32, %arg1: i32, %arg2: i32) -> (i32, i32, i32) {
    %c0_i32 = arith.constant 0 : i32
    %c0_i32_0 = arith.constant 0 : i32
    return %arg0, %arg2, %c0_i32 : i32, i32, i32
  }
  func.func @transform_4(%arg0: i32, %arg1: i32, %arg2: i32) -> (i32, i32) {
    %c0_i32 = arith.constant 0 : i32
    %c0_i32_0 = arith.constant 0 : i32
    %c0_i32_1 = arith.constant 0 : i32
    return %c0_i32, %c0_i32_0 : i32, i32
  }
  func.func @transform_5(%arg0: i32, %arg1: i32, %arg2: i32) -> (i32, i32) {
    %c0_i32 = arith.constant 0 : i32
    %c0_i32_0 = arith.constant 0 : i32
    %c0_i32_1 = arith.constant 0 : i32
    return %c0_i32, %c0_i32_0 : i32, i32
  }
  func.func @transform_6(%arg0: i32, %arg1: i32, %arg2: i32) -> (i32, i32) {
    %c0_i32 = arith.constant 0 : i32
    %c0_i32_0 = arith.constant 0 : i32
    %c0_i32_1 = arith.constant 0 : i32
    return %c0_i32, %c0_i32_0 : i32, i32
  }
  func.func @transform_7(%arg0: i32, %arg1: i32, %arg2: i32) -> (i32, i32) {
    %c0_i32 = arith.constant 0 : i32
    %c0_i32_0 = arith.constant 0 : i32
    %c0_i32_1 = arith.constant 0 : i32
    return %c0_i32, %c0_i32_0 : i32, i32
  }
  func.func @transform_8(%arg0: i32, %arg1: i32, %arg2: i32) -> (i32, i32) {
    %c0_i32 = arith.constant 0 : i32
    %c0_i32_0 = arith.constant 0 : i32
    %c0_i32_1 = arith.constant 0 : i32
    return %c0_i32, %c0_i32_0 : i32, i32
  }
  func.func @transform_9(%arg0: i32, %arg1: i32, %arg2: i32) -> (i32, i32) {
    %c0_i32 = arith.constant 0 : i32
    %c0_i32_0 = arith.constant 0 : i32
    %c0_i32_1 = arith.constant 0 : i32
    return %c0_i32, %c0_i32_0 : i32, i32
  }
  func.func @transform_10(%arg0: i32, %arg1: i32, %arg2: i32) -> (i32, i32) {
    %c0_i32 = arith.constant 0 : i32
    %c0_i32_0 = arith.constant 0 : i32
    %c0_i32_1 = arith.constant 0 : i32
    return %c0_i32, %c0_i32_0 : i32, i32
  }
  func.func @transform_11(%arg0: i32, %arg1: i32, %arg2: i32) -> (i32, i32) {
    %c0_i32 = arith.constant 0 : i32
    %c0_i32_0 = arith.constant 0 : i32
    %c0_i32_1 = arith.constant 0 : i32
    return %c0_i32, %c0_i32_0 : i32, i32
  }
  func.func @transform_12(%arg0: i32, %arg1: i32, %arg2: i32) -> (i32, i32) {
    %c0_i32 = arith.constant 0 : i32
    %c0_i32_0 = arith.constant 0 : i32
    %c0_i32_1 = arith.constant 0 : i32
    return %c0_i32, %c0_i32_0 : i32, i32
  }
  func.func @transform_13(%arg0: i32, %arg1: i32, %arg2: i32) -> (i32, i32) {
    %c0_i32 = arith.constant 0 : i32
    %c0_i32_0 = arith.constant 0 : i32
    %c0_i32_1 = arith.constant 0 : i32
    return %c0_i32, %c0_i32_0 : i32, i32
  }
  func.func @transform_14(%arg0: i32, %arg1: i32, %arg2: i32) -> (i32, i32, i32) {
    %c0_i32 = arith.constant 0 : i32
    %c0_i32_0 = arith.constant 0 : i32
    return %arg0, %arg1, %c0_i32 : i32, i32, i32
  }
}

module attributes {stable_mosaic.version = 11 : i64} {
  func.func @_token_path_kernel(%arg0: i32, %arg1: i32, %arg2: memref<1x8x32xf32, #tpu.memory_space<vmem>>, %arg3: memref<1x8x32xf32, #tpu.memory_space<vmem>>, %arg4: memref<1x32x32xf32, #tpu.memory_space<vmem>>, %arg5: memref<1x32x32xf32, #tpu.memory_space<vmem>>, %arg6: memref<32x32xf32, #tpu.memory_space<vmem>>, %arg7: memref<1x32xf32, #tpu.memory_space<vmem>>, %arg8: memref<32x32xf32, #tpu.memory_space<vmem>>, %arg9: memref<1x32xf32, #tpu.memory_space<vmem>>, %arg10: memref<32x32xf32, #tpu.memory_space<vmem>>, %arg11: memref<1x32xf32, #tpu.memory_space<vmem>>, %arg12: memref<32x32xf32, #tpu.memory_space<vmem>>, %arg13: memref<1x32xf32, #tpu.memory_space<vmem>>, %arg14: memref<1x32xf32, #tpu.memory_space<vmem>>, %arg15: memref<1x32xf32, #tpu.memory_space<vmem>>, %arg16: memref<32x16xf32, #tpu.memory_space<vmem>>, %arg17: memref<1x16xf32, #tpu.memory_space<vmem>>, %arg18: memref<32x16xf32, #tpu.memory_space<vmem>>, %arg19: memref<1x16xf32, #tpu.memory_space<vmem>>, %arg20: memref<32x16xf32, #tpu.memory_space<vmem>>, %arg21: memref<1x16xf32, #tpu.memory_space<vmem>>, %arg22: memref<16x32xf32, #tpu.memory_space<vmem>>, %arg23: memref<1x32xf32, #tpu.memory_space<vmem>>, %arg24: memref<1x32xf32, #tpu.memory_space<vmem>>, %arg25: memref<1x32xf32, #tpu.memory_space<vmem>>, %arg26: memref<32x64xf32, #tpu.memory_space<vmem>>, %arg27: memref<1x64xf32, #tpu.memory_space<vmem>>, %arg28: memref<64x32xf32, #tpu.memory_space<vmem>>, %arg29: memref<1x32xf32, #tpu.memory_space<vmem>>, %arg30: memref<1x32xf32, #tpu.memory_space<vmem>>, %arg31: memref<1x32xf32, #tpu.memory_space<vmem>>, %arg32: memref<1x8x32xf32, #tpu.memory_space<vmem>>, %arg33: memref<8x32xf32, #tpu.memory_space<vmem>>, %arg34: memref<8x16xf32, #tpu.memory_space<vmem>>, %arg35: memref<8x16xf32, #tpu.memory_space<vmem>>, %arg36: memref<8x4xf32, #tpu.memory_space<vmem>>, %arg37: memref<8x4xf32, #tpu.memory_space<vmem>>) attributes {dimension_semantics = [#tpu.dimension_semantics<parallel>, #tpu.dimension_semantics<arbitrary>], iteration_bounds = array<i64: 2, 2>, scalar_prefetch = 0 : i64, scratch_operands = 5 : i64, tpu.core_type = #tpu.core_type<tc>, window_params = [{transform_indices = @transform_0, window_bounds = array<i64: 1, 8, 32>}, {transform_indices = @transform_1, window_bounds = array<i64: 1, 8, 32>}, {transform_indices = @transform_2, window_bounds = array<i64: 1, 32, 32>}, {transform_indices = @transform_3, window_bounds = array<i64: 1, 32, 32>}, {pipeline_mode = #tpu.pipeline_mode<synchronous>, transform_indices = @transform_4, window_bounds = array<i64: 32, 32>}, {pipeline_mode = #tpu.pipeline_mode<synchronous>, transform_indices = @transform_5, window_bounds = array<i64: 1, 32>}, {pipeline_mode = #tpu.pipeline_mode<synchronous>, transform_indices = @transform_6, window_bounds = array<i64: 32, 32>}, {pipeline_mode = #tpu.pipeline_mode<synchronous>, transform_indices = @transform_7, window_bounds = array<i64: 1, 32>}, {pipeline_mode = #tpu.pipeline_mode<synchronous>, transform_indices = @transform_8, window_bounds = array<i64: 32, 32>}, {pipeline_mode = #tpu.pipeline_mode<synchronous>, transform_indices = @transform_9, window_bounds = array<i64: 1, 32>}, {pipeline_mode = #tpu.pipeline_mode<synchronous>, transform_indices = @transform_10, window_bounds = array<i64: 32, 32>}, {pipeline_mode = #tpu.pipeline_mode<synchronous>, transform_indices = @transform_11, window_bounds = array<i64: 1, 32>}, {pipeline_mode = #tpu.pipeline_mode<synchronous>, transform_indices = @transform_12, window_bounds = array<i64: 1, 32>}, {pipeline_mode = #tpu.pipeline_mode<synchronous>, transform_indices = @transform_13, window_bounds = array<i64: 1, 32>}, {pipeline_mode = #tpu.pipeline_mode<synchronous>, transform_indices = @transform_14, window_bounds = array<i64: 32, 16>}, {pipeline_mode = #tpu.pipeline_mode<synchronous>, transform_indices = @transform_15, window_bounds = array<i64: 1, 16>}, {pipeline_mode = #tpu.pipeline_mode<synchronous>, transform_indices = @transform_16, window_bounds = array<i64: 32, 16>}, {pipeline_mode = #tpu.pipeline_mode<synchronous>, transform_indices = @transform_17, window_bounds = array<i64: 1, 16>}, {pipeline_mode = #tpu.pipeline_mode<synchronous>, transform_indices = @transform_18, window_bounds = array<i64: 32, 16>}, {pipeline_mode = #tpu.pipeline_mode<synchronous>, transform_indices = @transform_19, window_bounds = array<i64: 1, 16>}, {pipeline_mode = #tpu.pipeline_mode<synchronous>, transform_indices = @transform_20, window_bounds = array<i64: 16, 32>}, {pipeline_mode = #tpu.pipeline_mode<synchronous>, transform_indices = @transform_21, window_bounds = array<i64: 1, 32>}, {pipeline_mode = #tpu.pipeline_mode<synchronous>, transform_indices = @transform_22, window_bounds = array<i64: 1, 32>}, {pipeline_mode = #tpu.pipeline_mode<synchronous>, transform_indices = @transform_23, window_bounds = array<i64: 1, 32>}, {pipeline_mode = #tpu.pipeline_mode<synchronous>, transform_indices = @transform_24, window_bounds = array<i64: 32, 64>}, {pipeline_mode = #tpu.pipeline_mode<synchronous>, transform_indices = @transform_25, window_bounds = array<i64: 1, 64>}, {pipeline_mode = #tpu.pipeline_mode<synchronous>, transform_indices = @transform_26, window_bounds = array<i64: 64, 32>}, {pipeline_mode = #tpu.pipeline_mode<synchronous>, transform_indices = @transform_27, window_bounds = array<i64: 1, 32>}, {pipeline_mode = #tpu.pipeline_mode<synchronous>, transform_indices = @transform_28, window_bounds = array<i64: 1, 32>}, {pipeline_mode = #tpu.pipeline_mode<synchronous>, transform_indices = @transform_29, window_bounds = array<i64: 1, 32>}, {transform_indices = @transform_30, window_bounds = array<i64: 1, 8, 32>}]} {
    %c0_i32 = arith.constant 0 : i32
    %0 = arith.cmpi eq, %arg1, %c0_i32 : i32
    %1 = arith.extui %0 : i1 to i32
    %c0_i32_0 = arith.constant 0 : i32
    %2 = arith.cmpi ne, %1, %c0_i32_0 : i32
    scf.if %2 {
      %c0_50 = arith.constant 0 : index
      %c0_51 = arith.constant 0 : index
      %c0_52 = arith.constant 0 : index
      %131 = vector.load %arg2[%c0_50, %c0_51, %c0_52] : memref<1x8x32xf32, #tpu.memory_space<vmem>>, vector<1x8x32xf32>
      %132 = vector.shape_cast %131 : vector<1x8x32xf32> to vector<8x32xf32>
      %c0_53 = arith.constant 0 : index
      %c0_54 = arith.constant 0 : index
      %c0_55 = arith.constant 0 : index
      %133 = vector.load %arg3[%c0_53, %c0_54, %c0_55] : memref<1x8x32xf32, #tpu.memory_space<vmem>>, vector<1x8x32xf32>
      %134 = vector.shape_cast %133 : vector<1x8x32xf32> to vector<8x32xf32>
      %135 = arith.addf %132, %134 : vector<8x32xf32>
      %c0_56 = arith.constant 0 : index
      %c0_57 = arith.constant 0 : index
      %136 = vector.load %arg6[%c0_56, %c0_57] : memref<32x32xf32, #tpu.memory_space<vmem>>, vector<32x32xf32>
      %cst_58 = arith.constant dense<0.000000e+00> : vector<8x32xf32>
      %137 = tpu.matmul %135, %136, %cst_58 {dimension_numbers = #tpu.dot_dimension_numbers<[1], [0], [0], [1], [0, 0, 1, 1], [], []>} : vector<8x32xf32>, vector<32x32xf32>, vector<8x32xf32> -> vector<8x32xf32>
      %c0_59 = arith.constant 0 : index
      %c0_60 = arith.constant 0 : index
      %138 = vector.load %arg7[%c0_59, %c0_60] : memref<1x32xf32, #tpu.memory_space<vmem>>, vector<1x32xf32>
      %139 = vector.broadcast %138 : vector<1x32xf32> to vector<8x32xf32>
      %140 = arith.addf %137, %139 : vector<8x32xf32>
      %c0_61 = arith.constant 0 : index
      %c0_62 = arith.constant 0 : index
      %141 = vector.load %arg8[%c0_61, %c0_62] : memref<32x32xf32, #tpu.memory_space<vmem>>, vector<32x32xf32>
      %cst_63 = arith.constant dense<0.000000e+00> : vector<8x32xf32>
      %142 = tpu.matmul %135, %141, %cst_63 {dimension_numbers = #tpu.dot_dimension_numbers<[1], [0], [0], [1], [0, 0, 1, 1], [], []>} : vector<8x32xf32>, vector<32x32xf32>, vector<8x32xf32> -> vector<8x32xf32>
      %c0_64 = arith.constant 0 : index
      %c0_65 = arith.constant 0 : index
      %143 = vector.load %arg9[%c0_64, %c0_65] : memref<1x32xf32, #tpu.memory_space<vmem>>, vector<1x32xf32>
      %144 = vector.broadcast %143 : vector<1x32xf32> to vector<8x32xf32>
      %145 = arith.addf %142, %144 : vector<8x32xf32>
      %c0_66 = arith.constant 0 : index
      %c0_67 = arith.constant 0 : index
      %146 = vector.load %arg10[%c0_66, %c0_67] : memref<32x32xf32, #tpu.memory_space<vmem>>, vector<32x32xf32>
      %cst_68 = arith.constant dense<0.000000e+00> : vector<8x32xf32>
      %147 = tpu.matmul %132, %146, %cst_68 {dimension_numbers = #tpu.dot_dimension_numbers<[1], [0], [0], [1], [0, 0, 1, 1], [], []>} : vector<8x32xf32>, vector<32x32xf32>, vector<8x32xf32> -> vector<8x32xf32>
      %c0_69 = arith.constant 0 : index
      %c0_70 = arith.constant 0 : index
      %148 = vector.load %arg11[%c0_69, %c0_70] : memref<1x32xf32, #tpu.memory_space<vmem>>, vector<1x32xf32>
      %149 = vector.broadcast %148 : vector<1x32xf32> to vector<8x32xf32>
      %150 = arith.addf %147, %149 : vector<8x32xf32>
      %151 = vector.extract_strided_slice %140 {offsets = [0, 0], sizes = [8, 8], strides = [1, 1]} : vector<8x32xf32> to vector<8x8xf32>
      %152 = vector.extract_strided_slice %145 {offsets = [0, 0], sizes = [8, 8], strides = [1, 1]} : vector<8x32xf32> to vector<8x8xf32>
      %cst_71 = arith.constant dense<0.000000e+00> : vector<8x8xf32>
      %153 = tpu.matmul %151, %152, %cst_71 {dimension_numbers = #tpu.dot_dimension_numbers<[1], [1], [0], [0], [0, 0, 1, 0], [], []>} : vector<8x8xf32>, vector<8x8xf32>, vector<8x8xf32> -> vector<8x8xf32>
      %cst_72 = arith.constant 0.353553385 : f32
      %154 = vector.broadcast %cst_72 : f32 to vector<8x8xf32>
      %155 = arith.mulf %153, %154 : vector<8x8xf32>
      %cst_73 = arith.constant dense<0xFF800000> : vector<8xf32>
      %156 = vector.multi_reduction <maximumf>, %155, %cst_73 [1] : vector<8x8xf32> to vector<8xf32>
      %157 = vector.shape_cast %156 : vector<8xf32> to vector<8x1xf32>
      %158 = vector.broadcast %157 : vector<8x1xf32> to vector<8x8xf32>
      %159 = arith.subf %155, %158 : vector<8x8xf32>
      %160 = math.exp %159 : vector<8x8xf32>
      %cst_74 = arith.constant dense<0.000000e+00> : vector<8xf32>
      %161 = vector.multi_reduction <add>, %160, %cst_74 [1] : vector<8x8xf32> to vector<8xf32>
      %162 = vector.shape_cast %161 : vector<8xf32> to vector<8x1xf32>
      %163 = vector.broadcast %162 : vector<8x1xf32> to vector<8x8xf32>
      %164 = arith.divf %160, %163 : vector<8x8xf32>
      %165 = vector.extract_strided_slice %150 {offsets = [0, 0], sizes = [8, 8], strides = [1, 1]} : vector<8x32xf32> to vector<8x8xf32>
      %cst_75 = arith.constant dense<0.000000e+00> : vector<8x8xf32>
      %166 = tpu.matmul %164, %165, %cst_75 {dimension_numbers = #tpu.dot_dimension_numbers<[1], [0], [0], [1], [0, 0, 1, 1], [], []>} : vector<8x8xf32>, vector<8x8xf32>, vector<8x8xf32> -> vector<8x8xf32>
      %167 = vector.extract_strided_slice %140 {offsets = [0, 8], sizes = [8, 8], strides = [1, 1]} : vector<8x32xf32> to vector<8x8xf32>
      %168 = vector.extract_strided_slice %145 {offsets = [0, 8], sizes = [8, 8], strides = [1, 1]} : vector<8x32xf32> to vector<8x8xf32>
      %cst_76 = arith.constant dense<0.000000e+00> : vector<8x8xf32>
      %169 = tpu.matmul %167, %168, %cst_76 {dimension_numbers = #tpu.dot_dimension_numbers<[1], [1], [0], [0], [0, 0, 1, 0], [], []>} : vector<8x8xf32>, vector<8x8xf32>, vector<8x8xf32> -> vector<8x8xf32>
      %cst_77 = arith.constant 0.353553385 : f32
      %170 = vector.broadcast %cst_77 : f32 to vector<8x8xf32>
      %171 = arith.mulf %169, %170 : vector<8x8xf32>
      %cst_78 = arith.constant dense<0xFF800000> : vector<8xf32>
      %172 = vector.multi_reduction <maximumf>, %171, %cst_78 [1] : vector<8x8xf32> to vector<8xf32>
      %173 = vector.shape_cast %172 : vector<8xf32> to vector<8x1xf32>
      %174 = vector.broadcast %173 : vector<8x1xf32> to vector<8x8xf32>
      %175 = arith.subf %171, %174 : vector<8x8xf32>
      %176 = math.exp %175 : vector<8x8xf32>
      %cst_79 = arith.constant dense<0.000000e+00> : vector<8xf32>
      %177 = vector.multi_reduction <add>, %176, %cst_79 [1] : vector<8x8xf32> to vector<8xf32>
      %178 = vector.shape_cast %177 : vector<8xf32> to vector<8x1xf32>
      %179 = vector.broadcast %178 : vector<8x1xf32> to vector<8x8xf32>
      %180 = arith.divf %176, %179 : vector<8x8xf32>
      %181 = vector.extract_strided_slice %150 {offsets = [0, 8], sizes = [8, 8], strides = [1, 1]} : vector<8x32xf32> to vector<8x8xf32>
      %cst_80 = arith.constant dense<0.000000e+00> : vector<8x8xf32>
      %182 = tpu.matmul %180, %181, %cst_80 {dimension_numbers = #tpu.dot_dimension_numbers<[1], [0], [0], [1], [0, 0, 1, 1], [], []>} : vector<8x8xf32>, vector<8x8xf32>, vector<8x8xf32> -> vector<8x8xf32>
      %183 = vector.extract_strided_slice %140 {offsets = [0, 16], sizes = [8, 8], strides = [1, 1]} : vector<8x32xf32> to vector<8x8xf32>
      %184 = vector.extract_strided_slice %145 {offsets = [0, 16], sizes = [8, 8], strides = [1, 1]} : vector<8x32xf32> to vector<8x8xf32>
      %cst_81 = arith.constant dense<0.000000e+00> : vector<8x8xf32>
      %185 = tpu.matmul %183, %184, %cst_81 {dimension_numbers = #tpu.dot_dimension_numbers<[1], [1], [0], [0], [0, 0, 1, 0], [], []>} : vector<8x8xf32>, vector<8x8xf32>, vector<8x8xf32> -> vector<8x8xf32>
      %cst_82 = arith.constant 0.353553385 : f32
      %186 = vector.broadcast %cst_82 : f32 to vector<8x8xf32>
      %187 = arith.mulf %185, %186 : vector<8x8xf32>
      %cst_83 = arith.constant dense<0xFF800000> : vector<8xf32>
      %188 = vector.multi_reduction <maximumf>, %187, %cst_83 [1] : vector<8x8xf32> to vector<8xf32>
      %189 = vector.shape_cast %188 : vector<8xf32> to vector<8x1xf32>
      %190 = vector.broadcast %189 : vector<8x1xf32> to vector<8x8xf32>
      %191 = arith.subf %187, %190 : vector<8x8xf32>
      %192 = math.exp %191 : vector<8x8xf32>
      %cst_84 = arith.constant dense<0.000000e+00> : vector<8xf32>
      %193 = vector.multi_reduction <add>, %192, %cst_84 [1] : vector<8x8xf32> to vector<8xf32>
      %194 = vector.shape_cast %193 : vector<8xf32> to vector<8x1xf32>
      %195 = vector.broadcast %194 : vector<8x1xf32> to vector<8x8xf32>
      %196 = arith.divf %192, %195 : vector<8x8xf32>
      %197 = vector.extract_strided_slice %150 {offsets = [0, 16], sizes = [8, 8], strides = [1, 1]} : vector<8x32xf32> to vector<8x8xf32>
      %cst_85 = arith.constant dense<0.000000e+00> : vector<8x8xf32>
      %198 = tpu.matmul %196, %197, %cst_85 {dimension_numbers = #tpu.dot_dimension_numbers<[1], [0], [0], [1], [0, 0, 1, 1], [], []>} : vector<8x8xf32>, vector<8x8xf32>, vector<8x8xf32> -> vector<8x8xf32>
      %199 = vector.extract_strided_slice %140 {offsets = [0, 24], sizes = [8, 8], strides = [1, 1]} : vector<8x32xf32> to vector<8x8xf32>
      %200 = vector.extract_strided_slice %145 {offsets = [0, 24], sizes = [8, 8], strides = [1, 1]} : vector<8x32xf32> to vector<8x8xf32>
      %cst_86 = arith.constant dense<0.000000e+00> : vector<8x8xf32>
      %201 = tpu.matmul %199, %200, %cst_86 {dimension_numbers = #tpu.dot_dimension_numbers<[1], [1], [0], [0], [0, 0, 1, 0], [], []>} : vector<8x8xf32>, vector<8x8xf32>, vector<8x8xf32> -> vector<8x8xf32>
      %cst_87 = arith.constant 0.353553385 : f32
      %202 = vector.broadcast %cst_87 : f32 to vector<8x8xf32>
      %203 = arith.mulf %201, %202 : vector<8x8xf32>
      %cst_88 = arith.constant dense<0xFF800000> : vector<8xf32>
      %204 = vector.multi_reduction <maximumf>, %203, %cst_88 [1] : vector<8x8xf32> to vector<8xf32>
      %205 = vector.shape_cast %204 : vector<8xf32> to vector<8x1xf32>
      %206 = vector.broadcast %205 : vector<8x1xf32> to vector<8x8xf32>
      %207 = arith.subf %203, %206 : vector<8x8xf32>
      %208 = math.exp %207 : vector<8x8xf32>
      %cst_89 = arith.constant dense<0.000000e+00> : vector<8xf32>
      %209 = vector.multi_reduction <add>, %208, %cst_89 [1] : vector<8x8xf32> to vector<8xf32>
      %210 = vector.shape_cast %209 : vector<8xf32> to vector<8x1xf32>
      %211 = vector.broadcast %210 : vector<8x1xf32> to vector<8x8xf32>
      %212 = arith.divf %208, %211 : vector<8x8xf32>
      %213 = vector.extract_strided_slice %150 {offsets = [0, 24], sizes = [8, 8], strides = [1, 1]} : vector<8x32xf32> to vector<8x8xf32>
      %cst_90 = arith.constant dense<0.000000e+00> : vector<8x8xf32>
      %214 = tpu.matmul %212, %213, %cst_90 {dimension_numbers = #tpu.dot_dimension_numbers<[1], [0], [0], [1], [0, 0, 1, 1], [], []>} : vector<8x8xf32>, vector<8x8xf32>, vector<8x8xf32> -> vector<8x8xf32>
      %215 = tpu.concatenate %166, %182, %198, %214 in 1 : vector<8x8xf32>, vector<8x8xf32>, vector<8x8xf32>, vector<8x8xf32> -> vector<8x32xf32>
      %c0_91 = arith.constant 0 : index
      %c0_92 = arith.constant 0 : index
      %216 = vector.load %arg12[%c0_91, %c0_92] : memref<32x32xf32, #tpu.memory_space<vmem>>, vector<32x32xf32>
      %cst_93 = arith.constant dense<0.000000e+00> : vector<8x32xf32>
      %217 = tpu.matmul %215, %216, %cst_93 {dimension_numbers = #tpu.dot_dimension_numbers<[1], [0], [0], [1], [0, 0, 1, 1], [], []>} : vector<8x32xf32>, vector<32x32xf32>, vector<8x32xf32> -> vector<8x32xf32>
      %c0_94 = arith.constant 0 : index
      %c0_95 = arith.constant 0 : index
      %218 = vector.load %arg13[%c0_94, %c0_95] : memref<1x32xf32, #tpu.memory_space<vmem>>, vector<1x32xf32>
      %219 = vector.broadcast %218 : vector<1x32xf32> to vector<8x32xf32>
      %220 = arith.addf %217, %219 : vector<8x32xf32>
      %221 = arith.addf %132, %220 : vector<8x32xf32>
      %c0_96 = arith.constant 0 : index
      %c0_97 = arith.constant 0 : index
      %222 = vector.load %arg14[%c0_96, %c0_97] : memref<1x32xf32, #tpu.memory_space<vmem>>, vector<1x32xf32>
      %c0_98 = arith.constant 0 : index
      %c0_99 = arith.constant 0 : index
      %223 = vector.load %arg15[%c0_98, %c0_99] : memref<1x32xf32, #tpu.memory_space<vmem>>, vector<1x32xf32>
      %cst_100 = arith.constant dense<0.000000e+00> : vector<8xf32>
      %224 = vector.multi_reduction <add>, %221, %cst_100 [1] : vector<8x32xf32> to vector<8xf32>
      %225 = vector.shape_cast %224 : vector<8xf32> to vector<8x1xf32>
      %cst_101 = arith.constant 3.200000e+01 : f32
      %226 = vector.broadcast %cst_101 : f32 to vector<8x1xf32>
      %227 = arith.divf %225, %226 : vector<8x1xf32>
      %228 = vector.broadcast %227 : vector<8x1xf32> to vector<8x32xf32>
      %229 = arith.subf %221, %228 : vector<8x32xf32>
      %230 = arith.mulf %229, %229 : vector<8x32xf32>
      %cst_102 = arith.constant dense<0.000000e+00> : vector<8xf32>
      %231 = vector.multi_reduction <add>, %230, %cst_102 [1] : vector<8x32xf32> to vector<8xf32>
      %232 = vector.shape_cast %231 : vector<8xf32> to vector<8x1xf32>
      %cst_103 = arith.constant 3.200000e+01 : f32
      %233 = vector.broadcast %cst_103 : f32 to vector<8x1xf32>
      %234 = arith.divf %232, %233 : vector<8x1xf32>
      %235 = vector.broadcast %227 : vector<8x1xf32> to vector<8x32xf32>
      %236 = arith.subf %221, %235 : vector<8x32xf32>
      %cst_104 = arith.constant 9.99999974E-6 : f32
      %237 = vector.broadcast %cst_104 : f32 to vector<8x1xf32>
      %238 = arith.addf %234, %237 : vector<8x1xf32>
      %239 = math.rsqrt %238 : vector<8x1xf32>
      %240 = vector.broadcast %239 : vector<8x1xf32> to vector<8x32xf32>
      %241 = arith.mulf %236, %240 : vector<8x32xf32>
      %242 = vector.broadcast %222 : vector<1x32xf32> to vector<8x32xf32>
      %243 = arith.mulf %241, %242 : vector<8x32xf32>
      %244 = vector.broadcast %223 : vector<1x32xf32> to vector<8x32xf32>
      %245 = arith.addf %243, %244 : vector<8x32xf32>
      %c0_105 = arith.constant 0 : index
      %c0_106 = arith.constant 0 : index
      %246 = vector.load %arg33[%c0_105, %c0_106] : memref<8x32xf32, #tpu.memory_space<vmem>>, vector<8x32xf32>
      tpu.vector_store %arg33[%c0_105, %c0_106], %245 {strides = array<i32>} : memref<8x32xf32, #tpu.memory_space<vmem>>, vector<8x32xf32>,
      %247 = arith.addf %245, %134 : vector<8x32xf32>
      %c0_107 = arith.constant 0 : index
      %c0_108 = arith.constant 0 : index
      %248 = vector.load %arg16[%c0_107, %c0_108] : memref<32x16xf32, #tpu.memory_space<vmem>>, vector<32x16xf32>
      %cst_109 = arith.constant dense<0.000000e+00> : vector<8x16xf32>
      %249 = tpu.matmul %247, %248, %cst_109 {dimension_numbers = #tpu.dot_dimension_numbers<[1], [0], [0], [1], [0, 0, 1, 1], [], []>} : vector<8x32xf32>, vector<32x16xf32>, vector<8x16xf32> -> vector<8x16xf32>
      %c0_110 = arith.constant 0 : index
      %c0_111 = arith.constant 0 : index
      %250 = vector.load %arg17[%c0_110, %c0_111] : memref<1x16xf32, #tpu.memory_space<vmem>>, vector<1x16xf32>
      %251 = vector.broadcast %250 : vector<1x16xf32> to vector<8x16xf32>
      %252 = arith.addf %249, %251 : vector<8x16xf32>
      %c0_112 = arith.constant 0 : index
      %c0_113 = arith.constant 0 : index
      %253 = vector.load %arg34[%c0_112, %c0_113] : memref<8x16xf32, #tpu.memory_space<vmem>>, vector<8x16xf32>
      tpu.vector_store %arg34[%c0_112, %c0_113], %252 {strides = array<i32>} : memref<8x16xf32, #tpu.memory_space<vmem>>, vector<8x16xf32>,
      %cst_114 = arith.constant 0xFF800000 : f32
      %254 = vector.broadcast %cst_114 : f32 to vector<8x4xf32>
      %c0_115 = arith.constant 0 : index
      %c0_116 = arith.constant 0 : index
      %255 = vector.load %arg36[%c0_115, %c0_116] : memref<8x4xf32, #tpu.memory_space<vmem>>, vector<8x4xf32>
      tpu.vector_store %arg36[%c0_115, %c0_116], %254 {strides = array<i32>} : memref<8x4xf32, #tpu.memory_space<vmem>>, vector<8x4xf32>,
      %cst_117 = arith.constant 0.000000e+00 : f32
      %256 = vector.broadcast %cst_117 : f32 to vector<8x4xf32>
      %c0_118 = arith.constant 0 : index
      %c0_119 = arith.constant 0 : index
      %257 = vector.load %arg37[%c0_118, %c0_119] : memref<8x4xf32, #tpu.memory_space<vmem>>, vector<8x4xf32>
      tpu.vector_store %arg37[%c0_118, %c0_119], %256 {strides = array<i32>} : memref<8x4xf32, #tpu.memory_space<vmem>>, vector<8x4xf32>,
      %cst_120 = arith.constant 0.000000e+00 : f32
      %258 = vector.broadcast %cst_120 : f32 to vector<8x16xf32>
      %c0_121 = arith.constant 0 : index
      %c0_122 = arith.constant 0 : index
      %259 = vector.load %arg35[%c0_121, %c0_122] : memref<8x16xf32, #tpu.memory_space<vmem>>, vector<8x16xf32>
      tpu.vector_store %arg35[%c0_121, %c0_122], %258 {strides = array<i32>} : memref<8x16xf32, #tpu.memory_space<vmem>>, vector<8x16xf32>,
    } else {
    }
    %c0 = arith.constant 0 : index
    %c0_1 = arith.constant 0 : index
    %c0_2 = arith.constant 0 : index
    %3 = vector.load %arg4[%c0, %c0_1, %c0_2] : memref<1x32x32xf32, #tpu.memory_space<vmem>>, vector<1x32x32xf32>
    %4 = vector.shape_cast %3 : vector<1x32x32xf32> to vector<32x32xf32>
    %c0_3 = arith.constant 0 : index
    %c0_4 = arith.constant 0 : index
    %c0_5 = arith.constant 0 : index
    %5 = vector.load %arg5[%c0_3, %c0_4, %c0_5] : memref<1x32x32xf32, #tpu.memory_space<vmem>>, vector<1x32x32xf32>
    %6 = vector.shape_cast %5 : vector<1x32x32xf32> to vector<32x32xf32>
    %7 = arith.addf %4, %6 : vector<32x32xf32>
    %c0_6 = arith.constant 0 : index
    %c0_7 = arith.constant 0 : index
    %8 = vector.load %arg18[%c0_6, %c0_7] : memref<32x16xf32, #tpu.memory_space<vmem>>, vector<32x16xf32>
    %cst = arith.constant dense<0.000000e+00> : vector<32x16xf32>
    %9 = tpu.matmul %7, %8, %cst {dimension_numbers = #tpu.dot_dimension_numbers<[1], [0], [0], [1], [0, 0, 1, 1], [], []>} : vector<32x32xf32>, vector<32x16xf32>, vector<32x16xf32> -> vector<32x16xf32>
    %c0_8 = arith.constant 0 : index
    %c0_9 = arith.constant 0 : index
    %10 = vector.load %arg19[%c0_8, %c0_9] : memref<1x16xf32, #tpu.memory_space<vmem>>, vector<1x16xf32>
    %11 = vector.broadcast %10 : vector<1x16xf32> to vector<32x16xf32>
    %12 = arith.addf %9, %11 : vector<32x16xf32>
    %c0_10 = arith.constant 0 : index
    %c0_11 = arith.constant 0 : index
    %13 = vector.load %arg20[%c0_10, %c0_11] : memref<32x16xf32, #tpu.memory_space<vmem>>, vector<32x16xf32>
    %cst_12 = arith.constant dense<0.000000e+00> : vector<32x16xf32>
    %14 = tpu.matmul %4, %13, %cst_12 {dimension_numbers = #tpu.dot_dimension_numbers<[1], [0], [0], [1], [0, 0, 1, 1], [], []>} : vector<32x32xf32>, vector<32x16xf32>, vector<32x16xf32> -> vector<32x16xf32>
    %c0_13 = arith.constant 0 : index
    %c0_14 = arith.constant 0 : index
    %15 = vector.load %arg21[%c0_13, %c0_14] : memref<1x16xf32, #tpu.memory_space<vmem>>, vector<1x16xf32>
    %16 = vector.broadcast %15 : vector<1x16xf32> to vector<32x16xf32>
    %17 = arith.addf %14, %16 : vector<32x16xf32>
    %c0_15 = arith.constant 0 : index
    %c0_16 = arith.constant 0 : index
    %18 = vector.load %arg34[%c0_15, %c0_16] : memref<8x16xf32, #tpu.memory_space<vmem>>, vector<8x16xf32>
    %c0_17 = arith.constant 0 : index
    %c0_18 = arith.constant 0 : index
    %19 = vector.load %arg35[%c0_17, %c0_18] : memref<8x16xf32, #tpu.memory_space<vmem>>, vector<8x16xf32>
    %c0_19 = arith.constant 0 : index
    %c0_20 = arith.constant 0 : index
    %20 = vector.load %arg36[%c0_19, %c0_20] : memref<8x4xf32, #tpu.memory_space<vmem>>, vector<8x4xf32>
    %c0_21 = arith.constant 0 : index
    %c0_22 = arith.constant 0 : index
    %21 = vector.load %arg37[%c0_21, %c0_22] : memref<8x4xf32, #tpu.memory_space<vmem>>, vector<8x4xf32>
    %22 = vector.extract_strided_slice %18 {offsets = [0, 0], sizes = [8, 4], strides = [1, 1]} : vector<8x16xf32> to vector<8x4xf32>
    %23 = vector.extract_strided_slice %12 {offsets = [0, 0], sizes = [32, 4], strides = [1, 1]} : vector<32x16xf32> to vector<32x4xf32>
    %cst_23 = arith.constant dense<0.000000e+00> : vector<8x32xf32>
    %24 = tpu.matmul %22, %23, %cst_23 {dimension_numbers = #tpu.dot_dimension_numbers<[1], [1], [0], [0], [0, 0, 1, 0], [], []>} : vector<8x4xf32>, vector<32x4xf32>, vector<8x32xf32> -> vector<8x32xf32>
    %cst_24 = arith.constant 5.000000e-01 : f32
    %25 = vector.broadcast %cst_24 : f32 to vector<8x32xf32>
    %26 = arith.mulf %24, %25 : vector<8x32xf32>
    %27 = vector.extract_strided_slice %20 {offsets = [0, 0], sizes = [8, 1], strides = [1, 1]} : vector<8x4xf32> to vector<8x1xf32>
    %cst_25 = arith.constant dense<0xFF800000> : vector<8xf32>
    %28 = vector.multi_reduction <maximumf>, %26, %cst_25 [1] : vector<8x32xf32> to vector<8xf32>
    %29 = vector.shape_cast %28 : vector<8xf32> to vector<8x1xf32>
    %30 = arith.maximumf %27, %29 : vector<8x1xf32>
    %31 = arith.subf %27, %30 : vector<8x1xf32>
    %32 = math.exp %31 : vector<8x1xf32>
    %33 = vector.broadcast %30 : vector<8x1xf32> to vector<8x32xf32>
    %34 = arith.subf %26, %33 : vector<8x32xf32>
    %35 = math.exp %34 : vector<8x32xf32>
    %36 = vector.extract_strided_slice %21 {offsets = [0, 0], sizes = [8, 1], strides = [1, 1]} : vector<8x4xf32> to vector<8x1xf32>
    %37 = arith.mulf %32, %36 : vector<8x1xf32>
    %cst_26 = arith.constant dense<0.000000e+00> : vector<8xf32>
    %38 = vector.multi_reduction <add>, %35, %cst_26 [1] : vector<8x32xf32> to vector<8xf32>
    %39 = vector.shape_cast %38 : vector<8xf32> to vector<8x1xf32>
    %40 = arith.addf %37, %39 : vector<8x1xf32>
    %41 = vector.extract_strided_slice %19 {offsets = [0, 0], sizes = [8, 4], strides = [1, 1]} : vector<8x16xf32> to vector<8x4xf32>
    %42 = vector.broadcast %32 : vector<8x1xf32> to vector<8x4xf32>
    %43 = arith.mulf %42, %41 : vector<8x4xf32>
    %44 = vector.extract_strided_slice %17 {offsets = [0, 0], sizes = [32, 4], strides = [1, 1]} : vector<32x16xf32> to vector<32x4xf32>
    %cst_27 = arith.constant dense<0.000000e+00> : vector<8x4xf32>
    %45 = tpu.matmul %35, %44, %cst_27 {dimension_numbers = #tpu.dot_dimension_numbers<[1], [0], [0], [1], [0, 0, 1, 1], [], []>} : vector<8x32xf32>, vector<32x4xf32>, vector<8x4xf32> -> vector<8x4xf32>
    %46 = arith.addf %43, %45 : vector<8x4xf32>
    %47 = vector.extract_strided_slice %18 {offsets = [0, 4], sizes = [8, 4], strides = [1, 1]} : vector<8x16xf32> to vector<8x4xf32>
    %48 = vector.extract_strided_slice %12 {offsets = [0, 4], sizes = [32, 4], strides = [1, 1]} : vector<32x16xf32> to vector<32x4xf32>
    %cst_28 = arith.constant dense<0.000000e+00> : vector<8x32xf32>
    %49 = tpu.matmul %47, %48, %cst_28 {dimension_numbers = #tpu.dot_dimension_numbers<[1], [1], [0], [0], [0, 0, 1, 0], [], []>} : vector<8x4xf32>, vector<32x4xf32>, vector<8x32xf32> -> vector<8x32xf32>
    %cst_29 = arith.constant 5.000000e-01 : f32
    %50 = vector.broadcast %cst_29 : f32 to vector<8x32xf32>
    %51 = arith.mulf %49, %50 : vector<8x32xf32>
    %52 = vector.extract_strided_slice %20 {offsets = [0, 1], sizes = [8, 1], strides = [1, 1]} : vector<8x4xf32> to vector<8x1xf32>
    %cst_30 = arith.constant dense<0xFF800000> : vector<8xf32>
    %53 = vector.multi_reduction <maximumf>, %51, %cst_30 [1] : vector<8x32xf32> to vector<8xf32>
    %54 = vector.shape_cast %53 : vector<8xf32> to vector<8x1xf32>
    %55 = arith.maximumf %52, %54 : vector<8x1xf32>
    %56 = arith.subf %52, %55 : vector<8x1xf32>
    %57 = math.exp %56 : vector<8x1xf32>
    %58 = vector.broadcast %55 : vector<8x1xf32> to vector<8x32xf32>
    %59 = arith.subf %51, %58 : vector<8x32xf32>
    %60 = math.exp %59 : vector<8x32xf32>
    %61 = vector.extract_strided_slice %21 {offsets = [0, 1], sizes = [8, 1], strides = [1, 1]} : vector<8x4xf32> to vector<8x1xf32>
    %62 = arith.mulf %57, %61 : vector<8x1xf32>
    %cst_31 = arith.constant dense<0.000000e+00> : vector<8xf32>
    %63 = vector.multi_reduction <add>, %60, %cst_31 [1] : vector<8x32xf32> to vector<8xf32>
    %64 = vector.shape_cast %63 : vector<8xf32> to vector<8x1xf32>
    %65 = arith.addf %62, %64 : vector<8x1xf32>
    %66 = vector.extract_strided_slice %19 {offsets = [0, 4], sizes = [8, 4], strides = [1, 1]} : vector<8x16xf32> to vector<8x4xf32>
    %67 = vector.broadcast %57 : vector<8x1xf32> to vector<8x4xf32>
    %68 = arith.mulf %67, %66 : vector<8x4xf32>
    %69 = vector.extract_strided_slice %17 {offsets = [0, 4], sizes = [32, 4], strides = [1, 1]} : vector<32x16xf32> to vector<32x4xf32>
    %cst_32 = arith.constant dense<0.000000e+00> : vector<8x4xf32>
    %70 = tpu.matmul %60, %69, %cst_32 {dimension_numbers = #tpu.dot_dimension_numbers<[1], [0], [0], [1], [0, 0, 1, 1], [], []>} : vector<8x32xf32>, vector<32x4xf32>, vector<8x4xf32> -> vector<8x4xf32>
    %71 = arith.addf %68, %70 : vector<8x4xf32>
    %72 = vector.extract_strided_slice %18 {offsets = [0, 8], sizes = [8, 4], strides = [1, 1]} : vector<8x16xf32> to vector<8x4xf32>
    %73 = vector.extract_strided_slice %12 {offsets = [0, 8], sizes = [32, 4], strides = [1, 1]} : vector<32x16xf32> to vector<32x4xf32>
    %cst_33 = arith.constant dense<0.000000e+00> : vector<8x32xf32>
    %74 = tpu.matmul %72, %73, %cst_33 {dimension_numbers = #tpu.dot_dimension_numbers<[1], [1], [0], [0], [0, 0, 1, 0], [], []>} : vector<8x4xf32>, vector<32x4xf32>, vector<8x32xf32> -> vector<8x32xf32>
    %cst_34 = arith.constant 5.000000e-01 : f32
    %75 = vector.broadcast %cst_34 : f32 to vector<8x32xf32>
    %76 = arith.mulf %74, %75 : vector<8x32xf32>
    %77 = vector.extract_strided_slice %20 {offsets = [0, 2], sizes = [8, 1], strides = [1, 1]} : vector<8x4xf32> to vector<8x1xf32>
    %cst_35 = arith.constant dense<0xFF800000> : vector<8xf32>
    %78 = vector.multi_reduction <maximumf>, %76, %cst_35 [1] : vector<8x32xf32> to vector<8xf32>
    %79 = vector.shape_cast %78 : vector<8xf32> to vector<8x1xf32>
    %80 = arith.maximumf %77, %79 : vector<8x1xf32>
    %81 = arith.subf %77, %80 : vector<8x1xf32>
    %82 = math.exp %81 : vector<8x1xf32>
    %83 = vector.broadcast %80 : vector<8x1xf32> to vector<8x32xf32>
    %84 = arith.subf %76, %83 : vector<8x32xf32>
    %85 = math.exp %84 : vector<8x32xf32>
    %86 = vector.extract_strided_slice %21 {offsets = [0, 2], sizes = [8, 1], strides = [1, 1]} : vector<8x4xf32> to vector<8x1xf32>
    %87 = arith.mulf %82, %86 : vector<8x1xf32>
    %cst_36 = arith.constant dense<0.000000e+00> : vector<8xf32>
    %88 = vector.multi_reduction <add>, %85, %cst_36 [1] : vector<8x32xf32> to vector<8xf32>
    %89 = vector.shape_cast %88 : vector<8xf32> to vector<8x1xf32>
    %90 = arith.addf %87, %89 : vector<8x1xf32>
    %91 = vector.extract_strided_slice %19 {offsets = [0, 8], sizes = [8, 4], strides = [1, 1]} : vector<8x16xf32> to vector<8x4xf32>
    %92 = vector.broadcast %82 : vector<8x1xf32> to vector<8x4xf32>
    %93 = arith.mulf %92, %91 : vector<8x4xf32>
    %94 = vector.extract_strided_slice %17 {offsets = [0, 8], sizes = [32, 4], strides = [1, 1]} : vector<32x16xf32> to vector<32x4xf32>
    %cst_37 = arith.constant dense<0.000000e+00> : vector<8x4xf32>
    %95 = tpu.matmul %85, %94, %cst_37 {dimension_numbers = #tpu.dot_dimension_numbers<[1], [0], [0], [1], [0, 0, 1, 1], [], []>} : vector<8x32xf32>, vector<32x4xf32>, vector<8x4xf32> -> vector<8x4xf32>
    %96 = arith.addf %93, %95 : vector<8x4xf32>
    %97 = vector.extract_strided_slice %18 {offsets = [0, 12], sizes = [8, 4], strides = [1, 1]} : vector<8x16xf32> to vector<8x4xf32>
    %98 = vector.extract_strided_slice %12 {offsets = [0, 12], sizes = [32, 4], strides = [1, 1]} : vector<32x16xf32> to vector<32x4xf32>
    %cst_38 = arith.constant dense<0.000000e+00> : vector<8x32xf32>
    %99 = tpu.matmul %97, %98, %cst_38 {dimension_numbers = #tpu.dot_dimension_numbers<[1], [1], [0], [0], [0, 0, 1, 0], [], []>} : vector<8x4xf32>, vector<32x4xf32>, vector<8x32xf32> -> vector<8x32xf32>
    %cst_39 = arith.constant 5.000000e-01 : f32
    %100 = vector.broadcast %cst_39 : f32 to vector<8x32xf32>
    %101 = arith.mulf %99, %100 : vector<8x32xf32>
    %102 = vector.extract_strided_slice %20 {offsets = [0, 3], sizes = [8, 1], strides = [1, 1]} : vector<8x4xf32> to vector<8x1xf32>
    %cst_40 = arith.constant dense<0xFF800000> : vector<8xf32>
    %103 = vector.multi_reduction <maximumf>, %101, %cst_40 [1] : vector<8x32xf32> to vector<8xf32>
    %104 = vector.shape_cast %103 : vector<8xf32> to vector<8x1xf32>
    %105 = arith.maximumf %102, %104 : vector<8x1xf32>
    %106 = arith.subf %102, %105 : vector<8x1xf32>
    %107 = math.exp %106 : vector<8x1xf32>
    %108 = vector.broadcast %105 : vector<8x1xf32> to vector<8x32xf32>
    %109 = arith.subf %101, %108 : vector<8x32xf32>
    %110 = math.exp %109 : vector<8x32xf32>
    %111 = vector.extract_strided_slice %21 {offsets = [0, 3], sizes = [8, 1], strides = [1, 1]} : vector<8x4xf32> to vector<8x1xf32>
    %112 = arith.mulf %107, %111 : vector<8x1xf32>
    %cst_41 = arith.constant dense<0.000000e+00> : vector<8xf32>
    %113 = vector.multi_reduction <add>, %110, %cst_41 [1] : vector<8x32xf32> to vector<8xf32>
    %114 = vector.shape_cast %113 : vector<8xf32> to vector<8x1xf32>
    %115 = arith.addf %112, %114 : vector<8x1xf32>
    %116 = vector.extract_strided_slice %19 {offsets = [0, 12], sizes = [8, 4], strides = [1, 1]} : vector<8x16xf32> to vector<8x4xf32>
    %117 = vector.broadcast %107 : vector<8x1xf32> to vector<8x4xf32>
    %118 = arith.mulf %117, %116 : vector<8x4xf32>
    %119 = vector.extract_strided_slice %17 {offsets = [0, 12], sizes = [32, 4], strides = [1, 1]} : vector<32x16xf32> to vector<32x4xf32>
    %cst_42 = arith.constant dense<0.000000e+00> : vector<8x4xf32>
    %120 = tpu.matmul %110, %119, %cst_42 {dimension_numbers = #tpu.dot_dimension_numbers<[1], [0], [0], [1], [0, 0, 1, 1], [], []>} : vector<8x32xf32>, vector<32x4xf32>, vector<8x4xf32> -> vector<8x4xf32>
    %121 = arith.addf %118, %120 : vector<8x4xf32>
    %122 = tpu.concatenate %30, %55, %80, %105 in 1 : vector<8x1xf32>, vector<8x1xf32>, vector<8x1xf32>, vector<8x1xf32> -> vector<8x4xf32>
    %c0_43 = arith.constant 0 : index
    %c0_44 = arith.constant 0 : index
    %123 = vector.load %arg36[%c0_43, %c0_44] : memref<8x4xf32, #tpu.memory_space<vmem>>, vector<8x4xf32>
    tpu.vector_store %arg36[%c0_43, %c0_44], %122 {strides = array<i32>} : memref<8x4xf32, #tpu.memory_space<vmem>>, vector<8x4xf32>,
    %124 = tpu.concatenate %40, %65, %90, %115 in 1 : vector<8x1xf32>, vector<8x1xf32>, vector<8x1xf32>, vector<8x1xf32> -> vector<8x4xf32>
    %c0_45 = arith.constant 0 : index
    %c0_46 = arith.constant 0 : index
    %125 = vector.load %arg37[%c0_45, %c0_46] : memref<8x4xf32, #tpu.memory_space<vmem>>, vector<8x4xf32>
    tpu.vector_store %arg37[%c0_45, %c0_46], %124 {strides = array<i32>} : memref<8x4xf32, #tpu.memory_space<vmem>>, vector<8x4xf32>,
    %126 = tpu.concatenate %46, %71, %96, %121 in 1 : vector<8x4xf32>, vector<8x4xf32>, vector<8x4xf32>, vector<8x4xf32> -> vector<8x16xf32>
    %c0_47 = arith.constant 0 : index
    %c0_48 = arith.constant 0 : index
    %127 = vector.load %arg35[%c0_47, %c0_48] : memref<8x16xf32, #tpu.memory_space<vmem>>, vector<8x16xf32>
    tpu.vector_store %arg35[%c0_47, %c0_48], %126 {strides = array<i32>} : memref<8x16xf32, #tpu.memory_space<vmem>>, vector<8x16xf32>,
    %c1_i32 = arith.constant 1 : i32
    %128 = arith.cmpi eq, %arg1, %c1_i32 : i32
    %129 = arith.extui %128 : i1 to i32
    %c0_i32_49 = arith.constant 0 : i32
    %130 = arith.cmpi ne, %129, %c0_i32_49 : i32
    scf.if %130 {
      %c0_50 = arith.constant 0 : index
      %c0_51 = arith.constant 0 : index
      %131 = vector.load %arg35[%c0_50, %c0_51] : memref<8x16xf32, #tpu.memory_space<vmem>>, vector<8x16xf32>
      %c0_52 = arith.constant 0 : index
      %c0_53 = arith.constant 0 : index
      %132 = vector.load %arg37[%c0_52, %c0_53] : memref<8x4xf32, #tpu.memory_space<vmem>>, vector<8x4xf32>
      %133 = vector.extract_strided_slice %131 {offsets = [0, 0], sizes = [8, 4], strides = [1, 1]} : vector<8x16xf32> to vector<8x4xf32>
      %134 = vector.extract_strided_slice %132 {offsets = [0, 0], sizes = [8, 1], strides = [1, 1]} : vector<8x4xf32> to vector<8x1xf32>
      %135 = vector.broadcast %134 : vector<8x1xf32> to vector<8x4xf32>
      %136 = arith.divf %133, %135 : vector<8x4xf32>
      %137 = vector.extract_strided_slice %131 {offsets = [0, 4], sizes = [8, 4], strides = [1, 1]} : vector<8x16xf32> to vector<8x4xf32>
      %138 = vector.extract_strided_slice %132 {offsets = [0, 1], sizes = [8, 1], strides = [1, 1]} : vector<8x4xf32> to vector<8x1xf32>
      %139 = vector.broadcast %138 : vector<8x1xf32> to vector<8x4xf32>
      %140 = arith.divf %137, %139 : vector<8x4xf32>
      %141 = vector.extract_strided_slice %131 {offsets = [0, 8], sizes = [8, 4], strides = [1, 1]} : vector<8x16xf32> to vector<8x4xf32>
      %142 = vector.extract_strided_slice %132 {offsets = [0, 2], sizes = [8, 1], strides = [1, 1]} : vector<8x4xf32> to vector<8x1xf32>
      %143 = vector.broadcast %142 : vector<8x1xf32> to vector<8x4xf32>
      %144 = arith.divf %141, %143 : vector<8x4xf32>
      %145 = vector.extract_strided_slice %131 {offsets = [0, 12], sizes = [8, 4], strides = [1, 1]} : vector<8x16xf32> to vector<8x4xf32>
      %146 = vector.extract_strided_slice %132 {offsets = [0, 3], sizes = [8, 1], strides = [1, 1]} : vector<8x4xf32> to vector<8x1xf32>
      %147 = vector.broadcast %146 : vector<8x1xf32> to vector<8x4xf32>
      %148 = arith.divf %145, %147 : vector<8x4xf32>
      %149 = tpu.concatenate %136, %140, %144, %148 in 1 : vector<8x4xf32>, vector<8x4xf32>, vector<8x4xf32>, vector<8x4xf32> -> vector<8x16xf32>
      %c0_54 = arith.constant 0 : index
      %c0_55 = arith.constant 0 : index
      %150 = vector.load %arg22[%c0_54, %c0_55] : memref<16x32xf32, #tpu.memory_space<vmem>>, vector<16x32xf32>
      %cst_56 = arith.constant dense<0.000000e+00> : vector<8x32xf32>
      %151 = tpu.matmul %149, %150, %cst_56 {dimension_numbers = #tpu.dot_dimension_numbers<[1], [0], [0], [1], [0, 0, 1, 1], [], []>} : vector<8x16xf32>, vector<16x32xf32>, vector<8x32xf32> -> vector<8x32xf32>
      %c0_57 = arith.constant 0 : index
      %c0_58 = arith.constant 0 : index
      %152 = vector.load %arg23[%c0_57, %c0_58] : memref<1x32xf32, #tpu.memory_space<vmem>>, vector<1x32xf32>
      %153 = vector.broadcast %152 : vector<1x32xf32> to vector<8x32xf32>
      %154 = arith.addf %151, %153 : vector<8x32xf32>
      %c0_59 = arith.constant 0 : index
      %c0_60 = arith.constant 0 : index
      %155 = vector.load %arg33[%c0_59, %c0_60] : memref<8x32xf32, #tpu.memory_space<vmem>>, vector<8x32xf32>
      %156 = arith.addf %155, %154 : vector<8x32xf32>
      %c0_61 = arith.constant 0 : index
      %c0_62 = arith.constant 0 : index
      %157 = vector.load %arg24[%c0_61, %c0_62] : memref<1x32xf32, #tpu.memory_space<vmem>>, vector<1x32xf32>
      %c0_63 = arith.constant 0 : index
      %c0_64 = arith.constant 0 : index
      %158 = vector.load %arg25[%c0_63, %c0_64] : memref<1x32xf32, #tpu.memory_space<vmem>>, vector<1x32xf32>
      %cst_65 = arith.constant dense<0.000000e+00> : vector<8xf32>
      %159 = vector.multi_reduction <add>, %156, %cst_65 [1] : vector<8x32xf32> to vector<8xf32>
      %160 = vector.shape_cast %159 : vector<8xf32> to vector<8x1xf32>
      %cst_66 = arith.constant 3.200000e+01 : f32
      %161 = vector.broadcast %cst_66 : f32 to vector<8x1xf32>
      %162 = arith.divf %160, %161 : vector<8x1xf32>
      %163 = vector.broadcast %162 : vector<8x1xf32> to vector<8x32xf32>
      %164 = arith.subf %156, %163 : vector<8x32xf32>
      %165 = arith.mulf %164, %164 : vector<8x32xf32>
      %cst_67 = arith.constant dense<0.000000e+00> : vector<8xf32>
      %166 = vector.multi_reduction <add>, %165, %cst_67 [1] : vector<8x32xf32> to vector<8xf32>
      %167 = vector.shape_cast %166 : vector<8xf32> to vector<8x1xf32>
      %cst_68 = arith.constant 3.200000e+01 : f32
      %168 = vector.broadcast %cst_68 : f32 to vector<8x1xf32>
      %169 = arith.divf %167, %168 : vector<8x1xf32>
      %170 = vector.broadcast %162 : vector<8x1xf32> to vector<8x32xf32>
      %171 = arith.subf %156, %170 : vector<8x32xf32>
      %cst_69 = arith.constant 9.99999974E-6 : f32
      %172 = vector.broadcast %cst_69 : f32 to vector<8x1xf32>
      %173 = arith.addf %169, %172 : vector<8x1xf32>
      %174 = math.rsqrt %173 : vector<8x1xf32>
      %175 = vector.broadcast %174 : vector<8x1xf32> to vector<8x32xf32>
      %176 = arith.mulf %171, %175 : vector<8x32xf32>
      %177 = vector.broadcast %157 : vector<1x32xf32> to vector<8x32xf32>
      %178 = arith.mulf %176, %177 : vector<8x32xf32>
      %179 = vector.broadcast %158 : vector<1x32xf32> to vector<8x32xf32>
      %180 = arith.addf %178, %179 : vector<8x32xf32>
      %c0_70 = arith.constant 0 : index
      %c0_71 = arith.constant 0 : index
      %181 = vector.load %arg26[%c0_70, %c0_71] : memref<32x64xf32, #tpu.memory_space<vmem>>, vector<32x64xf32>
      %cst_72 = arith.constant dense<0.000000e+00> : vector<8x64xf32>
      %182 = tpu.matmul %180, %181, %cst_72 {dimension_numbers = #tpu.dot_dimension_numbers<[1], [0], [0], [1], [0, 0, 1, 1], [], []>} : vector<8x32xf32>, vector<32x64xf32>, vector<8x64xf32> -> vector<8x64xf32>
      %c0_73 = arith.constant 0 : index
      %c0_74 = arith.constant 0 : index
      %183 = vector.load %arg27[%c0_73, %c0_74] : memref<1x64xf32, #tpu.memory_space<vmem>>, vector<1x64xf32>
      %184 = vector.broadcast %183 : vector<1x64xf32> to vector<8x64xf32>
      %185 = arith.addf %182, %184 : vector<8x64xf32>
      %cst_75 = arith.constant 0.000000e+00 : f32
      %186 = vector.broadcast %cst_75 : f32 to vector<8x64xf32>
      %187 = arith.maximumf %185, %186 : vector<8x64xf32>
      %c0_76 = arith.constant 0 : index
      %c0_77 = arith.constant 0 : index
      %188 = vector.load %arg28[%c0_76, %c0_77] : memref<64x32xf32, #tpu.memory_space<vmem>>, vector<64x32xf32>
      %cst_78 = arith.constant dense<0.000000e+00> : vector<8x32xf32>
      %189 = tpu.matmul %187, %188, %cst_78 {dimension_numbers = #tpu.dot_dimension_numbers<[1], [0], [0], [1], [0, 0, 1, 1], [], []>} : vector<8x64xf32>, vector<64x32xf32>, vector<8x32xf32> -> vector<8x32xf32>
      %c0_79 = arith.constant 0 : index
      %c0_80 = arith.constant 0 : index
      %190 = vector.load %arg29[%c0_79, %c0_80] : memref<1x32xf32, #tpu.memory_space<vmem>>, vector<1x32xf32>
      %191 = vector.broadcast %190 : vector<1x32xf32> to vector<8x32xf32>
      %192 = arith.addf %189, %191 : vector<8x32xf32>
      %193 = arith.addf %180, %192 : vector<8x32xf32>
      %c0_81 = arith.constant 0 : index
      %c0_82 = arith.constant 0 : index
      %194 = vector.load %arg30[%c0_81, %c0_82] : memref<1x32xf32, #tpu.memory_space<vmem>>, vector<1x32xf32>
      %c0_83 = arith.constant 0 : index
      %c0_84 = arith.constant 0 : index
      %195 = vector.load %arg31[%c0_83, %c0_84] : memref<1x32xf32, #tpu.memory_space<vmem>>, vector<1x32xf32>
      %cst_85 = arith.constant dense<0.000000e+00> : vector<8xf32>
      %196 = vector.multi_reduction <add>, %193, %cst_85 [1] : vector<8x32xf32> to vector<8xf32>
      %197 = vector.shape_cast %196 : vector<8xf32> to vector<8x1xf32>
      %cst_86 = arith.constant 3.200000e+01 : f32
      %198 = vector.broadcast %cst_86 : f32 to vector<8x1xf32>
      %199 = arith.divf %197, %198 : vector<8x1xf32>
      %200 = vector.broadcast %199 : vector<8x1xf32> to vector<8x32xf32>
      %201 = arith.subf %193, %200 : vector<8x32xf32>
      %202 = arith.mulf %201, %201 : vector<8x32xf32>
      %cst_87 = arith.constant dense<0.000000e+00> : vector<8xf32>
      %203 = vector.multi_reduction <add>, %202, %cst_87 [1] : vector<8x32xf32> to vector<8xf32>
      %204 = vector.shape_cast %203 : vector<8xf32> to vector<8x1xf32>
      %cst_88 = arith.constant 3.200000e+01 : f32
      %205 = vector.broadcast %cst_88 : f32 to vector<8x1xf32>
      %206 = arith.divf %204, %205 : vector<8x1xf32>
      %207 = vector.broadcast %199 : vector<8x1xf32> to vector<8x32xf32>
      %208 = arith.subf %193, %207 : vector<8x32xf32>
      %cst_89 = arith.constant 9.99999974E-6 : f32
      %209 = vector.broadcast %cst_89 : f32 to vector<8x1xf32>
      %210 = arith.addf %206, %209 : vector<8x1xf32>
      %211 = math.rsqrt %210 : vector<8x1xf32>
      %212 = vector.broadcast %211 : vector<8x1xf32> to vector<8x32xf32>
      %213 = arith.mulf %208, %212 : vector<8x32xf32>
      %214 = vector.broadcast %194 : vector<1x32xf32> to vector<8x32xf32>
      %215 = arith.mulf %213, %214 : vector<8x32xf32>
      %216 = vector.broadcast %195 : vector<1x32xf32> to vector<8x32xf32>
      %217 = arith.addf %215, %216 : vector<8x32xf32>
      %c0_90 = arith.constant 0 : index
      %c0_91 = arith.constant 0 : index
      %c0_92 = arith.constant 0 : index
      %218 = vector.load %arg32[%c0_90, %c0_91, %c0_92] : memref<1x8x32xf32, #tpu.memory_space<vmem>>, vector<1x8x32xf32>
      %219 = vector.shape_cast %218 : vector<1x8x32xf32> to vector<8x32xf32>
      %220 = vector.shape_cast %217 : vector<8x32xf32> to vector<1x8x32xf32>
      tpu.vector_store %arg32[%c0_90, %c0_91, %c0_92], %220 {strides = array<i32>} : memref<1x8x32xf32, #tpu.memory_space<vmem>>, vector<1x8x32xf32>,
    } else {
    }
    return
  }
  func.func @transform_0(%arg0: i32, %arg1: i32) -> (i32, i32, i32) {
    %c0_i32 = arith.constant 0 : i32
    %c0_i32_0 = arith.constant 0 : i32
    %c0_i32_1 = arith.constant 0 : i32
    return %arg0, %c0_i32, %c0_i32_0 : i32, i32, i32
  }
  func.func @transform_1(%arg0: i32, %arg1: i32) -> (i32, i32, i32) {
    %c0_i32 = arith.constant 0 : i32
    %c0_i32_0 = arith.constant 0 : i32
    %c0_i32_1 = arith.constant 0 : i32
    return %arg0, %c0_i32, %c0_i32_0 : i32, i32, i32
  }
  func.func @transform_2(%arg0: i32, %arg1: i32) -> (i32, i32, i32) {
    %c0_i32 = arith.constant 0 : i32
    %c0_i32_0 = arith.constant 0 : i32
    return %arg0, %arg1, %c0_i32 : i32, i32, i32
  }
  func.func @transform_3(%arg0: i32, %arg1: i32) -> (i32, i32, i32) {
    %c0_i32 = arith.constant 0 : i32
    %c0_i32_0 = arith.constant 0 : i32
    return %arg0, %arg1, %c0_i32 : i32, i32, i32
  }
  func.func @transform_4(%arg0: i32, %arg1: i32) -> (i32, i32) {
    %c0_i32 = arith.constant 0 : i32
    %c0_i32_0 = arith.constant 0 : i32
    %c0_i32_1 = arith.constant 0 : i32
    return %c0_i32, %c0_i32_0 : i32, i32
  }
  func.func @transform_5(%arg0: i32, %arg1: i32) -> (i32, i32) {
    %c0_i32 = arith.constant 0 : i32
    %c0_i32_0 = arith.constant 0 : i32
    %c0_i32_1 = arith.constant 0 : i32
    return %c0_i32, %c0_i32_0 : i32, i32
  }
  func.func @transform_6(%arg0: i32, %arg1: i32) -> (i32, i32) {
    %c0_i32 = arith.constant 0 : i32
    %c0_i32_0 = arith.constant 0 : i32
    %c0_i32_1 = arith.constant 0 : i32
    return %c0_i32, %c0_i32_0 : i32, i32
  }
  func.func @transform_7(%arg0: i32, %arg1: i32) -> (i32, i32) {
    %c0_i32 = arith.constant 0 : i32
    %c0_i32_0 = arith.constant 0 : i32
    %c0_i32_1 = arith.constant 0 : i32
    return %c0_i32, %c0_i32_0 : i32, i32
  }
  func.func @transform_8(%arg0: i32, %arg1: i32) -> (i32, i32) {
    %c0_i32 = arith.constant 0 : i32
    %c0_i32_0 = arith.constant 0 : i32
    %c0_i32_1 = arith.constant 0 : i32
    return %c0_i32, %c0_i32_0 : i32, i32
  }
  func.func @transform_9(%arg0: i32, %arg1: i32) -> (i32, i32) {
    %c0_i32 = arith.constant 0 : i32
    %c0_i32_0 = arith.constant 0 : i32
    %c0_i32_1 = arith.constant 0 : i32
    return %c0_i32, %c0_i32_0 : i32, i32
  }
  func.func @transform_10(%arg0: i32, %arg1: i32) -> (i32, i32) {
    %c0_i32 = arith.constant 0 : i32
    %c0_i32_0 = arith.constant 0 : i32
    %c0_i32_1 = arith.constant 0 : i32
    return %c0_i32, %c0_i32_0 : i32, i32
  }
  func.func @transform_11(%arg0: i32, %arg1: i32) -> (i32, i32) {
    %c0_i32 = arith.constant 0 : i32
    %c0_i32_0 = arith.constant 0 : i32
    %c0_i32_1 = arith.constant 0 : i32
    return %c0_i32, %c0_i32_0 : i32, i32
  }
  func.func @transform_12(%arg0: i32, %arg1: i32) -> (i32, i32) {
    %c0_i32 = arith.constant 0 : i32
    %c0_i32_0 = arith.constant 0 : i32
    %c0_i32_1 = arith.constant 0 : i32
    return %c0_i32, %c0_i32_0 : i32, i32
  }
  func.func @transform_13(%arg0: i32, %arg1: i32) -> (i32, i32) {
    %c0_i32 = arith.constant 0 : i32
    %c0_i32_0 = arith.constant 0 : i32
    %c0_i32_1 = arith.constant 0 : i32
    return %c0_i32, %c0_i32_0 : i32, i32
  }
  func.func @transform_14(%arg0: i32, %arg1: i32) -> (i32, i32) {
    %c0_i32 = arith.constant 0 : i32
    %c0_i32_0 = arith.constant 0 : i32
    %c0_i32_1 = arith.constant 0 : i32
    return %c0_i32, %c0_i32_0 : i32, i32
  }
  func.func @transform_15(%arg0: i32, %arg1: i32) -> (i32, i32) {
    %c0_i32 = arith.constant 0 : i32
    %c0_i32_0 = arith.constant 0 : i32
    %c0_i32_1 = arith.constant 0 : i32
    return %c0_i32, %c0_i32_0 : i32, i32
  }
  func.func @transform_16(%arg0: i32, %arg1: i32) -> (i32, i32) {
    %c0_i32 = arith.constant 0 : i32
    %c0_i32_0 = arith.constant 0 : i32
    %c0_i32_1 = arith.constant 0 : i32
    return %c0_i32, %c0_i32_0 : i32, i32
  }
  func.func @transform_17(%arg0: i32, %arg1: i32) -> (i32, i32) {
    %c0_i32 = arith.constant 0 : i32
    %c0_i32_0 = arith.constant 0 : i32
    %c0_i32_1 = arith.constant 0 : i32
    return %c0_i32, %c0_i32_0 : i32, i32
  }
  func.func @transform_18(%arg0: i32, %arg1: i32) -> (i32, i32) {
    %c0_i32 = arith.constant 0 : i32
    %c0_i32_0 = arith.constant 0 : i32
    %c0_i32_1 = arith.constant 0 : i32
    return %c0_i32, %c0_i32_0 : i32, i32
  }
  func.func @transform_19(%arg0: i32, %arg1: i32) -> (i32, i32) {
    %c0_i32 = arith.constant 0 : i32
    %c0_i32_0 = arith.constant 0 : i32
    %c0_i32_1 = arith.constant 0 : i32
    return %c0_i32, %c0_i32_0 : i32, i32
  }
  func.func @transform_20(%arg0: i32, %arg1: i32) -> (i32, i32) {
    %c0_i32 = arith.constant 0 : i32
    %c0_i32_0 = arith.constant 0 : i32
    %c0_i32_1 = arith.constant 0 : i32
    return %c0_i32, %c0_i32_0 : i32, i32
  }
  func.func @transform_21(%arg0: i32, %arg1: i32) -> (i32, i32) {
    %c0_i32 = arith.constant 0 : i32
    %c0_i32_0 = arith.constant 0 : i32
    %c0_i32_1 = arith.constant 0 : i32
    return %c0_i32, %c0_i32_0 : i32, i32
  }
  func.func @transform_22(%arg0: i32, %arg1: i32) -> (i32, i32) {
    %c0_i32 = arith.constant 0 : i32
    %c0_i32_0 = arith.constant 0 : i32
    %c0_i32_1 = arith.constant 0 : i32
    return %c0_i32, %c0_i32_0 : i32, i32
  }
  func.func @transform_23(%arg0: i32, %arg1: i32) -> (i32, i32) {
    %c0_i32 = arith.constant 0 : i32
    %c0_i32_0 = arith.constant 0 : i32
    %c0_i32_1 = arith.constant 0 : i32
    return %c0_i32, %c0_i32_0 : i32, i32
  }
  func.func @transform_24(%arg0: i32, %arg1: i32) -> (i32, i32) {
    %c0_i32 = arith.constant 0 : i32
    %c0_i32_0 = arith.constant 0 : i32
    %c0_i32_1 = arith.constant 0 : i32
    return %c0_i32, %c0_i32_0 : i32, i32
  }
  func.func @transform_25(%arg0: i32, %arg1: i32) -> (i32, i32) {
    %c0_i32 = arith.constant 0 : i32
    %c0_i32_0 = arith.constant 0 : i32
    %c0_i32_1 = arith.constant 0 : i32
    return %c0_i32, %c0_i32_0 : i32, i32
  }
  func.func @transform_26(%arg0: i32, %arg1: i32) -> (i32, i32) {
    %c0_i32 = arith.constant 0 : i32
    %c0_i32_0 = arith.constant 0 : i32
    %c0_i32_1 = arith.constant 0 : i32
    return %c0_i32, %c0_i32_0 : i32, i32
  }
  func.func @transform_27(%arg0: i32, %arg1: i32) -> (i32, i32) {
    %c0_i32 = arith.constant 0 : i32
    %c0_i32_0 = arith.constant 0 : i32
    %c0_i32_1 = arith.constant 0 : i32
    return %c0_i32, %c0_i32_0 : i32, i32
  }
  func.func @transform_28(%arg0: i32, %arg1: i32) -> (i32, i32) {
    %c0_i32 = arith.constant 0 : i32
    %c0_i32_0 = arith.constant 0 : i32
    %c0_i32_1 = arith.constant 0 : i32
    return %c0_i32, %c0_i32_0 : i32, i32
  }
  func.func @transform_29(%arg0: i32, %arg1: i32) -> (i32, i32) {
    %c0_i32 = arith.constant 0 : i32
    %c0_i32_0 = arith.constant 0 : i32
    %c0_i32_1 = arith.constant 0 : i32
    return %c0_i32, %c0_i32_0 : i32, i32
  }
  func.func @transform_30(%arg0: i32, %arg1: i32) -> (i32, i32, i32) {
    %c0_i32 = arith.constant 0 : i32
    %c0_i32_0 = arith.constant 0 : i32
    %c0_i32_1 = arith.constant 0 : i32
    return %arg0, %c0_i32, %c0_i32_0 : i32, i32, i32
  }
}

</mosaic_0001>

<bundles_post_ra>
// kernel: two_way_transformer.6
= control target key start
LH: loop header
LB: loop body
LE: loop exit
PB: predicated region body
PF: predicated region fallthrough
CT: control target
= control target key end

     0   :  { %s2153_s29 = smov 0   ;;  %s2155_s30 = smov 0   ;;  %s2643_s0 = inlined_call_operand.vmem [shape: f32[2,64,32], index: 0, kind: input, shape index: {}]   ;;  %s2644_s1 = inlined_call_operand.vmem [shape: f32[2,64,32], index: 1, kind: input, shape index: {}]   ;;  %s2645_s2 = inlined_call_operand.vmem [shape: f32[2,8,32], index: 2, kind: input, shape index: {}]   ;;  %s2646_s3 = inlined_call_operand.vmem [shape: f32[2,8,32], index: 3, kind: input, shape index: {}]   ;;  %s2647_s4 = inlined_call_operand.vmem [shape: f32[32,16], index: 4, kind: input, shape index: {}]   ;;  %s2648_s5 = inlined_call_operand.vmem [shape: f32[1,16], index: 5, kind: input, shape index: {}]   ;;  %s2649_s6 = inlined_call_operand.vmem [shape: f32[32,16], index: 6, kind: input, shape index: {}]   ;;  %s2650_s7 = inlined_call_operand.vmem [shape: f32[1,16], index: 7, kind: input, shape index: {}]   ;;  %s2651_s8 = inlined_call_operand.vmem [shape: f32[32,16], index: 8, kind: input, shape index: {}]   ;;  %s2652_s9 = inlined_call_operand.vmem [shape: f32[1,16], index: 9, kind: input, shape index: {}]   ;;  %s2653_s10 = inlined_call_operand.vmem [shape: f32[16,32], index: 10, kind: input, shape index: {}]   ;;  %s2654_s11 = inlined_call_operand.vmem [shape: f32[1,32], index: 11, kind: input, shape index: {}]   ;;  %s2655_s12 = inlined_call_operand.vmem [shape: f32[1,32], index: 12, kind: input, shape index: {}]   ;;  %s2656_s13 = inlined_call_operand.vmem [shape: f32[1,32], index: 13, kind: input, shape index: {}]   ;;  %s2657_s14 = inlined_call_operand.vmem [shape: f32[2,64,32], index: 14, kind: output, shape index: {}]  }
   0x1   :  { %2658 = sst [smem:[#allocation2_spill]] %s2643_s0  ;;  %s2157_s15 = smov 0  }
   0x2   :  { %2659 = sst [smem:[#allocation3_spill]] %s2644_s1  ;;  %s2159_s16 = smov 0  }
   0x3   :  { %2660 = sst [smem:[#allocation4_spill]] %s2647_s4  ;;  %s2161_s17 = smov 0  }
   0x4 LB: > { %s33_s18 = sadd.s32 1, %s2061_s15  ;;  %s36_s19 = sadd.s32 1, %s2065_s16  ;;  %s2069_s17 = sphi %s2161_s17, %s24_s17   ;;  %s2065_s16 = sphi %s2159_s16, %s2667_s16   ;;  %s2061_s15 = sphi %s2157_s15, %s2666_s15   ;;  %s2057_s30 = sphi %s2155_s30, %s2665_s30   ;;  %s2053_s29 = sphi %s2153_s29, %s2664_s29  }
   0x5   : > { %p34_p0 = scmp.ge.s32.totalorder %s33_s18, 2  ;;  %p1835_p1 = scmp.ge.s32.totalorder %s2069_s17, 1 }
   0x6   : > { %p468_p2 = scmp.lt.s32.totalorder %s2069_s17, 5 }
   0x7   : > { %s2669_s18 = smov (%p34_p0, %s33_s18), 0  ;;  %s2671_s19 = smov (!%p34_p0, %s36_s19), %s2065_s16 }
   0x8   : > { %p469_p3 = pnand %p1835_p1, %p468_p2  ;;  %p38_p4 = scmp.ge.s32.totalorder %s2671_s19, 2 }
   0x9   : > { %s2661_s4 = sld [smem:[#allocation4_spill]] (!%p469_p3)  ;;  %s1836_s24 = sshll.u32 (!%p469_p3), %s2053_s29, 2 }
   0xa   : > { %s2673_s19 = smov (%p38_p4, %s2671_s19), 0  ;;  %472 = sbr.rel (%p469_p3) target bundleno = 1437 (0x59d), region = 76 }
   0xb   : > { %p540_p5 = scmp.lt.s32.totalorder (!%p469_p3), %s2057_s30, 1  ;;  %p542_p6 = scmp.lt.s32.totalorder (!%p469_p3), %s1836_s24, 7 }
   0xc   : > { %s2662_s0 = sld [smem:[#allocation2_spill]] (!%p469_p3)  ;;  %s2071_s20 = smov (!%p469_p3), 124  }
   0xd   : > { %s2663_s1 = sld [smem:[#allocation3_spill]] (!%p469_p3)  ;;  %s2072_s23 = smov (!%p469_p3), 116  }
   0xe   : > { %s2076_s27 = smov (!%p469_p3), 12  }
   0xf   : > { %v595_v0 = vld [vmem:[%s2661_s4 + $0x18] sm:$0xff]  ;;  %v594_v1 = vld [vmem:[%s2661_s4 + $0x10] sm:$0xff]  ;;  %v593_v2 = vld [vmem:[%s2661_s4 + $0x8] sm:$0xff]  ;;  %s2675_s30 = smov (!%p540_p5, %s2057_s30), 1  ;;  %s2677_s24 = smov (!%p542_p6, %s1836_s24), 7  ;;  %vm600_vm0 = vcmask 261120  }
  0x10   : > { %625 = vmatpush.msra.mxu0 %v595_v0  ;;  %1895 = vmatpush.msra.mxu1 %v595_v0  ;;  %v676_v3 = vld [vmem:[%s2651_s8 + $0x18] sm:$0xff]  ;;  %v592_v4 = vld [vmem:[%s2661_s4] sm:$0xff]  ;;  %s2201_s29 = sshll.u32 %s2675_s30, 3  ;;  %v644_v6 = vld [vmem:[%s2649_s6 + $0x10] sm:$0xff]  ;;  %vm704_vm1 = vcmask 31744   ;;  %vm753_vm2 = vcmask 64512  }
  0x11   : > { %v645_v5 = vld [vmem:[%s2649_s6 + $0x18] sm:$0xff]  ;;  %696 = vmatpush.msra.mxu2 %v676_v3  ;;  %s545_s25 = sadd.s32 %s2201_s29, %s2677_s24  ;;  %v643_v13 = vld [vmem:[%s2649_s6 + $0x8] sm:$0xff]  ;;  %s562_s21 = scalar_lea.vmem %s2645_s2, %s2201_s29  ;;  %v642_v14 = vld [vmem:[%s2649_s6] sm:$0xff] }
  0x12   : > { %626 = vmatpush.msra.mxu0 %v594_v1  ;;  %1896 = vmatpush.msra.mxu1 %v594_v1  ;;  %s2207_s26 = sshll.u32 %s545_s25, 3  ;;  %v589_v17 = vld [vmem:[%s562_s21] sm:$0xff]  ;;  %v675_v24 = vld [vmem:[%s2651_s8 + $0x10] sm:$0xff]  ;;  %v674_v25 = vld [vmem:[%s2651_s8 + $0x8] sm:$0xff]  ;;  %s2074_s25 = smov 8  }
  0x13   : > { %s2213_s28 = scalar_lea.vmem %s2662_s0, %s2207_s26  ;;  %s557_s22 = scalar_lea.vmem %s2663_s1, %s2207_s26  ;;  %697 = vmatpush.msra.mxu2 %v675_v24  ;;  %v673_v26 = vld [vmem:[%s2651_s8] sm:$0xff] }
  0x14   : > { %627 = vmatpush.msra.mxu0 %v593_v2  ;;  %1897 = vmatpush.msra.mxu1 %v593_v2  ;;  %v577_v7 = vld [vmem:[%s2213_s28] sm:$0xff]  ;;  %v580_v9 = vld [vmem:[%s2213_s28 + $0x18] sm:$0xff]  ;;  %s566_s0 = scalar_lea.vmem %s2646_s3, %s2201_s29  ;;  %v578_v15 = vld [vmem:[%s2213_s28 + $0x8] sm:$0xff]  ;;  %s2073_s29 = smov 120  }
  0x15   : > { %v581_v8 = vld [vmem:[%s557_s22] sm:$0xff]  ;;  %v584_v11 = vld [vmem:[%s557_s22 + $0x18] sm:$0xff]  ;;  %v582_v16 = vld [vmem:[%s557_s22 + $0x8] sm:$0xff]  ;;  %698 = vmatpush.msra.mxu2 %v674_v25 }
  0x16   : > { %628 = vmatpush.msra.mxu0 %v592_v4  ;;  %1898 = vmatpush.msra.mxu1 %v592_v4  ;;  %v585_v10 = vadd.f32 %v581_v8, %v577_v7  ;;  %v588_v12 = vadd.f32 %v584_v11, %v580_v9  ;;  %v590_v18 = vld [vmem:[%s566_s0] sm:$0xff]  ;;  %v586_v19 = vadd.f32 %v582_v16, %v578_v15  ;;  %v579_v21 = vld [vmem:[%s2213_s28 + $0x10] sm:$0xff]  ;;  %s2075_s0 = smov 4  }
  0x17   : > { %v591_v20 = vadd.f32 %v590_v18, %v589_v17  ;;  %v583_v22 = vld [vmem:[%s557_s22 + $0x10] sm:$0xff]  ;;  %699 = vmatpush.msra.mxu2 %v673_v26  ;;  %v1947_v27 = vld [vmem:[%s2648_s5] ss:$0 sm:$0xff] }
  0x18   : > { %665 = vmatpush.msrb.mxu1 %v645_v5  ;;  %1847 = vmatmul.msk.f32.vlgmr.msra.gmra.mxu0 %vm600_vm0, %v585_v10  ;;  %v587_v23 = vadd.f32 %v583_v22, %v579_v21  ;;  %v1948_v31 = vld [vmem:[%s2650_s7] ss:$0 sm:$0xff] }
  0x19   : > { %1850 = vmatmul.msk.f32.vlgmr.msra.gmra.mxu1 %vm600_vm0, %v588_v12  ;;  %1852 = vmatmul.msk.f32.vlgmr.msra.gmra.mxu2 %vm600_vm0, %v589_v17  ;;  %v1949_v39 = vld [vmem:[%s2652_s9] ss:$0 sm:$0xff] }
  0x1a   : > { %666 = vmatpush.msrb.mxu1 %v644_v6 }
  0x1c   : > { %667 = vmatpush.msrb.mxu1 %v643_v13 }
  0x1e   : > { %668 = vmatpush.msrb.mxu1 %v642_v14 }
  0x20   : > { %1848 = vmatmul.msk.f32.gmra.mxu0 %vm600_vm0, %v586_v19 }
  0x21   : > { %1851 = vmatmul.msk.f32.vlgmr.msrb.gmra.mxu1 %vm600_vm0, %v591_v20 }
  0x28   : > { %1849 = vmatmul.msk.f32.gmra.mxu0 %vm600_vm0, %v587_v23 }
  0x95   : > { %v630_v28 = vpop.f32.mrf.mxu0 }
  0x96   : > { %v639_v29 = vpop.f32.mrf.mxu1  ;;  %v631_v36 = vadd.f32 %v1947_v27, %v630_v28 }
  0x97   : > { %v640_v30 = vadd.f32 %v1947_v27, %v639_v29 }
  0x99   : > { %897 = vrot.lane.b32.xlu2 %v640_v30, %s2071_s20 }
  0x9c   : > { %v701_v40 = vpop.f32.mrf.mxu2 }
  0x9d   : > { %v633_v32 = vpop.f32.mrf.mxu0  ;;  %v2285_v41 = vadd.f32 %v1949_v39, %v701_v40 }
  0x9e   : > { %v634_v33 = vadd.f32 %v1947_v27, %v633_v32  ;;  %v670_v34 = vpop.f32.mrf.mxu1 }
  0x9f   : > { %v671_v35 = vadd.f32 %v1948_v31, %v670_v34  ;;  %877 = vmatpush.msra.mxu1 %v2285_v41 }
  0xa0   : > { %893 = vrot.lane.b32.xlu1 %v634_v33, %s2071_s20 }
  0xa1   : > { %899 = vrot.lane.b32.xlu0 %v671_v35, %s2071_s20  ;;  %1853 = vmatpush.xpose.msk.msrb.mxu2 %vm704_vm1, %v671_v35 }
  0xa2   : > { %1899 = vmatpush.xpose.msk.msra.mxu3 %vm704_vm1, %v671_v35  ;;  %1286 = vrot.lane.b32.xlu2 %v671_v35, %s2072_s23 }
  0xa4   : > { %1854 = vmatmul.msk.f32.vlgmr.msrb.gmra.mxu2 %vm704_vm1, %v631_v36 }
  0xa5   : > { %1855 = vmatmul.msk.f32.vlgmr.msra.gmra.mxu3 %vm704_vm1, %v634_v33  ;;  %v636_v37 = vpop.f32.mrf.mxu0 }
  0xa6   : > { %v637_v38 = vadd.f32 %v1947_v27, %v636_v37 }
  0xa8   : > { %895 = vrot.lane.b32.xlu1 %v637_v38, %s2071_s20 }
  0xa9   : > { %891 = vrot.lane.b32.xlu0 %v631_v36, %s2071_s20 }
  0xaa   : > { %1280 = vrot.lane.b32.xlu2 %v634_v33, %s2072_s23 }
  0xad   : > { %1856 = vmatmul.msk.f32.gmra.mxu3 %vm704_vm1, %v637_v38 }
  0xb0   : > { %1093 = vrot.lane.b32.xlu1 %v671_v35, %s2073_s29 }
  0xb1   : > { %1278 = vrot.lane.b32.xlu0 %v631_v36, %s2072_s23 }
  0xb2   : > { %1087 = vrot.lane.b32.xlu2 %v634_v33, %s2073_s29 }
  0xb5   : > { %1857 = vmatmul.msk.f32.gmra.mxu3 %vm704_vm1, %v640_v30 }
  0xb8   : > { %1282 = vrot.lane.b32.xlu1 %v637_v38, %s2072_s23 }
  0xb9   : > { %1085 = vrot.lane.b32.xlu0 %v631_v36, %s2073_s29 }
  0xba   : > { %1091 = vrot.lane.b32.xlu2 %v640_v30, %s2073_s29 }
  0xc0   : > { %1089 = vrot.lane.b32.xlu1 %v637_v38, %s2073_s29 }
  0xc1   : > { %1284 = vrot.lane.b32.xlu0 %v640_v30, %s2072_s23 }
  0xf3   : > { %v898_v42 = vpop.permute.xlu2 %897 }
  0xfc   : > { %v1287_v45 = vpop.permute.xlu2 %1286 }
 0x104   : > { %v1281_v54 = vpop.permute.xlu2 %1280 }
 0x10c   : > { %v1088_v62 = vpop.permute.xlu2 %1087 }
 0x112   : > { %v894_v43 = vpop.permute.xlu1 %893 }
 0x113   : > { %v900_v44 = vpop.permute.xlu0 %899 }
 0x114   : > { %1862 = vmatpush.xpose.msk.msra.mxu2 %vm704_vm1, %v900_v44  ;;  %v1092_v3 = vpop.permute.xlu2 %1091 }
 0x118   : > { %1880 = vmatpush.xpose.msk.msrb.mxu2 %vm704_vm1, %v1287_v45 }
 0x11a   : > { %v896_v46 = vpop.permute.xlu1 %895 }
 0x11b   : > { %v892_v47 = vpop.permute.xlu0 %891 }
 0x11c   : > { %1863 = vmatmul.msk.f32.vlgmr.msra.gmra.mxu2 %vm704_vm1, %v892_v47 }
 0x122   : > { %v1094_v48 = vpop.permute.xlu1 %1093 }
 0x123   : > { %v1279_v49 = vpop.permute.xlu0 %1278  ;;  %1871 = vmatpush.xpose.msk.msrb.mxu0 %vm704_vm1, %v1094_v48 }
 0x124   : > { %1864 = vmatmul.msk.f32.gmra.mxu2 %vm704_vm1, %v894_v43 }
 0x127   : > { %v737_v50 = vpop.f32.mrf.mxu2 }
 0x128   : > { %v749_v51 = vmul.f32 0.5, %v737_v50  ;;  %v740_v52 = vpop.f32.mrf.mxu3 }
 0x129   : > { %v750_v53 = vmul.f32 0.5, %v740_v52 }
 0x12a   : > { %v754_v55 = vsel %vm753_vm2, %v749_v51, -inf  ;;  %v1283_v60 = vpop.permute.xlu1 %1282 }
 0x12b   : > { %v757_v56 = vsel %vm753_vm2, %v750_v53, -inf  ;;  %v1086_v57 = vpop.permute.xlu0 %1085  ;;  %755 = vmax.xlane.f32.xlu1 %v754_v55 }
 0x12c   : > { %758 = vmax.xlane.f32.xlu2 %v757_v56  ;;  %1865 = vmatmul.msk.f32.gmra.mxu2 %vm704_vm1, %v896_v46 }
 0x12d   : > { %1872 = vmatmul.msk.f32.vlgmr.msrb.gmra.mxu0 %vm704_vm1, %v1086_v57 }
 0x130   : > { %v743_v58 = vpop.f32.mrf.mxu3 }
 0x131   : > { %v2297_v59 = vmul.f32 0.5, %v743_v58 }
 0x132   : > { %v1090_v2 = vpop.permute.xlu1 %1089 }
 0x133   : > { %v760_v61 = vsel %vm753_vm2, %v2297_v59, -inf  ;;  %v1285_v4 = vpop.permute.xlu0 %1284 }
 0x134   : > { %761 = vmax.xlane.f32.xlu1 %v760_v61  ;;  %1866 = vmatmul.msk.f32.gmra.mxu2 %vm704_vm1, %v898_v42 }
 0x135   : > { %1873 = vmatmul.msk.f32.gmra.mxu0 %vm704_vm1, %v1088_v62 }
 0x138   : > { %v746_v63 = vpop.f32.mrf.mxu3 }
 0x139   : > { %v2303_v0 = vmul.f32 0.5, %v746_v63 }
 0x13b   : > { %v763_v1 = vsel %vm753_vm2, %v2303_v0, -inf }
 0x13c   : > { %764 = vmax.xlane.f32.xlu0 %v763_v1  ;;  %1881 = vmatmul.msk.f32.vlgmr.msrb.gmra.mxu2 %vm704_vm1, %v1279_v49 }
 0x13d   : > { %1874 = vmatmul.msk.f32.gmra.mxu0 %vm704_vm1, %v1090_v2 }
 0x144   : > { %1882 = vmatmul.msk.f32.gmra.mxu2 %vm704_vm1, %v1281_v54 }
 0x145   : > { %1875 = vmatmul.msk.f32.gmra.mxu0 %vm704_vm1, %v1092_v3 }
 0x14c   : > { %1883 = vmatmul.msk.f32.gmra.mxu2 %vm704_vm1, %v1283_v60 }
 0x154   : > { %1884 = vmatmul.msk.f32.gmra.mxu2 %vm704_vm1, %v1285_v4 }
 0x19e   : > { %v756_v5 = vpop.xlane.xlu1 %755 }
 0x19f   : > { %v759_v6 = vpop.xlane.xlu2 %758  ;;  %v766_v7 = vsub.f32 %v749_v51, %v756_v5  ;;  %v928_v8 = vpop.f32.mrf.mxu2 }
 0x1a0   : > { %v2313_v9 = vmul.f32 0.5, %v928_v8  ;;  %v767_v10 = vsub.f32 %v750_v53, %v759_v6 }
 0x1a1   : > { %v770_v11 = vmul.f32 1.442695, %v766_v7 }
 0x1a2   : > { %v944_v12 = vsel %vm753_vm2, %v2313_v9, -inf  ;;  %v772_v13 = vmul.f32 1.442695, %v767_v10 }
 0x1a3   : > { %1953 = vpow2.f32 %v770_v11  ;;  %945 = vmax.xlane.f32.xlu0 %v944_v12 }
 0x1a4   : > { %1955 = vpow2.f32 %v772_v13 }
 0x1a7   : > { %v931_v14 = vpop.f32.mrf.mxu2  ;;  %v762_v34 = vpop.xlane.xlu1 %761 }
 0x1a8   : > { %v2327_v22 = vmul.f32 0.5, %v931_v14  ;;  %v768_v36 = vsub.f32 %v2297_v59, %v762_v34 }
 0x1a9   : > { %v2317_v15 = vpop.eup %1953 }
 0x1aa   : > { %v1122_v16 = vpop.f32.mrf.mxu0  ;;  %v778_v17 = vsel %vm753_vm2, %v2317_v15, 0.0  ;;  %v2325_v20 = vpop.eup %1955  ;;  %v947_v26 = vsel %vm753_vm2, %v2327_v22, -inf  ;;  %v774_v40 = vmul.f32 1.442695, %v768_v36 }
 0x1ab   : > { %v2321_v18 = vmul.f32 0.5, %v1122_v16  ;;  %779 = vadd.xlane.f32.xlu0 %v778_v17  ;;  %v781_v24 = vsel %vm753_vm2, %v2325_v20, 0.0 }
 0x1ac   : > { %1957 = vpow2.f32 %v774_v40 }
 0x1ad   : > { %v1138_v19 = vsel %vm753_vm2, %v2321_v18, -inf }
 0x1ae   : > { %1139 = vmax.xlane.f32.xlu2 %v1138_v19 }
 0x1af   : > { %v934_v21 = vpop.f32.mrf.mxu2  ;;  %v765_v44 = vpop.xlane.xlu0 %764 }
 0x1b0   : > { %v2337_v28 = vmul.f32 0.5, %v934_v21  ;;  %v769_v47 = vsub.f32 %v2303_v0, %v765_v44 }
 0x1b2   : > { %v1125_v23 = vpop.f32.mrf.mxu0  ;;  %v950_v31 = vsel %vm753_vm2, %v2337_v28, -inf  ;;  %v776_v50 = vmul.f32 1.442695, %v769_v47  ;;  %v2363_v52 = vpop.eup %1957 }
 0x1b3   : > { %v2331_v25 = vmul.f32 0.5, %v1125_v23  ;;  %782 = vadd.xlane.f32.xlu0 %v781_v24  ;;  %v784_v55 = vsel %vm753_vm2, %v2363_v52, 0.0 }
 0x1b4   : > { %1959 = vpow2.f32 %v776_v50 }
 0x1b5   : > { %v1141_v27 = vsel %vm753_vm2, %v2331_v25, -inf }
 0x1b6   : > { %948 = vmax.xlane.f32.xlu2 %v947_v26  ;;  %1142 = vmax.xlane.f32.xlu1 %v1141_v27 }
 0x1b7   : > { %v937_v29 = vpop.f32.mrf.mxu2 }
 0x1b8   : > { %v2357_v48 = vmul.f32 0.5, %v937_v29 }
 0x1ba   : > { %v1128_v30 = vpop.f32.mrf.mxu0  ;;  %v953_v51 = vsel %vm753_vm2, %v2357_v48, -inf  ;;  %v2371_v57 = vpop.eup %1959 }
 0x1bb   : > { %v2341_v32 = vmul.f32 0.5, %v1128_v30  ;;  %951 = vmax.xlane.f32.xlu0 %v950_v31  ;;  %v787_v60 = vsel %vm753_vm2, %v2371_v57, 0.0 }
 0x1bd   : > { %v1144_v33 = vsel %vm753_vm2, %v2341_v32, -inf }
 0x1be   : > { %1145 = vmax.xlane.f32.xlu1 %v1144_v33 }
 0x1bf   : > { %v1315_v35 = vpop.f32.mrf.mxu2 }
 0x1c0   : > { %v2346_v37 = vmul.f32 0.5, %v1315_v35 }
 0x1c2   : > { %v1131_v38 = vpop.f32.mrf.mxu0  ;;  %v1331_v43 = vsel %vm753_vm2, %v2346_v37, -inf }
 0x1c3   : > { %v2348_v39 = vmul.f32 0.5, %v1131_v38 }
 0x1c5   : > { %v1147_v42 = vsel %vm753_vm2, %v2348_v39, -inf }
 0x1c6   : > { %1148 = vmax.xlane.f32.xlu2 %v1147_v42  ;;  %1332 = vmax.xlane.f32.xlu1 %v1331_v43 }
 0x1c7   : > { %v1318_v45 = vpop.f32.mrf.mxu2 }
 0x1c8   : > { %v2354_v46 = vmul.f32 0.5, %v1318_v45 }
 0x1ca   : > { %v1334_v49 = vsel %vm753_vm2, %v2354_v46, -inf }
 0x1cb   : > { %1335 = vmax.xlane.f32.xlu0 %v1334_v49 }
 0x1ce   : > { %954 = vmax.xlane.f32.xlu2 %v953_v51 }
 0x1cf   : > { %v1321_v53 = vpop.f32.mrf.mxu2 }
 0x1d0   : > { %v2365_v54 = vmul.f32 0.5, %v1321_v53 }
 0x1d2   : > { %v1337_v56 = vsel %vm753_vm2, %v2365_v54, -inf }
 0x1d3   : > { %785 = vadd.xlane.f32.xlu0 %v784_v55 }
 0x1d6   : > { %1338 = vmax.xlane.f32.xlu2 %v1337_v56 }
 0x1d7   : > { %v1324_v58 = vpop.f32.mrf.mxu2 }
 0x1d8   : > { %v2373_v59 = vmul.f32 0.5, %v1324_v58 }
 0x1da   : > { %v1340_v61 = vsel %vm753_vm2, %v2373_v59, -inf }
 0x1db   : > { %788 = vadd.xlane.f32.xlu0 %v787_v60 }
 0x1de   : > { %1341 = vmax.xlane.f32.xlu2 %v1340_v61 }
 0x1f6   : > { %1041 = vrot.lane.b32.xlu2 %v2285_v41, %s2071_s20 }
 0x216   : > { %v946_v62 = vpop.xlane.xlu0 %945 }
 0x217   : > { %v956_v2 = vsub.f32 %v2313_v9, %v946_v62 }
 0x219   : > { %v960_v7 = vmul.f32 1.442695, %v956_v2 }
 0x21e   : > { %v780_v63 = vpop.xlane.xlu0 %779 }
 0x21f   : > { %1961 = vrcp.f32 %v780_v63  ;;  %v799_v10 = vand.u32 2147483647, %v780_v63  ;;  %v801_v11 = vand.u32 2147483648, %v780_v63  ;;  %vm795_vm4 = vweird.f32 %v780_v63 }
 0x221   : > { %v1140_v0 = vpop.xlane.xlu2 %1139  ;;  %v802_v24 = vor.u32 1.1754944e-38, %v801_v11  ;;  %vm800_vm6 = vcmp.eq.f32.partialorder %v799_v10, 8.507059e+37 }
 0x222   : > { %v1150_v1 = vsub.f32 %v2321_v18, %v1140_v0 }
 0x224   : > { %v1154_v3 = vmul.f32 1.442695, %v1150_v1 }
 0x225   : > { %v1962_v4 = vpop.eup %1961 }
 0x226   : > { %v791_v5 = vmul.f32 %v1962_v4, %v780_v63  ;;  %1963 = vpow2.f32 %v1154_v3  ;;  %v783_v6 = vpop.xlane.xlu0 %782  ;;  %vm796_vm3 = vweird.f32 %v1962_v4 }
 0x227   : > { %1965 = vrcp.f32 %v783_v6  ;;  %vm797_vm5 = vmor %vm795_vm4, %vm796_vm3  ;;  %v816_v35 = vand.u32 2147483648, %v783_v6  ;;  %v814_v43 = vand.u32 2147483647, %v783_v6  ;;  %vm810_vm8 = vweird.f32 %v783_v6 }
 0x228   : > { %v792_v8 = vsub.f32 1.0, %v791_v5  ;;  %1967 = vpow2.f32 %v960_v7 }
 0x229   : > { %v949_v12 = vpop.xlane.xlu2 %948  ;;  %v1143_v13 = vpop.xlane.xlu1 %1142  ;;  %vm815_vm10 = vcmp.eq.f32.partialorder %v814_v43, 8.507059e+37 }
 0x22a   : > { %v793_v14 = vmul.f32 %v1962_v4, %v792_v8  ;;  %v957_v16 = vsub.f32 %v2327_v22, %v949_v12  ;;  %v1151_v17 = vsub.f32 %v2331_v25, %v1143_v13 }
 0x22c   : > { %v2385_v9 = vpop.eup %1963  ;;  %v794_v18 = vadd.f32 %v1962_v4, %v793_v14  ;;  %v962_v19 = vmul.f32 1.442695, %v957_v16  ;;  %v1156_v21 = vmul.f32 1.442695, %v1151_v17 }
 0x22d   : > { %v1966_v23 = vpop.eup %1965  ;;  %v1162_v26 = vsel %vm753_vm2, %v2385_v9, 0.0 }
 0x22e   : > { %v798_v27 = vsel %vm797_vm5, %v1962_v4, %v794_v18  ;;  %v806_v29 = vmul.f32 %v1966_v23, %v783_v6  ;;  %1969 = vpow2.f32 %v962_v19  ;;  %1163 = vadd.xlane.f32.xlu0 %v1162_v26  ;;  %v952_v22 = vpop.xlane.xlu0 %951  ;;  %v2391_v34 = vpop.eup %1967  ;;  %vm811_vm7 = vweird.f32 %v1966_v23 }
 0x22f   : > { %v803_v25 = vsel %vm800_vm6, %v802_v24, %v798_v27  ;;  %1971 = vpow2.f32 %v1156_v21  ;;  %v958_v30 = vsub.f32 %v2337_v28, %v952_v22  ;;  %v968_v50 = vsel %vm753_vm2, %v2391_v34, 0.0  ;;  %vm812_vm9 = vmor %vm810_vm8, %vm811_vm7 }
 0x230   : > { %v807_v31 = vsub.f32 1.0, %v806_v29  ;;  %v804_v33 = vmul.f32 %v2317_v15, %v803_v25  ;;  %v817_v15 = vor.u32 1.1754944e-38, %v816_v35 }
 0x231   : > { %v964_v36 = vmul.f32 1.442695, %v958_v30  ;;  %v1146_v38 = vpop.xlane.xlu1 %1145 }
 0x232   : > { %v808_v40 = vmul.f32 %v1966_v23, %v807_v31  ;;  %v1152_v42 = vsub.f32 %v2341_v32, %v1146_v38  ;;  %1858 = vmatmul.msk.f32.vlgmr.msra.gmra.mxu1 %vm753_vm2, %v804_v33 }
 0x233   : > { %1973 = vpow2.f32 %v964_v36 }
 0x234   : > { %v2395_v44 = vpop.eup %1969  ;;  %v1158_v28 = vmul.f32 1.442695, %v1152_v42  ;;  %v809_v45 = vadd.f32 %v1966_v23, %v808_v40 }
 0x235   : > { %v2397_v47 = vpop.eup %1971  ;;  %v971_v49 = vsel %vm753_vm2, %v2395_v44, 0.0 }
 0x236   : > { %1975 = vpow2.f32 %v1158_v28  ;;  %972 = vadd.xlane.f32.xlu1 %v971_v49  ;;  %969 = vadd.xlane.f32.xlu0 %v968_v50  ;;  %v1165_v32 = vsel %vm753_vm2, %v2397_v47, 0.0  ;;  %v813_v51 = vsel %vm812_vm9, %v1966_v23, %v809_v45 }
 0x237   : > { %1166 = vadd.xlane.f32.xlu2 %v1165_v32  ;;  %v818_v53 = vsel %vm815_vm10, %v817_v15, %v813_v51 }
 0x238   : > { %v819_v55 = vmul.f32 %v2325_v20, %v818_v53 }
 0x239   : > { %v2406_v56 = vpop.xlane.xlu2 %1148  ;;  %v2408_v58 = vpop.eup %1973 }
 0x23a   : > { %1859 = vmatmul.msk.f32.gmra.mxu1 %vm753_vm2, %v819_v55  ;;  %v974_v61 = vsel %vm753_vm2, %v2408_v58, 0.0  ;;  %v1333_v0 = vpop.xlane.xlu1 %1332  ;;  %v1153_v50 = vsub.f32 %v2348_v39, %v2406_v56 }
 0x23b   : > { %v1343_v2 = vsub.f32 %v2346_v37, %v1333_v0 }
 0x23c   : > { %v2411_v60 = vpop.eup %1975  ;;  %v1160_v32 = vmul.f32 1.442695, %v1153_v50 }
 0x23d   : > { %v1168_v62 = vsel %vm753_vm2, %v2411_v60, 0.0  ;;  %v1347_v5 = vmul.f32 1.442695, %v1343_v2 }
 0x23e   : > { %975 = vadd.xlane.f32.xlu1 %v974_v61  ;;  %1169 = vadd.xlane.f32.xlu0 %v1168_v62  ;;  %v1336_v63 = vpop.xlane.xlu0 %1335 }
 0x23f   : > { %v1344_v10 = vsub.f32 %v2354_v46, %v1336_v63 }
 0x241   : > { %v955_v1 = vpop.xlane.xlu2 %954  ;;  %v1349_v14 = vmul.f32 1.442695, %v1344_v10 }
 0x242   : > { %v959_v20 = vsub.f32 %v2357_v48, %v955_v1 }
 0x244   : > { %v966_v3 = vmul.f32 1.442695, %v959_v20 }
 0x246   : > { %1977 = vpow2.f32 %v966_v3  ;;  %v786_v4 = vpop.xlane.xlu0 %785 }
 0x247   : > { %1979 = vrcp.f32 %v786_v4  ;;  %v831_v17 = vand.u32 2147483648, %v786_v4  ;;  %v829_v21 = vand.u32 2147483647, %v786_v4  ;;  %vm825_vm12 = vweird.f32 %v786_v4 }
 0x248   : > { %1981 = vpow2.f32 %v1347_v5 }
 0x249   : > { %v1339_v6 = vpop.xlane.xlu2 %1338  ;;  %v832_v26 = vor.u32 1.1754944e-38, %v831_v17  ;;  %vm830_vm14 = vcmp.eq.f32.partialorder %v829_v21, 8.507059e+37 }
 0x24a   : > { %v1345_v7 = vsub.f32 %v2365_v54, %v1339_v6 }
 0x24c   : > { %v2420_v8 = vpop.eup %1977  ;;  %v1351_v11 = vmul.f32 1.442695, %v1345_v7 }
 0x24d   : > { %v1980_v12 = vpop.eup %1979  ;;  %v977_v48 = vsel %vm753_vm2, %v2420_v8, 0.0 }
 0x24e   : > { %v821_v13 = vmul.f32 %v1980_v12, %v786_v4  ;;  %1983 = vpow2.f32 %v1351_v11  ;;  %978 = vadd.xlane.f32.xlu1 %v977_v48  ;;  %v789_v37 = vpop.xlane.xlu0 %788  ;;  %v2425_v54 = vpop.eup %1981  ;;  %vm826_vm11 = vweird.f32 %v1980_v12 }
 0x24f   : > { %1985 = vrcp.f32 %v789_v37  ;;  %v1355_v29 = vsel %vm753_vm2, %v2425_v54, 0.0  ;;  %vm827_vm13 = vmor %vm825_vm12, %vm826_vm11  ;;  %v846_v35 = vand.u32 2147483648, %v789_v37  ;;  %v844_v42 = vand.u32 2147483647, %v789_v37 }
 0x250   : > { %v822_v16 = vsub.f32 1.0, %v821_v13  ;;  %1987 = vpow2.f32 %v1349_v14  ;;  %vm840_vm3 = vweird.f32 %v789_v37 }
 0x251   : > { %v1342_v18 = vpop.xlane.xlu2 %1341  ;;  %v847_v28 = vor.u32 1.1754944e-38, %v846_v35  ;;  %vm845_vm5 = vcmp.eq.f32.partialorder %v844_v42, 8.507059e+37  ;;  %1989 = vpow2.f32 %v1160_v32 }
 0x252   : > { %v823_v19 = vmul.f32 %v1980_v12, %v822_v16  ;;  %v1346_v51 = vsub.f32 %v2373_v59, %v1342_v18 }
 0x254   : > { %v2427_v46 = vpop.eup %1983  ;;  %v824_v23 = vadd.f32 %v1980_v12, %v823_v19  ;;  %v1353_v55 = vmul.f32 1.442695, %v1346_v51 }
 0x255   : > { %v1986_v24 = vpop.eup %1985  ;;  %v1361_v27 = vsel %vm753_vm2, %v2427_v46, 0.0 }
 0x256   : > { %v836_v22 = vmul.f32 %v1986_v24, %v789_v37  ;;  %1362 = vadd.xlane.f32.xlu0 %v1361_v27  ;;  %1356 = vadd.xlane.f32.xlu1 %v1355_v29  ;;  %v828_v25 = vsel %vm827_vm13, %v1980_v12, %v824_v23  ;;  %v2434_v38 = vpop.eup %1987  ;;  %vm841_vm15 = vweird.f32 %v1986_v24  ;;  %1991 = vpow2.f32 %v1353_v55 }
 0x257   : > { %v833_v30 = vsel %vm830_vm14, %v832_v26, %v828_v25  ;;  %v1358_v45 = vsel %vm753_vm2, %v2434_v38, 0.0  ;;  %vm842_vm4 = vmor %vm840_vm3, %vm841_vm15  ;;  %v2448_v53 = vpop.eup %1989 }
 0x258   : > { %v837_v31 = vsub.f32 1.0, %v836_v22  ;;  %v834_v33 = vmul.f32 %v2363_v52, %v833_v30 }
 0x259   : > { %v1042_v36 = vpop.permute.xlu2 %1041 }
 0x25a   : > { %v838_v40 = vmul.f32 %v1986_v24, %v837_v31  ;;  %1071 = vmatpush.msrb.mxu3 %v1042_v36  ;;  %1860 = vmatmul.msk.f32.gmra.mxu1 %vm753_vm2, %v834_v33 }
 0x25c   : > { %v839_v43 = vadd.f32 %v1986_v24, %v838_v40  ;;  %v2452_v61 = vpop.eup %1991 }
 0x25e   : > { %1359 = vadd.xlane.f32.xlu1 %v1358_v45  ;;  %v843_v15 = vsel %vm842_vm4, %v1986_v24, %v839_v43 }
 0x25f   : > { %v848_v52 = vsel %vm845_vm5, %v847_v28, %v843_v15 }
 0x260   : > { %v849_v49 = vmul.f32 %v2371_v57, %v848_v52  ;;  %v1171_v57 = vsel %vm753_vm2, %v2448_v53, 0.0 }
 0x262   : > { %1861 = vmatmul.msk.f32.gmra.mxu1 %vm753_vm2, %v849_v49 }
 0x26a   : > { %1234 = vrot.lane.b32.xlu0 %v2285_v41, %s2073_s29 }
 0x277   : > { %1427 = vrot.lane.b32.xlu1 %v2285_v41, %s2072_s23  ;;  %v1364_v41 = vsel %vm753_vm2, %v2452_v61, 0.0 }
 0x294   : > { %1172 = vadd.xlane.f32.xlu0 %v1171_v57 }
 0x2a1   : > { %v2456_v62 = vpop.xlane.xlu0 %1163  ;;  %1365 = vadd.xlane.f32.xlu1 %v1364_v41 }
 0x2a9   : > { %v970_v39 = vpop.xlane.xlu0 %969  ;;  %v973_v56 = vpop.xlane.xlu1 %972 }
 0x2aa   : > { %1993 = vrcp.f32 %v970_v39  ;;  %v991_v3 = vand.u32 2147483648, %v970_v39  ;;  %v989_v5 = vand.u32 2147483647, %v970_v39  ;;  %vm985_vm7 = vweird.f32 %v970_v39  ;;  %v2461_v22 = vpop.xlane.xlu2 %1166 }
 0x2ab   : > { %1995 = vrcp.f32 %v973_v56  ;;  %v1006_v37 = vand.u32 2147483648, %v973_v56  ;;  %vm1000_vm11 = vweird.f32 %v973_v56  ;;  %v1004_v18 = vand.u32 2147483647, %v973_v56 }
 0x2ac   : > { %v992_v11 = vor.u32 1.1754944e-38, %v991_v3  ;;  %vm990_vm9 = vcmp.eq.f32.partialorder %v989_v5, 8.507059e+37 }
 0x2ad   : > { %v1007_v23 = vor.u32 1.1754944e-38, %v1006_v37  ;;  %vm1005_vm13 = vcmp.eq.f32.partialorder %v1004_v18, 8.507059e+37 }
 0x2b0   : > { %v1994_v59 = vpop.eup %1993 }
 0x2b1   : > { %v981_v63 = vmul.f32 %v1994_v59, %v970_v39  ;;  %v976_v0 = vpop.xlane.xlu1 %975  ;;  %v1996_v1 = vpop.eup %1995  ;;  %vm986_vm6 = vweird.f32 %v1994_v59 }
 0x2b2   : > { %v996_v2 = vmul.f32 %v1996_v1, %v973_v56  ;;  %1997 = vrcp.f32 %v976_v0  ;;  %vm987_vm8 = vmor %vm985_vm7, %vm986_vm6  ;;  %vm1001_vm10 = vweird.f32 %v1996_v1  ;;  %v1021_v25 = vand.u32 2147483648, %v976_v0  ;;  %v2469_v15 = vpop.xlane.xlu0 %1169 }
 0x2b3   : > { %v982_v20 = vsub.f32 1.0, %v981_v63  ;;  %vm1002_vm12 = vmor %vm1000_vm11, %vm1001_vm10  ;;  %1999 = vrcp.f32 %v2456_v62  ;;  %vm1015_vm15 = vweird.f32 %v976_v0  ;;  %v1019_v31 = vand.u32 2147483647, %v976_v0 }
 0x2b4   : > { %v997_v6 = vsub.f32 1.0, %v996_v2  ;;  %v1022_v36 = vor.u32 1.1754944e-38, %v1021_v25  ;;  %vm1179_vm10 = vweird.f32 %v2456_v62 }
 0x2b5   : > { %v983_v4 = vmul.f32 %v1994_v59, %v982_v20  ;;  %vm1020_vm4 = vcmp.eq.f32.partialorder %v1019_v31, 8.507059e+37  ;;  %v1185_v20 = vand.u32 2147483648, %v2456_v62  ;;  %v1215_v31 = vand.u32 2147483648, %v2469_v15 }
 0x2b6   : > { %v998_v10 = vmul.f32 %v1996_v1, %v997_v6 }
 0x2b7   : > { %v984_v7 = vadd.f32 %v1994_v59, %v983_v4  ;;  %v1183_v4 = vand.u32 2147483647, %v2456_v62 }
 0x2b8   : > { %v1998_v12 = vpop.eup %1997  ;;  %v999_v13 = vadd.f32 %v1996_v1, %v998_v10 }
 0x2b9   : > { %v988_v48 = vsel %vm987_vm8, %v1994_v59, %v984_v7  ;;  %v1011_v14 = vmul.f32 %v1998_v12, %v976_v0  ;;  %vm1016_vm14 = vweird.f32 %v1998_v12 }
 0x2ba   : > { %v993_v16 = vsel %vm990_vm9, %v992_v11, %v988_v48  ;;  %v1003_v21 = vsel %vm1002_vm12, %v1996_v1, %v999_v13  ;;  %vm1017_vm3 = vmor %vm1015_vm15, %vm1016_vm14  ;;  %vm1184_vm12 = vcmp.eq.f32.partialorder %v1183_v4, 8.507059e+37  ;;  %vm1194_vm14 = vweird.f32 %v2461_v22 }
 0x2bb   : > { %v994_v17 = vmul.f32 %v2391_v34, %v993_v16  ;;  %v1012_v19 = vsub.f32 1.0, %v1011_v14  ;;  %v1008_v26 = vsel %vm1005_vm13, %v1007_v23, %v1003_v21  ;;  %v2000_v34 = vpop.eup %1999  ;;  %v1200_v14 = vand.u32 2147483648, %v2461_v22 }
 0x2bc   : > { %v1009_v30 = vmul.f32 %v2395_v44, %v1008_v26  ;;  %v1175_v35 = vmul.f32 %v2000_v34, %v2456_v62  ;;  %vm1180_vm8 = vweird.f32 %v2000_v34  ;;  %v1198_v21 = vand.u32 2147483647, %v2461_v22 }
 0x2bd   : > { %1867 = vmatmul.msk.f32.vlgmr.msrb.gmra.mxu3 %vm753_vm2, %v994_v17  ;;  %v1013_v24 = vmul.f32 %v1998_v12, %v1012_v19  ;;  %vm1181_vm11 = vmor %vm1179_vm10, %vm1180_vm8  ;;  %v1201_v26 = vor.u32 1.1754944e-38, %v1200_v14  ;;  %vm1209_vm8 = vweird.f32 %v2469_v15 }
 0x2be   : > { %v1176_v45 = vsub.f32 1.0, %v1175_v35 }
 0x2bf   : > { %v1014_v29 = vadd.f32 %v1998_v12, %v1013_v24 }
 0x2c0   : > { %v1177_v51 = vmul.f32 %v2000_v34, %v1176_v45 }
 0x2c1   : > { %v979_v27 = vpop.xlane.xlu1 %978  ;;  %v1018_v33 = vsel %vm1017_vm3, %v1998_v12, %v1014_v29  ;;  %v1186_v12 = vor.u32 1.1754944e-38, %v1185_v20 }
 0x2c2   : > { %2001 = vrcp.f32 %v979_v27  ;;  %v1023_v42 = vsel %vm1020_vm4, %v1022_v36, %v1018_v33  ;;  %v1036_v32 = vand.u32 2147483648, %v979_v27  ;;  %v1034_v57 = vand.u32 2147483647, %v979_v27 }
 0x2c3   : > { %2003 = vrcp.f32 %v2461_v22  ;;  %v1024_v49 = vmul.f32 %v2408_v58, %v1023_v42  ;;  %vm1030_vm6 = vweird.f32 %v979_v27  ;;  %v1178_v63 = vadd.f32 %v2000_v34, %v1177_v51 }
 0x2c4   : > { %v1037_v56 = vor.u32 1.1754944e-38, %v1036_v32  ;;  %vm1035_vm9 = vcmp.eq.f32.partialorder %v1034_v57, 8.507059e+37  ;;  %vm1199_vm4 = vcmp.eq.f32.partialorder %v1198_v21, 8.507059e+37 }
 0x2c5   : > { %1868 = vmatmul.msk.f32.gmra.mxu3 %vm753_vm2, %v1009_v30  ;;  %v1182_v7 = vsel %vm1181_vm11, %v2000_v34, %v1178_v63 }
 0x2c6   : > { %v1187_v62 = vsel %vm1184_vm12, %v1186_v12, %v1182_v7 }
 0x2c7   : > { %v1188_v19 = vmul.f32 %v2385_v9, %v1187_v62 }
 0x2c8   : > { %v2002_v40 = vpop.eup %2001 }
 0x2c9   : > { %v1026_v43 = vmul.f32 %v2002_v40, %v979_v27  ;;  %v2467_v28 = vpop.xlane.xlu1 %1356  ;;  %v2471_v44 = vpop.eup %2003  ;;  %vm1031_vm5 = vweird.f32 %v2002_v40 }
 0x2ca   : > { %2005 = vrcp.f32 %v2467_v28  ;;  %v1190_v55 = vmul.f32 %v2471_v44, %v2461_v22  ;;  %vm1032_vm7 = vmor %vm1030_vm6, %vm1031_vm5  ;;  %v2491_v5 = vpop.xlane.xlu0 %1362  ;;  %vm1195_vm13 = vweird.f32 %v2471_v44  ;;  %v1378_v34 = vand.u32 2147483648, %v2467_v28 }
 0x2cb   : > { %v1027_v52 = vsub.f32 1.0, %v1026_v43  ;;  %2007 = vrcp.f32 %v2469_v15  ;;  %vm1196_vm15 = vmor %vm1194_vm14, %vm1195_vm13  ;;  %vm1372_vm5 = vweird.f32 %v2467_v28  ;;  %v1376_v9 = vand.u32 2147483647, %v2467_v28 }
 0x2cc   : > { %v1191_v0 = vsub.f32 1.0, %v1190_v55  ;;  %v1213_v43 = vand.u32 2147483647, %v2469_v15  ;;  %v1406_v63 = vand.u32 2147483647, %v2491_v5 }
 0x2cd   : > { %v1028_v50 = vmul.f32 %v2002_v40, %v1027_v52  ;;  %1869 = vmatmul.msk.f32.gmra.mxu3 %vm753_vm2, %v1024_v49 }
 0x2ce   : > { %v1192_v10 = vmul.f32 %v2471_v44, %v1191_v0  ;;  %vm1214_vm12 = vcmp.eq.f32.partialorder %v1213_v43, 8.507059e+37 }
 0x2cf   : > { %v1029_v41 = vadd.f32 %v2002_v40, %v1028_v50 }
 0x2d0   : > { %v2479_v39 = vpop.eup %2005 }
 0x2d1   : > { %v2481_v58 = vpop.xlane.xlu1 %1359  ;;  %v1033_v59 = vsel %vm1032_vm7, %v2002_v40, %v1029_v41  ;;  %v2484_v1 = vpop.eup %2007  ;;  %v1368_v2 = vmul.f32 %v2479_v39, %v2467_v28  ;;  %vm1373_vm3 = vweird.f32 %v2479_v39  ;;  %v1379_v40 = vor.u32 1.1754944e-38, %v1378_v34 }
 0x2d2   : > { %2009 = vrcp.f32 %v2481_v58  ;;  %v1038_v3 = vsel %vm1035_vm9, %v1037_v56, %v1033_v59  ;;  %v1205_v11 = vmul.f32 %v2484_v1, %v2469_v15  ;;  %vm1374_vm6 = vmor %vm1372_vm5, %vm1373_vm3  ;;  %vm1210_vm7 = vweird.f32 %v2484_v1 }
 0x2d3   : > { %v1039_v6 = vmul.f32 %v2420_v8, %v1038_v3  ;;  %v1369_v48 = vsub.f32 1.0, %v1368_v2  ;;  %2011 = vrcp.f32 %v2491_v5  ;;  %v1193_v8 = vadd.f32 %v2471_v44, %v1192_v10  ;;  %vm1211_vm10 = vmor %vm1209_vm8, %vm1210_vm7 }
 0x2d4   : > { %v1206_v37 = vsub.f32 1.0, %v1205_v11  ;;  %vm1377_vm9 = vcmp.eq.f32.partialorder %v1376_v9, 8.507059e+37  ;;  %v1393_v50 = vand.u32 2147483648, %v2481_v58  ;;  %vm1387_vm13 = vweird.f32 %v2481_v58 }
 0x2d5   : > { %1870 = vmatmul.msk.f32.gmra.mxu3 %vm753_vm2, %v1039_v6  ;;  %v1370_v16 = vmul.f32 %v2479_v39, %v1369_v48  ;;  %v1197_v24 = vsel %vm1196_vm15, %v2471_v44, %v1193_v8  ;;  %v1216_v44 = vor.u32 1.1754944e-38, %v1215_v31  ;;  %v1391_v51 = vand.u32 2147483647, %v2481_v58 }
 0x2d6   : > { %v1207_v23 = vmul.f32 %v2484_v1, %v1206_v37  ;;  %v1202_v22 = vsel %vm1199_vm4, %v1201_v26, %v1197_v24  ;;  %v1394_v41 = vor.u32 1.1754944e-38, %v1393_v50  ;;  %vm1402_vm4 = vweird.f32 %v2491_v5 }
 0x2d7   : > { %v1371_v27 = vadd.f32 %v2479_v39, %v1370_v16  ;;  %v1203_v42 = vmul.f32 %v2397_v47, %v1202_v22  ;;  %vm1392_vm15 = vcmp.eq.f32.partialorder %v1391_v51, 8.507059e+37 }
 0x2d8   : > { %v2499_v13 = vpop.eup %2009  ;;  %v1208_v30 = vadd.f32 %v2484_v1, %v1207_v23 }
 0x2d9   : > { %v1383_v17 = vmul.f32 %v2499_v13, %v2481_v58  ;;  %v2012_v25 = vpop.eup %2011  ;;  %v1375_v35 = vsel %vm1374_vm6, %v2479_v39, %v1371_v27  ;;  %vm1388_vm11 = vweird.f32 %v2499_v13  ;;  %vm1407_vm6 = vcmp.eq.f32.partialorder %v1406_v63, 8.507059e+37 }
 0x2da   : > { %v1398_v33 = vmul.f32 %v2012_v25, %v2491_v5  ;;  %v1380_v28 = vsel %vm1377_vm9, %v1379_v40, %v1375_v35  ;;  %v1212_v45 = vsel %vm1211_vm10, %v2484_v1, %v1208_v30  ;;  %vm1389_vm14 = vmor %vm1387_vm13, %vm1388_vm11  ;;  %vm1403_vm3 = vweird.f32 %v2012_v25 }
 0x2db   : > { %v1384_v29 = vsub.f32 1.0, %v1383_v17  ;;  %v1381_v15 = vmul.f32 %v2425_v54, %v1380_v28  ;;  %v1217_v32 = vsel %vm1214_vm12, %v1216_v44, %v1212_v45  ;;  %v1408_v54 = vand.u32 2147483648, %v2491_v5  ;;  %vm1404_vm5 = vmor %vm1402_vm4, %vm1403_vm3  ;;  %v1533_v28 = vld [vmem:[%s2653_s10 + $0x8] sm:$0xff]  ;;  %v1532_v45 = vld [vmem:[%s2653_s10] sm:$0xff] }
 0x2dc   : > { %v1235_v18 = vpop.permute.xlu0 %1234  ;;  %v1399_v52 = vsub.f32 1.0, %v1398_v33  ;;  %v1218_v39 = vmul.f32 %v2411_v60, %v1217_v32  ;;  %1565 = vmatpush.msra.mxu0 %v1533_v28  ;;  %vm1527_vm3 = vcmask 97280  }
 0x2dd   : > { %1264 = vmatpush.msrb.mxu1 %v1235_v18  ;;  %v1385_v36 = vmul.f32 %v2499_v13, %v1384_v29  ;;  %v1409_v1 = vor.u32 1.1754944e-38, %v1408_v54 }
 0x2de   : > { %1876 = vmatmul.msk.f32.vlgmr.msrb.gmra.mxu1 %vm753_vm2, %v1188_v19  ;;  %v1400_v55 = vmul.f32 %v2012_v25, %v1399_v52  ;;  %1566 = vmatpush.msra.mxu0 %v1532_v45 }
 0x2df   : > { %v1386_v49 = vadd.f32 %v2499_v13, %v1385_v36 }
 0x2e0   : > { %v1401_v59 = vadd.f32 %v2012_v25, %v1400_v55 }
 0x2e1   : > { %v1390_v57 = vsel %vm1389_vm14, %v2499_v13, %v1386_v49 }
 0x2e2   : > { %v1395_v56 = vsel %vm1392_vm15, %v1394_v41, %v1390_v57  ;;  %v1405_v0 = vsel %vm1404_vm5, %v2012_v25, %v1401_v59  ;;  %vm1538_vm15 = vcmask 130048  }
 0x2e3   : > { %v1396_v58 = vmul.f32 %v2434_v38, %v1395_v56  ;;  %v1410_v60 = vsel %vm1407_vm6, %v1409_v1, %v1405_v0 }
 0x2e4   : > { %v1411_v20 = vmul.f32 %v2427_v46, %v1410_v60 }
 0x2e6   : > { %1877 = vmatmul.msk.f32.gmra.mxu1 %vm753_vm2, %v1203_v42 }
 0x2e9   : > { %v1428_v47 = vpop.permute.xlu1 %1427 }
 0x2ea   : > { %1457 = vmatpush.msra.mxu3 %v1428_v47 }
 0x2eb   : > { %1885 = vmatmul.msk.f32.vlgmr.msra.gmra.mxu3 %vm753_vm2, %v1381_v15 }
 0x2ee   : > { %1878 = vmatmul.msk.f32.gmra.mxu1 %vm753_vm2, %v1218_v39 }
 0x2f3   : > { %1886 = vmatmul.msk.f32.gmra.mxu3 %vm753_vm2, %v1396_v58 }
 0x2fb   : > { %1887 = vmatmul.msk.f32.gmra.mxu3 %vm753_vm2, %v1411_v20 }
 0x307   : > { %v1173_v2 = vpop.xlane.xlu0 %1172 }
 0x308   : > { %2013 = vrcp.f32 %v1173_v2  ;;  %v1230_v7 = vand.u32 2147483648, %v1173_v2  ;;  %v1228_v5 = vand.u32 2147483647, %v1173_v2  ;;  %vm1224_vm8 = vweird.f32 %v1173_v2 }
 0x30a   : > { %v1231_v12 = vor.u32 1.1754944e-38, %v1230_v7  ;;  %vm1229_vm10 = vcmp.eq.f32.partialorder %v1228_v5, 8.507059e+37 }
 0x30e   : > { %v2014_v3 = vpop.eup %2013 }
 0x30f   : > { %v1220_v4 = vmul.f32 %v2014_v3, %v1173_v2  ;;  %vm1225_vm7 = vweird.f32 %v2014_v3 }
 0x310   : > { %vm1226_vm9 = vmor %vm1224_vm8, %vm1225_vm7 }
 0x311   : > { %v1221_v6 = vsub.f32 1.0, %v1220_v4  ;;  %v1950_v4 = vld [vmem:[%s2654_s11] ss:$0 sm:$0xff] }
 0x313   : > { %v1222_v38 = vmul.f32 %v2014_v3, %v1221_v6 }
 0x314   : > { %v1366_v10 = vpop.xlane.xlu1 %1365 }
 0x315   : > { %2015 = vrcp.f32 %v1366_v10  ;;  %v1223_v11 = vadd.f32 %v2014_v3, %v1222_v38  ;;  %v1423_v14 = vand.u32 2147483648, %v1366_v10  ;;  %v1421_v17 = vand.u32 2147483647, %v1366_v10  ;;  %v2027_v38 = vld [vmem:[%s2213_s28] sm:$0xff] }
 0x316   : > { %vm1417_vm12 = vweird.f32 %v1366_v10 }
 0x317   : > { %v1227_v48 = vsel %vm1226_vm9, %v2014_v3, %v1223_v11  ;;  %v1424_v19 = vor.u32 1.1754944e-38, %v1423_v14  ;;  %vm1422_vm14 = vcmp.eq.f32.partialorder %v1421_v17, 8.507059e+37 }
 0x318   : > { %v1232_v46 = vsel %vm1229_vm10, %v1231_v12, %v1227_v48  ;;  %v2028_v48 = vld [vmem:[%s2213_s28 + $0x8] sm:$0xff] }
 0x319   : > { %v1233_v13 = vmul.f32 %v2448_v53, %v1232_v46  ;;  %v879_v53 = vpop.f32.mrf.mxu1 }
 0x31b   : > { %v2016_v62 = vpop.eup %2015  ;;  %1879 = vmatmul.msk.f32.gmra.mxu1 %vm753_vm2, %v1233_v13 }
 0x31c   : > { %v1413_v37 = vmul.f32 %v2016_v62, %v1366_v10  ;;  %vm1418_vm11 = vweird.f32 %v2016_v62 }
 0x31d   : > { %vm1419_vm13 = vmor %vm1417_vm12, %vm1418_vm11 }
 0x31e   : > { %v1414_v8 = vsub.f32 1.0, %v1413_v37 }
 0x320   : > { %v1415_v16 = vmul.f32 %v2016_v62, %v1414_v8  ;;  %v2029_v8 = vld [vmem:[%s2213_s28 + $0x10] sm:$0xff] }
 0x321   : > { %v882_v26 = vpop.f32.mrf.mxu1 }
 0x322   : > { %v1416_v18 = vadd.f32 %v2016_v62, %v1415_v16 }
 0x324   : > { %v1420_v21 = vsel %vm1419_vm13, %v2016_v62, %v1416_v18 }
 0x325   : > { %v1425_v23 = vsel %vm1422_vm14, %v1424_v19, %v1420_v21  ;;  %v2030_v19 = vld [vmem:[%s2213_s28 + $0x18] sm:$0xff] }
 0x326   : > { %v1426_v24 = vmul.f32 %v2452_v61, %v1425_v23 }
 0x328   : > { %1888 = vmatmul.msk.f32.gmra.mxu3 %vm753_vm2, %v1426_v24  ;;  %v2077_v24 = vmov 32.0  }
 0x329   : > { %v885_v29 = vpop.f32.mrf.mxu1  ;;  %2017 = vrcp.f32 %v2077_v24 }
 0x331   : > { %v888_v34 = vpop.f32.mrf.mxu1 }
 0x340   : > { %v1073_v27 = vpop.f32.mrf.mxu3 }
 0x348   : > { %v1076_v25 = vpop.f32.mrf.mxu3 }
 0x350   : > { %v1079_v22 = vpop.f32.mrf.mxu3 }
 0x358   : > { %v1082_v31 = vpop.f32.mrf.mxu3 }
 0x35b   : > { %v1266_v9 = vpop.f32.mrf.mxu1 }
 0x35c   : > { %1491 = vrot.lane.b32.xlu2 %v1266_v9, %s2074_s25 }
 0x363   : > { %v1269_v30 = vpop.f32.mrf.mxu1 }
 0x364   : > { %1475 = vrot.lane.b32.xlu2 %v1073_v27, %s2075_s0  ;;  %1493 = vrot.lane.b32.xlu0 %v1269_v30, %s2074_s25 }
 0x36b   : > { %v1272_v33 = vpop.f32.mrf.mxu1 }
 0x36c   : > { %1477 = vrot.lane.b32.xlu2 %v1076_v25, %s2075_s0  ;;  %1481 = vrot.lane.b32.xlu0 %v1082_v31, %s2075_s0 }
 0x36e   : > { %v1459_v61 = vpop.f32.mrf.mxu3 }
 0x36f   : > { %1507 = vrot.lane.b32.xlu1 %v1459_v61, %s2076_s27 }
 0x374   : > { %1479 = vrot.lane.b32.xlu2 %v1079_v22, %s2075_s0 }
 0x376   : > { %v1462_v35 = vpop.f32.mrf.mxu3 }
 0x377   : > { %1495 = vrot.lane.b32.xlu1 %v1272_v33, %s2074_s25 }
 0x37c   : > { %1509 = vrot.lane.b32.xlu2 %v1462_v35, %s2076_s27 }
 0x37e   : > { %v1465_v36 = vpop.f32.mrf.mxu3 }
 0x384   : > { %1511 = vrot.lane.b32.xlu2 %v1465_v36, %s2076_s27 }
 0x398   : > { %v1275_v40 = vpop.f32.mrf.mxu1 }
 0x399   : > { %1497 = vrot.lane.b32.xlu1 %v1275_v40, %s2074_s25 }
 0x3ab   : > { %v1468_v42 = vpop.f32.mrf.mxu3 }
 0x3ac   : > { %1513 = vrot.lane.b32.xlu2 %v1468_v42, %s2076_s27  ;;  %s2615_s27 = scalar_lea.vmem %s2657_s14, %s2207_s26 }
 0x3b6   : > { %v1492_v43 = vpop.permute.xlu2 %1491 }
 0x3be   : > { %v1476_v44 = vpop.permute.xlu2 %1475 }
 0x3bf   : > { %v1519_v50 = vsel %vm704_vm1, %v879_v53, %v1476_v44  ;;  %v2018_v53 = vpop.eup %2017 }
 0x3c0   : > { %v1523_v47 = vsel %vm753_vm2, %v1519_v50, %v1492_v43 }
 0x3c6   : > { %v1478_v52 = vpop.permute.xlu2 %1477 }
 0x3c7   : > { %v1520_v55 = vsel %vm704_vm1, %v882_v26, %v1478_v52  ;;  %v1599_v26 = vmul.f32 32.0, %v2018_v53 }
 0x3c9   : > { %v1600_v27 = vsub.f32 1.0, %v1599_v26 }
 0x3ce   : > { %v1480_v49 = vpop.permute.xlu2 %1479 }
 0x3cf   : > { %v1521_v59 = vsel %vm704_vm1, %v885_v29, %v1480_v49  ;;  %v1601_v29 = vmul.f32 %v2018_v53, %v1600_v27 }
 0x3d1   : > { %v1602_v25 = vadd.f32 %v2018_v53, %v1601_v29 }
 0x3d6   : > { %v1494_v51 = vpop.permute.xlu0 %1493  ;;  %v1510_v41 = vpop.permute.xlu2 %1509 }
 0x3d7   : > { %v1524_v57 = vsel %vm753_vm2, %v1520_v55, %v1494_v51 }
 0x3d8   : > { %v1529_v39 = vsel %vm1527_vm3, %v1524_v57, %v1510_v41 }
 0x3de   : > { %v1512_v58 = vpop.permute.xlu2 %1511  ;;  %v1482_v0 = vpop.permute.xlu0 %1481 }
 0x3df   : > { %v1522_v1 = vsel %vm704_vm1, %v888_v34, %v1482_v0  ;;  %vm1603_vm1 = vweird.f32 %v2018_v53 }
 0x3e0   : > { %v2584_v34 = vsel %vm1603_vm1, %v2018_v53, %v1602_v25 }
 0x3e1   : > { %v1508_v15 = vpop.permute.xlu1 %1507 }
 0x3e2   : > { %v1528_v32 = vsel %vm1527_vm3, %v1523_v47, %v1508_v15 }
 0x3e3   : > { %1889 = vmatmul.msk.f32.vlgmr.msra.gmra.mxu0 %vm1538_vm15, %v1528_v32 }
 0x3e9   : > { %v1496_v56 = vpop.permute.xlu1 %1495 }
 0x3ea   : > { %v1525_v54 = vsel %vm753_vm2, %v1521_v59, %v1496_v56 }
 0x3eb   : > { %1890 = vmatmul.msk.f32.gmra.mxu0 %vm1538_vm15, %v1529_v39  ;;  %v1530_v63 = vsel %vm1527_vm3, %v1525_v54, %v1512_v58 }
 0x3f3   : > { %1891 = vmatmul.msk.f32.gmra.mxu0 %vm1538_vm15, %v1530_v63 }
 0x406   : > { %v1514_v20 = vpop.permute.xlu2 %1513 }
 0x40b   : > { %v1498_v60 = vpop.permute.xlu1 %1497 }
 0x40c   : > { %v1526_v2 = vsel %vm753_vm2, %v1522_v1, %v1498_v60 }
 0x40d   : > { %v1531_v3 = vsel %vm1527_vm3, %v1526_v2, %v1514_v20 }
 0x40e   : > { %1892 = vmatmul.msk.f32.gmra.mxu0 %vm1538_vm15, %v1531_v3 }
 0x460   : > { %v1568_v6 = vpop.f32.mrf.mxu0 }
 0x461   : > { %v1569_v7 = vadd.f32 %v1950_v4, %v1568_v6  ;;  %v1951_v6 = vld [vmem:[%s2655_s12] ss:$0 sm:$0xff] }
 0x463   : > { %v1580_v5 = vadd.f32 %v2027_v38, %v1569_v7 }
 0x465   : > { %v1586_v10 = vsel %vm600_vm0, %v1580_v5, 0.0 }
 0x466   : > { %1587 = vadd.xlane.f32.xlu0 %v1586_v10 }
 0x468   : > { %v1571_v11 = vpop.f32.mrf.mxu0 }
 0x469   : > { %v1572_v12 = vadd.f32 %v1950_v4, %v1571_v11 }
 0x46b   : > { %v1581_v46 = vadd.f32 %v2028_v48, %v1572_v12 }
 0x46d   : > { %v1589_v13 = vsel %vm600_vm0, %v1581_v46, 0.0 }
 0x46e   : > { %1590 = vadd.xlane.f32.xlu1 %v1589_v13 }
 0x470   : > { %v1574_v62 = vpop.f32.mrf.mxu0 }
 0x471   : > { %v1575_v37 = vadd.f32 %v1950_v4, %v1574_v62 }
 0x473   : > { %v1582_v14 = vadd.f32 %v2029_v8, %v1575_v37 }
 0x475   : > { %v1592_v16 = vsel %vm600_vm0, %v1582_v14, 0.0 }
 0x476   : > { %1593 = vadd.xlane.f32.xlu2 %v1592_v16 }
 0x48b   : > { %v1577_v17 = vpop.f32.mrf.mxu0 }
 0x48c   : > { %v1578_v18 = vadd.f32 %v1950_v4, %v1577_v17 }
 0x48e   : > { %v1583_v21 = vadd.f32 %v2030_v19, %v1578_v18 }
 0x490   : > { %v1595_v23 = vsel %vm600_vm0, %v1583_v21, 0.0 }
 0x491   : > { %1596 = vadd.xlane.f32.xlu0 %v1595_v23 }
 0x4d9   : > { %v1588_v9 = vpop.xlane.xlu0 %1587 }
 0x4da   : > { %v1605_v22 = vmul.f32 %v2584_v34, %v1588_v9 }
 0x4dc   : > { %v1609_v30 = vsub.f32 %v1580_v5, %v1605_v22  ;;  %v1952_v5 = vld [vmem:[%s2656_s13] ss:$0 sm:$0xff] }
 0x4de   : > { %v1613_v31 = vmul.f32 %v1609_v30, %v1609_v30 }
 0x4e0   : > { %v1617_v61 = vsel %vm600_vm0, %v1613_v31, 0.0 }
 0x4e1   : > { %1618 = vadd.xlane.f32.xlu1 %v1617_v61  ;;  %v1591_v33 = vpop.xlane.xlu1 %1590 }
 0x4e2   : > { %v1606_v35 = vmul.f32 %v2584_v34, %v1591_v33 }
 0x4e4   : > { %v1610_v36 = vsub.f32 %v1581_v46, %v1606_v35 }
 0x4e6   : > { %v1614_v40 = vmul.f32 %v1610_v36, %v1610_v36 }
 0x4e8   : > { %v1620_v42 = vsel %vm600_vm0, %v1614_v40, 0.0 }
 0x4e9   : > { %v1594_v43 = vpop.xlane.xlu2 %1593  ;;  %1621 = vadd.xlane.f32.xlu2 %v1620_v42 }
 0x4ea   : > { %v1607_v28 = vmul.f32 %v2584_v34, %v1594_v43 }
 0x4ec   : > { %v2591_v45 = vsub.f32 %v1582_v14, %v1607_v28 }
 0x4ee   : > { %v1615_v44 = vmul.f32 %v2591_v45, %v2591_v45 }
 0x4f0   : > { %v1623_v52 = vsel %vm600_vm0, %v1615_v44, 0.0 }
 0x4f1   : > { %1624 = vadd.xlane.f32.xlu0 %v1623_v52 }
 0x504   : > { %v1597_v49 = vpop.xlane.xlu0 %1596 }
 0x505   : > { %v1608_v50 = vmul.f32 %v2584_v34, %v1597_v49 }
 0x507   : > { %v2597_v47 = vsub.f32 %v1583_v21, %v1608_v50 }
 0x509   : > { %v1616_v15 = vmul.f32 %v2597_v47, %v2597_v47 }
 0x50b   : > { %v1626_v32 = vsel %vm600_vm0, %v1616_v15, 0.0 }
 0x50c   : > { %1627 = vadd.xlane.f32.xlu1 %v1626_v32 }
 0x554   : > { %v1619_v51 = vpop.xlane.xlu1 %1618 }
 0x555   : > { %v1629_v55 = vmul.f32 %v1619_v51, %v2584_v34 }
 0x557   : > { %v1633_v57 = vadd.f32 1e-05, %v1629_v55 }
 0x559   : > { %2019 = vrsqrt.f32 %v1633_v57  ;;  %vm1643_vm4 = vweird.f32 %v1633_v57 }
 0x55c   : > { %v1622_v41 = vpop.xlane.xlu2 %1621 }
 0x55d   : > { %v1630_v39 = vmul.f32 %v1622_v41, %v2584_v34 }
 0x55f   : > { %v2020_v56 = vpop.eup %2019  ;;  %v1634_v59 = vadd.f32 1e-05, %v1630_v39 }
 0x560   : > { %v1638_v54 = vmul.f32 %v2020_v56, %v1633_v57  ;;  %vm1644_vm2 = vweird.f32 %v2020_v56 }
 0x561   : > { %2021 = vrsqrt.f32 %v1634_v59  ;;  %vm1645_vm5 = vmor %vm1643_vm4, %vm1644_vm2  ;;  %vm1653_vm7 = vweird.f32 %v1634_v59 }
 0x562   : > { %v1639_v58 = vmul.f32 %v2020_v56, %v1638_v54 }
 0x564   : > { %v1640_v63 = vmul.f32 0.5, %v1639_v58  ;;  %v1625_v0 = vpop.xlane.xlu0 %1624 }
 0x565   : > { %v1631_v1 = vmul.f32 %v1625_v0, %v2584_v34 }
 0x566   : > { %v1641_v60 = vsub.f32 1.5, %v1640_v63 }
 0x567   : > { %v2022_v20 = vpop.eup %2021  ;;  %v1635_v2 = vadd.f32 1e-05, %v1631_v1 }
 0x568   : > { %v1642_v3 = vmul.f32 %v2020_v56, %v1641_v60  ;;  %v1648_v4 = vmul.f32 %v2022_v20, %v1634_v59  ;;  %vm1654_vm6 = vweird.f32 %v2022_v20 }
 0x569   : > { %2023 = vrsqrt.f32 %v1635_v2  ;;  %vm1655_vm8 = vmor %vm1653_vm7, %vm1654_vm6  ;;  %vm1663_vm10 = vweird.f32 %v1635_v2 }
 0x56a   : > { %v1646_v7 = vsel %vm1645_vm5, %v2020_v56, %v1642_v3  ;;  %v1649_v38 = vmul.f32 %v2022_v20, %v1648_v4 }
 0x56b   : > { %v1677_v10 = vmul.f32 %v1646_v7, %v1609_v30 }
 0x56c   : > { %v1650_v11 = vmul.f32 0.5, %v1649_v38 }
 0x56d   : > { %v1684_v12 = vmul.f32 %v1951_v6, %v1677_v10 }
 0x56e   : > { %v1651_v48 = vsub.f32 1.5, %v1650_v11 }
 0x56f   : > { %v2024_v46 = vpop.eup %2023  ;;  %v1691_v13 = vadd.f32 %v1952_v5, %v1684_v12 }
 0x570   : > { %v1652_v62 = vmul.f32 %v2022_v20, %v1651_v48  ;;  %v1658_v37 = vmul.f32 %v2024_v46, %v1635_v2  ;;  %vm1664_vm9 = vweird.f32 %v2024_v46 }
 0x571   : > { %1695 = vst.msk [vmem:[%s2615_s27] sm:$0xff] %vm600_vm0, %v1691_v13  ;;  %vm1665_vm11 = vmor %vm1663_vm10, %vm1664_vm9 }
 0x572   : > { %v1656_v8 = vsel %vm1655_vm8, %v2022_v20, %v1652_v62  ;;  %v1659_v14 = vmul.f32 %v2024_v46, %v1658_v37 }
 0x573   : > { %v1678_v16 = vmul.f32 %v1656_v8, %v1610_v36 }
 0x574   : > { %v1660_v17 = vmul.f32 0.5, %v1659_v14 }
 0x575   : > { %v1685_v18 = vmul.f32 %v1951_v6, %v1678_v16 }
 0x576   : > { %v1661_v19 = vsub.f32 1.5, %v1660_v17 }
 0x577   : > { %v1692_v21 = vadd.f32 %v1952_v5, %v1685_v18 }
 0x578   : > { %v1662_v23 = vmul.f32 %v2024_v46, %v1661_v19 }
 0x579   : > { %1696 = vst.msk [vmem:[%s2615_s27 + $0x8] sm:$0xff] %vm600_vm0, %v1692_v21 }
 0x57a   : > { %v1666_v24 = vsel %vm1665_vm11, %v2024_v46, %v1662_v23 }
 0x57b   : > { %v1679_v53 = vmul.f32 %v1666_v24, %v2591_v45 }
 0x57d   : > { %v1686_v26 = vmul.f32 %v1951_v6, %v1679_v53 }
 0x57f   : > { %v1693_v27 = vadd.f32 %v1952_v5, %v1686_v26  ;;  %v1628_v29 = vpop.xlane.xlu1 %1627 }
 0x580   : > { %v1632_v25 = vmul.f32 %v1628_v29, %v2584_v34 }
 0x581   : > { %1697 = vst.msk [vmem:[%s2615_s27 + $0x10] sm:$0xff] %vm600_vm0, %v1693_v27 }
 0x582   : > { %v1636_v9 = vadd.f32 1e-05, %v1632_v25 }
 0x584   : > { %2025 = vrsqrt.f32 %v1636_v9  ;;  %vm1673_vm13 = vweird.f32 %v1636_v9 }
 0x58a   : > { %v2026_v22 = vpop.eup %2025 }
 0x58b   : > { %v1668_v30 = vmul.f32 %v2026_v22, %v1636_v9  ;;  %vm1674_vm12 = vweird.f32 %v2026_v22 }
 0x58c   : > { %vm1675_vm14 = vmor %vm1673_vm13, %vm1674_vm12 }
 0x58d   : > { %v1669_v31 = vmul.f32 %v2026_v22, %v1668_v30 }
 0x58f   : > { %v1670_v61 = vmul.f32 0.5, %v1669_v31 }
 0x591   : > { %v1671_v33 = vsub.f32 1.5, %v1670_v61 }
 0x593   : > { %v1672_v35 = vmul.f32 %v2026_v22, %v1671_v33 }
 0x595   : > { %v1676_v36 = vsel %vm1675_vm14, %v2026_v22, %v1672_v35 }
 0x596   : > { %v1680_v40 = vmul.f32 %v1676_v36, %v2597_v47 }
 0x598   : > { %v1687_v42 = vmul.f32 %v1951_v6, %v1680_v40 }
 0x59a   : > { %v1694_v43 = vadd.f32 %v1952_v5, %v1687_v42 }
 0x59c   : > { %1698 = vst.msk [vmem:[%s2615_s27 + $0x18] sm:$0xff] %vm600_vm0, %v1694_v43 }
 0x59d PF: > { %s24_s17 = sadd.s32 1, %s2069_s17   ;;  %s2664_s29 = smov %s2061_s15 }
 0x59e   : > { %p21_p7 = scmp.ge.s32.totalorder %s24_s17, 6   ;;  %s2665_s30 = smov %s2065_s16 }
 0x59f   : > { %s2666_s15 = smov %s2669_s18  ;;  %s2667_s16 = smov %s2673_s19 }
 0x5a0   :  { %23 = sbr.rel (!%p21_p7) target bundleno = 4 (0x4), region = 115 }

// kernel: two_way_transformer.5
= control target key start
LH: loop header
LB: loop body
LE: loop exit
PB: predicated region body
PF: predicated region fallthrough
CT: control target
= control target key end

     0   :  { %s3929_s6 = smov 1   ;;  %s3930_s10 = smov 2   ;;  %s4709_s0 = inlined_call_operand.smem [shape: u32[31], index: -1, kind: input, shape index: {}] }
   0x1   :  { %s4009_s5 = sld [smem:[%s4709_s0]]   ;;  %s3931_s14 = smov 3  }
   0x2   :  { %s4014_s9 = sld [smem:[%s4709_s0 + %s3929_s6]]   ;;  %s3932_s18 = smov 4  }
   0x3   :  { %s4019_s13 = sld [smem:[%s4709_s0 + %s3930_s10]]   ;;  %s3933_s22 = smov 5  }
   0x4   :  { %s4024_s17 = sld [smem:[%s4709_s0 + %s3931_s14]]   ;;  %s3934_s26 = smov 6  }
   0x5   :  { %s4029_s21 = sld [smem:[%s4709_s0 + %s3932_s18]]   ;;  %s3935_s30 = smov 7  }
   0x6   :  { %s4034_s25 = sld [smem:[%s4709_s0 + %s3933_s22]]   ;;  %s3936_s4 = smov 8  }
   0x7   :  { %4729 = sst [smem:[#allocation41_spill]] %s4009_s5  ;;  %s3937_s10 = smov 9  }
   0x8   :  { %4730 = sst [smem:[#allocation42_spill]] %s4014_s9  ;;  %s3938_s15 = smov 10  }
   0x9   :  { %4731 = sst [smem:[#allocation43_spill]] %s4019_s13  ;;  %s3939_s20 = smov 11  }
   0xa   :  { %4732 = sst [smem:[#allocation44_spill]] %s4024_s17  ;;  %s3941_s1 = smov 13  }
   0xb   :  { %s4039_s29 = sld [smem:[%s4709_s0 + %s3934_s26]]   ;;  %s3940_s26 = smov 12  }
   0xc   :  { %s4044_s3 = sld [smem:[%s4709_s0 + %s3935_s30]]   ;;  %s3942_s7 = smov 14  }
   0xd   :  { %s4049_s8 = sld [smem:[%s4709_s0 + %s3936_s4]]   ;;  %s3944_s22 = smov 16  }
   0xe   :  { %s4054_s14 = sld [smem:[%s4709_s0 + %s3937_s10]]   ;;  %s3945_s28 = smov 17  }
   0xf   :  { %s4059_s19 = sld [smem:[%s4709_s0 + %s3938_s15]]   ;;  %s3943_s15 = smov 15  }
  0x10   :  { %s4064_s24 = sld [smem:[%s4709_s0 + %s3939_s20]]  }
  0x11   :  { %s4069_s30 = sld [smem:[%s4709_s0 + %s3940_s26]]  }
  0x12   :  { %4733 = sst [smem:[#allocation45_spill]] %s4044_s3 }
  0x13   :  { %4734 = sst [smem:[#allocation46_spill]] %s4049_s8 }
  0x14   :  { %4735 = sst [smem:[#allocation47_spill]] %s4054_s14 }
  0x15   :  { %s4074_s6 = sld [smem:[%s4709_s0 + %s3941_s1]]  }
  0x16   :  { %s4079_s12 = sld [smem:[%s4709_s0 + %s3942_s7]]   ;;  %s3946_s7 = smov 18  }
  0x17   :  { %4736 = sst [smem:[#allocation48_spill]] %s4069_s30 }
  0x18   :  { %s4084_s20 = sld [smem:[%s4709_s0 + %s3943_s15]]   ;;  %s3947_s15 = smov 19  }
  0x19   :  { %s4089_s27 = sld [smem:[%s4709_s0 + %s3944_s22]]   ;;  %s3948_s22 = smov 20  }
  0x1a   :  { %s4094_s4 = sld [smem:[%s4709_s0 + %s3945_s28]]   ;;  %s3949_s28 = smov 21  }
  0x1b   :  { %4737 = sst [smem:[#allocation49_spill]] %s4074_s6 }
  0x1c   :  { %4738 = sst [smem:[#allocation50_spill]] %s4079_s12 }
  0x1d   :  { %s4099_s6 = sld [smem:[%s4709_s0 + %s3946_s7]]   ;;  %s3950_s7 = smov 22  }
  0x1e   :  { %4739 = sst [smem:[#allocation51_spill]] %s4084_s20 }
  0x1f   :  { %4740 = sst [smem:[#allocation52_spill]] %s4089_s27 }
  0x20   :  { %4741 = sst [smem:[#allocation53_spill]] %s4094_s4 }
  0x21   :  { %s4104_s20 = sld [smem:[%s4709_s0 + %s3947_s15]]   ;;  %s3951_s15 = smov 23  }
  0x22   :  { %s4109_s27 = sld [smem:[%s4709_s0 + %s3948_s22]]   ;;  %s3952_s22 = smov 24  }
  0x23   :  { %4742 = sst [smem:[#allocation54_spill]] %s4099_s6 }
  0x24   :  { %s4114_s4 = sld [smem:[%s4709_s0 + %s3949_s28]]   ;;  %s3953_s28 = smov 25  }
  0x25   :  { %s4119_s6 = sld [smem:[%s4709_s0 + %s3950_s7]]   ;;  %s3954_s7 = smov 26  }
  0x26   :  { %s4129_s30 = sld [smem:[%s4709_s0 + %s3952_s22]]   ;;  %s3956_s22 = smov 28  }
  0x27   :  { %4743 = sst [smem:[#allocation55_spill]] %s4104_s20 }
  0x28   :  { %s4124_s20 = sld [smem:[%s4709_s0 + %s3951_s15]]   ;;  %s3955_s15 = smov 27  }
  0x29   :  { %s4139_s12 = sld [smem:[%s4709_s0 + %s3954_s7]]   ;;  %s3958_s7 = smov 30  }
  0x2a   :  { %4744 = sst [smem:[#allocation56_spill]] %s4114_s4 }
  0x2b   :  { %4745 = sst [smem:[#allocation57_spill]] %s4119_s6 }
  0x2c   :  { %s4134_s4 = sld [smem:[%s4709_s0 + %s3953_s28]]   ;;  %s3957_s28 = smov 29  }
  0x2d   :  { %s4144_s17 = sld [smem:[%s4709_s0 + %s3955_s15]]  }
  0x2e   :  { %s4149_s13 = sld [smem:[%s4709_s0 + %s3956_s22]]  }
  0x2f   :  { %4747 = sst [smem:[#allocation59_spill]] %s4139_s12 }
  0x30   :  { %s4154_s9 = sld [smem:[%s4709_s0 + %s3957_s28]]  }
  0x31   :  { %s4159_s12 = sld [smem:[%s4709_s0 + %s3958_s7]]  }
  0x32   :  { %4746 = sst [smem:[#allocation58_spill]] %s4134_s4 }
  0x37   :  { %4748 = sst [smem:[#allocation60_spill]] %s4159_s12 }
  0x38   :  { %66 = vsyncpa [#allocation8], 0 }
  0x39   :  { %67 = vsyncpa [#allocation10], 0 }
  0x3a   :  { %68 = vsyncpa [#allocation13], 0 }
  0x3b   :  { %69 = vsyncpa [#allocation16], 0 }
  0x3c   :  { %70 = vsyncpa [#allocation19], 0 }
  0x3d   :  { %71 = vsyncpa [#allocation22], 0 }
  0x3e   :  { %72 = vsyncpa [#allocation25], 0 }
  0x3f   :  { %73 = vsyncpa [#allocation28], 0 }
  0x40   :  { %74 = vsyncpa [#allocation31], 0  ;;  %s4161_s15 = smov 0   ;;  %s4163_s16 = smov 0  }
  0x41   :  { %s4165_s18 = smov 0   ;;  %s4167_s22 = smov 0  }
  0x42   :  { %s4169_s23 = smov 0  }
  0x43 LB: > { %s4749_s8 = sld [smem:[#allocation46_spill]]  ;;  %s803_s0 = sshll.u32 %s4034_s25, 4  ;;  %s3927_s23 = sphi %s4169_s23, %s80_s23   ;;  %s3923_s22 = sphi %s4167_s22, %s4801_s22   ;;  %s3919_s18 = sphi %s4165_s18, %s4800_s18   ;;  %s3915_s16 = sphi %s4163_s16, %s4799_s16   ;;  %s3911_s15 = sphi %s4161_s15, %s4798_s15   ;;  %s4187_s0 = int_to_ptr.hbm [resolvable:$true] %s803_s0 }
  0x44   : > { %s4750_s4 = sld [smem:[#allocation58_spill]]  ;;  %s2905_s26 = sadd.s32 4294967295, %s3927_s23  }
  0x45   : > { %s4751_s14 = sld [smem:[#allocation47_spill]]  ;;  %p2907_p0 = scmp.ge.s32.totalorder %s3927_s23, 1 }
  0x46   : > { %s4752_s6 = sld [smem:[#allocation57_spill]]  ;;  %p777_p1 = scmp.lt.s32.totalorder %s3927_s23, 5 }
  0x47   : > { %s4753_s3 = sld [smem:[#allocation45_spill]]  ;;  %p4192_p2 = scmp.eq.s32.totalorder %s2905_s26, 0 }
  0x48   : > { %4754 = sst [smem:[#allocation61_spill]] %s3911_s15  ;;  %p4196_p3 = pnand %p2907_p0, %p777_p1 }
  0x49   : > { %4755 = sst [smem:[#allocation62_spill]] %s3915_s16  ;;  %s3959_s2 = smov [#allocation9]  }
  0x4a   : > { %4756 = sst [smem:[#allocation63_spill]] %s3927_s23  ;;  %s805_s7 = sshll.u32 %s3959_s2, 4  ;;  %s806_s7 = int_to_ptr.vmem [resolvable:$true] %s805_s7 }
  0x4b   : > { %s4757_s28 = scalar_select %p4192_p2, 1, 0 }
  0x4c   : > { %p3071_p4 = pneg %p4196_p3  ;;  %s855_s11 = sshll.u32 %s4751_s14, 4  ;;  %s4215_s11 = int_to_ptr.hbm [resolvable:$true] %s855_s11 }
  0x4d   : > { %4758 = sst [smem:[#allocation64_spill]] %s4757_s28  ;;  %s829_s10 = sshll.u32 %s4753_s3, 4  ;;  %s4203_s10 = int_to_ptr.hbm [resolvable:$true] %s829_s10 }
  0x4e   : > { %p4208_p5 = pnand %p4192_p2, %p3071_p4  ;;  %s3960_s23 = smov [#allocation12]  }
  0x4f   : > { %s4212_s12 = sshll.u32 %s3960_s23, 4  ;;  %s3373_s2 = sshra.s32 %s4187_s0, 4  ;;  %s832_s12 = int_to_ptr.vmem [resolvable:$true] %s4212_s12  ;;  %s3374_s2 = int_to_ptr.hbm [resolvable:$true] %s3373_s2 }
  0x50   : > { %s3375_s5 = scalar_lea.hbm %s3374_s2, 1  ;;  %p4220_p7 = pneg %p4208_p5 }
  0x51   : > { %p3376_p6 = scmp.ne.s32.totalorder %s3374_s2, %s3375_s5  ;;  %s3380_s16 = scalar_lea.hbm %s4034_s25, 1 }
  0x52   : > { %p3381_p10 = scmp.lt.s32.totalorder %s3374_s2, %s4034_s25  ;;  %p3382_p11 = scmp.lt.s32.totalorder %s3380_s16, %s3375_s5 }
  0x53   : > { %p3378_p8 = pnand %p4220_p7, %p3376_p6 }
  0x54   : > { %p3383_p12 = por %p3382_p11, %p3381_p10 }
  0x55   : > { %p3379_p9 = pneg %p3378_p8 }
  0x57   : > { %p3384_p13 = pnand %p3383_p12, %p3379_p9 }
  0x59   : > { %3387 = shalt.err (!%p3384_p13)
}
  0x5a   : > { %3077 = dma.hbm_to_vmem [thread:$0]  (!%p4208_p5), %s4187_s0, 16, %s806_s7, [#allocation10]  }
  0x5b   : > { %s3403_s23 = sshra.s32 %s4203_s10, 4  ;;  %s3410_s2 = scalar_lea.hbm %s4753_s3, 1  ;;  %s3404_s23 = int_to_ptr.hbm [resolvable:$true] %s3403_s23 }
  0x5c   : > { %s3405_s28 = scalar_lea.hbm %s3404_s23, 1  ;;  %p3411_p6 = scmp.lt.s32.totalorder %s3404_s23, %s4753_s3 }
  0x5d   : > { %p3406_p0 = scmp.ne.s32.totalorder %s3404_s23, %s3405_s28  ;;  %p3412_p8 = scmp.lt.s32.totalorder %s3410_s2, %s3405_s28 }
  0x5f   : > { %p3408_p1 = pnand %p3406_p0, %p4220_p7  ;;  %p3413_p9 = por %p3412_p8, %p3411_p6 }
  0x61   : > { %p3409_p4 = pneg %p3408_p1 }
  0x63   : > { %p3414_p10 = pnand %p3413_p9, %p3409_p4 }
  0x65   : > { %3417 = shalt.err (!%p3414_p10)
}
  0x66   : > { %3083 = dma.hbm_to_vmem [thread:$0]  (!%p4208_p5), %s4203_s10, 16, %s832_s12, [#allocation13]  }
  0x67   : > { %s3961_s5 = smov [#allocation15]   ;;  %s881_s0 = sshll.u32 %s4064_s24, 4  ;;  %s4240_s0 = int_to_ptr.hbm [resolvable:$true] %s881_s0 }
  0x68   : > { %s857_s16 = sshll.u32 %s3961_s5, 4  ;;  %s3433_s7 = sshra.s32 %s4215_s11, 4  ;;  %s858_s16 = int_to_ptr.vmem [resolvable:$true] %s857_s16  ;;  %s3434_s7 = int_to_ptr.hbm [resolvable:$true] %s3433_s7 }
  0x69   : > { %s3435_s28 = scalar_lea.hbm %s3434_s7, 1  ;;  %s3440_s23 = scalar_lea.hbm %s4751_s14, 1 }
  0x6a   : > { %p3436_p11 = scmp.ne.s32.totalorder %s3434_s7, %s3435_s28  ;;  %p3441_p0 = scmp.lt.s32.totalorder %s3434_s7, %s4751_s14 }
  0x6b   : > { %p3442_p1 = scmp.lt.s32.totalorder %s3440_s23, %s3435_s28 }
  0x6c   : > { %p3438_p12 = pnand %p3436_p11, %p4220_p7 }
  0x6d   : > { %p3443_p4 = por %p3442_p1, %p3441_p0 }
  0x6e   : > { %p3439_p13 = pneg %p3438_p12 }
  0x70   : > { %p3444_p6 = pnand %p3443_p4, %p3439_p13 }
  0x72   : > { %3447 = shalt.err (!%p3444_p6)
}
  0x73   : > { %3089 = dma.hbm_to_vmem [thread:$0]  (!%p4208_p5), %s4215_s11, 16, %s858_s16, [#allocation16]  }
  0x74   : > { %s934_s12 = sshll.u32 %s4752_s6, 4  ;;  %s3962_s10 = smov [#allocation18]   ;;  %s4251_s12 = int_to_ptr.hbm [resolvable:$true] %s934_s12 }
  0x75   : > { %s883_s2 = sshll.u32 %s3962_s10, 4  ;;  %s3463_s5 = sshra.s32 %s4240_s0, 4  ;;  %s884_s2 = int_to_ptr.vmem [resolvable:$true] %s883_s2  ;;  %s3464_s5 = int_to_ptr.hbm [resolvable:$true] %s3463_s5 }
  0x76   : > { %s3465_s7 = scalar_lea.hbm %s3464_s5, 1  ;;  %s3470_s28 = scalar_lea.hbm %s4064_s24, 1 }
  0x77   : > { %p3466_p8 = scmp.ne.s32.totalorder %s3464_s5, %s3465_s7  ;;  %p3471_p11 = scmp.lt.s32.totalorder %s3464_s5, %s4064_s24 }
  0x78   : > { %p3472_p12 = scmp.lt.s32.totalorder %s3470_s28, %s3465_s7 }
  0x79   : > { %p3468_p9 = pnand %p3466_p8, %p4220_p7 }
  0x7a   : > { %p3473_p13 = por %p3472_p12, %p3471_p11 }
  0x7b   : > { %p3469_p10 = pneg %p3468_p9 }
  0x7d   : > { %p3474_p0 = pnand %p3473_p13, %p3469_p10 }
  0x7f   : > { %3477 = shalt.err (!%p3474_p0)
}
  0x80   : > { %3095 = dma.hbm_to_vmem [thread:$0]  (!%p4208_p5), %s4240_s0, 16, %s884_s2, [#allocation19]  }
  0x81   : > { %s3963_s11 = smov [#allocation21]   ;;  %s3493_s23 = sshra.s32 %s4251_s12, 4  ;;  %s3494_s23 = int_to_ptr.hbm [resolvable:$true] %s3493_s23 }
  0x82   : > { %s936_s16 = sshll.u32 %s3963_s11, 4  ;;  %s3495_s10 = scalar_lea.hbm %s3494_s23, 1  ;;  %s937_s16 = int_to_ptr.vmem [resolvable:$true] %s936_s16 }
  0x83   : > { %p3496_p1 = scmp.ne.s32.totalorder %s3494_s23, %s3495_s10  ;;  %s3500_s5 = scalar_lea.hbm %s4752_s6, 1 }
  0x84   : > { %p3501_p8 = scmp.lt.s32.totalorder %s3494_s23, %s4752_s6  ;;  %p3502_p9 = scmp.lt.s32.totalorder %s3500_s5, %s3495_s10 }
  0x85   : > { %p3498_p4 = pnand %p3496_p1, %p4220_p7 }
  0x86   : > { %p3503_p10 = por %p3502_p9, %p3501_p8 }
  0x87   : > { %p3499_p6 = pneg %p3498_p4 }
  0x89   : > { %p3504_p11 = pnand %p3503_p10, %p3499_p6 }
  0x8b   : > { %3507 = shalt.err (!%p3504_p11)
}
  0x8c   : > { %3101 = dma.hbm_to_vmem [thread:$0]  (!%p4208_p5), %s4251_s12, 16, %s937_s16, [#allocation22]  }
  0x8d   : > { %s957_s0 = sshll.u32 %s4129_s30, 4  ;;  %s3964_s2 = smov [#allocation24]   ;;  %s958_s0 = int_to_ptr.hbm [resolvable:$true] %s957_s0 }
  0x8e   : > { %s959_s7 = sshll.u32 %s3964_s2, 4  ;;  %s987_s28 = sshll.u32 %s4144_s17, 4  ;;  %s960_s7 = int_to_ptr.vmem [resolvable:$true] %s959_s7  ;;  %s988_s28 = int_to_ptr.hbm [resolvable:$true] %s987_s28 }
  0x8f   : > { %s3523_s11 = sshra.s32 %s958_s0, 4  ;;  %s3530_s10 = scalar_lea.hbm %s4129_s30, 32  ;;  %s3524_s11 = int_to_ptr.hbm [resolvable:$true] %s3523_s11 }
  0x90   : > { %s3525_s23 = scalar_lea.hbm %s3524_s11, 32  ;;  %p3531_p1 = scmp.lt.s32.totalorder %s3524_s11, %s4129_s30 }
  0x91   : > { %p3526_p12 = scmp.ne.s32.totalorder %s3524_s11, %s3525_s23  ;;  %p3532_p4 = scmp.lt.s32.totalorder %s3530_s10, %s3525_s23 }
  0x93   : > { %p3528_p13 = pnand %p3526_p12, %p4220_p7  ;;  %p3533_p6 = por %p3532_p4, %p3531_p1 }
  0x95   : > { %p3529_p0 = pneg %p3528_p13 }
  0x97   : > { %p3534_p8 = pnand %p3533_p6, %p3529_p0 }
  0x99   : > { %3537 = shalt.err (!%p3534_p8)
}
  0x9a   : > { %s4719_s12 = smov 128   ;;  %s4721_s16 = smov 8  }
  0x9b   : > { %3107 = dma.hbm_to_vmem [thread:$0]  (!%p4208_p5), %s958_s0, 512, %s960_s7, [#allocation25], %s4719_s12, %s4719_s12, %s4721_s16  }
  0x9c   : > { %s3967_s5 = smov [#allocation27]   ;;  %s3553_s11 = sshra.s32 %s988_s28, 4  ;;  %s3554_s11 = int_to_ptr.hbm [resolvable:$true] %s3553_s11 }
  0x9d   : > { %s989_s2 = sshll.u32 %s3967_s5, 4  ;;  %s3555_s23 = scalar_lea.hbm %s3554_s11, 1  ;;  %s990_s2 = int_to_ptr.vmem [resolvable:$true] %s989_s2 }
  0x9e   : > { %p3556_p9 = scmp.ne.s32.totalorder %s3554_s11, %s3555_s23  ;;  %s3560_s10 = scalar_lea.hbm %s4144_s17, 1 }
  0x9f   : > { %p3561_p12 = scmp.lt.s32.totalorder %s3554_s11, %s4144_s17  ;;  %p3562_p13 = scmp.lt.s32.totalorder %s3560_s10, %s3555_s23 }
  0xa0   : > { %p3558_p10 = pnand %p3556_p9, %p4220_p7 }
  0xa1   : > { %p3563_p0 = por %p3562_p13, %p3561_p12 }
  0xa2   : > { %p3559_p11 = pneg %p3558_p10 }
  0xa4   : > { %p3564_p1 = pnand %p3563_p0, %p3559_p11 }
  0xa6   : > { %3567 = shalt.err (!%p3564_p1)
}
  0xa7   : > { %3113 = dma.hbm_to_vmem [thread:$0]  (!%p4208_p5), %s988_s28, 16, %s990_s2, [#allocation28]  }
  0xa8   : > { %s89_s0 = sadd.s32 1, %s3919_s18  ;;  %s92_s7 = sadd.s32 1, %s3923_s22 }
  0xa9   : > { %p90_p4 = scmp.ge.s32.totalorder %s89_s0, 2  ;;  %s788_s5 = sshll.u32 %s4029_s21, 4  ;;  %s789_s5 = int_to_ptr.hbm [resolvable:$true] %s788_s5 }
  0xaa   : > { %s3968_s11 = smov [#allocation7]   ;;  %s814_s10 = sshll.u32 %s4039_s29, 4  ;;  %s815_s10 = int_to_ptr.hbm [resolvable:$true] %s814_s10 }
  0xab   : > { %s4803_s0 = smov (%p90_p4, %s89_s0), 0  ;;  %s4805_s7 = smov (!%p90_p4, %s92_s7), %s3923_s22 }
  0xac   : > { %s790_s23 = sshll.u32 %s3968_s11, 4  ;;  %p94_p6 = scmp.ge.s32.totalorder %s4805_s7, 2  ;;  %s791_s23 = int_to_ptr.vmem [resolvable:$true] %s790_s23 }
  0xad   : > { %s3583_s12 = sshra.s32 %s789_s5, 4  ;;  %s3590_s28 = scalar_lea.hbm %s4029_s21, 32  ;;  %s3584_s12 = int_to_ptr.hbm [resolvable:$true] %s3583_s12 }
  0xae   : > { %s3585_s16 = scalar_lea.hbm %s3584_s12, 32  ;;  %p3591_p11 = scmp.lt.s32.totalorder %s3584_s12, %s4029_s21 }
  0xaf   : > { %p3586_p8 = scmp.ne.s32.totalorder %s3584_s12, %s3585_s16  ;;  %p3592_p12 = scmp.lt.s32.totalorder %s3590_s28, %s3585_s16 }
  0xb1   : > { %p3588_p9 = pnand %p3586_p8, %p4220_p7  ;;  %p3593_p13 = por %p3592_p12, %p3591_p11 }
  0xb3   : > { %p3589_p10 = pneg %p3588_p9 }
  0xb5   : > { %p3594_p0 = pnand %p3593_p13, %p3589_p10 }
  0xb7   : > { %3597 = shalt.err (!%p3594_p0)
}
  0xb8   : > { %s4762_s2 = smov 8   ;;  %s4763_s11 = smov 128  }
  0xb9   : > { %3074 = dma.hbm_to_vmem [thread:$0]  (!%p4208_p5), %s789_s5, 512, %s791_s23, [#allocation8], %s4763_s11, %s4763_s11, %s4762_s2  }
  0xba   : > { %s4807_s7 = smov (%p94_p6, %s4805_s7), 0  ;;  %s3969_s3 = smov [#allocation11]  }
  0xbb   : > { %s816_s12 = sshll.u32 %s3969_s3, 4  ;;  %s840_s16 = sshll.u32 %s4749_s8, 4  ;;  %s817_s12 = int_to_ptr.vmem [resolvable:$true] %s816_s12  ;;  %s4306_s16 = int_to_ptr.hbm [resolvable:$true] %s840_s16 }
  0xbc   : > { %s3613_s28 = sshra.s32 %s815_s10, 4  ;;  %s3620_s14 = scalar_lea.hbm %s4039_s29, 32  ;;  %s3614_s28 = int_to_ptr.hbm [resolvable:$true] %s3613_s28 }
  0xbd   : > { %s3615_s6 = scalar_lea.hbm %s3614_s28, 32  ;;  %p3621_p9 = scmp.lt.s32.totalorder %s3614_s28, %s4039_s29 }
  0xbe   : > { %p3616_p1 = scmp.ne.s32.totalorder %s3614_s28, %s3615_s6  ;;  %p3622_p10 = scmp.lt.s32.totalorder %s3620_s14, %s3615_s6 }
  0xc0   : > { %p3618_p4 = pnand %p3616_p1, %p4220_p7  ;;  %p3623_p11 = por %p3622_p10, %p3621_p9 }
  0xc2   : > { %p3619_p8 = pneg %p3618_p4 }
  0xc4   : > { %p3624_p6 = pnand %p3623_p11, %p3619_p8 }
  0xc6   : > { %3627 = shalt.err (!%p3624_p6)
}
  0xc7   : > { %3080 = dma.hbm_to_vmem [thread:$0]  (!%p4208_p5), %s815_s10, 512, %s817_s12, [#allocation10], %s4763_s11, %s4763_s11, %s4762_s2  }
  0xc8   : > { %s866_s3 = sshll.u32 %s4059_s19, 4  ;;  %s3970_s5 = smov [#allocation14]   ;;  %s4318_s3 = int_to_ptr.hbm [resolvable:$true] %s866_s3 }
  0xc9   : > { %s842_s23 = sshll.u32 %s3970_s5, 4  ;;  %s3643_s14 = sshra.s32 %s4306_s16, 4  ;;  %s843_s23 = int_to_ptr.vmem [resolvable:$true] %s842_s23  ;;  %s3644_s14 = int_to_ptr.hbm [resolvable:$true] %s3643_s14 }
  0xca   : > { %s3645_s6 = scalar_lea.hbm %s3644_s14, 32  ;;  %s3650_s28 = scalar_lea.hbm %s4749_s8, 32 }
  0xcb   : > { %p3646_p12 = scmp.ne.s32.totalorder %s3644_s14, %s3645_s6  ;;  %p3651_p1 = scmp.lt.s32.totalorder %s3644_s14, %s4749_s8 }
  0xcc   : > { %p3652_p4 = scmp.lt.s32.totalorder %s3650_s28, %s3645_s6 }
  0xcd   : > { %p3648_p13 = pnand %p3646_p12, %p4220_p7 }
  0xce   : > { %p3653_p8 = por %p3652_p4, %p3651_p1 }
  0xcf   : > { %p3649_p0 = pneg %p3648_p13 }
  0xd1   : > { %p3654_p9 = pnand %p3653_p8, %p3649_p0 }
  0xd3   : > { %3657 = shalt.err (!%p3654_p9)
}
  0xd4   : > { %3086 = dma.hbm_to_vmem [thread:$0]  (!%p4208_p5), %s4306_s16, 512, %s843_s23, [#allocation13], %s4763_s11, %s4763_s11, %s4762_s2  }
  0xd5   : > { %s3971_s10 = smov [#allocation17]   ;;  %s916_s5 = sshll.u32 %s4109_s27, 4  ;;  %s4332_s5 = int_to_ptr.hbm [resolvable:$true] %s916_s5 }
  0xd6   : > { %s868_s12 = sshll.u32 %s3971_s10, 4  ;;  %s3673_s14 = sshra.s32 %s4318_s3, 4  ;;  %s869_s12 = int_to_ptr.vmem [resolvable:$true] %s868_s12  ;;  %s3674_s14 = int_to_ptr.hbm [resolvable:$true] %s3673_s14 }
  0xd7   : > { %s3675_s6 = scalar_lea.hbm %s3674_s14, 32  ;;  %s3680_s28 = scalar_lea.hbm %s4059_s19, 32 }
  0xd8   : > { %p3676_p10 = scmp.ne.s32.totalorder %s3674_s14, %s3675_s6  ;;  %p3681_p12 = scmp.lt.s32.totalorder %s3674_s14, %s4059_s19 }
  0xd9   : > { %p3682_p13 = scmp.lt.s32.totalorder %s3680_s28, %s3675_s6 }
  0xda   : > { %p3678_p11 = pnand %p3676_p10, %p4220_p7 }
  0xdb   : > { %p3683_p0 = por %p3682_p13, %p3681_p12 }
  0xdc   : > { %p3679_p6 = pneg %p3678_p11 }
  0xde   : > { %p3684_p1 = pnand %p3683_p0, %p3679_p6 }
  0xe0   : > { %3687 = shalt.err (!%p3684_p1)
}
  0xe1   : > { %3092 = dma.hbm_to_vmem [thread:$0]  (!%p4208_p5), %s4318_s3, 512, %s869_s12, [#allocation16], %s4763_s11, %s4763_s11, %s4762_s2  }
  0xe2   : > { %s946_s16 = sshll.u32 %s4124_s20, 4  ;;  %s3972_s23 = smov [#allocation20]   ;;  %s4346_s16 = int_to_ptr.hbm [resolvable:$true] %s946_s16 }
  0xe3   : > { %s918_s10 = sshll.u32 %s3972_s23, 4  ;;  %s3703_s14 = sshra.s32 %s4332_s5, 4  ;;  %s919_s10 = int_to_ptr.vmem [resolvable:$true] %s918_s10  ;;  %s3704_s14 = int_to_ptr.hbm [resolvable:$true] %s3703_s14 }
  0xe4   : > { %s3705_s6 = scalar_lea.hbm %s3704_s14, 16  ;;  %s3710_s28 = scalar_lea.hbm %s4109_s27, 16 }
  0xe5   : > { %p3706_p4 = scmp.ne.s32.totalorder %s3704_s14, %s3705_s6  ;;  %p3711_p10 = scmp.lt.s32.totalorder %s3704_s14, %s4109_s27 }
  0xe6   : > { %p3712_p11 = scmp.lt.s32.totalorder %s3710_s28, %s3705_s6 }
  0xe7   : > { %p3708_p8 = pnand %p3706_p4, %p4220_p7 }
  0xe8   : > { %p3713_p6 = por %p3712_p11, %p3711_p10 }
  0xe9   : > { %p3709_p9 = pneg %p3708_p8 }
  0xeb   : > { %p3714_p12 = pnand %p3713_p6, %p3709_p9 }
  0xed   : > { %3717 = shalt.err (!%p3714_p12)
}
  0xee   : > { %3098 = dma.hbm_to_vmem [thread:$0]  (!%p4208_p5), %s4332_s5, 256, %s919_s10, [#allocation19], %s4763_s11, %s4763_s11, %s4762_s2  }
  0xef   : > { %s3973_s3 = smov [#allocation23]   ;;  %s972_s23 = sshll.u32 %s4750_s4, 4  ;;  %s4360_s23 = int_to_ptr.hbm [resolvable:$true] %s972_s23 }
  0xf0   : > { %s948_s12 = sshll.u32 %s3973_s3, 4  ;;  %s3733_s14 = sshra.s32 %s4346_s16, 4  ;;  %s949_s12 = int_to_ptr.vmem [resolvable:$true] %s948_s12  ;;  %s3734_s14 = int_to_ptr.hbm [resolvable:$true] %s3733_s14 }
  0xf1   : > { %s3735_s6 = scalar_lea.hbm %s3734_s14, 1  ;;  %s3740_s28 = scalar_lea.hbm %s4124_s20, 1 }
  0xf2   : > { %p3736_p13 = scmp.ne.s32.totalorder %s3734_s14, %s3735_s6  ;;  %p3741_p4 = scmp.lt.s32.totalorder %s3734_s14, %s4124_s20 }
  0xf3   : > { %p3742_p8 = scmp.lt.s32.totalorder %s3740_s28, %s3735_s6 }
  0xf4   : > { %p3738_p0 = pnand %p3736_p13, %p4220_p7 }
  0xf5   : > { %p3743_p9 = por %p3742_p8, %p3741_p4 }
  0xf6   : > { %p3739_p1 = pneg %p3738_p0 }
  0xf8   : > { %p3744_p10 = pnand %p3743_p9, %p3739_p1 }
  0xfa   : > { %3747 = shalt.err (!%p3744_p10)
}
  0xfb   : > { %3104 = dma.hbm_to_vmem [thread:$0]  (!%p4208_p5), %s4346_s16, 16, %s949_s12, [#allocation22]  }
  0xfc   : > { %s999_s2 = sshll.u32 %s4149_s13, 4  ;;  %s3974_s11 = smov [#allocation26]   ;;  %s4371_s2 = int_to_ptr.hbm [resolvable:$true] %s999_s2 }
  0xfd   : > { %s974_s5 = sshll.u32 %s3974_s11, 4  ;;  %s3763_s10 = sshra.s32 %s4360_s23, 4  ;;  %s975_s5 = int_to_ptr.vmem [resolvable:$true] %s974_s5  ;;  %s3764_s10 = int_to_ptr.hbm [resolvable:$true] %s3763_s10 }
  0xfe   : > { %s3765_s3 = scalar_lea.hbm %s3764_s10, 1  ;;  %s3770_s14 = scalar_lea.hbm %s4750_s4, 1 }
  0xff   : > { %p3766_p11 = scmp.ne.s32.totalorder %s3764_s10, %s3765_s3  ;;  %p3771_p13 = scmp.lt.s32.totalorder %s3764_s10, %s4750_s4 }
 0x100   : > { %p3772_p0 = scmp.lt.s32.totalorder %s3770_s14, %s3765_s3 }
 0x101   : > { %p3768_p6 = pnand %p3766_p11, %p4220_p7 }
 0x102   : > { %p3773_p1 = por %p3772_p0, %p3771_p13 }
 0x103   : > { %p3769_p12 = pneg %p3768_p6 }
 0x105   : > { %p3774_p4 = pnand %p3773_p1, %p3769_p12 }
 0x107   : > { %3777 = shalt.err (!%p3774_p4)
}
 0x108   : > { %3110 = dma.hbm_to_vmem [thread:$0]  (!%p4208_p5), %s4360_s23, 16, %s975_s5, [#allocation25]  }
 0x109   : > { %s3975_s16 = smov [#allocation29]   ;;  %s1011_s6 = sshll.u32 %s4154_s9, 4  ;;  %s1012_s6 = int_to_ptr.hbm [resolvable:$true] %s1011_s6 }
 0x10a   : > { %s1001_s12 = sshll.u32 %s3975_s16, 4  ;;  %s3793_s28 = sshra.s32 %s4371_s2, 4  ;;  %s1002_s12 = int_to_ptr.vmem [resolvable:$true] %s1001_s12  ;;  %s3794_s28 = int_to_ptr.hbm [resolvable:$true] %s3793_s28 }
 0x10b   : > { %s3795_s11 = scalar_lea.hbm %s3794_s28, 1  ;;  %s3800_s10 = scalar_lea.hbm %s4149_s13, 1 }
 0x10c   : > { %p3796_p8 = scmp.ne.s32.totalorder %s3794_s28, %s3795_s11  ;;  %p3801_p11 = scmp.lt.s32.totalorder %s3794_s28, %s4149_s13 }
 0x10d   : > { %p3802_p6 = scmp.lt.s32.totalorder %s3800_s10, %s3795_s11 }
 0x10e   : > { %p3798_p9 = pnand %p3796_p8, %p4220_p7 }
 0x10f   : > { %p3803_p12 = por %p3802_p6, %p3801_p11 }
 0x110   : > { %p3799_p10 = pneg %p3798_p9 }
 0x112   : > { %p3804_p13 = pnand %p3803_p12, %p3799_p10 }
 0x114   : > { %3807 = shalt.err (!%p3804_p13)
}
 0x115   : > { %3116 = dma.hbm_to_vmem [thread:$0]  (!%p4208_p5), %s4371_s2, 16, %s1002_s12, [#allocation28]  }
 0x116   : > { %s3976_s23 = smov [#allocation30]   ;;  %s3823_s3 = sshra.s32 %s1012_s6, 4  ;;  %s3824_s3 = int_to_ptr.hbm [resolvable:$true] %s3823_s3 }
 0x117   : > { %s1013_s5 = sshll.u32 %s3976_s23, 4  ;;  %s3825_s14 = scalar_lea.hbm %s3824_s3, 1  ;;  %s1014_s5 = int_to_ptr.vmem [resolvable:$true] %s1013_s5 }
 0x118   : > { %p3826_p0 = scmp.ne.s32.totalorder %s3824_s3, %s3825_s14  ;;  %s3830_s16 = scalar_lea.hbm %s4154_s9, 1 }
 0x119   : > { %p3831_p8 = scmp.lt.s32.totalorder %s3824_s3, %s4154_s9  ;;  %p3832_p9 = scmp.lt.s32.totalorder %s3830_s16, %s3825_s14 }
 0x11a   : > { %p3828_p1 = pnand %p3826_p0, %p4220_p7 }
 0x11b   : > { %p3833_p10 = por %p3832_p9, %p3831_p8 }
 0x11c   : > { %p3829_p4 = pneg %p3828_p1 }
 0x11e   : > { %p3834_p11 = pnand %p3833_p10, %p3829_p4 }
 0x120   : > { %3837 = shalt.err (!%p3834_p11)
}
 0x121   : > { %3119 = dma.hbm_to_vmem [thread:$0]  (!%p4208_p5), %s1012_s6, 16, %s1014_s5, [#allocation31]  }
 0x122   : > { %1066 = sbr.rel (%p4196_p3) target bundleno = 4046 (0xfce), region = 140 }
 0x127   : > { %3874 = dma.done.wait (%p4192_p2), [#allocation8], 512  }
 0x128   : > { %3876 = vsyncadd (%p4192_p2), [#allocation8], 4294966784 }
 0x129   : > { %3878 = dma.done.wait (%p4192_p2), [#allocation10], 528  }
 0x12a   : > { %3880 = vsyncadd (%p4192_p2), [#allocation10], 4294966768 }
 0x12b   : > { %3882 = dma.done.wait (%p4192_p2), [#allocation13], 528  }
 0x12c   : > { %3884 = vsyncadd (%p4192_p2), [#allocation13], 4294966768 }
 0x12d   : > { %3886 = dma.done.wait (%p4192_p2), [#allocation16], 528  }
 0x12e   : > { %3888 = vsyncadd (%p4192_p2), [#allocation16], 4294966768 }
 0x12f   : > { %3890 = dma.done.wait (%p4192_p2), [#allocation19], 272  }
 0x130   : > { %3892 = vsyncadd (%p4192_p2), [#allocation19], 4294967024 }
 0x131   : > { %3894 = dma.done.wait (%p4192_p2), [#allocation22], 32  }
 0x132   : > { %3896 = vsyncadd (%p4192_p2), [#allocation22], 4294967264 }
 0x133   : > { %3898 = dma.done.wait (%p4192_p2), [#allocation25], 528  }
 0x134   : > { %3900 = vsyncadd (%p4192_p2), [#allocation25], 4294966768 }
 0x135   : > { %3902 = dma.done.wait (%p4192_p2), [#allocation28], 32  }
 0x136   : > { %3904 = vsyncadd (%p4192_p2), [#allocation28], 4294967264 }
 0x137   : > { %3906 = dma.done.wait (%p4192_p2), [#allocation31], 16  }
 0x138   : > { %3908 = vsyncadd (%p4192_p2), [#allocation31], 4294967280  ;;  %s4765_s15 = sld [smem:[#allocation62_spill]] }
 0x139   : > { %s4766_s1 = sld [smem:[#allocation61_spill]] }
 0x13a   : > { %s4767_s26 = sld [smem:[#allocation41_spill]] }
 0x13b   : > { %s4768_s12 = sld [smem:[#allocation42_spill]] }
 0x13c   : > { %s4769_s6 = sld [smem:[#allocation60_spill]] }
 0x13d   : > { %s4770_s28 = sld [smem:[#allocation43_spill]] }
 0x13e   : > { %s4771_s11 = sld [smem:[#allocation44_spill]]  ;;  %p1240_p3 = scmp.lt.s32.totalorder %s4765_s15, 1 }
 0x13f   : > { %s2944_s10 = sshll.u32 %s4766_s1, 2  ;;  %p2951_p2 = scmp.ne.s32.totalorder %s4766_s1, 0 }
 0x140   : > { %p1251_p5 = scmp.lt.s32.totalorder %s2944_s10, 7  ;;  %s4809_s15 = smov (!%p1240_p3, %s4765_s15), 1 }
 0x141   : > { %s4437_s23 = sshll.u32 %s4809_s15, 3  ;;  %1275 = sbr.rel (%p2951_p2) target bundleno = 1772 (0x6ec), region = 208 }
 0x142   : > { %s4811_s10 = smov (!%p1251_p5, %s2944_s10), 7  ;;  %s1243_s5 = scalar_lea.vmem %s4767_s26, %s4437_s23 }
 0x143   : > { %s1247_s3 = scalar_lea.vmem %s4768_s12, %s4437_s23  ;;  %s1254_s14 = sadd.s32 %s4437_s23, %s4811_s10 }
 0x144   : > { %s1271_s16 = scalar_lea.vmem %s4769_s6, %s4437_s23  ;;  %s2946_s2 = sshll.u32 %s1254_s14, 3 }
 0x145   : > { %s4447_s4 = scalar_lea.vmem %s4770_s28, %s2946_s2  ;;  %s4450_s8 = scalar_lea.vmem %s4771_s11, %s2946_s2 }
 0x146   : > { %v1313_v0 = vld [vmem:[#allocation11 + $0x18] sm:$0xff]  ;;  %v1312_v1 = vld [vmem:[#allocation11 + $0x10] sm:$0xff]  ;;  %v1311_v4 = vld [vmem:[#allocation11 + $0x8] sm:$0xff]  ;;  %vm1286_vm0 = vcmask 261120   ;;  %vm1366_vm1 = vcmask 64512   ;;  %s3977_s15 = smov 104  }
 0x147   : > { %v1281_v2 = vld [vmem:[#allocation7 + $0x18] sm:$0xff]  ;;  %1330 = vmatpush.msra.mxu1 %v1313_v0  ;;  %v1280_v3 = vld [vmem:[#allocation7 + $0x10] sm:$0xff]  ;;  %v1310_v5 = vld [vmem:[#allocation11] sm:$0xff]  ;;  %s3978_s1 = smov 120   ;;  %s3979_s26 = smov 112  }
 0x148   : > { %1302 = vmatpush.msra.mxu0 %v1281_v2  ;;  %v1279_v6 = vld [vmem:[#allocation7 + $0x8] sm:$0xff]  ;;  %v1278_v7 = vld [vmem:[#allocation7] sm:$0xff]  ;;  %v1276_v8 = vld [vmem:[%s1243_s5] sm:$0xff]  ;;  %s3980_s12 = smov 8   ;;  %s3981_s6 = smov 16  }
 0x149   : > { %1331 = vmatpush.msra.mxu1 %v1312_v1  ;;  %v3264_v9 = vld [vmem:[#allocation12] ss:$0 sm:$0xff]  ;;  %v3265_v10 = vld [vmem:[#allocation9] ss:$0 sm:$0xff]  ;;  %v1340_v16 = vld [vmem:[#allocation14 + $0x10] sm:$0xff]  ;;  %s3982_s28 = smov 24  }
 0x14a   : > { %1303 = vmatpush.msra.mxu0 %v1280_v3  ;;  %v1341_v15 = vld [vmem:[#allocation14 + $0x18] sm:$0xff]  ;;  %v1339_v17 = vld [vmem:[#allocation14 + $0x8] sm:$0xff]  ;;  %v1338_v18 = vld [vmem:[#allocation14] sm:$0xff]  ;;  %s4772_s11 = sld [smem:[#allocation50_spill]] }
 0x14b   : > { %1332 = vmatpush.msra.mxu1 %v1311_v4  ;;  %1358 = vmatpush.msra.mxu2 %v1341_v15  ;;  %v3266_v28 = vld [vmem:[#allocation15] ss:$0 sm:$0xff]  ;;  %s4773_s10 = sld [smem:[#allocation48_spill]] }
 0x14c   : > { %1304 = vmatpush.msra.mxu0 %v1279_v6  ;;  %s4774_s5 = sld [smem:[#allocation49_spill]] }
 0x14d   : > { %1333 = vmatpush.msra.mxu1 %v1310_v5  ;;  %1359 = vmatpush.msra.mxu2 %v1340_v16  ;;  %s4776_s2 = sld [smem:[#allocation51_spill]] }
 0x14e   : > { %1305 = vmatpush.msra.mxu0 %v1278_v7  ;;  %2953 = vmatmul.msk.f32.vlgmr.msra.gmra.mxu1 %vm1286_vm0, %v1276_v8 }
 0x14f   : > { %2952 = vmatmul.msk.f32.vlgmr.msra.gmra.mxu0 %vm1286_vm0, %v1276_v8  ;;  %1360 = vmatpush.msra.mxu2 %v1339_v17 }
 0x151   : > { %1361 = vmatpush.msra.mxu2 %v1338_v18 }
 0x152   : > { %2954 = vmatmul.msk.f32.vlgmr.msra.gmra.mxu2 %vm1286_vm0, %v1276_v8 }
 0x1cb   : > { %v1335_v11 = vpop.f32.mrf.mxu1 }
 0x1cc   : > { %v1307_v12 = vpop.f32.mrf.mxu0  ;;  %v1336_v13 = vadd.f32 %v3264_v9, %v1335_v11 }
 0x1cd   : > { %v1308_v14 = vadd.f32 %v3265_v10, %v1307_v12 }
 0x1ce   : > { %1602 = vrot.lane.b32.xlu2 %v1336_v13, %s3977_s15  ;;  %1443 = vrot.lane.b32.xlu1 %v1336_v13, %s3978_s1 }
 0x1cf   : > { %1523 = vrot.lane.b32.xlu0 %v1336_v13, %s3979_s26  ;;  %2955 = vmatpush.xpose.msk.msra.mxu3 %vm1366_vm1, %v1336_v13 }
 0x1d2   : > { %2956 = vmatmul.msk.f32.vlgmr.msra.gmra.mxu3 %vm1366_vm1, %v1308_v14 }
 0x1d5   : > { %v1363_v29 = vpop.f32.mrf.mxu2 }
 0x1d6   : > { %1600 = vrot.lane.b32.xlu2 %v1308_v14, %s3977_s15  ;;  %1441 = vrot.lane.b32.xlu1 %v1308_v14, %s3978_s1  ;;  %v1364_v30 = vadd.f32 %v3266_v28, %v1363_v29 }
 0x1d7   : > { %1521 = vrot.lane.b32.xlu0 %v1308_v14, %s3979_s26 }
 0x1d8   : > { %1436 = vmatpush.msrb.mxu3 %v1364_v30 }
 0x228   : > { %v1603_v20 = vpop.permute.xlu2 %1602 }
 0x230   : > { %v1601_v24 = vpop.permute.xlu2 %1600 }
 0x240   : > { %v1444_v19 = vpop.permute.xlu1 %1443 }
 0x241   : > { %v1524_v21 = vpop.permute.xlu0 %1523  ;;  %2958 = vmatpush.xpose.msk.msrb.mxu0 %vm1366_vm1, %v1444_v19 }
 0x242   : > { %2961 = vmatpush.xpose.msk.msrb.mxu2 %vm1366_vm1, %v1524_v21 }
 0x245   : > { %2964 = vmatpush.xpose.msk.msra.mxu0 %vm1366_vm1, %v1603_v20 }
 0x248   : > { %v1442_v22 = vpop.permute.xlu1 %1441 }
 0x249   : > { %v1522_v23 = vpop.permute.xlu0 %1521  ;;  %2959 = vmatmul.msk.f32.vlgmr.msrb.gmra.mxu0 %vm1366_vm1, %v1442_v22 }
 0x24a   : > { %2962 = vmatmul.msk.f32.vlgmr.msrb.gmra.mxu2 %vm1366_vm1, %v1522_v23 }
 0x251   : > { %2965 = vmatmul.msk.f32.vlgmr.msra.gmra.mxu0 %vm1366_vm1, %v1601_v24 }
 0x255   : > { %v1390_v25 = vpop.f32.mrf.mxu3 }
 0x256   : > { %v1393_v26 = vmul.f32 0.35355338, %v1390_v25 }
 0x258   : > { %v1394_v27 = vsel %vm1366_vm1, %v1393_v26, -inf }
 0x259   : > { %1395 = vmax.xlane.f32.xlu0 %v1394_v27 }
 0x2c6   : > { %v1466_v31 = vpop.f32.mrf.mxu0 }
 0x2c7   : > { %v1469_v32 = vmul.f32 0.35355338, %v1466_v31 }
 0x2c9   : > { %v1470_v33 = vsel %vm1366_vm1, %v1469_v32, -inf }
 0x2ca   : > { %1471 = vmax.xlane.f32.xlu1 %v1470_v33 }
 0x2cc   : > { %v1396_v34 = vpop.xlane.xlu0 %1395 }
 0x2cd   : > { %v1397_v35 = vsub.f32 %v1393_v26, %v1396_v34  ;;  %v1546_v36 = vpop.f32.mrf.mxu2 }
 0x2ce   : > { %v1549_v37 = vmul.f32 0.35355338, %v1546_v36  ;;  %v1625_v40 = vpop.f32.mrf.mxu0 }
 0x2cf   : > { %v1398_v38 = vmul.f32 1.442695, %v1397_v35  ;;  %v1628_v41 = vmul.f32 0.35355338, %v1625_v40 }
 0x2d0   : > { %v1550_v39 = vsel %vm1366_vm1, %v1549_v37, -inf }
 0x2d1   : > { %3271 = vpow2.f32 %v1398_v38  ;;  %1551 = vmax.xlane.f32.xlu2 %v1550_v39  ;;  %v1629_v43 = vsel %vm1366_vm1, %v1628_v41, -inf }
 0x2d7   : > { %v3272_v42 = vpop.eup %3271 }
 0x2d8   : > { %v1400_v44 = vsel %vm1366_vm1, %v3272_v42, 0.0 }
 0x2d9   : > { %1630 = vmax.xlane.f32.xlu2 %v1629_v43  ;;  %1401 = vadd.xlane.f32.xlu0 %v1400_v44 }
 0x33d   : > { %v1472_v45 = vpop.xlane.xlu1 %1471 }
 0x33e   : > { %v1473_v46 = vsub.f32 %v1469_v32, %v1472_v45 }
 0x340   : > { %v1474_v47 = vmul.f32 1.442695, %v1473_v46 }
 0x342   : > { %3273 = vpow2.f32 %v1474_v47 }
 0x344   : > { %v1552_v48 = vpop.xlane.xlu2 %1551 }
 0x345   : > { %v1553_v49 = vsub.f32 %v1549_v37, %v1552_v48 }
 0x347   : > { %v1554_v50 = vmul.f32 1.442695, %v1553_v49 }
 0x348   : > { %v4475_v51 = vpop.eup %3273 }
 0x349   : > { %3275 = vpow2.f32 %v1554_v50  ;;  %v1476_v52 = vsel %vm1366_vm1, %v4475_v51, 0.0 }
 0x34a   : > { %1477 = vadd.xlane.f32.xlu1 %v1476_v52  ;;  %v1698_v52 = vld [vmem:[#allocation17 + $0x10] sm:$0xff] }
 0x34c   : > { %v1631_v53 = vpop.xlane.xlu2 %1630  ;;  %v1402_v54 = vpop.xlane.xlu0 %1401 }
 0x34d   : > { %v1632_v55 = vsub.f32 %v1628_v41, %v1631_v53  ;;  %3277 = vrcp.f32 %v1402_v54  ;;  %v1414_v63 = vand.u32 2147483648, %v1402_v54  ;;  %v1412_v1 = vand.u32 2147483647, %v1402_v54  ;;  %v1697_v53 = vld [vmem:[#allocation17 + $0x8] sm:$0xff] }
 0x34e   : > { %vm1408_vm3 = vweird.f32 %v1402_v54 }
 0x34f   : > { %v4479_v56 = vpop.eup %3275  ;;  %v1633_v57 = vmul.f32 1.442695, %v1632_v55  ;;  %v1415_v4 = vor.u32 1.1754944e-38, %v1414_v63  ;;  %vm1413_vm5 = vcmp.eq.f32.partialorder %v1412_v1, 8.507059e+37  ;;  %v3984_v55 = vmov 0.0  }
 0x350   : > { %v1556_v58 = vsel %vm1366_vm1, %v4479_v56, 0.0  ;;  %v3267_v63 = vld [vmem:[#allocation18] ss:$0 sm:$0xff] }
 0x351   : > { %3279 = vpow2.f32 %v1633_v57  ;;  %1557 = vadd.xlane.f32.xlu2 %v1556_v58 }
 0x353   : > { %v3278_v59 = vpop.eup %3277 }
 0x354   : > { %v1404_v60 = vmul.f32 %v3278_v59, %v1402_v54  ;;  %vm1409_vm2 = vweird.f32 %v3278_v59  ;;  %v3983_v54 = vmov -inf  }
 0x355   : > { %vm1410_vm4 = vmor %vm1408_vm3, %vm1409_vm2 }
 0x356   : > { %v1405_v61 = vsub.f32 1.0, %v1404_v60 }
 0x357   : > { %v4483_v62 = vpop.eup %3279 }
 0x358   : > { %v1406_v0 = vmul.f32 %v3278_v59, %v1405_v61  ;;  %v1635_v2 = vsel %vm1366_vm1, %v4483_v62, 0.0 }
 0x359   : > { %1636 = vadd.xlane.f32.xlu0 %v1635_v2 }
 0x35a   : > { %v1407_v3 = vadd.f32 %v3278_v59, %v1406_v0 }
 0x35c   : > { %v1411_v5 = vsel %vm1410_vm4, %v3278_v59, %v1407_v3  ;;  %vm1800_vm4 = vcmask 31744   ;;  %v3985_v3 = vmov 32.0  }
 0x35d   : > { %v1416_v6 = vsel %vm1413_vm5, %v1415_v4, %v1411_v5  ;;  %1801 = vst.msk [vmem:[#allocation5] sm:$0xff] %vm1800_vm4, %v3983_v54  ;;  %vm1692_vm5 = vcmask 130048  }
 0x35e   : > { %v1417_v7 = vmul.f32 %v3272_v42, %v1416_v6  ;;  %1802 = vst.msk [vmem:[#allocation6] sm:$0xff] %vm1800_vm4, %v3984_v55 }
 0x35f   : > { %1803 = vst.msk [vmem:[#allocation4] sm:$0xff] %vm1692_vm5, %v3984_v55 }
 0x360   : > { %2957 = vmatmul.msk.f32.vlgmr.msrb.gmra.mxu3 %vm1366_vm1, %v1417_v7 }
 0x363   : > { %1495 = vrot.lane.b32.xlu1 %v1364_v30, %s3978_s1 }
 0x369   : > { %1574 = vrot.lane.b32.xlu2 %v1364_v30, %s3979_s26 }
 0x36d   : > { %1653 = vrot.lane.b32.xlu0 %v1364_v30, %s3977_s15 }
 0x3bd   : > { %v1478_v8 = vpop.xlane.xlu1 %1477 }
 0x3be   : > { %3281 = vrcp.f32 %v1478_v8  ;;  %v1490_v16 = vand.u32 2147483648, %v1478_v8  ;;  %vm1484_vm7 = vweird.f32 %v1478_v8  ;;  %v1488_v20 = vand.u32 2147483647, %v1478_v8 }
 0x3c0   : > { %v1491_v24 = vor.u32 1.1754944e-38, %v1490_v16  ;;  %vm1489_vm10 = vcmp.eq.f32.partialorder %v1488_v20, 8.507059e+37  ;;  %v1770_v16 = vld [vmem:[%s4772_s11 + $0x10] sm:$0xff] }
 0x3c4   : > { %v3282_v9 = vpop.eup %3281  ;;  %v1558_v10 = vpop.xlane.xlu2 %1557 }
 0x3c5   : > { %v1480_v11 = vmul.f32 %v3282_v9, %v1478_v8  ;;  %3283 = vrcp.f32 %v1558_v10  ;;  %vm1485_vm6 = vweird.f32 %v3282_v9  ;;  %v1570_v22 = vand.u32 2147483648, %v1558_v10 }
 0x3c6   : > { %vm1486_vm8 = vmor %vm1484_vm7, %vm1485_vm6  ;;  %v1568_v26 = vand.u32 2147483647, %v1558_v10  ;;  %vm1564_vm11 = vweird.f32 %v1558_v10  ;;  %vm1694_vm6 = vcmask 195584  }
 0x3c7   : > { %v1481_v12 = vsub.f32 1.0, %v1480_v11  ;;  %v1571_v30 = vor.u32 1.1754944e-38, %v1570_v22 }
 0x3c8   : > { %vm1569_vm13 = vcmp.eq.f32.partialorder %v1568_v26, 8.507059e+37 }
 0x3c9   : > { %v1482_v13 = vmul.f32 %v3282_v9, %v1481_v12 }
 0x3cb   : > { %v3284_v14 = vpop.eup %3283  ;;  %v1483_v15 = vadd.f32 %v3282_v9, %v1482_v13 }
 0x3cc   : > { %v1560_v17 = vmul.f32 %v3284_v14, %v1558_v10  ;;  %v1575_v18 = vpop.permute.xlu2 %1574  ;;  %v1637_v19 = vpop.xlane.xlu0 %1636  ;;  %vm1565_vm9 = vweird.f32 %v3284_v14 }
 0x3cd   : > { %3285 = vrcp.f32 %v1637_v19  ;;  %1595 = vmatpush.msra.mxu3 %v1575_v18  ;;  %v1487_v23 = vsel %vm1486_vm8, %v3282_v9, %v1483_v15  ;;  %vm1566_vm12 = vmor %vm1564_vm11, %vm1565_vm9  ;;  %v1649_v38 = vand.u32 2147483648, %v1637_v19  ;;  %v1647_v40 = vand.u32 2147483647, %v1637_v19  ;;  %v1771_v15 = vld [vmem:[%s4772_s11 + $0x18] sm:$0xff]  ;;  %v1768_v18 = vld [vmem:[%s4772_s11] sm:$0xff] }
 0x3ce   : > { %v1561_v21 = vsub.f32 1.0, %v1560_v17  ;;  %v1492_v28 = vsel %vm1489_vm10, %v1491_v24, %v1487_v23  ;;  %vm1643_vm15 = vweird.f32 %v1637_v19  ;;  %3287 = vrcp.f32 %v3985_v3  ;;  %v1769_v17 = vld [vmem:[%s4772_s11 + $0x8] sm:$0xff] }
 0x3cf   : > { %v1493_v35 = vmul.f32 %v4475_v51, %v1492_v28  ;;  %v1650_v42 = vor.u32 1.1754944e-38, %v1649_v38  ;;  %vm1648_vm3 = vcmp.eq.f32.partialorder %v1647_v40, 8.507059e+37  ;;  %v1699_v51 = vld [vmem:[#allocation17 + $0x18] sm:$0xff]  ;;  %1791 = vmatpush.msrb.mxu3 %v1771_v15  ;;  %v3268_v28 = vld [vmem:[%s4773_s10] ss:$0 sm:$0xff] }
 0x3d0   : > { %v1562_v25 = vmul.f32 %v3284_v14, %v1561_v21  ;;  %1719 = vmatpush.msra.mxu2 %v1699_v51 }
 0x3d1   : > { %1792 = vmatpush.msrb.mxu3 %v1770_v16 }
 0x3d2   : > { %v1563_v27 = vadd.f32 %v3284_v14, %v1562_v25  ;;  %1720 = vmatpush.msra.mxu2 %v1698_v52 }
 0x3d3   : > { %v3286_v29 = vpop.eup %3285  ;;  %1793 = vmatpush.msrb.mxu3 %v1769_v17 }
 0x3d4   : > { %v1567_v31 = vsel %vm1566_vm12, %v3284_v14, %v1563_v27  ;;  %v1639_v32 = vmul.f32 %v3286_v29, %v1637_v19  ;;  %vm1644_vm14 = vweird.f32 %v3286_v29  ;;  %1721 = vmatpush.msra.mxu2 %v1697_v53  ;;  %v3288_v4 = vpop.eup %3287 }
 0x3d5   : > { %v1572_v33 = vsel %vm1569_vm13, %v1571_v30, %v1567_v31  ;;  %v1496_v34 = vpop.permute.xlu1 %1495  ;;  %vm1645_vm2 = vmor %vm1643_vm15, %vm1644_vm14  ;;  %v1733_v5 = vmul.f32 32.0, %v3288_v4  ;;  %1794 = vmatpush.msrb.mxu3 %v1768_v18  ;;  %v3269_v30 = vld [vmem:[%s4774_s5] ss:$0 sm:$0xff] }
 0x3d6   : > { %v1640_v36 = vsub.f32 1.0, %v1639_v32  ;;  %1516 = vmatpush.msrb.mxu1 %v1496_v34  ;;  %v1573_v37 = vmul.f32 %v4479_v56, %v1572_v33  ;;  %v1696_v56 = vld [vmem:[#allocation17] sm:$0xff]  ;;  %v1277_v33 = vld [vmem:[%s1247_s3] sm:$0xff] }
 0x3d7   : > { %2960 = vmatmul.msk.f32.vlgmr.msrb.gmra.mxu1 %vm1366_vm1, %v1493_v35  ;;  %1722 = vmatpush.msra.mxu2 %v1696_v56  ;;  %v1734_v6 = vsub.f32 1.0, %v1733_v5 }
 0x3d8   : > { %v1641_v39 = vmul.f32 %v3286_v29, %v1640_v36  ;;  %2963 = vmatmul.msk.f32.vlgmr.msra.gmra.mxu3 %vm1366_vm1, %v1573_v37  ;;  %v3270_v36 = vld [vmem:[%s4776_s2] ss:$0 sm:$0xff] }
 0x3d9   : > { %v1735_v7 = vmul.f32 %v3288_v4, %v1734_v6 }
 0x3da   : > { %v1642_v41 = vadd.f32 %v3286_v29, %v1641_v39 }
 0x3db   : > { %v1736_v8 = vadd.f32 %v3288_v4, %v1735_v7 }
 0x3dc   : > { %v1646_v43 = vsel %vm1645_vm2, %v3286_v29, %v1642_v41 }
 0x3dd   : > { %v1651_v44 = vsel %vm1648_vm3, %v1650_v42, %v1646_v43 }
 0x3de   : > { %v1652_v45 = vmul.f32 %v4483_v62, %v1651_v44 }
 0x3df   : > { %v1654_v46 = vpop.permute.xlu0 %1653 }
 0x3e0   : > { %1674 = vmatpush.msra.mxu1 %v1654_v46 }
 0x3e1   : > { %2966 = vmatmul.msk.f32.vlgmr.msra.gmra.mxu1 %vm1366_vm1, %v1652_v45 }
 0x3e3   : > { %v1438_v47 = vpop.f32.mrf.mxu3 }
 0x454   : > { %v1518_v48 = vpop.f32.mrf.mxu1 }
 0x455   : > { %1680 = vrot.lane.b32.xlu1 %v1518_v48, %s3980_s12 }
 0x45b   : > { %v1597_v49 = vpop.f32.mrf.mxu3 }
 0x45c   : > { %1684 = vrot.lane.b32.xlu0 %v1597_v49, %s3981_s6 }
 0x45e   : > { %v1676_v50 = vpop.f32.mrf.mxu1 }
 0x45f   : > { %1688 = vrot.lane.b32.xlu2 %v1676_v50, %s3982_s28 }
 0x4b9   : > { %v1689_v60 = vpop.permute.xlu2 %1688 }
 0x4c7   : > { %v1681_v57 = vpop.permute.xlu1 %1680 }
 0x4c8   : > { %v1691_v58 = vsel %vm1366_vm1, %v1438_v47, %v1681_v57  ;;  %vm1737_vm1 = vweird.f32 %v3288_v4 }
 0x4c9   : > { %v1738_v9 = vsel %vm1737_vm1, %v3288_v4, %v1736_v8 }
 0x4ce   : > { %v1685_v59 = vpop.permute.xlu0 %1684 }
 0x4cf   : > { %v1693_v61 = vsel %vm1692_vm5, %v1691_v58, %v1685_v59 }
 0x4d0   : > { %v1695_v62 = vsel %vm1694_vm6, %v1693_v61, %v1689_v60 }
 0x4d1   : > { %2967 = vmatmul.msk.f32.vlgmr.msra.gmra.mxu2 %vm1286_vm0, %v1695_v62 }
 0x554   : > { %v1724_v0 = vpop.f32.mrf.mxu2 }
 0x555   : > { %v1725_v1 = vadd.f32 %v3267_v63, %v1724_v0 }
 0x557   : > { %v1729_v2 = vsel %vm1286_vm0, %v1725_v1, 0.0 }
 0x558   : > { %1730 = vadd.xlane.f32.xlu1 %v1729_v2 }
 0x5cb   : > { %v1731_v10 = vpop.xlane.xlu1 %1730 }
 0x5cc   : > { %v1739_v11 = vmul.f32 %v1738_v9, %v1731_v10 }
 0x5ce   : > { %v1740_v12 = vsub.f32 %v1725_v1, %v1739_v11 }
 0x5d0   : > { %v1741_v13 = vmul.f32 %v1740_v12, %v1740_v12 }
 0x5d2   : > { %v1742_v14 = vsel %vm1286_vm0, %v1741_v13, 0.0 }
 0x5d3   : > { %1743 = vadd.xlane.f32.xlu0 %v1742_v14 }
 0x646   : > { %v1744_v19 = vpop.xlane.xlu0 %1743 }
 0x647   : > { %v1745_v20 = vmul.f32 %v1744_v19, %v1738_v9 }
 0x649   : > { %v1746_v21 = vadd.f32 1e-05, %v1745_v20 }
 0x64b   : > { %3289 = vrsqrt.f32 %v1746_v21  ;;  %vm1753_vm8 = vweird.f32 %v1746_v21 }
 0x651   : > { %v3290_v22 = vpop.eup %3289 }
 0x652   : > { %v1748_v23 = vmul.f32 %v3290_v22, %v1746_v21  ;;  %vm1754_vm7 = vweird.f32 %v3290_v22 }
 0x653   : > { %vm1755_vm9 = vmor %vm1753_vm8, %vm1754_vm7 }
 0x654   : > { %v1749_v24 = vmul.f32 %v3290_v22, %v1748_v23 }
 0x656   : > { %v1750_v25 = vmul.f32 0.5, %v1749_v24 }
 0x658   : > { %v1751_v26 = vsub.f32 1.5, %v1750_v25 }
 0x65a   : > { %v1752_v27 = vmul.f32 %v3290_v22, %v1751_v26 }
 0x65c   : > { %v1756_v29 = vsel %vm1755_vm9, %v3290_v22, %v1752_v27 }
 0x65d   : > { %v1757_v31 = vmul.f32 %v1756_v29, %v1740_v12 }
 0x65f   : > { %v1761_v32 = vmul.f32 %v3268_v28, %v1757_v31 }
 0x661   : > { %v1765_v34 = vadd.f32 %v3269_v30, %v1761_v32 }
 0x663   : > { %1766 = vst.msk [vmem:[#allocation2] sm:$0xff] %vm1286_vm0, %v1765_v34  ;;  %v1767_v35 = vadd.f32 %v1765_v34, %v1277_v33 }
 0x665   : > { %2968 = vmatmul.msk.f32.vlgmr.msrb.gmra.mxu3 %vm1286_vm0, %v1767_v35 }
 0x6e8   : > { %v1796_v37 = vpop.f32.mrf.mxu3 }
 0x6e9   : > { %v1797_v38 = vadd.f32 %v3270_v36, %v1796_v37 }
 0x6eb   : > { %1799 = vst.msk [vmem:[#allocation3] sm:$0xff] %vm1692_vm5, %v1797_v38 }
 0x6ec PF: > { %s4777_s15 = sld [smem:[#allocation52_spill]]  ;;  %v1804_v41 = vld [vmem:[%s4447_s4] sm:$0xff]  ;;  %vm4728_vm0 = vcmask 261120   ;;  %v1805_v50 = vld [vmem:[%s4447_s4 + $0x8] sm:$0xff]  ;;  %v1806_v53 = vld [vmem:[%s4447_s4 + $0x10] sm:$0xff]  ;;  %s3986_s12 = smov 124  }
 0x6ed   : > { %s4779_s26 = sld [smem:[#allocation54_spill]]  ;;  %v1808_v42 = vld [vmem:[%s4450_s8] sm:$0xff]  ;;  %v1809_v51 = vld [vmem:[%s4450_s8 + $0x8] sm:$0xff]  ;;  %v1810_v54 = vld [vmem:[%s4450_s8 + $0x10] sm:$0xff]  ;;  %vm1919_vm10 = vcmask 31744   ;;  %s3988_s6 = smov 116  }
 0x6ee   : > { %v1812_v45 = vadd.f32 %v1808_v42, %v1804_v41  ;;  %s4780_s3 = sld [smem:[#allocation53_spill]]  ;;  %v1813_v52 = vadd.f32 %v1809_v51, %v1805_v50  ;;  %v1814_v55 = vadd.f32 %v1810_v54, %v1806_v53  ;;  %v1807_v56 = vld [vmem:[%s4447_s4 + $0x18] sm:$0xff]  ;;  %v3989_v30 = vmov 0   ;;  %s3993_s28 = smov 4  }
 0x6ef   : > { %v1811_v57 = vld [vmem:[%s4450_s8 + $0x18] sm:$0xff]  ;;  %s3987_s8 = smov 120   ;;  %s4781_s4 = sld [smem:[#allocation55_spill]]  ;;  %3291 = vset.pattern.permute.xlu0 %v3989_v30  ;;  %3325 = vset.pattern.permute.xlu1 %v3989_v30  ;;  %vm2331_vm11 = vcmask 7168   ;;  %vm2333_vm12 = vcmask 15360   ;;  %vm2335_vm13 = vcmask 23552  }
 0x6f0   : > { %v1815_v58 = vadd.f32 %v1811_v57, %v1807_v56  ;;  %v4579_v31 = vld [vmem:[#allocation5] sm:$0xff]  ;;  %s3994_s10 = smov 8   ;;  %s3995_s5 = smov 12   ;;  %vm2343_vm14 = vcmask 64512   ;;  %vm2345_vm15 = vcmask 97280   ;;  %vm2347_vm2 = vcmask 130048  }
 0x6f1   : > { %s4782_s14 = sld [smem:[#allocation61_spill]] }
 0x6f2   : > { %s4778_s1 = smov %s4777_s15  ;;  %v1819_v39 = vld [vmem:[%s4777_s15 + $0x18] sm:$0xff]  ;;  %v1915_v3 = vld [vmem:[#allocation3] sm:$0xff] }
 0x6f3   : > { %v1818_v40 = vld [vmem:[%s4778_s1 + $0x10] sm:$0xff]  ;;  %1849 = vmatpush.msra.mxu0 %v1819_v39  ;;  %v1817_v43 = vld [vmem:[%s4778_s1 + $0x8] sm:$0xff]  ;;  %v1816_v44 = vld [vmem:[%s4778_s1] sm:$0xff] }
 0x6f4   : > { %v1869_v46 = vld [vmem:[%s4779_s26 + $0x18] sm:$0xff]  ;;  %v1868_v47 = vld [vmem:[%s4779_s26 + $0x10] sm:$0xff]  ;;  %v1867_v48 = vld [vmem:[%s4779_s26 + $0x8] sm:$0xff] }
 0x6f5   : > { %1850 = vmatpush.msra.mxu0 %v1818_v40  ;;  %1898 = vmatpush.msra.mxu1 %v1869_v46  ;;  %v1866_v49 = vld [vmem:[%s4779_s26] sm:$0xff] }
 0x6f6   : > { %v3329_v60 = vld [vmem:[%s4780_s3] ss:$0 sm:$0xff] }
 0x6f7   : > { %1851 = vmatpush.msra.mxu0 %v1817_v43  ;;  %1899 = vmatpush.msra.mxu1 %v1868_v47  ;;  %v3330_v8 = vld [vmem:[%s4781_s4] ss:$0 sm:$0xff]  ;;  %p3001_p7 = scmp.ne.s32.totalorder %s4782_s14, 1 }
 0x6f8   : > { %s4787_s2 = sld [smem:[#allocation56_spill]] (!%p3001_p7) }
 0x6f9   : > { %1852 = vmatpush.msra.mxu0 %v1816_v44  ;;  %1900 = vmatpush.msra.mxu1 %v1867_v48  ;;  %s4789_s15 = sld [smem:[#allocation59_spill]] (!%p3001_p7) }
 0x6fa   : > { %2969 = vmatmul.msk.f32.vlgmr.msra.gmra.mxu0 %vm4728_vm0, %v1812_v45 }
 0x6fb   : > { %1901 = vmatpush.msra.mxu1 %v1866_v49 }
 0x6fc   : > { %2973 = vmatmul.msk.f32.vlgmr.msra.gmra.mxu1 %vm4728_vm0, %v1804_v41 }
 0x6ff   : > { %s4790_s3 = smov (!%p3001_p7), %s4789_s15 }
 0x702   : > { %2970 = vmatmul.msk.f32.gmra.mxu0 %vm4728_vm0, %v1813_v52  ;;  %v3990_v52 = vmov 2  }
 0x704   : > { %2974 = vmatmul.msk.f32.gmra.mxu1 %vm4728_vm0, %v1805_v50 }
 0x70a   : > { %2971 = vmatmul.msk.f32.gmra.mxu0 %vm4728_vm0, %v1814_v55 }
 0x70c   : > { %2975 = vmatmul.msk.f32.gmra.mxu1 %vm4728_vm0, %v1806_v53 }
 0x712   : > { %2972 = vmatmul.msk.f32.gmra.mxu0 %vm4728_vm0, %v1815_v58  ;;  %v3991_v58 = vmov 1  }
 0x713   : > { %3303 = vset.pattern.permute.xlu2 %v3991_v58 }
 0x714   : > { %2976 = vmatmul.msk.f32.gmra.mxu1 %vm4728_vm0, %v1807_v56 }
 0x777   : > { %v1854_v59 = vpop.f32.mrf.mxu0 }
 0x778   : > { %v4542_v0 = vadd.f32 %v3329_v60, %v1854_v59  ;;  %v3992_v59 = vmov 3  }
 0x779   : > { %v1903_v5 = vpop.f32.mrf.mxu1 }
 0x77a   : > { %v1904_v13 = vadd.f32 %v3330_v8, %v1903_v5 }
 0x77f   : > { %v1857_v61 = vpop.f32.mrf.mxu0 }
 0x780   : > { %v1858_v62 = vadd.f32 %v3329_v60, %v1857_v61 }
 0x781   : > { %v1906_v6 = vpop.f32.mrf.mxu1 }
 0x782   : > { %2010 = vrot.lane.b32.xlu2 %v1858_v62, %s3986_s12  ;;  %v1907_v12 = vadd.f32 %v3330_v8, %v1906_v6 }
 0x784   : > { %v3297_v37 = vpack.i.bf16 %v1904_v13, %v1907_v12 }
 0x787   : > { %v1860_v63 = vpop.f32.mrf.mxu0 }
 0x788   : > { %v1861_v4 = vadd.f32 %v3329_v60, %v1860_v63 }
 0x789   : > { %v1909_v7 = vpop.f32.mrf.mxu1 }
 0x78a   : > { %2008 = vrot.lane.b32.xlu2 %v4542_v0, %s3986_s12  ;;  %v1910_v10 = vadd.f32 %v3330_v8, %v1909_v7 }
 0x78f   : > { %v1863_v1 = vpop.f32.mrf.mxu0 }
 0x790   : > { %v1864_v2 = vadd.f32 %v3329_v60, %v1863_v1 }
 0x791   : > { %v1912_v9 = vpop.f32.mrf.mxu1 }
 0x792   : > { %2014 = vrot.lane.b32.xlu1 %v1864_v2, %s3986_s12  ;;  %2977 = vmatpush.xpose.msk.msra.mxu2 %vm1919_vm10, %v1864_v2  ;;  %v1913_v11 = vadd.f32 %v3330_v8, %v1912_v9 }
 0x793   : > { %2006 = vrot.lane.b32.xlu2 %v1915_v3, %s3986_s12 }
 0x794   : > { %1997 = vmatpush.msra.mxu3 %v1913_v11  ;;  %v3305_v38 = vpack.i.bf16 %v1910_v10, %v1913_v11 }
 0x796   : > { %2978 = vmatpush.xpose.msk.msra.mxu2 %vm1919_vm10, %v1861_v4  ;;  %1998 = vmatpush.msra.mxu3 %v1910_v10 }
 0x798   : > { %1999 = vmatpush.msra.mxu3 %v1907_v12 }
 0x79a   : > { %2012 = vrot.lane.b32.xlu1 %v1861_v4, %s3986_s12  ;;  %2979 = vmatpush.xpose.msk.msra.mxu2 %vm1919_vm10, %v1858_v62 }
 0x79b   : > { %2123 = vrot.lane.b32.xlu2 %v1861_v4, %s3987_s8  ;;  %2000 = vmatpush.msra.mxu3 %v1904_v13 }
 0x79e   : > { %2980 = vmatpush.xpose.msk.msra.mxu2 %vm1919_vm10, %v4542_v0 }
 0x7a1   : > { %2981 = vmatmul.msk.f32.vlgmr.msra.gmra.mxu2 %vm1919_vm10, %v1915_v3 }
 0x7a2   : > { %2125 = vrot.lane.b32.xlu1 %v1864_v2, %s3987_s8 }
 0x7a3   : > { %2121 = vrot.lane.b32.xlu2 %v1858_v62, %s3987_s8 }
 0x7aa   : > { %2232 = vrot.lane.b32.xlu1 %v1864_v2, %s3988_s6 }
 0x7ab   : > { %2119 = vrot.lane.b32.xlu2 %v4542_v0, %s3987_s8 }
 0x7b2   : > { %2230 = vrot.lane.b32.xlu1 %v1861_v4, %s3988_s6 }
 0x7b3   : > { %2224 = vrot.lane.b32.xlu2 %v1915_v3, %s3988_s6 }
 0x7ba   : > { %2228 = vrot.lane.b32.xlu1 %v1858_v62, %s3988_s6 }
 0x7c2   : > { %2117 = vrot.lane.b32.xlu1 %v1915_v3, %s3987_s8 }
 0x7dc   : > { %v2011_v14 = vpop.permute.xlu2 %2010 }
 0x7e4   : > { %v2009_v15 = vpop.permute.xlu2 %2008 }
 0x7ed   : > { %v2007_v16 = vpop.permute.xlu2 %2006 }
 0x7f5   : > { %v2124_v18 = vpop.permute.xlu2 %2123 }
 0x7fd   : > { %v2122_v21 = vpop.permute.xlu2 %2121 }
 0x804   : > { %v2015_v17 = vpop.permute.xlu1 %2014 }
 0x805   : > { %2983 = vmatpush.xpose.msk.msrb.mxu3 %vm1919_vm10, %v2015_v17  ;;  %v2120_v23 = vpop.permute.xlu2 %2119 }
 0x80c   : > { %v2013_v19 = vpop.permute.xlu1 %2012 }
 0x80d   : > { %2984 = vmatpush.xpose.msk.msrb.mxu3 %vm1919_vm10, %v2013_v19  ;;  %v2225_v46 = vpop.permute.xlu2 %2224 }
 0x811   : > { %2985 = vmatpush.xpose.msk.msrb.mxu3 %vm1919_vm10, %v2011_v14 }
 0x814   : > { %v2126_v20 = vpop.permute.xlu1 %2125 }
 0x815   : > { %2986 = vmatpush.xpose.msk.msrb.mxu3 %vm1919_vm10, %v2009_v15  ;;  %2989 = vmatpush.xpose.msk.msrb.mxu0 %vm1919_vm10, %v2126_v20 }
 0x819   : > { %2990 = vmatpush.xpose.msk.msrb.mxu0 %vm1919_vm10, %v2124_v18 }
 0x81c   : > { %v2233_v22 = vpop.permute.xlu1 %2232 }
 0x81d   : > { %2991 = vmatpush.xpose.msk.msrb.mxu0 %vm1919_vm10, %v2122_v21  ;;  %2995 = vmatpush.xpose.msk.msrb.mxu1 %vm1919_vm10, %v2233_v22 }
 0x821   : > { %2992 = vmatpush.xpose.msk.msrb.mxu0 %vm1919_vm10, %v2120_v23 }
 0x824   : > { %v2231_v24 = vpop.permute.xlu1 %2230  ;;  %v1952_v25 = vpop.f32.mrf.mxu2 }
 0x825   : > { %v1955_v26 = vmul.f32 0.5, %v1952_v25  ;;  %2996 = vmatpush.xpose.msk.msrb.mxu1 %vm1919_vm10, %v2231_v24 }
 0x827   : > { %v1956_v27 = vsel %vm4728_vm0, %v1955_v26, -inf }
 0x828   : > { %1957 = vmax.xlane.f32.xlu0 %v1956_v27 }
 0x82c   : > { %v2229_v28 = vpop.permute.xlu1 %2228 }
 0x82d   : > { %2997 = vmatpush.xpose.msk.msrb.mxu1 %vm1919_vm10, %v2229_v28 }
 0x834   : > { %v2118_v29 = vpop.permute.xlu1 %2117 }
 0x835   : > { %2993 = vmatmul.msk.f32.vlgmr.msrb.gmra.mxu0 %vm1919_vm10, %v2118_v29 }
 0x89b   : > { %v1958_v32 = vpop.xlane.xlu0 %1957 }
 0x89c   : > { %v1959_v33 = vmax.f32 %v4579_v31, %v1958_v32 }
 0x89e   : > { %1965 = vperm.xlu0 %3291, %v1959_v33   ;;  %v1960_v39 = vsub.f32 %v4579_v31, %v1959_v33 }
 0x8a0   : > { %v1961_v40 = vmul.f32 1.442695, %v1960_v39 }
 0x8a2   : > { %3331 = vpow2.f32 %v1961_v40 }
 0x8a6   : > { %2226 = vrot.lane.b32.xlu0 %v4542_v0, %s3988_s6 }
 0x8a7   : > { %3302 = vset.pattern.permute.xlu0 %v3990_v52 }
 0x8a8   : > { %v4592_v41 = vpop.eup %3331 }
 0x8b2   : > { %v2154_v34 = vpop.f32.mrf.mxu0 }
 0x8b3   : > { %v4584_v35 = vmul.f32 0.5, %v2154_v34 }
 0x8b5   : > { %v2158_v36 = vsel %vm4728_vm0, %v4584_v35, -inf }
 0x8b6   : > { %2159 = vmax.xlane.f32.xlu1 %v2158_v36 }
 0x8cf   : > { %3298 = vrot.lane.b32.xlu1 %v3297_v37, %s3986_s12 }
 0x8d7   : > { %3306 = vrot.lane.b32.xlu1 %v3305_v38, %s3987_s8 }
 0x8df   : > { %3316 = vrot.lane.b32.xlu1 %v3297_v37, %s3987_s8 }
 0x8e7   : > { %1978 = vperm.xlu1 %3325, %v4592_v41  }
 0x8ef   : > { %3327 = vset.pattern.permute.xlu1 %v3991_v58 }
 0x910   : > { %v1966_v42 = vpop.permute.xlu0 %1965 }
 0x911   : > { %v1968_v43 = vsub.f32 %v1955_v26, %v1966_v42 }
 0x913   : > { %v1969_v44 = vmul.f32 1.442695, %v1968_v43 }
 0x915   : > { %3333 = vpow2.f32 %v1969_v44 }
 0x918   : > { %v2227_v45 = vpop.permute.xlu0 %2226 }
 0x919   : > { %2998 = vmatpush.xpose.msk.msrb.mxu1 %vm1919_vm10, %v2227_v45  ;;  %v1918_v45 = vld [vmem:[#allocation6] sm:$0xff] }
 0x91b   : > { %v4596_v47 = vpop.eup %3333 }
 0x91c   : > { %2982 = vmatmul.msk.f32.vlgmr.msra.gmra.mxu3 %vm4728_vm0, %v4596_v47  ;;  %2999 = vmatmul.msk.f32.vlgmr.msrb.gmra.mxu1 %vm1919_vm10, %v2225_v46  ;;  %v1972_v22 = vsel %vm4728_vm0, %v4596_v47, 0.0  ;;  %v1971_v47 = vmul.f32 %v4592_v41, %v1918_v45 }
 0x924   : > { %2987 = vmatmul.msk.f32.vlgmr.msrb.gmra.mxu3 %vm1919_vm10, %v2007_v16 }
 0x929   : > { %v2160_v56 = vpop.xlane.xlu1 %2159 }
 0x92a   : > { %v2161_v57 = vmax.f32 %v4579_v31, %v2160_v56 }
 0x92c   : > { %v2162_v24 = vsub.f32 %v4579_v31, %v2161_v57 }
 0x92e   : > { %v2163_v25 = vmul.f32 1.442695, %v2162_v24 }
 0x941   : > { %v3299_v3 = vpop.permute.xlu1 %3298 }
 0x942   : > { %v3300_v8 = vunpack.i.l.bf16 %v3299_v3  ;;  %v3301_v9 = vunpack.i.h.bf16 %v3299_v3 }
 0x949   : > { %v3307_v5 = vpop.permute.xlu1 %3306 }
 0x94a   : > { %v3308_v10 = vunpack.i.l.bf16 %v3307_v5  ;;  %v3309_v13 = vunpack.i.h.bf16 %v3307_v5  ;;  %v1916_v5 = vld [vmem:[#allocation4] sm:$0xff] }
 0x951   : > { %v3317_v14 = vpop.permute.xlu1 %3316 }
 0x952   : > { %v3318_v16 = vunpack.i.l.bf16 %v3317_v14  ;;  %v3319_v17 = vunpack.i.h.bf16 %v3317_v14 }
 0x959   : > { %v1979_v56 = vpop.permute.xlu1 %1978 }
 0x999   : > { %v2261_v48 = vpop.f32.mrf.mxu1 }
 0x99a   : > { %v4602_v49 = vmul.f32 0.5, %v2261_v48 }
 0x99c   : > { %v2265_v50 = vsel %vm4728_vm0, %v4602_v49, -inf }
 0x99d   : > { %2266 = vmax.xlane.f32.xlu2 %v2265_v50 }
 0x99f   : > { %v4606_v51 = vpop.f32.mrf.mxu3 }
 0x9a7   : > { %v2043_v53 = vpop.f32.mrf.mxu3 }
 0x9a8   : > { %v4608_v54 = vmul.f32 0.5, %v2043_v53 }
 0x9aa   : > { %v2047_v55 = vsel %vm4728_vm0, %v4608_v54, -inf }
 0x9ab   : > { %2048 = vmax.xlane.f32.xlu0 %v2047_v55 }
 0x9bf   : > { %3293 = vrot.lane.b32.xlu0 %v3305_v38, %s3986_s12 }
 0x9c7   : > { %2167 = vperm.xlu0 %3302, %v2161_v57  }
 0x9cf   : > { %3321 = vrot.lane.b32.xlu0 %v3297_v37, %s3988_s6 }
 0x9d0   : > { %3328 = vset.pattern.permute.xlu0 %v3992_v59 }
 0xa10   : > { %v2267_v60 = vpop.xlane.xlu2 %2266 }
 0xa11   : > { %v4617_v63 = vmax.f32 %v4579_v31, %v2267_v60 }
 0xa13   : > { %v2269_v53 = vsub.f32 %v4579_v31, %v4617_v63 }
 0xa15   : > { %v2270_v55 = vmul.f32 1.442695, %v2269_v53 }
 0xa1e   : > { %v2049_v61 = vpop.xlane.xlu0 %2048 }
 0xa1f   : > { %v2050_v62 = vmax.f32 %v4579_v31, %v2049_v61 }
 0xa21   : > { %v2332_v0 = vsel %vm2331_vm11, %v1959_v33, %v2050_v62  ;;  %2056 = vperm.xlu2 %3303, %v2050_v62   ;;  %v2051_v20 = vsub.f32 %v4579_v31, %v2050_v62 }
 0xa22   : > { %v2334_v1 = vsel %vm2333_vm12, %v2332_v0, %v2161_v57 }
 0xa23   : > { %v2336_v2 = vsel %vm2335_vm13, %v2334_v1, %v4617_v63  ;;  %v2052_v21 = vmul.f32 1.442695, %v2051_v20 }
 0xa24   : > { %2337 = vst.msk [vmem:[#allocation5] sm:$0xff] %vm1919_vm10, %v2336_v2 }
 0xa29   : > { %3304 = vset.pattern.permute.xlu2 %v3992_v59 }
 0xa2a   : > { %2274 = vperm.xlu2 %3304, %v4617_v63  }
 0xa31   : > { %v3294_v4 = vpop.permute.xlu0 %3293 }
 0xa32   : > { %3311 = vrot.lane.b32.xlu2 %v3305_v38, %s3988_s6  ;;  %v3295_v6 = vunpack.i.l.bf16 %v3294_v4  ;;  %v3296_v7 = vunpack.i.h.bf16 %v3294_v4 }
 0xa33   : > { %3326 = vset.pattern.permute.xlu2 %v3990_v52 }
 0xa34   : > { %2104 = vmatpush.msrb.mxu2 %v3295_v6 }
 0xa36   : > { %2105 = vmatpush.msrb.mxu2 %v3296_v7 }
 0xa38   : > { %2106 = vmatpush.msrb.mxu2 %v3300_v8  ;;  %v1981_v8 = vmul.f32 %v1979_v56, %v1916_v5 }
 0xa39   : > { %v2168_v11 = vpop.permute.xlu0 %2167 }
 0xa3a   : > { %v2170_v12 = vsub.f32 %v4584_v35, %v2168_v11  ;;  %2107 = vmatpush.msrb.mxu2 %v3301_v9  ;;  %v2005_v11 = vadd.f32 %v4606_v51, %v1981_v8 }
 0xa3c   : > { %2211 = vmatpush.msra.mxu2 %v3308_v10  ;;  %v2171_v15 = vmul.f32 1.442695, %v2170_v12 }
 0xa3e   : > { %2212 = vmatpush.msra.mxu2 %v3309_v13  ;;  %3335 = vpow2.f32 %v2171_v15 }
 0xa3f   : > { %3337 = vpow2.f32 %v2052_v21 }
 0xa40   : > { %2213 = vmatpush.msra.mxu2 %v3318_v16  ;;  %3339 = vpow2.f32 %v2163_v25 }
 0xa41   : > { %v3322_v38 = vpop.permute.xlu0 %3321 }
 0xa42   : > { %2214 = vmatpush.msra.mxu2 %v3319_v17  ;;  %v3323_v40 = vunpack.i.l.bf16 %v3322_v38  ;;  %v3324_v42 = vunpack.i.h.bf16 %v3322_v38 }
 0xa44   : > { %v3336_v18 = vpop.eup %3335 }
 0xa45   : > { %v2174_v19 = vsel %vm4728_vm0, %v3336_v18, 0.0  ;;  %v3338_v23 = vpop.eup %3337 }
 0xa46   : > { %2175 = vadd.xlane.f32.xlu1 %v2174_v19  ;;  %v3340_v26 = vpop.eup %3339  ;;  %v2062_v48 = vmul.f32 %v3338_v23, %v1918_v45 }
 0xa47   : > { %v2173_v61 = vmul.f32 %v3340_v26, %v1918_v45 }
 0xa5b   : > { %1973 = vadd.xlane.f32.xlu2 %v1972_v22 }
 0xa5f   : > { %2069 = vperm.xlu1 %3327, %v3338_v23  }
 0xa73   : > { %2180 = vperm.xlu2 %3326, %v3340_v26  }
 0xa7b   : > { %v2057_v27 = vpop.permute.xlu2 %2056 }
 0xa7c   : > { %v2059_v28 = vsub.f32 %v4608_v54, %v2057_v27 }
 0xa7e   : > { %v2060_v29 = vmul.f32 1.442695, %v2059_v28 }
 0xa80   : > { %3341 = vpow2.f32 %v2060_v29 }
 0xa84   : > { %v2275_v30 = vpop.permute.xlu2 %2274 }
 0xa85   : > { %v2277_v33 = vsub.f32 %v4602_v49, %v2275_v30 }
 0xa86   : > { %v3342_v32 = vpop.eup %3341 }
 0xa87   : > { %2988 = vmatmul.msk.f32.vlgmr.msrb.gmra.mxu2 %vm4728_vm0, %v3342_v32  ;;  %v2063_v34 = vsel %vm4728_vm0, %v3342_v32, 0.0  ;;  %v2278_v35 = vmul.f32 1.442695, %v2277_v33 }
 0xa88   : > { %2064 = vadd.xlane.f32.xlu0 %v2063_v34 }
 0xa89   : > { %3343 = vpow2.f32 %v2278_v35 }
 0xa8a   : > { %3345 = vpow2.f32 %v2270_v55 }
 0xa8c   : > { %v3312_v36 = vpop.permute.xlu2 %3311 }
 0xa8d   : > { %v3313_v37 = vunpack.i.l.bf16 %v3312_v36  ;;  %v3314_v39 = vunpack.i.h.bf16 %v3312_v36 }
 0xa8f   : > { %2994 = vmatmul.msk.f32.vlgmr.msra.gmra.mxu2 %vm4728_vm0, %v3336_v18  ;;  %2318 = vmatpush.msra.mxu3 %v3313_v37  ;;  %v3344_v43 = vpop.eup %3343 }
 0xa90   : > { %v2281_v44 = vsel %vm4728_vm0, %v3344_v43, 0.0  ;;  %v3346_v59 = vpop.eup %3345 }
 0xa91   : > { %2319 = vmatpush.msra.mxu3 %v3314_v39  ;;  %v2280_v41 = vmul.f32 %v3346_v59, %v1918_v45 }
 0xa93   : > { %2320 = vmatpush.msra.mxu3 %v3323_v40 }
 0xa95   : > { %2321 = vmatpush.msra.mxu3 %v3324_v42 }
 0xa96   : > { %3000 = vmatmul.msk.f32.vlgmr.msra.gmra.mxu3 %vm4728_vm0, %v3344_v43 }
 0xa9c   : > { %2282 = vadd.xlane.f32.xlu2 %v2281_v44 }
 0xab9   : > { %v2176_v60 = vpop.xlane.xlu1 %2175 }
 0xaba   : > { %v2177_v62 = vadd.f32 %v2176_v60, %v2173_v61 }
 0xace   : > { %v1974_v46 = vpop.xlane.xlu2 %1973 }
 0xacf   : > { %v1975_v50 = vadd.f32 %v1974_v46, %v1971_v47 }
 0xad1   : > { %v2070_v4 = vpop.permute.xlu1 %2069 }
 0xad2   : > { %v2072_v7 = vmul.f32 %v2070_v4, %v1916_v5 }
 0xad6   : > { %v2181_v57 = vpop.permute.xlu2 %2180 }
 0xad7   : > { %v2183_v10 = vmul.f32 %v2181_v57, %v1916_v5 }
 0xafb   : > { %v2065_v49 = vpop.xlane.xlu0 %2064 }
 0xafc   : > { %v2066_v52 = vadd.f32 %v2065_v49, %v2062_v48 }
 0xafe   : > { %v2338_v54 = vsel %vm2331_vm11, %v1975_v50, %v2066_v52 }
 0xaff   : > { %v2339_v2 = vsel %vm2333_vm12, %v2338_v54, %v2177_v62 }
 0xb0a   : > { %v2109_v58 = vpop.f32.mrf.mxu2 }
 0xb0b   : > { %2113 = vrot.lane.b32.xlu1 %v2109_v58, %s3993_s28 }
 0xb0f   : > { %v2283_v0 = vpop.xlane.xlu2 %2282 }
 0xb10   : > { %v2284_v1 = vadd.f32 %v2283_v0, %v2280_v41 }
 0xb12   : > { %v2340_v31 = vsel %vm2335_vm13, %v2339_v2, %v2284_v1  ;;  %v2216_v63 = vpop.f32.mrf.mxu2 }
 0xb13   : > { %2341 = vst.msk [vmem:[#allocation6] sm:$0xff] %vm1919_vm10, %v2340_v31  ;;  %2220 = vrot.lane.b32.xlu0 %v2216_v63, %s3994_s10 }
 0xb19   : > { %v2323_v3 = vpop.f32.mrf.mxu3 }
 0xb1a   : > { %2327 = vrot.lane.b32.xlu1 %v2323_v3, %s3995_s5 }
 0xb1b   : > { %2287 = vperm.xlu0 %3328, %v3346_v59  }
 0xb7d   : > { %v2114_v6 = vpop.permute.xlu1 %2113 }
 0xb7e   : > { %v2116_v9 = vadd.f32 %v2114_v6, %v2072_v7 }
 0xb80   : > { %v2342_v14 = vsel %vm1919_vm10, %v2005_v11, %v2116_v9 }
 0xb85   : > { %v2221_v12 = vpop.permute.xlu0 %2220 }
 0xb86   : > { %v2223_v13 = vadd.f32 %v2221_v12, %v2183_v10 }
 0xb88   : > { %v2344_v15 = vsel %vm2343_vm14, %v2342_v14, %v2223_v13 }
 0xb8c   : > { %v2328_v18 = vpop.permute.xlu1 %2327 }
 0xb8d   : > { %v2288_v16 = vpop.permute.xlu0 %2287 }
 0xb8e   : > { %v2290_v17 = vmul.f32 %v2288_v16, %v1916_v5 }
 0xb8f   : > { %2352 = sbr.rel (%p3001_p7) target bundleno = 4046 (0xfce), region = 212 }
 0xb90   : > { %v2330_v19 = vadd.f32 %v2328_v18, %v2290_v17 }
 0xb92   : > { %v2346_v20 = vsel %vm2345_vm15, %v2344_v15, %v2330_v19 }
 0xb93   : > { %2348 = vst.msk [vmem:[#allocation4] sm:$0xff] %vm2347_vm2, %v2346_v20 }
 0xb94   : > { %v2354_v51 = vld [vmem:[#allocation6] sm:$0xff]  ;;  %v3996_v21 = vmov 2   ;;  %v3997_v22 = vmov 0   ;;  %v3998_v23 = vmov 3   ;;  %v3999_v24 = vmov 1   ;;  %v2436_v25 = vld [vmem:[#allocation20 + $0x8] sm:$0xff] }
 0xb95   : > { %3349 = vset.pattern.permute.xlu1 %v3996_v21  ;;  %3347 = vset.pattern.permute.xlu0 %v3997_v22  ;;  %v2435_v26 = vld [vmem:[#allocation20] sm:$0xff]  ;;  %v3352_v18 = vld [vmem:[%s4787_s2] ss:$0 sm:$0xff] }
 0xb96   : > { %2395 = vperm.xlu1 %3349, %v2354_v51   ;;  %2357 = vperm.xlu0 %3347, %v2354_v51   ;;  %v2464_v20 = vld [vmem:[#allocation2] sm:$0xff]  ;;  %v2539_v41 = vld [vmem:[%s4790_s3 + $0x10] sm:$0xff] }
 0xb97   : > { %2458 = vmatpush.msra.mxu0 %v2436_v25  ;;  %v3353_v56 = vld [vmem:[#allocation21] ss:$0 sm:$0xff] }
 0xb99   : > { %2459 = vmatpush.msra.mxu0 %v2435_v26 }
 0xb9a   : > { %v2353_v3 = vld [vmem:[#allocation4] sm:$0xff] }
 0xb9e   : > { %3350 = vset.pattern.permute.xlu1 %v3998_v23  ;;  %3348 = vset.pattern.permute.xlu0 %v3999_v24 }
 0xb9f   : > { %2414 = vperm.xlu1 %3350, %v2354_v51   ;;  %2376 = vperm.xlu0 %3348, %v2354_v51  }
 0xba7   : > { %3351 = vset.pattern.permute.xlu0 %v3998_v23  ;;  %v4000_v23 = vmov 32.0  }
 0xc08   : > { %v2396_v27 = vpop.permute.xlu1 %2395  ;;  %v2358_v28 = vpop.permute.xlu0 %2357 }
 0xc09   : > { %3359 = vrcp.f32 %v2396_v27  ;;  %v2409_v42 = vand.u32 2147483648, %v2396_v27  ;;  %vm2403_vm3 = vweird.f32 %v2396_v27  ;;  %vm2365_vm4 = vweird.f32 %v2358_v28 }
 0xc0a   : > { %3361 = vrcp.f32 %v2358_v28  ;;  %v2371_v45 = vand.u32 2147483648, %v2358_v28  ;;  %v2369_v49 = vand.u32 2147483647, %v2358_v28  ;;  %v2407_v54 = vand.u32 2147483647, %v2396_v27 }
 0xc0b   : > { %v2410_v55 = vor.u32 1.1754944e-38, %v2409_v42  ;;  %v2543_v42 = vld [vmem:[%s4790_s3 + $0x30] sm:$0xff] }
 0xc0c   : > { %v2372_v0 = vor.u32 1.1754944e-38, %v2371_v45  ;;  %vm2370_vm13 = vcmp.eq.f32.partialorder %v2369_v49, 8.507059e+37 }
 0xc0f   : > { %v3360_v29 = vpop.eup %3359 }
 0xc10   : > { %v3362_v30 = vpop.eup %3361  ;;  %v2399_v32 = vmul.f32 %v3360_v29, %v2396_v27  ;;  %vm2404_vm6 = vweird.f32 %v3360_v29 }
 0xc11   : > { %v2361_v33 = vmul.f32 %v3362_v30, %v2358_v28  ;;  %v2415_v34 = vpop.permute.xlu1 %2414  ;;  %v2377_v35 = vpop.permute.xlu0 %2376  ;;  %vm2366_vm5 = vweird.f32 %v3362_v30  ;;  %vm4659_vm9 = vmor %vm2403_vm3, %vm2404_vm6 }
 0xc12   : > { %3363 = vrcp.f32 %v2415_v34  ;;  %v2400_v36 = vsub.f32 1.0, %v2399_v32  ;;  %v2388_v53 = vand.u32 2147483647, %v2377_v35  ;;  %vm4652_vm1 = vmor %vm2365_vm4, %vm2366_vm5  ;;  %v2390_v58 = vand.u32 2147483648, %v2377_v35 }
 0xc13   : > { %v2362_v37 = vsub.f32 1.0, %v2361_v33  ;;  %3365 = vrcp.f32 %v2377_v35  ;;  %v2428_v59 = vand.u32 2147483648, %v2415_v34  ;;  %v2426_v62 = vand.u32 2147483647, %v2415_v34 }
 0xc14   : > { %v2401_v39 = vmul.f32 %v3360_v29, %v2400_v36  ;;  %vm2422_vm11 = vweird.f32 %v2415_v34  ;;  %vm2384_vm12 = vweird.f32 %v2377_v35  ;;  %vm2408_vm4 = vcmp.eq.f32.partialorder %v2407_v54, 8.507059e+37  ;;  %v2508_v36 = vld [vmem:[#allocation24 + $0x18] sm:$0xff] }
 0xc15   : > { %v2363_v38 = vmul.f32 %v3362_v30, %v2362_v37  ;;  %v2391_v63 = vor.u32 1.1754944e-38, %v2390_v58  ;;  %v2429_v6 = vor.u32 1.1754944e-38, %v2428_v59  ;;  %vm2389_vm3 = vcmp.eq.f32.partialorder %v2388_v53, 8.507059e+37  ;;  %v2507_v37 = vld [vmem:[#allocation24 + $0x10] sm:$0xff]  ;;  %2528 = vmatpush.msra.mxu1 %v2508_v36  ;;  %v3354_v59 = vld [vmem:[#allocation23] ss:$0 sm:$0xff] }
 0xc16   : > { %v2402_v50 = vadd.f32 %v3360_v29, %v2401_v39  ;;  %vm2427_vm6 = vcmp.eq.f32.partialorder %v2426_v62, 8.507059e+37  ;;  %3367 = vrcp.f32 %v4000_v23  ;;  %v2505_v39 = vld [vmem:[#allocation24] sm:$0xff] }
 0xc17   : > { %v2364_v47 = vadd.f32 %v3362_v30, %v2363_v38  ;;  %v2506_v38 = vld [vmem:[#allocation24 + $0x8] sm:$0xff]  ;;  %2529 = vmatpush.msra.mxu1 %v2507_v37  ;;  %v3358_v23 = vld [vmem:[#allocation30] ss:$0 sm:$0xff] }
 0xc18   : > { %v3364_v40 = vpop.eup %3363  ;;  %v2406_v1 = vsel %vm4659_vm9, %v3360_v29, %v2402_v50  ;;  %v2538_v62 = vld [vmem:[%s4790_s3 + $0x8] sm:$0xff] }
 0xc19   : > { %v3366_v43 = vpop.eup %3365  ;;  %v2418_v44 = vmul.f32 %v3364_v40, %v2415_v34  ;;  %vm2423_vm7 = vweird.f32 %v3364_v40  ;;  %v2368_v61 = vsel %vm4652_vm1, %v3362_v30, %v2364_v47  ;;  %v2411_v8 = vsel %vm2408_vm4, %v2410_v55, %v2406_v1  ;;  %2530 = vmatpush.msra.mxu1 %v2506_v38  ;;  %v3355_v1 = vld [vmem:[#allocation26] ss:$0 sm:$0xff] }
 0xc1a   : > { %v2380_v46 = vmul.f32 %v3366_v43, %v2377_v35  ;;  %vm2385_vm8 = vweird.f32 %v3366_v43  ;;  %vm2424_vm5 = vmor %vm2422_vm11, %vm2423_vm7  ;;  %v2373_v4 = vsel %vm2370_vm13, %v2372_v0, %v2368_v61  ;;  %v2412_v13 = vmul.f32 %v2411_v8, %v2353_v3  ;;  %v2537_v0 = vld [vmem:[%s4790_s3] sm:$0xff] }
 0xc1b   : > { %v2419_v48 = vsub.f32 1.0, %v2418_v44  ;;  %vm2386_vm0 = vmor %vm2384_vm12, %vm2385_vm8  ;;  %v2374_v11 = vmul.f32 %v2373_v4, %v2353_v3  ;;  %2531 = vmatpush.msra.mxu1 %v2505_v39  ;;  %vm2549_vm8 = vcmask 523264  }
 0xc1c   : > { %v2381_v52 = vsub.f32 1.0, %v2380_v46  ;;  %v3368_v24 = vpop.eup %3367  ;;  %v2541_v46 = vld [vmem:[%s4790_s3 + $0x20] sm:$0xff] }
 0xc1d   : > { %v2420_v57 = vmul.f32 %v3364_v40, %v2419_v48  ;;  %v2472_v25 = vmul.f32 32.0, %v3368_v24  ;;  %v2540_v48 = vld [vmem:[%s4790_s3 + $0x18] sm:$0xff] }
 0xc1e   : > { %v2382_v60 = vmul.f32 %v3366_v43, %v2381_v52 }
 0xc1f   : > { %v2421_v2 = vadd.f32 %v3364_v40, %v2420_v57  ;;  %v2473_v26 = vsub.f32 1.0, %v2472_v25 }
 0xc20   : > { %v2383_v31 = vadd.f32 %v3366_v43, %v2382_v60 }
 0xc21   : > { %v2425_v5 = vsel %vm2424_vm5, %v3364_v40, %v2421_v2  ;;  %v2474_v27 = vmul.f32 %v3368_v24, %v2473_v26  ;;  %v2544_v40 = vld [vmem:[%s4789_s15 + $0x38] sm:$0xff] }
 0xc22   : > { %v2387_v7 = vsel %vm2386_vm0, %v3366_v43, %v2383_v31  ;;  %v2430_v10 = vsel %vm2427_vm6, %v2429_v6, %v2425_v5  ;;  %vm4788_vm0 = vcmask 261120   ;;  %2561 = vmatpush.msra.mxu2 %v2544_v40  ;;  %v2542_v43 = vld [vmem:[%s4790_s3 + $0x28] sm:$0xff] }
 0xc23   : > { %v2392_v9 = vsel %vm2389_vm3, %v2391_v63, %v2387_v7  ;;  %v2431_v14 = vmul.f32 %v2430_v10, %v2353_v3  ;;  %v2475_v28 = vadd.f32 %v3368_v24, %v2474_v27  ;;  %vm4792_vm7 = vmmov %vm4788_vm0 }
 0xc24   : > { %v2393_v12 = vmul.f32 %v2392_v9, %v2353_v3  ;;  %2562 = vmatpush.msra.mxu2 %v2543_v42  ;;  %v3356_v3 = vld [vmem:[#allocation27] ss:$0 sm:$0xff]  ;;  %vm4793_vm9 = vmmov %vm4788_vm0 }
 0xc25   : > { %vm4794_vm11 = vmmov %vm4788_vm0 }
 0xc26   : > { %v2432_v15 = vsel %vm1919_vm10, %v2374_v11, %v2393_v12  ;;  %vm2476_vm10 = vweird.f32 %v3368_v24  ;;  %2563 = vmatpush.msra.mxu2 %v2542_v43  ;;  %vm4796_vm5 = vmmov %vm4788_vm0 }
 0xc27   : > { %v2433_v16 = vsel %vm2343_vm14, %v2432_v15, %v2412_v13  ;;  %v4672_v29 = vsel %vm2476_vm10, %v3368_v24, %v2475_v28  ;;  %vm4791_vm14 = vmmov %vm4788_vm0 }
 0xc28   : > { %v2434_v17 = vsel %vm2345_vm15, %v2433_v16, %v2431_v14  ;;  %2564 = vmatpush.msra.mxu2 %v2541_v46 }
 0xc29   : > { %3002 = vmatmul.msk.f32.vlgmr.msra.gmra.mxu0 %vm2347_vm2, %v2434_v17 }
 0xc2a   : > { %2565 = vmatpush.msra.mxu2 %v2540_v48 }
 0xc2c   : > { %2566 = vmatpush.msra.mxu2 %v2539_v41 }
 0xc2e   : > { %2567 = vmatpush.msra.mxu2 %v2538_v62 }
 0xc30   : > { %2568 = vmatpush.msra.mxu2 %v2537_v0 }
 0xca6   : > { %v2461_v19 = vpop.f32.mrf.mxu0 }
 0xca7   : > { %v2462_v51 = vadd.f32 %v3352_v18, %v2461_v19 }
 0xca9   : > { %v2465_v21 = vadd.f32 %v2464_v20, %v2462_v51 }
 0xcab   : > { %v2468_v22 = vsel %vm4788_vm0, %v2465_v21, 0.0 }
 0xcac   : > { %2469 = vadd.xlane.f32.xlu2 %v2468_v22 }
 0xd1f   : > { %v2470_v30 = vpop.xlane.xlu2 %2469 }
 0xd20   : > { %v2478_v32 = vmul.f32 %v4672_v29, %v2470_v30 }
 0xd22   : > { %v2479_v33 = vsub.f32 %v2465_v21, %v2478_v32  ;;  %v3357_v21 = vld [vmem:[#allocation29] ss:$0 sm:$0xff] }
 0xd24   : > { %v2480_v34 = vmul.f32 %v2479_v33, %v2479_v33 }
 0xd26   : > { %v2481_v35 = vsel %vm4791_vm14, %v2480_v34, 0.0 }
 0xd27   : > { %2482 = vadd.xlane.f32.xlu2 %v2481_v35 }
 0xd9a   : > { %v2483_v44 = vpop.xlane.xlu2 %2482 }
 0xd9b   : > { %v2484_v45 = vmul.f32 %v2483_v44, %v4672_v29 }
 0xd9d   : > { %v2485_v47 = vadd.f32 1e-05, %v2484_v45 }
 0xd9f   : > { %3369 = vrsqrt.f32 %v2485_v47  ;;  %vm2492_vm2 = vweird.f32 %v2485_v47 }
 0xda5   : > { %v3370_v49 = vpop.eup %3369 }
 0xda6   : > { %v2487_v50 = vmul.f32 %v3370_v49, %v2485_v47  ;;  %vm2493_vm15 = vweird.f32 %v3370_v49 }
 0xda7   : > { %vm2494_vm1 = vmor %vm2492_vm2, %vm2493_vm15 }
 0xda8   : > { %v2488_v52 = vmul.f32 %v3370_v49, %v2487_v50 }
 0xdaa   : > { %v2489_v53 = vmul.f32 0.5, %v2488_v52 }
 0xdac   : > { %v2490_v54 = vsub.f32 1.5, %v2489_v53 }
 0xdae   : > { %v2491_v55 = vmul.f32 %v3370_v49, %v2490_v54 }
 0xdb0   : > { %v2495_v57 = vsel %vm2494_vm1, %v3370_v49, %v2491_v55 }
 0xdb1   : > { %v2496_v58 = vmul.f32 %v2495_v57, %v2479_v33 }
 0xdb3   : > { %v2500_v60 = vmul.f32 %v3353_v56, %v2496_v58 }
 0xdb5   : > { %v2504_v61 = vadd.f32 %v3354_v59, %v2500_v60 }
 0xdb7   : > { %3003 = vmatmul.msk.f32.vlgmr.msra.gmra.mxu1 %vm4792_vm7, %v2504_v61 }
 0xe34   : > { %v2533_v2 = vpop.f32.mrf.mxu1 }
 0xe35   : > { %v2534_v31 = vadd.f32 %v3355_v1, %v2533_v2 }
 0xe37   : > { %v2536_v63 = vmax.f32 %v2534_v31, 0.0 }
 0xe39   : > { %3004 = vmatmul.msk.f32.vlgmr.msra.gmra.mxu2 %vm2549_vm8, %v2536_v63 }
 0xebc   : > { %v2570_v4 = vpop.f32.mrf.mxu2 }
 0xebd   : > { %v2571_v5 = vadd.f32 %v3356_v3, %v2570_v4 }
 0xebf   : > { %v2573_v6 = vadd.f32 %v2571_v5, %v2504_v61 }
 0xec1   : > { %v2576_v7 = vsel %vm4793_vm9, %v2573_v6, 0.0 }
 0xec2   : > { %2577 = vadd.xlane.f32.xlu1 %v2576_v7 }
 0xf35   : > { %v2578_v8 = vpop.xlane.xlu1 %2577 }
 0xf36   : > { %v2579_v9 = vmul.f32 %v2578_v8, %v4672_v29 }
 0xf38   : > { %v2580_v10 = vsub.f32 %v2573_v6, %v2579_v9 }
 0xf3a   : > { %v2581_v11 = vmul.f32 %v2580_v10, %v2580_v10 }
 0xf3c   : > { %v2582_v12 = vsel %vm4794_vm11, %v2581_v11, 0.0 }
 0xf3d   : > { %2583 = vadd.xlane.f32.xlu2 %v2582_v12 }
 0xfb0   : > { %v2584_v13 = vpop.xlane.xlu2 %2583 }
 0xfb1   : > { %v2585_v14 = vmul.f32 %v2584_v13, %v4672_v29 }
 0xfb3   : > { %v2586_v15 = vadd.f32 1e-05, %v2585_v14 }
 0xfb5   : > { %3371 = vrsqrt.f32 %v2586_v15  ;;  %vm2593_vm13 = vweird.f32 %v2586_v15 }
 0xfbb   : > { %v3372_v16 = vpop.eup %3371 }
 0xfbc   : > { %v2588_v17 = vmul.f32 %v3372_v16, %v2586_v15  ;;  %vm2594_vm12 = vweird.f32 %v3372_v16 }
 0xfbd   : > { %vm2595_vm4 = vmor %vm2593_vm13, %vm2594_vm12 }
 0xfbe   : > { %v2589_v18 = vmul.f32 %v3372_v16, %v2588_v17 }
 0xfc0   : > { %v2590_v19 = vmul.f32 0.5, %v2589_v18 }
 0xfc2   : > { %v2591_v20 = vsub.f32 1.5, %v2590_v19 }
 0xfc4   : > { %v2592_v51 = vmul.f32 %v3372_v16, %v2591_v20 }
 0xfc6   : > { %v2596_v22 = vsel %vm2595_vm4, %v3372_v16, %v2592_v51 }
 0xfc7   : > { %v2597_v24 = vmul.f32 %v2596_v22, %v2580_v10 }
 0xfc9   : > { %v2601_v25 = vmul.f32 %v3357_v21, %v2597_v24 }
 0xfcb   : > { %v2605_v26 = vadd.f32 %v3358_v23, %v2601_v25 }
 0xfcd   : > { %2606 = vst.msk [vmem:[%s1271_s16] sm:$0xff] %vm4796_vm5, %v2605_v26 }
 0xfce PF: > { %s4797_s8 = sld [smem:[#allocation63_spill]]  ;;  %s4798_s15 = smov %s3919_s18 }
 0xfcf   : > { %s4799_s16 = smov %s3923_s22  ;;  %s4800_s18 = smov %s4803_s0 }
 0xfd0   : > { %s4801_s22 = smov %s4807_s7 }
 0xfd4   : > { %s80_s23 = sadd.s32 1, %s4797_s8  }
 0xfd5   : > { %p77_p6 = scmp.ge.s32.totalorder %s80_s23, 6  }
 0xfd7   :  { %79 = sbr.rel (!%p77_p6) target bundleno = 67 (0x43), region = 282 }
 0xfdc   :  { %2626 = vsyncpa [#allocation8], 1 }
 0xfdd   :  { %2628 = vsyncpa [#allocation8 + $0x1], 1 }
 0xfde   :  { %2629 = vsyncpa [#allocation10], 1 }
 0xfdf   :  { %2630 = vsyncpa [#allocation13], 1 }
 0xfe0   :  { %2631 = vsyncpa [#allocation16], 1 }
 0xfe1   :  { %2632 = vsyncpa [#allocation19], 1 }
 0xfe2   :  { %2633 = vsyncpa [#allocation22], 1 }
 0xfe3   :  { %2634 = vsyncpa [#allocation25], 1 }
 0xfe4   :  { %2635 = vsyncpa [#allocation28], 1 }
 0xfe5   :  { %2636 = vsyncpa [#allocation31], 1 }

// kernel: two_way_transformer.9
= control target key start
LH: loop header
LB: loop body
LE: loop exit
PB: predicated region body
PF: predicated region fallthrough
CT: control target
= control target key end

     0   :  { %s2253_s0 = inlined_call_operand.vmem [shape: f32[2,8,32], index: 0, kind: input, shape index: {}]   ;;  %s2254_s1 = inlined_call_operand.vmem [shape: f32[2,8,32], index: 1, kind: input, shape index: {}]   ;;  %s2255_s2 = inlined_call_operand.vmem [shape: f32[2,64,32], index: 2, kind: input, shape index: {}]   ;;  %s2256_s3 = inlined_call_operand.vmem [shape: f32[2,64,32], index: 3, kind: input, shape index: {}]   ;;  %s2257_s4 = inlined_call_operand.vmem [shape: f32[32,16], index: 4, kind: input, shape index: {}]   ;;  %s2258_s5 = inlined_call_operand.vmem [shape: f32[1,16], index: 5, kind: input, shape index: {}]   ;;  %s2259_s6 = inlined_call_operand.vmem [shape: f32[32,16], index: 6, kind: input, shape index: {}]   ;;  %s2260_s7 = inlined_call_operand.vmem [shape: f32[1,16], index: 7, kind: input, shape index: {}]   ;;  %s2261_s8 = inlined_call_operand.vmem [shape: f32[32,16], index: 8, kind: input, shape index: {}]   ;;  %s2262_s9 = inlined_call_operand.vmem [shape: f32[1,16], index: 9, kind: input, shape index: {}]   ;;  %s2263_s10 = inlined_call_operand.vmem [shape: f32[16,32], index: 10, kind: input, shape index: {}]   ;;  %s2264_s11 = inlined_call_operand.vmem [shape: f32[1,32], index: 11, kind: input, shape index: {}]   ;;  %s2265_s12 = inlined_call_operand.vmem [shape: f32[1,32], index: 12, kind: input, shape index: {}]   ;;  %s2266_s13 = inlined_call_operand.vmem [shape: f32[1,32], index: 13, kind: input, shape index: {}]   ;;  %s2267_s14 = inlined_call_operand.hbm [shape: f32[2,8,32], index: 14, kind: output, shape index: {}]  }
   0x1   :  { %2282 = sst [smem:[#allocation21_spill]] %s2265_s12 }
   0x2   :  { %2283 = sst [smem:[#allocation22_spill]] %s2266_s13 }
   0x3   :  { %2284 = sst [smem:[#allocation23_spill]] %s2267_s14 }
   0x4   :  { %19 = vsyncpa [#allocation7], 0 }
   0x5   :  { %21 = vsyncpa [#allocation7 + $0x1], 0  ;;  %s1894_s29 = smov 0   ;;  %s1896_s30 = smov 0  }
   0x6   :  { %s1898_s15 = smov 0   ;;  %s1900_s16 = smov 0  }
   0x7   :  { %s1902_s17 = smov 0   ;;  %s1904_s18 = smov 0  }
   0x8   :  { %s1906_s19 = smov 0   ;;  %s1908_s20 = smov 0  }
   0x9 LB: > { %2285 = sst [smem:[#allocation9_spill]] %s1772_s29  ;;  %s1487_s21 = sadd.s32 4294967295, %s1800_s20   ;;  %s1800_s20 = sphi %s1908_s20, %s27_s20   ;;  %s1796_s19 = sphi %s1906_s19, %s2321_s19   ;;  %s1792_s18 = sphi %s1904_s18, %s2320_s18   ;;  %s1788_s17 = sphi %s1902_s17, %s2319_s17   ;;  %s1784_s16 = sphi %s1900_s16, %s2318_s16   ;;  %s1780_s15 = sphi %s1898_s15, %s2317_s15   ;;  %s1776_s30 = sphi %s1896_s30, %s2316_s30   ;;  %s1772_s29 = sphi %s1894_s29, %s2315_s29  }
   0xa   : > { %2286 = sst [smem:[#allocation10_spill]] %s1776_s30  ;;  %s1488_s22 = sadd.s32 4294967294, %s1800_s20  }
   0xb   : > { %2287 = sst [smem:[#allocation11_spill]] %s1780_s15  ;;  %s39_s23 = sadd.s32 1, %s1792_s18 }
   0xc   : > { %2288 = sst [smem:[#allocation12_spill]] %s1788_s17  ;;  %p40_p0 = scmp.ge.s32.totalorder %s39_s23, 2 }
   0xd   : > { %2289 = sst [smem:[#allocation13_spill]] %s1792_s18  ;;  %s46_s24 = sadd.s32 1, %s1796_s19 }
   0xe   : > { %2290 = sst [smem:[#allocation14_spill]] %s1796_s19  ;;  %p387_p1 = scmp.ne.s32.totalorder %s1780_s15, %s1776_s30 }
   0xf   : > { %2291 = sst [smem:[#allocation15_spill]] %s1800_s20  ;;  %p388_p2 = scmp.eq.s32.totalorder %s1487_s21, 3 }
  0x10   : > { %s2323_s23 = smov (%p40_p0, %s39_s23), 0  ;;  %s2325_s24 = smov (!%p40_p0, %s46_s24), %s1796_s19 }
  0x11   : > { %2292 = sst [smem:[#allocation16_spill]] %s2323_s23  ;;  %p1943_p3 = por %p388_p2, %p387_p1 }
  0x12   : > { %p393_p4 = scmp.ne.s32.totalorder %s1776_s30, %s1772_s29  ;;  %p48_p5 = scmp.ge.s32.totalorder %s2325_s24, 2 }
  0x13   : > { %s2293_s25 = scalar_select %p1943_p3, 1, 0 }
  0x14   : > { %p394_p6 = scmp.eq.s32.totalorder %s1488_s22, 3  ;;  %p1491_p7 = scmp.ge.s32.totalorder %s1800_s20, 1 }
  0x15   : > { %2294 = sst [smem:[#allocation17_spill]] %s2293_s25  ;;  %p488_p8 = scmp.lt.s32.totalorder %s1800_s20, 5 }
  0x16   : > { %s2327_s24 = smov (%p48_p5, %s2325_s24), 0  ;;  %p1953_p9 = por %p394_p6, %p393_p4 }
  0x17   : > { %2295 = sst [smem:[#allocation18_spill]] %s2327_s24  ;;  %p489_p10 = pnand %p1491_p7, %p488_p8 }
  0x18   : > { %s2296_s26 = scalar_select %p1953_p9, 1, 0 }
  0x19   : > { %s372_s27 = ssub.s32 %s1796_s19, %s2327_s24  ;;  %s377_s28 = sadd.s32 1, %s1780_s15 }
  0x1a   : > { %2297 = sst [smem:[#allocation19_spill]] %s2296_s26  ;;  %p375_p11 = scmp.eq.s32.totalorder %s372_s27, 0 }
  0x1b   : > { %492 = sbr.rel (%p489_p10) target bundleno = 1934 (0x78e), region = 76  ;;  %s2279_s22 = sand.u32 (!%p489_p10), 1, %s1776_s30  }
  0x1c   : > { %s1961_s21 = scalar_select %p375_p11, %s1780_s15, %s377_s28  }
  0x1d   : > { %p561_p12 = scmp.lt.s32.totalorder (!%p489_p10), %s1788_s17, 1  ;;  %s1967_s23 = sshll.u32 (!%p489_p10), %s2279_s22, 3 }
  0x1e   : > { %2298 = sst [smem:[#allocation20_spill]] %s1961_s21  ;;  %s1495_s18 = sshll.u32 (!%p489_p10), %s1784_s16, 2 }
  0x1f   : > { %p578_p13 = scmp.lt.s32.totalorder (!%p489_p10), %s1495_s18, 7  ;;  %s560_s12 = scalar_lea.vmem (!%p489_p10), [#allocation6], %s1967_s23 }
  0x20   : > { %s562_s26 = scalar_select %p561_p12, %s1788_s17, 1 }
  0x21   : > { %s2329_s18 = smov (!%p578_p13, %s1495_s18), 7  ;;  %p1501_p0 = scmp.ne.s32.totalorder %s1784_s16, 0 }
  0x22   : > { %s1493_s24 = sshll.u32 %s562_s26, 3 }
  0x23   : > { %s1974_s19 = scalar_lea.vmem %s2253_s0, %s1493_s24  ;;  %s574_s29 = scalar_lea.vmem %s2254_s1, %s1493_s24 }
  0x24   : > { %s581_s20 = sadd.s32 %s1493_s24, %s2329_s18  ;;  %598 = sbr.rel (%p1501_p0) target bundleno = 178 (0xb2), region = 80 }
  0x25   : > { %s1497_s14 = sshll.u32 %s581_s20, 3 }
  0x26   : > { %s1982_s30 = scalar_lea.vmem %s2255_s2, %s1497_s14  ;;  %s1987_s26 = scalar_lea.vmem %s2256_s3, %s1497_s14 }
  0x29   : > { %v605_v0 = vld [vmem:[%s2257_s4 + $0x18] sm:$0xff]  ;;  %v604_v1 = vld [vmem:[%s2257_s4 + $0x10] sm:$0xff]  ;;  %v599_v2 = vld [vmem:[%s1974_s19] sm:$0xff]  ;;  %vm610_vm0 = vcmask 261120   ;;  %vm634_vm1 = vcmask 130048   ;;  %vm636_vm2 = vcmask 31744  }
  0x2a   : > { %626 = vmatpush.msra.mxu0 %v605_v0  ;;  %v600_v3 = vld [vmem:[%s574_s29] sm:$0xff]  ;;  %v603_v4 = vld [vmem:[%s2257_s4 + $0x8] sm:$0xff]  ;;  %v1802_v7 = vmov -inf   ;;  %v1803_v8 = vmov 0.0  }
  0x2b   : > { %v602_v5 = vld [vmem:[%s2257_s4] sm:$0xff]  ;;  %v601_v6 = vadd.f32 %v600_v3, %v599_v2  ;;  %637 = vst.msk [vmem:[#allocation4] sm:$0xff] %vm636_vm2, %v1802_v7 }
  0x2c   : > { %627 = vmatpush.msra.mxu0 %v604_v1  ;;  %638 = vst.msk [vmem:[#allocation5] sm:$0xff] %vm636_vm2, %v1803_v8  ;;  %v1629_v9 = vld [vmem:[%s2258_s5] ss:$0 sm:$0xff] }
  0x2d   : > { %639 = vst.msk [vmem:[#allocation3] sm:$0xff] %vm634_vm1, %v1803_v8 }
  0x2e   : > { %628 = vmatpush.msra.mxu0 %v603_v4 }
  0x30   : > { %629 = vmatpush.msra.mxu0 %v602_v5 }
  0x31   : > { %1502 = vmatmul.msk.f32.vlgmr.msra.gmra.mxu0 %vm610_vm0, %v601_v6 }
  0xae   : > { %v631_v10 = vpop.f32.mrf.mxu0 }
  0xaf   : > { %v632_v11 = vadd.f32 %v1629_v9, %v631_v10 }
  0xb1   : > { %635 = vst.msk [vmem:[#allocation2] sm:$0xff] %vm634_vm1, %v632_v11 }
  0xb2 PF: > { %v655_v12 = vld [vmem:[%s2259_s6 + $0x18] sm:$0xff]  ;;  %v654_v13 = vld [vmem:[%s2259_s6 + $0x10] sm:$0xff]  ;;  %v640_v14 = vld [vmem:[%s1982_s30] sm:$0xff]  ;;  %vm660_vm3 = vcmask 261120   ;;  %s1804_s15 = smov 124   ;;  %vm755_vm4 = vcmask 31744  }
  0xb3   : > { %685 = vmatpush.msra.mxu0 %v655_v12  ;;  %v644_v15 = vld [vmem:[%s1987_s26] sm:$0xff]  ;;  %v653_v16 = vld [vmem:[%s2259_s6 + $0x8] sm:$0xff]  ;;  %v705_v19 = vld [vmem:[%s2261_s8 + $0x18] sm:$0xff]  ;;  %v1807_v3 = vmov 0   ;;  %vm1167_vm5 = vcmask 7168   ;;  %vm1169_vm6 = vcmask 15360  }
  0xb4   : > { %v652_v17 = vld [vmem:[%s2259_s6] sm:$0xff]  ;;  %v648_v18 = vadd.f32 %v644_v15, %v640_v14  ;;  %v704_v20 = vld [vmem:[%s2261_s8 + $0x10] sm:$0xff]  ;;  %734 = vmatpush.msra.mxu1 %v705_v19  ;;  %v703_v21 = vld [vmem:[%s2261_s8 + $0x8] sm:$0xff]  ;;  %1630 = vset.pattern.permute.xlu0 %v1807_v3  ;;  %vm1171_vm7 = vcmask 23552   ;;  %s1811_s13 = smov 4   ;;  %s1812_s14 = smov 8  }
  0xb5   : > { %686 = vmatpush.msra.mxu0 %v654_v13  ;;  %v702_v22 = vld [vmem:[%s2261_s8] sm:$0xff]  ;;  %v641_v23 = vld [vmem:[%s1982_s30 + $0x8] sm:$0xff]  ;;  %v642_v26 = vld [vmem:[%s1982_s30 + $0x10] sm:$0xff]  ;;  %1664 = vset.pattern.permute.xlu1 %v1807_v3  ;;  %s1813_s17 = smov 12   ;;  %vm1179_vm8 = vcmask 64512   ;;  %vm1181_vm9 = vcmask 97280  }
  0xb6   : > { %735 = vmatpush.msra.mxu1 %v704_v20  ;;  %v645_v24 = vld [vmem:[%s1987_s26 + $0x8] sm:$0xff]  ;;  %v646_v27 = vld [vmem:[%s1987_s26 + $0x10] sm:$0xff]  ;;  %v643_v29 = vld [vmem:[%s1982_s30 + $0x18] sm:$0xff]  ;;  %s1805_s30 = smov 120   ;;  %vm1183_vm10 = vcmask 130048   ;;  %p1535_p1 = scmp.ne.s32.totalorder %s1784_s16, 1 }
  0xb7   : > { %687 = vmatpush.msra.mxu0 %v653_v16  ;;  %v649_v25 = vadd.f32 %v645_v24, %v641_v23  ;;  %v650_v28 = vadd.f32 %v646_v27, %v642_v26  ;;  %v647_v30 = vld [vmem:[%s1987_s26 + $0x18] sm:$0xff]  ;;  %v1668_v33 = vld [vmem:[%s2260_s7] ss:$0 sm:$0xff]  ;;  %s1806_s26 = smov 116   ;;  %v2090_v4 = vld [vmem:[#allocation4] sm:$0xff]  ;;  %s2305_s28 = sld [smem:[#allocation21_spill]] (!%p1535_p1) }
  0xb8   : > { %736 = vmatpush.msra.mxu1 %v703_v21  ;;  %v651_v31 = vadd.f32 %v647_v30, %v643_v29  ;;  %v751_v40 = vld [vmem:[#allocation2] sm:$0xff] }
  0xb9   : > { %688 = vmatpush.msra.mxu0 %v652_v17  ;;  %v1669_v45 = vld [vmem:[%s2262_s9] ss:$0 sm:$0xff] }
  0xba   : > { %1503 = vmatmul.msk.f32.vlgmr.msra.gmra.mxu0 %vm660_vm3, %v648_v18  ;;  %737 = vmatpush.msra.mxu1 %v702_v22 }
  0xbb   : > { %1507 = vmatmul.msk.f32.vlgmr.msra.gmra.mxu1 %vm660_vm3, %v640_v14 }
  0xc2   : > { %1504 = vmatmul.msk.f32.gmra.mxu0 %vm660_vm3, %v649_v25  ;;  %v1808_v25 = vmov 2  }
  0xc3   : > { %1508 = vmatmul.msk.f32.gmra.mxu1 %vm660_vm3, %v641_v23 }
  0xca   : > { %1505 = vmatmul.msk.f32.gmra.mxu0 %vm660_vm3, %v650_v28 }
  0xcb   : > { %1509 = vmatmul.msk.f32.gmra.mxu1 %vm660_vm3, %v642_v26 }
  0xd2   : > { %1506 = vmatmul.msk.f32.gmra.mxu0 %vm660_vm3, %v651_v31  ;;  %v1809_v31 = vmov 1  }
  0xd3   : > { %1510 = vmatmul.msk.f32.gmra.mxu1 %vm660_vm3, %v643_v29  ;;  %1642 = vset.pattern.permute.xlu2 %v1809_v31 }
 0x137   : > { %v690_v32 = vpop.f32.mrf.mxu0 }
 0x138   : > { %v2051_v37 = vadd.f32 %v1668_v33, %v690_v32  ;;  %v739_v42 = vpop.f32.mrf.mxu1  ;;  %v1810_v32 = vmov 3  }
 0x139   : > { %v740_v50 = vadd.f32 %v1669_v45, %v739_v42 }
 0x13f   : > { %v693_v34 = vpop.f32.mrf.mxu0 }
 0x140   : > { %v694_v35 = vadd.f32 %v1668_v33, %v693_v34  ;;  %v742_v43 = vpop.f32.mrf.mxu1 }
 0x141   : > { %v743_v49 = vadd.f32 %v1669_v45, %v742_v43 }
 0x142   : > { %846 = vrot.lane.b32.xlu2 %v694_v35, %s1804_s15 }
 0x143   : > { %v1636_v10 = vpack.i.bf16 %v740_v50, %v743_v49 }
 0x147   : > { %v696_v36 = vpop.f32.mrf.mxu0 }
 0x148   : > { %v697_v41 = vadd.f32 %v1668_v33, %v696_v36  ;;  %v745_v44 = vpop.f32.mrf.mxu1 }
 0x149   : > { %v746_v47 = vadd.f32 %v1669_v45, %v745_v44 }
 0x14a   : > { %844 = vrot.lane.b32.xlu2 %v2051_v37, %s1804_s15 }
 0x14f   : > { %v699_v38 = vpop.f32.mrf.mxu0 }
 0x150   : > { %v700_v39 = vadd.f32 %v1668_v33, %v699_v38  ;;  %v748_v46 = vpop.f32.mrf.mxu1 }
 0x151   : > { %v749_v48 = vadd.f32 %v1669_v45, %v748_v46 }
 0x152   : > { %850 = vrot.lane.b32.xlu1 %v700_v39, %s1804_s15  ;;  %1511 = vmatpush.xpose.msk.msra.mxu2 %vm755_vm4, %v700_v39 }
 0x153   : > { %842 = vrot.lane.b32.xlu2 %v751_v40, %s1804_s15  ;;  %833 = vmatpush.msra.mxu3 %v749_v48  ;;  %v1644_v11 = vpack.i.bf16 %v746_v47, %v749_v48 }
 0x155   : > { %834 = vmatpush.msra.mxu3 %v746_v47 }
 0x156   : > { %1512 = vmatpush.xpose.msk.msra.mxu2 %vm755_vm4, %v697_v41 }
 0x157   : > { %835 = vmatpush.msra.mxu3 %v743_v49 }
 0x159   : > { %836 = vmatpush.msra.mxu3 %v740_v50 }
 0x15a   : > { %848 = vrot.lane.b32.xlu1 %v697_v41, %s1804_s15  ;;  %1513 = vmatpush.xpose.msk.msra.mxu2 %vm755_vm4, %v694_v35 }
 0x15b   : > { %959 = vrot.lane.b32.xlu2 %v697_v41, %s1805_s30 }
 0x15e   : > { %1514 = vmatpush.xpose.msk.msra.mxu2 %vm755_vm4, %v2051_v37 }
 0x161   : > { %1515 = vmatmul.msk.f32.vlgmr.msra.gmra.mxu2 %vm755_vm4, %v751_v40 }
 0x162   : > { %961 = vrot.lane.b32.xlu1 %v700_v39, %s1805_s30 }
 0x163   : > { %957 = vrot.lane.b32.xlu2 %v694_v35, %s1805_s30 }
 0x16a   : > { %1068 = vrot.lane.b32.xlu1 %v700_v39, %s1806_s26 }
 0x16b   : > { %955 = vrot.lane.b32.xlu2 %v2051_v37, %s1805_s30 }
 0x172   : > { %1066 = vrot.lane.b32.xlu1 %v697_v41, %s1806_s26 }
 0x173   : > { %1060 = vrot.lane.b32.xlu2 %v751_v40, %s1806_s26 }
 0x17a   : > { %1064 = vrot.lane.b32.xlu1 %v694_v35, %s1806_s26 }
 0x182   : > { %953 = vrot.lane.b32.xlu1 %v751_v40, %s1805_s30 }
 0x19c   : > { %v847_v51 = vpop.permute.xlu2 %846 }
 0x1a4   : > { %v845_v52 = vpop.permute.xlu2 %844 }
 0x1ad   : > { %v843_v53 = vpop.permute.xlu2 %842 }
 0x1b5   : > { %v960_v55 = vpop.permute.xlu2 %959 }
 0x1bd   : > { %v958_v58 = vpop.permute.xlu2 %957 }
 0x1c4   : > { %v851_v54 = vpop.permute.xlu1 %850 }
 0x1c5   : > { %1517 = vmatpush.xpose.msk.msrb.mxu3 %vm755_vm4, %v851_v54  ;;  %v956_v60 = vpop.permute.xlu2 %955 }
 0x1cc   : > { %v849_v56 = vpop.permute.xlu1 %848 }
 0x1cd   : > { %1518 = vmatpush.xpose.msk.msrb.mxu3 %vm755_vm4, %v849_v56  ;;  %v1061_v19 = vpop.permute.xlu2 %1060 }
 0x1d1   : > { %1519 = vmatpush.xpose.msk.msrb.mxu3 %vm755_vm4, %v847_v51 }
 0x1d4   : > { %v962_v57 = vpop.permute.xlu1 %961 }
 0x1d5   : > { %1520 = vmatpush.xpose.msk.msrb.mxu3 %vm755_vm4, %v845_v52  ;;  %1523 = vmatpush.xpose.msk.msrb.mxu0 %vm755_vm4, %v962_v57 }
 0x1d9   : > { %1524 = vmatpush.xpose.msk.msrb.mxu0 %vm755_vm4, %v960_v55 }
 0x1dc   : > { %v1069_v59 = vpop.permute.xlu1 %1068 }
 0x1dd   : > { %1525 = vmatpush.xpose.msk.msrb.mxu0 %vm755_vm4, %v958_v58  ;;  %1529 = vmatpush.xpose.msk.msrb.mxu1 %vm755_vm4, %v1069_v59 }
 0x1e1   : > { %1526 = vmatpush.xpose.msk.msrb.mxu0 %vm755_vm4, %v956_v60 }
 0x1e4   : > { %v1067_v61 = vpop.permute.xlu1 %1066  ;;  %v788_v62 = vpop.f32.mrf.mxu2 }
 0x1e5   : > { %v791_v63 = vmul.f32 0.5, %v788_v62  ;;  %1530 = vmatpush.xpose.msk.msrb.mxu1 %vm755_vm4, %v1067_v61 }
 0x1e7   : > { %v792_v0 = vsel %vm660_vm3, %v791_v63, -inf }
 0x1e8   : > { %793 = vmax.xlane.f32.xlu0 %v792_v0 }
 0x1ec   : > { %v1065_v1 = vpop.permute.xlu1 %1064 }
 0x1ed   : > { %1531 = vmatpush.xpose.msk.msrb.mxu1 %vm755_vm4, %v1065_v1 }
 0x1f4   : > { %v954_v2 = vpop.permute.xlu1 %953 }
 0x1f5   : > { %1527 = vmatmul.msk.f32.vlgmr.msrb.gmra.mxu0 %vm755_vm4, %v954_v2 }
 0x25b   : > { %v794_v5 = vpop.xlane.xlu0 %793 }
 0x25c   : > { %v795_v6 = vmax.f32 %v2090_v4, %v794_v5 }
 0x25e   : > { %801 = vperm.xlu0 %1630, %v795_v6   ;;  %v796_v12 = vsub.f32 %v2090_v4, %v795_v6 }
 0x260   : > { %v797_v13 = vmul.f32 1.442695, %v796_v12 }
 0x262   : > { %1670 = vpow2.f32 %v797_v13 }
 0x266   : > { %1062 = vrot.lane.b32.xlu0 %v2051_v37, %s1806_s26 }
 0x267   : > { %1641 = vset.pattern.permute.xlu0 %v1808_v25 }
 0x268   : > { %v2103_v14 = vpop.eup %1670 }
 0x272   : > { %v990_v7 = vpop.f32.mrf.mxu0 }
 0x273   : > { %v2095_v8 = vmul.f32 0.5, %v990_v7 }
 0x275   : > { %v994_v9 = vsel %vm660_vm3, %v2095_v8, -inf }
 0x276   : > { %995 = vmax.xlane.f32.xlu1 %v994_v9 }
 0x28f   : > { %1637 = vrot.lane.b32.xlu1 %v1636_v10, %s1804_s15 }
 0x297   : > { %1645 = vrot.lane.b32.xlu1 %v1644_v11, %s1805_s30 }
 0x29f   : > { %1655 = vrot.lane.b32.xlu1 %v1636_v10, %s1805_s30 }
 0x2a7   : > { %814 = vperm.xlu1 %1664, %v2103_v14  }
 0x2af   : > { %1666 = vset.pattern.permute.xlu1 %v1809_v31 }
 0x2d0   : > { %v802_v15 = vpop.permute.xlu0 %801 }
 0x2d1   : > { %v804_v16 = vsub.f32 %v791_v63, %v802_v15 }
 0x2d3   : > { %v805_v17 = vmul.f32 1.442695, %v804_v16 }
 0x2d5   : > { %1672 = vpow2.f32 %v805_v17 }
 0x2d8   : > { %v1063_v18 = vpop.permute.xlu0 %1062 }
 0x2d9   : > { %1532 = vmatpush.xpose.msk.msrb.mxu1 %vm755_vm4, %v1063_v18  ;;  %v754_v18 = vld [vmem:[#allocation5] sm:$0xff] }
 0x2db   : > { %v2107_v20 = vpop.eup %1672 }
 0x2dc   : > { %1516 = vmatmul.msk.f32.vlgmr.msra.gmra.mxu3 %vm660_vm3, %v2107_v20  ;;  %1533 = vmatmul.msk.f32.vlgmr.msrb.gmra.mxu1 %vm755_vm4, %v1061_v19  ;;  %v808_v59 = vsel %vm660_vm3, %v2107_v20, 0.0  ;;  %v807_v20 = vmul.f32 %v2103_v14, %v754_v18 }
 0x2e4   : > { %1521 = vmatmul.msk.f32.vlgmr.msrb.gmra.mxu3 %vm755_vm4, %v843_v53 }
 0x2e9   : > { %v996_v29 = vpop.xlane.xlu1 %995 }
 0x2ea   : > { %v997_v30 = vmax.f32 %v2090_v4, %v996_v29 }
 0x2ec   : > { %v998_v61 = vsub.f32 %v2090_v4, %v997_v30 }
 0x2ee   : > { %v999_v62 = vmul.f32 1.442695, %v998_v61 }
 0x301   : > { %v1638_v40 = vpop.permute.xlu1 %1637 }
 0x302   : > { %v1639_v45 = vunpack.i.l.bf16 %v1638_v40  ;;  %v1640_v46 = vunpack.i.h.bf16 %v1638_v40 }
 0x309   : > { %v1646_v42 = vpop.permute.xlu1 %1645 }
 0x30a   : > { %v1647_v47 = vunpack.i.l.bf16 %v1646_v42  ;;  %v1648_v50 = vunpack.i.h.bf16 %v1646_v42  ;;  %v752_v42 = vld [vmem:[#allocation3] sm:$0xff] }
 0x311   : > { %v1656_v51 = vpop.permute.xlu1 %1655 }
 0x312   : > { %v1657_v53 = vunpack.i.l.bf16 %v1656_v51  ;;  %v1658_v54 = vunpack.i.h.bf16 %v1656_v51 }
 0x319   : > { %v815_v29 = vpop.permute.xlu1 %814 }
 0x359   : > { %v1097_v21 = vpop.f32.mrf.mxu1 }
 0x35a   : > { %v2113_v22 = vmul.f32 0.5, %v1097_v21 }
 0x35c   : > { %v1101_v23 = vsel %vm660_vm3, %v2113_v22, -inf }
 0x35d   : > { %1102 = vmax.xlane.f32.xlu2 %v1101_v23 }
 0x35f   : > { %v2117_v24 = vpop.f32.mrf.mxu3 }
 0x367   : > { %v879_v26 = vpop.f32.mrf.mxu3 }
 0x368   : > { %v2119_v27 = vmul.f32 0.5, %v879_v26 }
 0x36a   : > { %v883_v28 = vsel %vm660_vm3, %v2119_v27, -inf }
 0x36b   : > { %884 = vmax.xlane.f32.xlu0 %v883_v28 }
 0x37f   : > { %1632 = vrot.lane.b32.xlu0 %v1644_v11, %s1804_s15 }
 0x387   : > { %1003 = vperm.xlu0 %1641, %v997_v30  }
 0x38f   : > { %1660 = vrot.lane.b32.xlu0 %v1636_v10, %s1806_s26 }
 0x390   : > { %1667 = vset.pattern.permute.xlu0 %v1810_v32 }
 0x3d0   : > { %v1103_v33 = vpop.xlane.xlu2 %1102 }
 0x3d1   : > { %v2128_v36 = vmax.f32 %v2090_v4, %v1103_v33 }
 0x3d3   : > { %v1105_v26 = vsub.f32 %v2090_v4, %v2128_v36 }
 0x3d5   : > { %v1106_v28 = vmul.f32 1.442695, %v1105_v26 }
 0x3de   : > { %v885_v34 = vpop.xlane.xlu0 %884 }
 0x3df   : > { %v886_v35 = vmax.f32 %v2090_v4, %v885_v34 }
 0x3e1   : > { %v1168_v37 = vsel %vm1167_vm5, %v795_v6, %v886_v35  ;;  %892 = vperm.xlu2 %1642, %v886_v35   ;;  %v887_v57 = vsub.f32 %v2090_v4, %v886_v35 }
 0x3e2   : > { %v1170_v38 = vsel %vm1169_vm6, %v1168_v37, %v997_v30 }
 0x3e3   : > { %v1172_v39 = vsel %vm1171_vm7, %v1170_v38, %v2128_v36  ;;  %v888_v58 = vmul.f32 1.442695, %v887_v57 }
 0x3e4   : > { %1173 = vst.msk [vmem:[#allocation4] sm:$0xff] %vm755_vm4, %v1172_v39 }
 0x3e9   : > { %1643 = vset.pattern.permute.xlu2 %v1810_v32 }
 0x3ea   : > { %1110 = vperm.xlu2 %1643, %v2128_v36  }
 0x3f1   : > { %v1633_v41 = vpop.permute.xlu0 %1632 }
 0x3f2   : > { %1650 = vrot.lane.b32.xlu2 %v1644_v11, %s1806_s26  ;;  %v1634_v43 = vunpack.i.l.bf16 %v1633_v41  ;;  %v1635_v44 = vunpack.i.h.bf16 %v1633_v41  ;;  %s2306_s26 = sld [smem:[#allocation22_spill]] (!%p1535_p1) }
 0x3f3   : > { %1665 = vset.pattern.permute.xlu2 %v1808_v25 }
 0x3f4   : > { %940 = vmatpush.msrb.mxu2 %v1634_v43 }
 0x3f6   : > { %941 = vmatpush.msrb.mxu2 %v1635_v44 }
 0x3f8   : > { %942 = vmatpush.msrb.mxu2 %v1639_v45  ;;  %v817_v45 = vmul.f32 %v815_v29, %v752_v42 }
 0x3f9   : > { %v1004_v48 = vpop.permute.xlu0 %1003 }
 0x3fa   : > { %v1006_v49 = vsub.f32 %v2095_v8, %v1004_v48  ;;  %943 = vmatpush.msrb.mxu2 %v1640_v46  ;;  %v841_v48 = vadd.f32 %v2117_v24, %v817_v45 }
 0x3fc   : > { %1047 = vmatpush.msra.mxu2 %v1647_v47  ;;  %v1007_v52 = vmul.f32 1.442695, %v1006_v49 }
 0x3fe   : > { %1048 = vmatpush.msra.mxu2 %v1648_v50  ;;  %1674 = vpow2.f32 %v1007_v52 }
 0x3ff   : > { %1676 = vpow2.f32 %v888_v58 }
 0x400   : > { %1049 = vmatpush.msra.mxu2 %v1657_v53  ;;  %1678 = vpow2.f32 %v999_v62 }
 0x401   : > { %v1661_v11 = vpop.permute.xlu0 %1660 }
 0x402   : > { %1050 = vmatpush.msra.mxu2 %v1658_v54  ;;  %v1662_v13 = vunpack.i.l.bf16 %v1661_v11  ;;  %v1663_v15 = vunpack.i.h.bf16 %v1661_v11 }
 0x404   : > { %v1675_v55 = vpop.eup %1674 }
 0x405   : > { %v1010_v56 = vsel %vm660_vm3, %v1675_v55, 0.0  ;;  %v1677_v60 = vpop.eup %1676 }
 0x406   : > { %1011 = vadd.xlane.f32.xlu1 %v1010_v56  ;;  %v1679_v63 = vpop.eup %1678  ;;  %v898_v21 = vmul.f32 %v1677_v60, %v754_v18 }
 0x407   : > { %v1009_v34 = vmul.f32 %v1679_v63, %v754_v18 }
 0x41b   : > { %809 = vadd.xlane.f32.xlu2 %v808_v59 }
 0x41f   : > { %905 = vperm.xlu1 %1666, %v1677_v60  }
 0x433   : > { %1016 = vperm.xlu2 %1665, %v1679_v63  }
 0x43b   : > { %v893_v0 = vpop.permute.xlu2 %892 }
 0x43c   : > { %v895_v1 = vsub.f32 %v2119_v27, %v893_v0 }
 0x43e   : > { %v896_v2 = vmul.f32 1.442695, %v895_v1 }
 0x440   : > { %1680 = vpow2.f32 %v896_v2 }
 0x444   : > { %v1111_v3 = vpop.permute.xlu2 %1110 }
 0x445   : > { %v1113_v6 = vsub.f32 %v2113_v22, %v1111_v3 }
 0x446   : > { %v1681_v5 = vpop.eup %1680 }
 0x447   : > { %1522 = vmatmul.msk.f32.vlgmr.msrb.gmra.mxu2 %vm660_vm3, %v1681_v5  ;;  %v899_v7 = vsel %vm660_vm3, %v1681_v5, 0.0  ;;  %v1114_v8 = vmul.f32 1.442695, %v1113_v6 }
 0x448   : > { %900 = vadd.xlane.f32.xlu0 %v899_v7 }
 0x449   : > { %1682 = vpow2.f32 %v1114_v8 }
 0x44a   : > { %1684 = vpow2.f32 %v1106_v28 }
 0x44c   : > { %v1651_v9 = vpop.permute.xlu2 %1650 }
 0x44d   : > { %v1652_v10 = vunpack.i.l.bf16 %v1651_v9  ;;  %v1653_v12 = vunpack.i.h.bf16 %v1651_v9 }
 0x44f   : > { %1528 = vmatmul.msk.f32.vlgmr.msra.gmra.mxu2 %vm660_vm3, %v1675_v55  ;;  %1154 = vmatpush.msra.mxu3 %v1652_v10  ;;  %v1683_v16 = vpop.eup %1682 }
 0x450   : > { %v1117_v17 = vsel %vm660_vm3, %v1683_v16, 0.0  ;;  %v1685_v32 = vpop.eup %1684 }
 0x451   : > { %1155 = vmatpush.msra.mxu3 %v1653_v12  ;;  %v1116_v14 = vmul.f32 %v1685_v32, %v754_v18 }
 0x453   : > { %1156 = vmatpush.msra.mxu3 %v1662_v13 }
 0x455   : > { %1157 = vmatpush.msra.mxu3 %v1663_v15 }
 0x456   : > { %1534 = vmatmul.msk.f32.vlgmr.msra.gmra.mxu3 %vm660_vm3, %v1683_v16 }
 0x45c   : > { %1118 = vadd.xlane.f32.xlu2 %v1117_v17 }
 0x479   : > { %v1012_v33 = vpop.xlane.xlu1 %1011 }
 0x47a   : > { %v1013_v35 = vadd.f32 %v1012_v33, %v1009_v34 }
 0x48e   : > { %v810_v19 = vpop.xlane.xlu2 %809 }
 0x48f   : > { %v811_v23 = vadd.f32 %v810_v19, %v807_v20 }
 0x491   : > { %v906_v41 = vpop.permute.xlu1 %905 }
 0x492   : > { %v908_v44 = vmul.f32 %v906_v41, %v752_v42 }
 0x496   : > { %v1017_v30 = vpop.permute.xlu2 %1016 }
 0x497   : > { %v1019_v47 = vmul.f32 %v1017_v30, %v752_v42 }
 0x4bb   : > { %v901_v22 = vpop.xlane.xlu0 %900 }
 0x4bc   : > { %v902_v25 = vadd.f32 %v901_v22, %v898_v21 }
 0x4be   : > { %v1174_v27 = vsel %vm1167_vm5, %v811_v23, %v902_v25 }
 0x4bf   : > { %v1175_v39 = vsel %vm1169_vm6, %v1174_v27, %v1013_v35 }
 0x4ca   : > { %v945_v31 = vpop.f32.mrf.mxu2 }
 0x4cb   : > { %949 = vrot.lane.b32.xlu1 %v945_v31, %s1811_s13 }
 0x4cf   : > { %v1119_v37 = vpop.xlane.xlu2 %1118 }
 0x4d0   : > { %v1120_v38 = vadd.f32 %v1119_v37, %v1116_v14 }
 0x4d2   : > { %v1176_v4 = vsel %vm1171_vm7, %v1175_v39, %v1120_v38  ;;  %v1052_v36 = vpop.f32.mrf.mxu2 }
 0x4d3   : > { %1177 = vst.msk [vmem:[#allocation5] sm:$0xff] %vm755_vm4, %v1176_v4  ;;  %1056 = vrot.lane.b32.xlu0 %v1052_v36, %s1812_s14 }
 0x4d9   : > { %v1159_v40 = vpop.f32.mrf.mxu3 }
 0x4da   : > { %1163 = vrot.lane.b32.xlu1 %v1159_v40, %s1813_s17 }
 0x4db   : > { %1123 = vperm.xlu0 %1667, %v1685_v32  }
 0x53d   : > { %v950_v43 = vpop.permute.xlu1 %949 }
 0x53e   : > { %v952_v46 = vadd.f32 %v950_v43, %v908_v44 }
 0x540   : > { %v1178_v51 = vsel %vm755_vm4, %v841_v48, %v952_v46 }
 0x545   : > { %v1057_v49 = vpop.permute.xlu0 %1056 }
 0x546   : > { %v1059_v50 = vadd.f32 %v1057_v49, %v1019_v47 }
 0x548   : > { %v1180_v52 = vsel %vm1179_vm8, %v1178_v51, %v1059_v50 }
 0x54c   : > { %v1164_v55 = vpop.permute.xlu1 %1163 }
 0x54d   : > { %v1124_v53 = vpop.permute.xlu0 %1123 }
 0x54e   : > { %v1126_v54 = vmul.f32 %v1124_v53, %v752_v42 }
 0x54f   : > { %1188 = sbr.rel (%p1535_p1) target bundleno = 1912 (0x778), region = 84 }
 0x550   : > { %v1166_v56 = vadd.f32 %v1164_v55, %v1126_v54 }
 0x552   : > { %v1182_v57 = vsel %vm1181_vm9, %v1180_v52, %v1166_v56 }
 0x553   : > { %1184 = vst.msk [vmem:[#allocation3] sm:$0xff] %vm1183_vm10, %v1182_v57 }
 0x554   : > { %v1190_v24 = vld [vmem:[#allocation5] sm:$0xff]  ;;  %v1814_v58 = vmov 2   ;;  %v1815_v59 = vmov 0   ;;  %v1816_v60 = vmov 3   ;;  %v1817_v61 = vmov 1   ;;  %v1272_v62 = vld [vmem:[%s2263_s10 + $0x8] sm:$0xff] }
 0x555   : > { %1688 = vset.pattern.permute.xlu1 %v1814_v58  ;;  %1686 = vset.pattern.permute.xlu0 %v1815_v59  ;;  %v1271_v63 = vld [vmem:[%s2263_s10] sm:$0xff] }
 0x556   : > { %1231 = vperm.xlu1 %1688, %v1190_v24   ;;  %1193 = vperm.xlu0 %1686, %v1190_v24   ;;  %v1691_v56 = vld [vmem:[%s2264_s11] ss:$0 sm:$0xff] }
 0x557   : > { %1294 = vmatpush.msra.mxu0 %v1272_v62 }
 0x559   : > { %1295 = vmatpush.msra.mxu0 %v1271_v63 }
 0x55a   : > { %v1189_v42 = vld [vmem:[#allocation3] sm:$0xff] }
 0x55e   : > { %1689 = vset.pattern.permute.xlu1 %v1816_v60  ;;  %1687 = vset.pattern.permute.xlu0 %v1817_v61  ;;  %v1818_v61 = vmov 32.0  }
 0x55f   : > { %1250 = vperm.xlu1 %1689, %v1190_v24   ;;  %1212 = vperm.xlu0 %1687, %v1190_v24   ;;  %v1300_v24 = vld [vmem:[%s1974_s19] sm:$0xff] }
 0x567   : > { %1690 = vset.pattern.permute.xlu0 %v1816_v60 }
 0x5c8   : > { %v1232_v0 = vpop.permute.xlu1 %1231  ;;  %v1194_v1 = vpop.permute.xlu0 %1193 }
 0x5c9   : > { %1694 = vrcp.f32 %v1232_v0  ;;  %v1245_v15 = vand.u32 2147483648, %v1232_v0  ;;  %vm1239_vm11 = vweird.f32 %v1232_v0  ;;  %vm1201_vm12 = vweird.f32 %v1194_v1 }
 0x5ca   : > { %1696 = vrcp.f32 %v1194_v1  ;;  %v1207_v18 = vand.u32 2147483648, %v1194_v1  ;;  %v1205_v22 = vand.u32 2147483647, %v1194_v1  ;;  %v1243_v27 = vand.u32 2147483647, %v1232_v0 }
 0x5cb   : > { %v1246_v28 = vor.u32 1.1754944e-38, %v1245_v15 }
 0x5cc   : > { %v1208_v37 = vor.u32 1.1754944e-38, %v1207_v18 }
 0x5cf   : > { %v1695_v2 = vpop.eup %1694 }
 0x5d0   : > { %v1697_v3 = vpop.eup %1696  ;;  %v1235_v5 = vmul.f32 %v1695_v2, %v1232_v0  ;;  %vm1240_vm14 = vweird.f32 %v1695_v2 }
 0x5d1   : > { %v1197_v6 = vmul.f32 %v1697_v3, %v1194_v1  ;;  %v1251_v7 = vpop.permute.xlu1 %1250  ;;  %v1213_v8 = vpop.permute.xlu0 %1212  ;;  %vm1202_vm13 = vweird.f32 %v1697_v3  ;;  %vm2176_vm2 = vmor %vm1239_vm11, %vm1240_vm14 }
 0x5d2   : > { %1698 = vrcp.f32 %v1251_v7  ;;  %v1236_v9 = vsub.f32 1.0, %v1235_v5  ;;  %v1262_v25 = vand.u32 2147483647, %v1251_v7  ;;  %vm2169_vm15 = vmor %vm1201_vm12, %vm1202_vm13  ;;  %v1264_v31 = vand.u32 2147483648, %v1251_v7 }
 0x5d3   : > { %v1198_v10 = vsub.f32 1.0, %v1197_v6  ;;  %1700 = vrcp.f32 %v1213_v8  ;;  %v1226_v32 = vand.u32 2147483648, %v1213_v8  ;;  %v1224_v34 = vand.u32 2147483647, %v1213_v8 }
 0x5d4   : > { %v1237_v12 = vmul.f32 %v1695_v2, %v1236_v9  ;;  %vm1258_vm5 = vweird.f32 %v1251_v7  ;;  %vm1220_vm7 = vweird.f32 %v1213_v8  ;;  %vm1206_vm12 = vcmp.eq.f32.partialorder %v1205_v22, 8.507059e+37  ;;  %v1693_v22 = vld [vmem:[%s2306_s26] ss:$0 sm:$0xff] }
 0x5d5   : > { %v1199_v11 = vmul.f32 %v1697_v3, %v1198_v10  ;;  %vm1244_vm13 = vcmp.eq.f32.partialorder %v1243_v27, 8.507059e+37  ;;  %v1265_v40 = vor.u32 1.1754944e-38, %v1264_v31  ;;  %v1227_v41 = vor.u32 1.1754944e-38, %v1226_v32 }
 0x5d6   : > { %v1238_v23 = vadd.f32 %v1695_v2, %v1237_v12  ;;  %vm1225_vm11 = vcmp.eq.f32.partialorder %v1224_v34, 8.507059e+37  ;;  %vm1263_vm14 = vcmp.eq.f32.partialorder %v1262_v25, 8.507059e+37  ;;  %1702 = vrcp.f32 %v1818_v61 }
 0x5d7   : > { %v1200_v20 = vadd.f32 %v1697_v3, %v1199_v11 }
 0x5d8   : > { %v1699_v13 = vpop.eup %1698  ;;  %v1242_v38 = vsel %vm2176_vm2, %v1695_v2, %v1238_v23 }
 0x5d9   : > { %v1701_v16 = vpop.eup %1700  ;;  %v1254_v17 = vmul.f32 %v1699_v13, %v1251_v7  ;;  %vm1259_vm0 = vweird.f32 %v1699_v13  ;;  %v1204_v14 = vsel %vm2169_vm15, %v1697_v3, %v1200_v20  ;;  %v1247_v46 = vsel %vm1244_vm13, %v1246_v28, %v1242_v38  ;;  %v1692_v20 = vld [vmem:[%s2305_s28] ss:$0 sm:$0xff] }
 0x5da   : > { %v1216_v19 = vmul.f32 %v1701_v16, %v1213_v8  ;;  %vm1221_vm1 = vweird.f32 %v1701_v16  ;;  %vm2182_vm6 = vmor %vm1258_vm5, %vm1259_vm0  ;;  %v1209_v43 = vsel %vm1206_vm12, %v1208_v37, %v1204_v14  ;;  %v1248_v51 = vmul.f32 %v1247_v46, %v1189_v42 }
 0x5db   : > { %v1255_v21 = vsub.f32 1.0, %v1254_v17  ;;  %vm1222_vm15 = vmor %vm1220_vm7, %vm1221_vm1  ;;  %v1210_v49 = vmul.f32 %v1209_v43, %v1189_v42 }
 0x5dc   : > { %v1217_v26 = vsub.f32 1.0, %v1216_v19  ;;  %v1703_v62 = vpop.eup %1702 }
 0x5dd   : > { %v1256_v30 = vmul.f32 %v1699_v13, %v1255_v21  ;;  %v1308_v63 = vmul.f32 32.0, %v1703_v62 }
 0x5de   : > { %v1218_v33 = vmul.f32 %v1701_v16, %v1217_v26 }
 0x5df   : > { %v1257_v39 = vadd.f32 %v1699_v13, %v1256_v30  ;;  %v1309_v0 = vsub.f32 1.0, %v1308_v63 }
 0x5e0   : > { %v1219_v36 = vadd.f32 %v1701_v16, %v1218_v33 }
 0x5e1   : > { %v1261_v44 = vsel %vm2182_vm6, %v1699_v13, %v1257_v39  ;;  %v1310_v1 = vmul.f32 %v1703_v62, %v1309_v0 }
 0x5e2   : > { %v1223_v45 = vsel %vm1222_vm15, %v1701_v16, %v1219_v36  ;;  %v1266_v48 = vsel %vm1263_vm14, %v1265_v40, %v1261_v44 }
 0x5e3   : > { %v1228_v47 = vsel %vm1225_vm11, %v1227_v41, %v1223_v45  ;;  %v1267_v52 = vmul.f32 %v1266_v48, %v1189_v42  ;;  %v1311_v2 = vadd.f32 %v1703_v62, %v1310_v1 }
 0x5e4   : > { %v1229_v50 = vmul.f32 %v1228_v47, %v1189_v42 }
 0x5e6   : > { %v1268_v53 = vsel %vm755_vm4, %v1210_v49, %v1229_v50  ;;  %vm1312_vm4 = vweird.f32 %v1703_v62 }
 0x5e7   : > { %v1269_v54 = vsel %vm1179_vm8, %v1268_v53, %v1248_v51  ;;  %v1313_v3 = vsel %vm1312_vm4, %v1703_v62, %v1311_v2 }
 0x5e8   : > { %v1270_v55 = vsel %vm1181_vm9, %v1269_v54, %v1267_v52 }
 0x5e9   : > { %1536 = vmatmul.msk.f32.vlgmr.msra.gmra.mxu0 %vm1183_vm10, %v1270_v55 }
 0x666   : > { %v1297_v57 = vpop.f32.mrf.mxu0 }
 0x667   : > { %v1298_v58 = vadd.f32 %v1691_v56, %v1297_v57 }
 0x669   : > { %v1301_v59 = vadd.f32 %v1300_v24, %v1298_v58 }
 0x66b   : > { %v1304_v60 = vsel %vm660_vm3, %v1301_v59, 0.0 }
 0x66c   : > { %1305 = vadd.xlane.f32.xlu2 %v1304_v60 }
 0x6df   : > { %v1306_v5 = vpop.xlane.xlu2 %1305 }
 0x6e0   : > { %v1314_v6 = vmul.f32 %v1313_v3, %v1306_v5 }
 0x6e2   : > { %v1315_v7 = vsub.f32 %v1301_v59, %v1314_v6 }
 0x6e4   : > { %v1316_v8 = vmul.f32 %v1315_v7, %v1315_v7 }
 0x6e6   : > { %v1317_v9 = vsel %vm660_vm3, %v1316_v8, 0.0 }
 0x6e7   : > { %1318 = vadd.xlane.f32.xlu2 %v1317_v9 }
 0x75a   : > { %v1319_v10 = vpop.xlane.xlu2 %1318 }
 0x75b   : > { %v1320_v11 = vmul.f32 %v1319_v10, %v1313_v3 }
 0x75d   : > { %v1321_v12 = vadd.f32 1e-05, %v1320_v11 }
 0x75f   : > { %1704 = vrsqrt.f32 %v1321_v12  ;;  %vm1328_vm9 = vweird.f32 %v1321_v12 }
 0x765   : > { %v1705_v13 = vpop.eup %1704 }
 0x766   : > { %v1323_v15 = vmul.f32 %v1705_v13, %v1321_v12  ;;  %vm1329_vm8 = vweird.f32 %v1705_v13 }
 0x767   : > { %vm1330_vm10 = vmor %vm1328_vm9, %vm1329_vm8 }
 0x768   : > { %v1324_v16 = vmul.f32 %v1705_v13, %v1323_v15 }
 0x76a   : > { %v1325_v17 = vmul.f32 0.5, %v1324_v16 }
 0x76c   : > { %v1326_v18 = vsub.f32 1.5, %v1325_v17 }
 0x76e   : > { %v1327_v19 = vmul.f32 %v1705_v13, %v1326_v18 }
 0x770   : > { %v1331_v21 = vsel %vm1330_vm10, %v1705_v13, %v1327_v19 }
 0x771   : > { %v1332_v23 = vmul.f32 %v1331_v21, %v1315_v7 }
 0x773   : > { %v1336_v25 = vmul.f32 %v1692_v20, %v1332_v23 }
 0x775   : > { %v1340_v26 = vadd.f32 %v1693_v22, %v1336_v25 }
 0x777   : > { %1341 = vst.msk [vmem:[%s560_s12] sm:$0xff] %vm660_vm3, %v1340_v26 }
 0x778 PF: > { %s2307_s18 = sld [smem:[#allocation12_spill]]  ;;  %s1356_s25 = sshll.u32 %s560_s12, 4  ;;  %s1357_s25 = int_to_ptr.vmem [resolvable:$true] %s1356_s25 }
 0x779   : > { %s2308_s20 = sld [smem:[#allocation10_spill]] }
 0x77a   : > { %s2310_s24 = sld [smem:[#allocation23_spill]] }
 0x77e   : > { %s1538_s14 = sshll.u32 %s2307_s18, 3 }
 0x77f   : > { %s2311_s22 = sand.u32 1, %s2308_s20  }
 0x780   : > { %s1354_s16 = scalar_lea.hbm %s2310_s24, %s1538_s14  ;;  %s1343_s19 = scalar_lea.sflag [#allocation7], %s2311_s22 }
 0x781   : > { %s1358_s21 = sshll.u32 %s1354_s16, 4  ;;  %s1726_s26 = scalar_lea.hbm %s2310_s24, 16  ;;  %s1359_s21 = int_to_ptr.hbm [resolvable:$true] %s1358_s21 }
 0x782   : > { %s1720_s27 = sshra.s32 %s1359_s21, 4  ;;  %s1721_s27 = int_to_ptr.hbm [resolvable:$true] %s1720_s27 }
 0x783   : > { %s1722_s28 = scalar_lea.hbm %s1721_s27, 8  ;;  %p1727_p6 = scmp.lt.s32.totalorder %s1721_s27, %s2310_s24 }
 0x784   : > { %p1723_p2 = scmp.ne.s32.totalorder %s1721_s27, %s1722_s28  ;;  %p1728_p7 = scmp.lt.s32.totalorder %s1726_s26, %s1722_s28 }
 0x786   : > { %p1724_p4 = pnand %p1723_p2, %p1943_p3  ;;  %p1729_p8 = por %p1728_p7, %p1727_p6 }
 0x788   : > { %p1725_p5 = pneg %p1724_p4 }
 0x78a   : > { %p1730_p10 = pnand %p1729_p8, %p1725_p5 }
 0x78c   : > { %1733 = shalt.err (!%p1730_p10)
}
 0x78d   : > { %1541 = dma.vmem_to_hbm [thread:$0]  (%p1943_p3), %s1357_s25, 128, %s1359_s21, %s1343_s19  }
 0x78e PF: > { %s2312_s12 = sld [smem:[#allocation15_spill]] }
 0x78f   : > { %s2313_s23 = sld [smem:[#allocation9_spill]] }
 0x794   : > { %p1547_p11 = scmp.ge.s32.totalorder %s2312_s12, 2 }
 0x795   : > { %s1370_s17 = sand.u32 1, %s2313_s23  }
 0x796   : > { %p1544_p12 = pnand %p1547_p11, %p1953_p9  ;;  %s1371_s29 = scalar_lea.sflag [#allocation7], %s1370_s17 }
 0x798   : > { %p1545_p13 = pneg %p1544_p12 }
 0x79a   : > { %1767 = dma.done.wait (%p1545_p13), %s1371_s29, 128  }
 0x79b   : > { %1769 = vsyncadd (%p1545_p13), %s1371_s29, 4294967168  ;;  %s27_s20 = sadd.s32 1, %s2312_s12   ;;  %s2315_s29 = sld [smem:[#allocation10_spill]] }
 0x79c   : > { %p24_p0 = scmp.ge.s32.totalorder %s27_s20, 6   ;;  %s2316_s30 = sld [smem:[#allocation11_spill]] }
 0x79d   : > { %s2317_s15 = sld [smem:[#allocation20_spill]] }
 0x79e   : > { %s2318_s16 = sld [smem:[#allocation13_spill]]  ;;  %26 = sbr.rel (!%p24_p0) target bundleno = 9 (0x9), region = 128 }
 0x79f   : > { %s2319_s17 = sld [smem:[#allocation14_spill]] }
 0x7a0   : > { %s2320_s18 = sld [smem:[#allocation16_spill]] }
 0x7a1   : > { %s2321_s19 = sld [smem:[#allocation18_spill]] }
 0x7a3   :  { %1377 = vsyncpa [#allocation7], 1 }
 0x7a4   :  { %1379 = vsyncpa [#allocation7 + $0x1], 1 }

// kernel: two_way_transformer.7
= control target key start
LH: loop header
LB: loop body
LE: loop exit
PB: predicated region body
PF: predicated region fallthrough
CT: control target
= control target key end

     0   :  { %s2822_s6 = smov 1   ;;  %s2823_s10 = smov 2   ;;  %s3379_s0 = inlined_call_operand.smem [shape: u32[31], index: -1, kind: input, shape index: {}] }
   0x1   :  { %s2884_s5 = sld [smem:[%s3379_s0]]   ;;  %s2824_s14 = smov 3  }
   0x2   :  { %s2889_s9 = sld [smem:[%s3379_s0 + %s2822_s6]]   ;;  %s2825_s18 = smov 4  }
   0x3   :  { %s2894_s13 = sld [smem:[%s3379_s0 + %s2823_s10]]   ;;  %s2826_s22 = smov 5  }
   0x4   :  { %s2899_s17 = sld [smem:[%s3379_s0 + %s2824_s14]]   ;;  %s2827_s26 = smov 6  }
   0x5   :  { %s2904_s21 = sld [smem:[%s3379_s0 + %s2825_s18]]   ;;  %s2828_s30 = smov 7  }
   0x6   :  { %s2909_s25 = sld [smem:[%s3379_s0 + %s2826_s22]]   ;;  %s2829_s4 = smov 8  }
   0x7   :  { %s2914_s29 = sld [smem:[%s3379_s0 + %s2827_s26]]   ;;  %s2830_s10 = smov 9  }
   0x8   :  { %s2919_s3 = sld [smem:[%s3379_s0 + %s2828_s30]]   ;;  %s2831_s15 = smov 10  }
   0x9   :  { %s2924_s8 = sld [smem:[%s3379_s0 + %s2829_s4]]   ;;  %s2832_s20 = smov 11  }
   0xa   :  { %s2929_s14 = sld [smem:[%s3379_s0 + %s2830_s10]]   ;;  %s2833_s26 = smov 12  }
   0xb   :  { %s2934_s19 = sld [smem:[%s3379_s0 + %s2831_s15]]   ;;  %s2834_s1 = smov 13  }
   0xc   :  { %s2939_s24 = sld [smem:[%s3379_s0 + %s2832_s20]]   ;;  %s2835_s7 = smov 14  }
   0xd   :  { %s2944_s30 = sld [smem:[%s3379_s0 + %s2833_s26]]   ;;  %s2836_s15 = smov 15  }
   0xe   :  { %s2949_s6 = sld [smem:[%s3379_s0 + %s2834_s1]]   ;;  %s2837_s22 = smov 16  }
   0xf   :  { %s2954_s12 = sld [smem:[%s3379_s0 + %s2835_s7]]   ;;  %s2838_s28 = smov 17  }
  0x10   :  { %s2959_s20 = sld [smem:[%s3379_s0 + %s2836_s15]]   ;;  %s2839_s7 = smov 18  }
  0x11   :  { %s2964_s27 = sld [smem:[%s3379_s0 + %s2837_s22]]   ;;  %s2840_s15 = smov 19  }
  0x12   :  { %s2969_s4 = sld [smem:[%s3379_s0 + %s2838_s28]]   ;;  %s2841_s22 = smov 20  }
  0x13   :  { %s2842_s28 = smov 21   ;;  %s3038_s16 = smov 0  }
  0x14   :  { %3387 = sst [smem:[#allocation7_spill]] %s2949_s6  ;;  %s3040_s18 = smov 0  }
  0x15   :  { %s2974_s6 = sld [smem:[%s3379_s0 + %s2839_s7]]   ;;  %s2843_s7 = smov 22  }
  0x16   :  { %3388 = sst [smem:[#allocation8_spill]] %s2959_s20  ;;  %s3044_s23 = smov 0  }
  0x17   :  { %3389 = sst [smem:[#allocation9_spill]] %s2964_s27 }
  0x18   :  { %3390 = sst [smem:[#allocation10_spill]] %s2969_s4 }
  0x19   :  { %s2979_s20 = sld [smem:[%s3379_s0 + %s2840_s15]]   ;;  %s2844_s15 = smov 23  }
  0x1a   :  { %s2984_s27 = sld [smem:[%s3379_s0 + %s2841_s22]]   ;;  %s2845_s22 = smov 24  }
  0x1b   :  { %3391 = sst [smem:[#allocation11_spill]] %s2974_s6 }
  0x1c   :  { %s2989_s4 = sld [smem:[%s3379_s0 + %s2842_s28]]   ;;  %s2846_s28 = smov 25  }
  0x1d   :  { %s2994_s6 = sld [smem:[%s3379_s0 + %s2843_s7]]   ;;  %s2847_s7 = smov 26  }
  0x1f   :  { %3392 = sst [smem:[#allocation12_spill]] %s2979_s20 }
  0x20   :  { %3393 = sst [smem:[#allocation13_spill]] %s2984_s27 }
  0x21   :  { %s2999_s20 = sld [smem:[%s3379_s0 + %s2844_s15]]   ;;  %s2848_s15 = smov 27  }
  0x22   :  { %3394 = sst [smem:[#allocation14_spill]] %s2989_s4 }
  0x23   :  { %3395 = sst [smem:[#allocation15_spill]] %s2994_s6 }
  0x24   :  { %s3004_s27 = sld [smem:[%s3379_s0 + %s2845_s22]]   ;;  %s2849_s22 = smov 28  }
  0x25   :  { %s3009_s4 = sld [smem:[%s3379_s0 + %s2846_s28]]   ;;  %s2850_s28 = smov 29  }
  0x26   :  { %s3014_s6 = sld [smem:[%s3379_s0 + %s2847_s7]]   ;;  %s2851_s7 = smov 30  }
  0x27   :  { %3396 = sst [smem:[#allocation16_spill]] %s2999_s20 }
  0x28   :  { %s3019_s20 = sld [smem:[%s3379_s0 + %s2848_s15]]   ;;  %s3036_s15 = smov 0  }
  0x2a   :  { %3397 = sst [smem:[#allocation17_spill]] %s3004_s27 }
  0x2b   :  { %3398 = sst [smem:[#allocation18_spill]] %s3009_s4 }
  0x2c   :  { %3399 = sst [smem:[#allocation19_spill]] %s3014_s6 }
  0x2d   :  { %s3024_s27 = sld [smem:[%s3379_s0 + %s2849_s22]]   ;;  %s3042_s22 = smov 0  }
  0x2e   :  { %s3029_s4 = sld [smem:[%s3379_s0 + %s2850_s28]]  }
  0x2f   :  { %s3034_s6 = sld [smem:[%s3379_s0 + %s2851_s7]]  }
  0x30 LB: > { %3400 = sst [smem:[#allocation20_spill]] %s2816_s22  ;;  %s80_s0 = sadd.s32 1, %s2812_s18  ;;  %s2820_s23 = sphi %s3044_s23, %s71_s23   ;;  %s2816_s22 = sphi %s3042_s22, %s3430_s22   ;;  %s2812_s18 = sphi %s3040_s18, %s3432_s18   ;;  %s2808_s16 = sphi %s3038_s16, %s3428_s16   ;;  %s2804_s15 = sphi %s3036_s15, %s3431_s15  }
  0x31   : > { %s83_s26 = sadd.s32 1, %s2816_s22  ;;  %p81_p0 = scmp.ge.s32.totalorder %s80_s0, 2 }
  0x32   : > { %p2513_p1 = scmp.ge.s32.totalorder %s2820_s23, 1  ;;  %p897_p2 = scmp.lt.s32.totalorder %s2820_s23, 5 }
  0x33   : > { %s3434_s0 = smov (%p81_p0, %s80_s0), 0  ;;  %s3436_s26 = smov (!%p81_p0, %s83_s26), %s2816_s22 }
  0x34   : > { %3401 = sst [smem:[#allocation21_spill]] %s3434_s0  ;;  %p898_p3 = pnand %p2513_p1, %p897_p2 }
  0x35   : > { %p85_p4 = scmp.ge.s32.totalorder %s3436_s26, 2  ;;  %p995_p5 = scmp.lt.s32.totalorder (!%p898_p3), %s2808_s16, 1 }
  0x36   : > { %901 = sbr.rel (%p898_p3) target bundleno = 3787 (0xecb), region = 140  ;;  %s2516_s28 = sshll.u32 (!%p898_p3), %s2804_s15, 2 }
  0x37   : > { %s3438_s26 = smov (%p85_p4, %s3436_s26), 0  ;;  %p1006_p6 = scmp.lt.s32.totalorder (!%p898_p3), %s2516_s28, 7 }
  0x38   : > { %3402 = sst [smem:[#allocation22_spill]] %s3438_s26  ;;  %p2523_p7 = scmp.ne.s32.totalorder (!%p898_p3), %s2804_s15, 0 }
  0x3b   : > { %s3440_s16 = smov (!%p995_p5, %s2808_s16), 1  ;;  %s3442_s28 = smov (!%p1006_p6, %s2516_s28), 7 }
  0x3c   : > { %s3069_s1 = sshll.u32 %s3440_s16, 3  ;;  %1030 = sbr.rel (%p2523_p7) target bundleno = 1513 (0x5e9), region = 144 }
  0x3d   : > { %s998_s2 = scalar_lea.vmem %s2884_s5, %s3069_s1  ;;  %s1002_s7 = scalar_lea.vmem %s2889_s9, %s3069_s1 }
  0x3e   : > { %s1009_s10 = sadd.s32 %s3069_s1, %s3442_s28  ;;  %s1026_s11 = scalar_lea.vmem %s3034_s6, %s3069_s1 }
  0x3f   : > { %s2518_s26 = sshll.u32 %s1009_s10, 3  ;;  %s2852_s16 = smov (!%p2523_p7), 104  }
  0x40   : > { %s3079_s0 = scalar_lea.vmem %s2894_s13, %s2518_s26  ;;  %s3082_s22 = scalar_lea.vmem %s2899_s17, %s2518_s26 }
  0x41   : > { %v1069_v0 = vld [vmem:[%s2914_s29 + $0x18] sm:$0xff]  ;;  %v1068_v1 = vld [vmem:[%s2914_s29 + $0x10] sm:$0xff]  ;;  %v1067_v3 = vld [vmem:[%s2914_s29 + $0x8] sm:$0xff]  ;;  %vm1042_vm0 = vcmask 261120   ;;  %vm1125_vm1 = vcmask 64512   ;;  %s2853_s26 = smov 120  }
  0x42   : > { %v1037_v2 = vld [vmem:[%s2904_s21 + $0x18] sm:$0xff]  ;;  %1086 = vmatpush.msra.mxu1 %v1069_v0  ;;  %v1036_v4 = vld [vmem:[%s2904_s21 + $0x10] sm:$0xff]  ;;  %v1035_v5 = vld [vmem:[%s2904_s21 + $0x8] sm:$0xff]  ;;  %s2854_s28 = smov 112   ;;  %s2857_s10 = smov 24  }
  0x43   : > { %1058 = vmatpush.msra.mxu0 %v1037_v2  ;;  %v3091_v6 = vld [vmem:[%s998_s2] sm:$0xff]  ;;  %v1097_v17 = vld [vmem:[%s2924_s8 + $0x18] sm:$0xff]  ;;  %v1096_v18 = vld [vmem:[%s2924_s8 + $0x10] sm:$0xff]  ;;  %s2855_s2 = smov 8  }
  0x44   : > { %v3093_v7 = vld [vmem:[%s1002_s7] sm:$0xff]  ;;  %1087 = vmatpush.msra.mxu1 %v1068_v1  ;;  %1117 = vmatpush.msra.mxu2 %v1097_v17  ;;  %v1095_v19 = vld [vmem:[%s2924_s8 + $0x8] sm:$0xff]  ;;  %s2856_s7 = smov 16  }
  0x45   : > { %1059 = vmatpush.msra.mxu0 %v1036_v4  ;;  %v1066_v8 = vld [vmem:[%s2914_s29] sm:$0xff]  ;;  %v1033_v10 = vadd.f32 %v3093_v7, %v3091_v6 }
  0x46   : > { %v1034_v9 = vld [vmem:[%s2904_s21] sm:$0xff]  ;;  %1088 = vmatpush.msra.mxu1 %v1067_v3  ;;  %1118 = vmatpush.msra.mxu2 %v1096_v18 }
  0x47   : > { %1060 = vmatpush.msra.mxu0 %v1035_v5  ;;  %v2673_v11 = vld [vmem:[%s2919_s3] ss:$0 sm:$0xff] }
  0x48   : > { %1089 = vmatpush.msra.mxu1 %v1066_v8  ;;  %v2674_v12 = vld [vmem:[%s2909_s25] ss:$0 sm:$0xff]  ;;  %1119 = vmatpush.msra.mxu2 %v1095_v19 }
  0x49   : > { %1061 = vmatpush.msra.mxu0 %v1034_v9  ;;  %2525 = vmatmul.msk.f32.vlgmr.msra.gmra.mxu1 %vm1042_vm0, %v1033_v10  ;;  %v1094_v20 = vld [vmem:[%s2924_s8] sm:$0xff] }
  0x4a   : > { %2524 = vmatmul.msk.f32.vlgmr.msra.gmra.mxu0 %vm1042_vm0, %v1033_v10  ;;  %1120 = vmatpush.msra.mxu2 %v1094_v20  ;;  %v2675_v30 = vld [vmem:[%s2929_s14] ss:$0 sm:$0xff] }
  0x4b   : > { %2526 = vmatmul.msk.f32.vlgmr.msra.gmra.mxu2 %vm1042_vm0, %v3091_v6 }
  0xc6   : > { %v1091_v13 = vpop.f32.mrf.mxu1 }
  0xc7   : > { %v1063_v14 = vpop.f32.mrf.mxu0  ;;  %v1092_v15 = vadd.f32 %v2673_v11, %v1091_v13 }
  0xc8   : > { %v1064_v16 = vadd.f32 %v2674_v12, %v1063_v14 }
  0xc9   : > { %1361 = vrot.lane.b32.xlu2 %v1092_v15, %s2852_s16  ;;  %1202 = vrot.lane.b32.xlu1 %v1092_v15, %s2853_s26 }
  0xca   : > { %1282 = vrot.lane.b32.xlu0 %v1092_v15, %s2854_s28  ;;  %2527 = vmatpush.xpose.msk.msra.mxu3 %vm1125_vm1, %v1092_v15 }
  0xcd   : > { %2528 = vmatmul.msk.f32.vlgmr.msra.gmra.mxu3 %vm1125_vm1, %v1064_v16 }
  0xce   : > { %v1122_v31 = vpop.f32.mrf.mxu2 }
  0xcf   : > { %v1123_v32 = vadd.f32 %v2675_v30, %v1122_v31 }
  0xd1   : > { %1359 = vrot.lane.b32.xlu2 %v1064_v16, %s2852_s16  ;;  %1200 = vrot.lane.b32.xlu1 %v1064_v16, %s2853_s26 }
  0xd2   : > { %1280 = vrot.lane.b32.xlu0 %v1064_v16, %s2854_s28  ;;  %1195 = vmatpush.msrb.mxu3 %v1123_v32 }
 0x123   : > { %v1362_v22 = vpop.permute.xlu2 %1361 }
 0x12b   : > { %v1360_v26 = vpop.permute.xlu2 %1359 }
 0x13b   : > { %v1203_v21 = vpop.permute.xlu1 %1202 }
 0x13c   : > { %v1283_v23 = vpop.permute.xlu0 %1282  ;;  %2530 = vmatpush.xpose.msk.msrb.mxu0 %vm1125_vm1, %v1203_v21 }
 0x13d   : > { %2533 = vmatpush.xpose.msk.msrb.mxu2 %vm1125_vm1, %v1283_v23 }
 0x140   : > { %2536 = vmatpush.xpose.msk.msra.mxu0 %vm1125_vm1, %v1362_v22 }
 0x143   : > { %v1201_v24 = vpop.permute.xlu1 %1200 }
 0x144   : > { %v1281_v25 = vpop.permute.xlu0 %1280  ;;  %2531 = vmatmul.msk.f32.vlgmr.msrb.gmra.mxu0 %vm1125_vm1, %v1201_v24 }
 0x145   : > { %2534 = vmatmul.msk.f32.vlgmr.msrb.gmra.mxu2 %vm1125_vm1, %v1281_v25 }
 0x14c   : > { %2537 = vmatmul.msk.f32.vlgmr.msra.gmra.mxu0 %vm1125_vm1, %v1360_v26 }
 0x150   : > { %v1149_v27 = vpop.f32.mrf.mxu3 }
 0x151   : > { %v1152_v28 = vmul.f32 0.35355338, %v1149_v27 }
 0x153   : > { %v1153_v29 = vsel %vm1125_vm1, %v1152_v28, -inf }
 0x154   : > { %1154 = vmax.xlane.f32.xlu0 %v1153_v29 }
 0x1c1   : > { %v1225_v33 = vpop.f32.mrf.mxu0 }
 0x1c2   : > { %v1228_v34 = vmul.f32 0.35355338, %v1225_v33 }
 0x1c4   : > { %v1229_v35 = vsel %vm1125_vm1, %v1228_v34, -inf }
 0x1c5   : > { %1230 = vmax.xlane.f32.xlu1 %v1229_v35 }
 0x1c7   : > { %v1155_v36 = vpop.xlane.xlu0 %1154 }
 0x1c8   : > { %v1156_v37 = vsub.f32 %v1152_v28, %v1155_v36  ;;  %v1305_v38 = vpop.f32.mrf.mxu2 }
 0x1c9   : > { %v1308_v39 = vmul.f32 0.35355338, %v1305_v38  ;;  %v1384_v42 = vpop.f32.mrf.mxu0 }
 0x1ca   : > { %v1157_v40 = vmul.f32 1.442695, %v1156_v37  ;;  %v1387_v43 = vmul.f32 0.35355338, %v1384_v42 }
 0x1cb   : > { %v1309_v41 = vsel %vm1125_vm1, %v1308_v39, -inf }
 0x1cc   : > { %2680 = vpow2.f32 %v1157_v40  ;;  %1310 = vmax.xlane.f32.xlu2 %v1309_v41  ;;  %v1388_v45 = vsel %vm1125_vm1, %v1387_v43, -inf }
 0x1d2   : > { %v2681_v44 = vpop.eup %2680 }
 0x1d3   : > { %v1159_v46 = vsel %vm1125_vm1, %v2681_v44, 0.0 }
 0x1d4   : > { %1389 = vmax.xlane.f32.xlu2 %v1388_v45  ;;  %1160 = vadd.xlane.f32.xlu0 %v1159_v46 }
 0x238   : > { %v1231_v47 = vpop.xlane.xlu1 %1230 }
 0x239   : > { %v1232_v48 = vsub.f32 %v1228_v34, %v1231_v47 }
 0x23b   : > { %v1233_v49 = vmul.f32 1.442695, %v1232_v48 }
 0x23d   : > { %2682 = vpow2.f32 %v1233_v49 }
 0x23f   : > { %v1311_v50 = vpop.xlane.xlu2 %1310 }
 0x240   : > { %v1312_v51 = vsub.f32 %v1308_v39, %v1311_v50 }
 0x242   : > { %v1313_v52 = vmul.f32 1.442695, %v1312_v51 }
 0x243   : > { %v3129_v53 = vpop.eup %2682 }
 0x244   : > { %2684 = vpow2.f32 %v1313_v52  ;;  %v1235_v54 = vsel %vm1125_vm1, %v3129_v53, 0.0 }
 0x245   : > { %1236 = vadd.xlane.f32.xlu1 %v1235_v54 }
 0x247   : > { %v1390_v55 = vpop.xlane.xlu2 %1389  ;;  %v1161_v56 = vpop.xlane.xlu0 %1160 }
 0x248   : > { %v1391_v57 = vsub.f32 %v1387_v43, %v1390_v55  ;;  %2686 = vrcp.f32 %v1161_v56  ;;  %v1173_v1 = vand.u32 2147483648, %v1161_v56  ;;  %v1171_v3 = vand.u32 2147483647, %v1161_v56  ;;  %v1458_v55 = vld [vmem:[%s2934_s19 + $0x18] sm:$0xff] }
 0x249   : > { %vm1167_vm3 = vweird.f32 %v1161_v56  ;;  %1478 = vmatpush.msra.mxu2 %v1458_v55 }
 0x24a   : > { %v3133_v58 = vpop.eup %2684  ;;  %v1392_v59 = vmul.f32 1.442695, %v1391_v57  ;;  %v1174_v8 = vor.u32 1.1754944e-38, %v1173_v1  ;;  %vm1172_vm5 = vcmp.eq.f32.partialorder %v1171_v3, 8.507059e+37  ;;  %v1456_v57 = vld [vmem:[%s2934_s19 + $0x8] sm:$0xff] }
 0x24b   : > { %v1315_v60 = vsel %vm1125_vm1, %v3133_v58, 0.0  ;;  %v2676_v3 = vld [vmem:[%s2939_s24] ss:$0 sm:$0xff] }
 0x24c   : > { %2688 = vpow2.f32 %v1392_v59  ;;  %1316 = vadd.xlane.f32.xlu2 %v1315_v60  ;;  %v2859_v59 = vmov 0.0   ;;  %v1455_v60 = vld [vmem:[%s2934_s19] sm:$0xff] }
 0x24e   : > { %v2687_v61 = vpop.eup %2686 }
 0x24f   : > { %v1163_v62 = vmul.f32 %v2687_v61, %v1161_v56  ;;  %vm1168_vm2 = vweird.f32 %v2687_v61  ;;  %v1457_v56 = vld [vmem:[%s2934_s19 + $0x10] sm:$0xff] }
 0x250   : > { %vm1169_vm4 = vmor %vm1167_vm3, %vm1168_vm2  ;;  %1479 = vmatpush.msra.mxu2 %v1457_v56 }
 0x251   : > { %v1164_v63 = vsub.f32 1.0, %v1163_v62 }
 0x252   : > { %v3137_v0 = vpop.eup %2688  ;;  %1480 = vmatpush.msra.mxu2 %v1456_v57 }
 0x253   : > { %v1165_v2 = vmul.f32 %v2687_v61, %v1164_v63  ;;  %v1394_v4 = vsel %vm1125_vm1, %v3137_v0, 0.0 }
 0x254   : > { %1395 = vadd.xlane.f32.xlu0 %v1394_v4  ;;  %1481 = vmatpush.msra.mxu2 %v1455_v60 }
 0x255   : > { %v1166_v5 = vadd.f32 %v2687_v61, %v1165_v2 }
 0x257   : > { %v1170_v9 = vsel %vm1169_vm4, %v2687_v61, %v1166_v5  ;;  %vm1560_vm4 = vcmask 31744  }
 0x258   : > { %v1175_v10 = vsel %vm1172_vm5, %v1174_v8, %v1170_v9  ;;  %vm1451_vm5 = vcmask 130048   ;;  %1562 = vst.msk [vmem:[#allocation6] sm:$0xff] %vm1560_vm4, %v2859_v59 }
 0x259   : > { %v1176_v11 = vmul.f32 %v2681_v44, %v1175_v10  ;;  %1563 = vst.msk [vmem:[#allocation4] sm:$0xff] %vm1451_vm5, %v2859_v59  ;;  %v2860_v10 = vmov 32.0  }
 0x25b   : > { %2529 = vmatmul.msk.f32.vlgmr.msrb.gmra.mxu3 %vm1125_vm1, %v1176_v11 }
 0x25e   : > { %1254 = vrot.lane.b32.xlu1 %v1123_v32, %s2853_s26  ;;  %s3404_s26 = sld [smem:[#allocation8_spill]] }
 0x264   : > { %1333 = vrot.lane.b32.xlu2 %v1123_v32, %s2854_s28 }
 0x268   : > { %1412 = vrot.lane.b32.xlu0 %v1123_v32, %s2852_s16  ;;  %s3403_s16 = sld [smem:[#allocation7_spill]] }
 0x2b8   : > { %v1237_v12 = vpop.xlane.xlu1 %1236 }
 0x2b9   : > { %2690 = vrcp.f32 %v1237_v12  ;;  %v1249_v20 = vand.u32 2147483648, %v1237_v12  ;;  %vm1243_vm7 = vweird.f32 %v1237_v12  ;;  %v1247_v24 = vand.u32 2147483647, %v1237_v12 }
 0x2bb   : > { %v1250_v28 = vor.u32 1.1754944e-38, %v1249_v20  ;;  %vm1248_vm10 = vcmp.eq.f32.partialorder %v1247_v24, 8.507059e+37  ;;  %v1528_v24 = vld [vmem:[%s2954_s12] sm:$0xff] }
 0x2bf   : > { %v2691_v13 = vpop.eup %2690  ;;  %v1317_v14 = vpop.xlane.xlu2 %1316 }
 0x2c0   : > { %v1239_v15 = vmul.f32 %v2691_v13, %v1237_v12  ;;  %2692 = vrcp.f32 %v1317_v14  ;;  %vm1244_vm6 = vweird.f32 %v2691_v13  ;;  %v1329_v26 = vand.u32 2147483648, %v1317_v14 }
 0x2c1   : > { %vm1245_vm8 = vmor %vm1243_vm7, %vm1244_vm6  ;;  %v1327_v30 = vand.u32 2147483647, %v1317_v14  ;;  %vm1323_vm11 = vweird.f32 %v1317_v14  ;;  %vm1453_vm6 = vcmask 195584  }
 0x2c2   : > { %v1240_v16 = vsub.f32 1.0, %v1239_v15  ;;  %v1330_v34 = vor.u32 1.1754944e-38, %v1329_v26 }
 0x2c3   : > { %vm1328_vm13 = vcmp.eq.f32.partialorder %v1327_v30, 8.507059e+37 }
 0x2c4   : > { %v1241_v17 = vmul.f32 %v2691_v13, %v1240_v16 }
 0x2c6   : > { %v2693_v18 = vpop.eup %2692  ;;  %v1242_v19 = vadd.f32 %v2691_v13, %v1241_v17 }
 0x2c7   : > { %v1319_v21 = vmul.f32 %v2693_v18, %v1317_v14  ;;  %v1334_v22 = vpop.permute.xlu2 %1333  ;;  %v1396_v23 = vpop.xlane.xlu0 %1395  ;;  %vm1324_vm9 = vweird.f32 %v2693_v18 }
 0x2c8   : > { %2694 = vrcp.f32 %v1396_v23  ;;  %1354 = vmatpush.msra.mxu3 %v1334_v22  ;;  %v1246_v27 = vsel %vm1245_vm8, %v2691_v13, %v1242_v19  ;;  %vm1325_vm12 = vmor %vm1323_vm11, %vm1324_vm9  ;;  %v1408_v42 = vand.u32 2147483648, %v1396_v23  ;;  %v1406_v44 = vand.u32 2147483647, %v1396_v23  ;;  %v1530_v22 = vld [vmem:[%s2954_s12 + $0x10] sm:$0xff] }
 0x2c9   : > { %v1320_v25 = vsub.f32 1.0, %v1319_v21  ;;  %v1251_v32 = vsel %vm1248_vm10, %v1250_v28, %v1246_v27  ;;  %vm1402_vm15 = vweird.f32 %v1396_v23  ;;  %2696 = vrcp.f32 %v2860_v10  ;;  %v1531_v21 = vld [vmem:[%s2954_s12 + $0x18] sm:$0xff] }
 0x2ca   : > { %v1252_v39 = vmul.f32 %v3129_v53, %v1251_v32  ;;  %v1409_v46 = vor.u32 1.1754944e-38, %v1408_v42  ;;  %vm1407_vm3 = vcmp.eq.f32.partialorder %v1406_v44, 8.507059e+37  ;;  %1551 = vmatpush.msrb.mxu3 %v1531_v21 }
 0x2cb   : > { %v1321_v29 = vmul.f32 %v2693_v18, %v1320_v25 }
 0x2cc   : > { %1552 = vmatpush.msrb.mxu3 %v1530_v22 }
 0x2cd   : > { %v1322_v31 = vadd.f32 %v2693_v18, %v1321_v29 }
 0x2ce   : > { %v2695_v33 = vpop.eup %2694 }
 0x2cf   : > { %v1326_v35 = vsel %vm1325_vm12, %v2693_v18, %v1322_v31  ;;  %v1398_v36 = vmul.f32 %v2695_v33, %v1396_v23  ;;  %vm1403_vm14 = vweird.f32 %v2695_v33  ;;  %v2697_v11 = vpop.eup %2696  ;;  %v1529_v23 = vld [vmem:[%s2954_s12 + $0x8] sm:$0xff] }
 0x2d0   : > { %v1331_v37 = vsel %vm1328_vm13, %v1330_v34, %v1326_v35  ;;  %v1255_v38 = vpop.permute.xlu1 %1254  ;;  %vm1404_vm2 = vmor %vm1402_vm15, %vm1403_vm14  ;;  %v1493_v12 = vmul.f32 32.0, %v2697_v11  ;;  %1553 = vmatpush.msrb.mxu3 %v1529_v23  ;;  %v2677_v34 = vld [vmem:[%s2944_s30] ss:$0 sm:$0xff] }
 0x2d1   : > { %v1399_v40 = vsub.f32 1.0, %v1398_v36  ;;  %1275 = vmatpush.msrb.mxu1 %v1255_v38  ;;  %v1332_v41 = vmul.f32 %v3133_v58, %v1331_v37  ;;  %v2858_v58 = vmov -inf   ;;  %v2678_v36 = vld [vmem:[%s3403_s16] ss:$0 sm:$0xff] }
 0x2d2   : > { %2532 = vmatmul.msk.f32.vlgmr.msrb.gmra.mxu1 %vm1125_vm1, %v1252_v39  ;;  %1561 = vst.msk [vmem:[#allocation5] sm:$0xff] %vm1560_vm4, %v2858_v58  ;;  %v1494_v13 = vsub.f32 1.0, %v1493_v12  ;;  %1554 = vmatpush.msrb.mxu3 %v1528_v24 }
 0x2d3   : > { %v1400_v43 = vmul.f32 %v2695_v33, %v1399_v40  ;;  %2535 = vmatmul.msk.f32.vlgmr.msra.gmra.mxu3 %vm1125_vm1, %v1332_v41  ;;  %v2679_v41 = vld [vmem:[%s3404_s26] ss:$0 sm:$0xff] }
 0x2d4   : > { %v1495_v14 = vmul.f32 %v2697_v11, %v1494_v13 }
 0x2d5   : > { %v1401_v45 = vadd.f32 %v2695_v33, %v1400_v43 }
 0x2d6   : > { %v1496_v15 = vadd.f32 %v2697_v11, %v1495_v14 }
 0x2d7   : > { %v1405_v47 = vsel %vm1404_vm2, %v2695_v33, %v1401_v45 }
 0x2d8   : > { %v1410_v48 = vsel %vm1407_vm3, %v1409_v46, %v1405_v47 }
 0x2d9   : > { %v1411_v49 = vmul.f32 %v3137_v0, %v1410_v48 }
 0x2da   : > { %v1413_v50 = vpop.permute.xlu0 %1412 }
 0x2db   : > { %1433 = vmatpush.msra.mxu1 %v1413_v50 }
 0x2dc   : > { %2538 = vmatmul.msk.f32.vlgmr.msra.gmra.mxu1 %vm1125_vm1, %v1411_v49 }
 0x2de   : > { %v1197_v51 = vpop.f32.mrf.mxu3 }
 0x34f   : > { %v1277_v52 = vpop.f32.mrf.mxu1 }
 0x350   : > { %1439 = vrot.lane.b32.xlu1 %v1277_v52, %s2855_s2 }
 0x356   : > { %v1356_v53 = vpop.f32.mrf.mxu3 }
 0x357   : > { %1443 = vrot.lane.b32.xlu0 %v1356_v53, %s2856_s7 }
 0x359   : > { %v1435_v54 = vpop.f32.mrf.mxu1 }
 0x35a   : > { %1447 = vrot.lane.b32.xlu2 %v1435_v54, %s2857_s10 }
 0x3b4   : > { %v1448_v0 = vpop.permute.xlu2 %1447 }
 0x3c2   : > { %v1440_v61 = vpop.permute.xlu1 %1439 }
 0x3c3   : > { %v1450_v62 = vsel %vm1125_vm1, %v1197_v51, %v1440_v61  ;;  %vm1497_vm1 = vweird.f32 %v2697_v11 }
 0x3c4   : > { %v1498_v16 = vsel %vm1497_vm1, %v2697_v11, %v1496_v15 }
 0x3c9   : > { %v1444_v63 = vpop.permute.xlu0 %1443 }
 0x3ca   : > { %v1452_v1 = vsel %vm1451_vm5, %v1450_v62, %v1444_v63 }
 0x3cb   : > { %v1454_v2 = vsel %vm1453_vm6, %v1452_v1, %v1448_v0 }
 0x3cc   : > { %2539 = vmatmul.msk.f32.vlgmr.msra.gmra.mxu2 %vm1042_vm0, %v1454_v2 }
 0x44f   : > { %v1483_v4 = vpop.f32.mrf.mxu2 }
 0x450   : > { %v1484_v5 = vadd.f32 %v2676_v3, %v1483_v4 }
 0x452   : > { %v1486_v8 = vadd.f32 %v1484_v5, %v3091_v6 }
 0x454   : > { %v1489_v9 = vsel %vm1042_vm0, %v1486_v8, 0.0 }
 0x455   : > { %1490 = vadd.xlane.f32.xlu1 %v1489_v9 }
 0x4c8   : > { %v1491_v17 = vpop.xlane.xlu1 %1490 }
 0x4c9   : > { %v1499_v18 = vmul.f32 %v1498_v16, %v1491_v17 }
 0x4cb   : > { %v1500_v19 = vsub.f32 %v1486_v8, %v1499_v18 }
 0x4cd   : > { %v1501_v6 = vmul.f32 %v1500_v19, %v1500_v19 }
 0x4cf   : > { %v1502_v20 = vsel %vm1042_vm0, %v1501_v6, 0.0 }
 0x4d0   : > { %1503 = vadd.xlane.f32.xlu0 %v1502_v20 }
 0x543   : > { %v1504_v25 = vpop.xlane.xlu0 %1503 }
 0x544   : > { %v1505_v26 = vmul.f32 %v1504_v25, %v1498_v16 }
 0x546   : > { %v1506_v27 = vadd.f32 1e-05, %v1505_v26 }
 0x548   : > { %2698 = vrsqrt.f32 %v1506_v27  ;;  %vm1513_vm8 = vweird.f32 %v1506_v27 }
 0x54e   : > { %v2699_v28 = vpop.eup %2698 }
 0x54f   : > { %v1508_v29 = vmul.f32 %v2699_v28, %v1506_v27  ;;  %vm1514_vm7 = vweird.f32 %v2699_v28 }
 0x550   : > { %vm1515_vm9 = vmor %vm1513_vm8, %vm1514_vm7 }
 0x551   : > { %v1509_v30 = vmul.f32 %v2699_v28, %v1508_v29 }
 0x553   : > { %v1510_v31 = vmul.f32 0.5, %v1509_v30 }
 0x555   : > { %v1511_v32 = vsub.f32 1.5, %v1510_v31 }
 0x557   : > { %v1512_v33 = vmul.f32 %v2699_v28, %v1511_v32 }
 0x559   : > { %v1516_v35 = vsel %vm1515_vm9, %v2699_v28, %v1512_v33 }
 0x55a   : > { %v1517_v37 = vmul.f32 %v1516_v35, %v1500_v19 }
 0x55c   : > { %v1521_v38 = vmul.f32 %v2677_v34, %v1517_v37 }
 0x55e   : > { %v1525_v39 = vadd.f32 %v2678_v36, %v1521_v38 }
 0x560   : > { %1526 = vst.msk [vmem:[#allocation2] sm:$0xff] %vm1042_vm0, %v1525_v39  ;;  %v1527_v40 = vadd.f32 %v1525_v39, %v3093_v7 }
 0x562   : > { %2540 = vmatmul.msk.f32.vlgmr.msrb.gmra.mxu3 %vm1042_vm0, %v1527_v40 }
 0x5e5   : > { %v1556_v42 = vpop.f32.mrf.mxu3 }
 0x5e6   : > { %v1557_v43 = vadd.f32 %v2679_v41, %v1556_v42 }
 0x5e8   : > { %1559 = vst.msk [vmem:[#allocation3] sm:$0xff] %vm1451_vm5, %v1557_v43 }
 0x5e9 PF: > { %s3405_s28 = sld [smem:[#allocation9_spill]]  ;;  %v1564_v7 = vld [vmem:[%s3079_s0] sm:$0xff]  ;;  %vm3386_vm0 = vcmask 261120   ;;  %v1565_v54 = vld [vmem:[%s3079_s0 + $0x8] sm:$0xff]  ;;  %v1566_v57 = vld [vmem:[%s3079_s0 + $0x10] sm:$0xff]  ;;  %s2861_s10 = smov 124  }
 0x5ea   : > { %s3406_s2 = sld [smem:[#allocation11_spill]]  ;;  %v1568_v46 = vld [vmem:[%s3082_s22] sm:$0xff]  ;;  %v1569_v55 = vld [vmem:[%s3082_s22 + $0x8] sm:$0xff]  ;;  %v1570_v58 = vld [vmem:[%s3082_s22 + $0x10] sm:$0xff]  ;;  %vm1679_vm10 = vcmask 31744   ;;  %s2863_s16 = smov 116  }
 0x5eb   : > { %v1572_v49 = vadd.f32 %v1568_v46, %v1564_v7  ;;  %s3407_s7 = sld [smem:[#allocation10_spill]]  ;;  %v1573_v56 = vadd.f32 %v1569_v55, %v1565_v54  ;;  %v1574_v59 = vadd.f32 %v1570_v58, %v1566_v57  ;;  %v1567_v60 = vld [vmem:[%s3079_s0 + $0x18] sm:$0xff]  ;;  %v2864_v35 = vmov 0   ;;  %s2868_s26 = smov 4  }
 0x5ec   : > { %v1571_v61 = vld [vmem:[%s3082_s22 + $0x18] sm:$0xff]  ;;  %s2862_s22 = smov 120   ;;  %s3408_s0 = sld [smem:[#allocation12_spill]]  ;;  %2700 = vset.pattern.permute.xlu0 %v2864_v35  ;;  %2734 = vset.pattern.permute.xlu1 %v2864_v35  ;;  %vm2091_vm11 = vcmask 7168   ;;  %vm2093_vm12 = vcmask 15360   ;;  %vm2095_vm13 = vcmask 23552  }
 0x5ed   : > { %v1575_v62 = vadd.f32 %v1571_v61, %v1567_v60  ;;  %v3237_v36 = vld [vmem:[#allocation5] sm:$0xff]  ;;  %vm2103_vm14 = vcmask 64512   ;;  %vm2105_vm15 = vcmask 97280   ;;  %vm2107_vm2 = vcmask 130048   ;;  %p2573_p8 = scmp.ne.s32.totalorder %s2804_s15, 1 }
 0x5ee   : > { %s3415_s15 = sld [smem:[#allocation14_spill]] (!%p2573_p8) }
 0x5ef   : > { %v1579_v44 = vld [vmem:[%s3405_s28 + $0x18] sm:$0xff]  ;;  %v1578_v45 = vld [vmem:[%s3405_s28 + $0x10] sm:$0xff]  ;;  %v1577_v47 = vld [vmem:[%s3405_s28 + $0x8] sm:$0xff] }
 0x5f0   : > { %1609 = vmatpush.msra.mxu0 %v1579_v44  ;;  %v1576_v48 = vld [vmem:[%s3405_s28] sm:$0xff]  ;;  %v1629_v50 = vld [vmem:[%s3406_s2 + $0x18] sm:$0xff]  ;;  %v1628_v51 = vld [vmem:[%s3406_s2 + $0x10] sm:$0xff] }
 0x5f1   : > { %1658 = vmatpush.msra.mxu1 %v1629_v50  ;;  %v1627_v52 = vld [vmem:[%s3406_s2 + $0x8] sm:$0xff]  ;;  %v1626_v53 = vld [vmem:[%s3406_s2] sm:$0xff] }
 0x5f2   : > { %1610 = vmatpush.msra.mxu0 %v1578_v45  ;;  %v2738_v0 = vld [vmem:[%s3407_s7] ss:$0 sm:$0xff]  ;;  %v1675_v9 = vld [vmem:[#allocation3] sm:$0xff]  ;;  %s2869_s7 = smov 8  }
 0x5f3   : > { %1659 = vmatpush.msra.mxu1 %v1628_v51  ;;  %v2739_v14 = vld [vmem:[%s3408_s0] ss:$0 sm:$0xff] }
 0x5f4   : > { %1611 = vmatpush.msra.mxu0 %v1577_v47 }
 0x5f5   : > { %1660 = vmatpush.msra.mxu1 %v1627_v52 }
 0x5f6   : > { %1612 = vmatpush.msra.mxu0 %v1576_v48 }
 0x5f7   : > { %2541 = vmatmul.msk.f32.vlgmr.msra.gmra.mxu0 %vm3386_vm0, %v1572_v49  ;;  %1661 = vmatpush.msra.mxu1 %v1626_v53 }
 0x5f8   : > { %2545 = vmatmul.msk.f32.vlgmr.msra.gmra.mxu1 %vm3386_vm0, %v1564_v7 }
 0x5ff   : > { %2542 = vmatmul.msk.f32.gmra.mxu0 %vm3386_vm0, %v1573_v56  ;;  %v2865_v56 = vmov 2  }
 0x600   : > { %2546 = vmatmul.msk.f32.gmra.mxu1 %vm3386_vm0, %v1565_v54 }
 0x607   : > { %2543 = vmatmul.msk.f32.gmra.mxu0 %vm3386_vm0, %v1574_v59 }
 0x608   : > { %2547 = vmatmul.msk.f32.gmra.mxu1 %vm3386_vm0, %v1566_v57 }
 0x60f   : > { %2544 = vmatmul.msk.f32.gmra.mxu0 %vm3386_vm0, %v1575_v62  ;;  %v2866_v62 = vmov 1  }
 0x610   : > { %2548 = vmatmul.msk.f32.gmra.mxu1 %vm3386_vm0, %v1567_v60  ;;  %2712 = vset.pattern.permute.xlu2 %v2866_v62 }
 0x674   : > { %v1614_v63 = vpop.f32.mrf.mxu0 }
 0x675   : > { %v3200_v4 = vadd.f32 %v2738_v0, %v1614_v63  ;;  %v1663_v11 = vpop.f32.mrf.mxu1  ;;  %v2867_v63 = vmov 3  }
 0x676   : > { %v1664_v19 = vadd.f32 %v2739_v14, %v1663_v11 }
 0x67c   : > { %v1617_v1 = vpop.f32.mrf.mxu0 }
 0x67d   : > { %v1618_v2 = vadd.f32 %v2738_v0, %v1617_v1  ;;  %v1666_v12 = vpop.f32.mrf.mxu1 }
 0x67e   : > { %v1667_v18 = vadd.f32 %v2739_v14, %v1666_v12 }
 0x67f   : > { %1770 = vrot.lane.b32.xlu2 %v1618_v2, %s2861_s10 }
 0x680   : > { %v2706_v42 = vpack.i.bf16 %v1664_v19, %v1667_v18 }
 0x684   : > { %v1620_v3 = vpop.f32.mrf.mxu0 }
 0x685   : > { %v1621_v10 = vadd.f32 %v2738_v0, %v1620_v3  ;;  %v1669_v13 = vpop.f32.mrf.mxu1 }
 0x686   : > { %v1670_v16 = vadd.f32 %v2739_v14, %v1669_v13 }
 0x687   : > { %1768 = vrot.lane.b32.xlu2 %v3200_v4, %s2861_s10 }
 0x68c   : > { %v1623_v5 = vpop.f32.mrf.mxu0 }
 0x68d   : > { %v1624_v8 = vadd.f32 %v2738_v0, %v1623_v5  ;;  %v1672_v15 = vpop.f32.mrf.mxu1 }
 0x68e   : > { %v1673_v17 = vadd.f32 %v2739_v14, %v1672_v15 }
 0x68f   : > { %1774 = vrot.lane.b32.xlu1 %v1624_v8, %s2861_s10  ;;  %2549 = vmatpush.xpose.msk.msra.mxu2 %vm1679_vm10, %v1624_v8 }
 0x690   : > { %1766 = vrot.lane.b32.xlu2 %v1675_v9, %s2861_s10  ;;  %1757 = vmatpush.msra.mxu3 %v1673_v17  ;;  %v2714_v43 = vpack.i.bf16 %v1670_v16, %v1673_v17 }
 0x692   : > { %1758 = vmatpush.msra.mxu3 %v1670_v16 }
 0x693   : > { %2550 = vmatpush.xpose.msk.msra.mxu2 %vm1679_vm10, %v1621_v10 }
 0x694   : > { %1759 = vmatpush.msra.mxu3 %v1667_v18 }
 0x696   : > { %1760 = vmatpush.msra.mxu3 %v1664_v19 }
 0x697   : > { %1772 = vrot.lane.b32.xlu1 %v1621_v10, %s2861_s10  ;;  %2551 = vmatpush.xpose.msk.msra.mxu2 %vm1679_vm10, %v1618_v2 }
 0x698   : > { %1883 = vrot.lane.b32.xlu2 %v1621_v10, %s2862_s22 }
 0x69b   : > { %2552 = vmatpush.xpose.msk.msra.mxu2 %vm1679_vm10, %v3200_v4 }
 0x69e   : > { %2553 = vmatmul.msk.f32.vlgmr.msra.gmra.mxu2 %vm1679_vm10, %v1675_v9 }
 0x69f   : > { %1885 = vrot.lane.b32.xlu1 %v1624_v8, %s2862_s22 }
 0x6a0   : > { %1881 = vrot.lane.b32.xlu2 %v1618_v2, %s2862_s22 }
 0x6a7   : > { %1992 = vrot.lane.b32.xlu1 %v1624_v8, %s2863_s16 }
 0x6a8   : > { %1879 = vrot.lane.b32.xlu2 %v3200_v4, %s2862_s22 }
 0x6af   : > { %1990 = vrot.lane.b32.xlu1 %v1621_v10, %s2863_s16 }
 0x6b0   : > { %1984 = vrot.lane.b32.xlu2 %v1675_v9, %s2863_s16 }
 0x6b7   : > { %1988 = vrot.lane.b32.xlu1 %v1618_v2, %s2863_s16 }
 0x6bf   : > { %1877 = vrot.lane.b32.xlu1 %v1675_v9, %s2862_s22 }
 0x6d9   : > { %v1771_v6 = vpop.permute.xlu2 %1770 }
 0x6e1   : > { %v1769_v20 = vpop.permute.xlu2 %1768 }
 0x6ea   : > { %v1767_v21 = vpop.permute.xlu2 %1766 }
 0x6f2   : > { %v1884_v23 = vpop.permute.xlu2 %1883 }
 0x6fa   : > { %v1882_v26 = vpop.permute.xlu2 %1881 }
 0x701   : > { %v1775_v22 = vpop.permute.xlu1 %1774 }
 0x702   : > { %2555 = vmatpush.xpose.msk.msrb.mxu3 %vm1679_vm10, %v1775_v22  ;;  %v1880_v28 = vpop.permute.xlu2 %1879 }
 0x709   : > { %v1773_v24 = vpop.permute.xlu1 %1772 }
 0x70a   : > { %2556 = vmatpush.xpose.msk.msrb.mxu3 %vm1679_vm10, %v1773_v24  ;;  %v1985_v50 = vpop.permute.xlu2 %1984 }
 0x70e   : > { %2557 = vmatpush.xpose.msk.msrb.mxu3 %vm1679_vm10, %v1771_v6 }
 0x711   : > { %v1886_v25 = vpop.permute.xlu1 %1885 }
 0x712   : > { %2558 = vmatpush.xpose.msk.msrb.mxu3 %vm1679_vm10, %v1769_v20  ;;  %2561 = vmatpush.xpose.msk.msrb.mxu0 %vm1679_vm10, %v1886_v25 }
 0x716   : > { %2562 = vmatpush.xpose.msk.msrb.mxu0 %vm1679_vm10, %v1884_v23 }
 0x719   : > { %v1993_v27 = vpop.permute.xlu1 %1992 }
 0x71a   : > { %2563 = vmatpush.xpose.msk.msrb.mxu0 %vm1679_vm10, %v1882_v26  ;;  %2567 = vmatpush.xpose.msk.msrb.mxu1 %vm1679_vm10, %v1993_v27 }
 0x71e   : > { %2564 = vmatpush.xpose.msk.msrb.mxu0 %vm1679_vm10, %v1880_v28 }
 0x721   : > { %v1991_v29 = vpop.permute.xlu1 %1990  ;;  %v1712_v30 = vpop.f32.mrf.mxu2 }
 0x722   : > { %v1715_v31 = vmul.f32 0.5, %v1712_v30  ;;  %2568 = vmatpush.xpose.msk.msrb.mxu1 %vm1679_vm10, %v1991_v29 }
 0x724   : > { %v1716_v32 = vsel %vm3386_vm0, %v1715_v31, -inf }
 0x725   : > { %1717 = vmax.xlane.f32.xlu0 %v1716_v32 }
 0x729   : > { %v1989_v33 = vpop.permute.xlu1 %1988 }
 0x72a   : > { %2569 = vmatpush.xpose.msk.msrb.mxu1 %vm1679_vm10, %v1989_v33 }
 0x731   : > { %v1878_v34 = vpop.permute.xlu1 %1877 }
 0x732   : > { %2565 = vmatmul.msk.f32.vlgmr.msrb.gmra.mxu0 %vm1679_vm10, %v1878_v34 }
 0x798   : > { %v1718_v37 = vpop.xlane.xlu0 %1717 }
 0x799   : > { %v1719_v38 = vmax.f32 %v3237_v36, %v1718_v37 }
 0x79b   : > { %1725 = vperm.xlu0 %2700, %v1719_v38   ;;  %v1720_v44 = vsub.f32 %v3237_v36, %v1719_v38 }
 0x79d   : > { %v1721_v45 = vmul.f32 1.442695, %v1720_v44 }
 0x79f   : > { %2740 = vpow2.f32 %v1721_v45 }
 0x7a3   : > { %1986 = vrot.lane.b32.xlu0 %v3200_v4, %s2863_s16 }
 0x7a4   : > { %2711 = vset.pattern.permute.xlu0 %v2865_v56 }
 0x7a5   : > { %v3250_v7 = vpop.eup %2740 }
 0x7af   : > { %v1914_v39 = vpop.f32.mrf.mxu0 }
 0x7b0   : > { %v3242_v40 = vmul.f32 0.5, %v1914_v39 }
 0x7b2   : > { %v1918_v41 = vsel %vm3386_vm0, %v3242_v40, -inf }
 0x7b3   : > { %1919 = vmax.xlane.f32.xlu1 %v1918_v41 }
 0x7cc   : > { %2707 = vrot.lane.b32.xlu1 %v2706_v42, %s2861_s10 }
 0x7d4   : > { %2715 = vrot.lane.b32.xlu1 %v2714_v43, %s2862_s22 }
 0x7dc   : > { %2725 = vrot.lane.b32.xlu1 %v2706_v42, %s2862_s22  ;;  %s3409_s22 = sld [smem:[#allocation13_spill]] (!%p2573_p8) }
 0x7e2   : > { %s3410_s0 = smov (!%p2573_p8), %s3409_s22 }
 0x7e4   : > { %1738 = vperm.xlu1 %2734, %v3250_v7  }
 0x7ec   : > { %2736 = vset.pattern.permute.xlu1 %v2866_v62 }
 0x80d   : > { %v1726_v46 = vpop.permute.xlu0 %1725 }
 0x80e   : > { %v1728_v47 = vsub.f32 %v1715_v31, %v1726_v46 }
 0x810   : > { %v1729_v48 = vmul.f32 1.442695, %v1728_v47 }
 0x812   : > { %2742 = vpow2.f32 %v1729_v48 }
 0x815   : > { %v1987_v49 = vpop.permute.xlu0 %1986 }
 0x816   : > { %2570 = vmatpush.xpose.msk.msrb.mxu1 %vm1679_vm10, %v1987_v49  ;;  %v1678_v49 = vld [vmem:[#allocation6] sm:$0xff] }
 0x818   : > { %v3254_v51 = vpop.eup %2742 }
 0x819   : > { %2554 = vmatmul.msk.f32.vlgmr.msra.gmra.mxu3 %vm3386_vm0, %v3254_v51  ;;  %2571 = vmatmul.msk.f32.vlgmr.msrb.gmra.mxu1 %vm1679_vm10, %v1985_v50  ;;  %v1732_v27 = vsel %vm3386_vm0, %v3254_v51, 0.0  ;;  %v1731_v51 = vmul.f32 %v3250_v7, %v1678_v49 }
 0x821   : > { %2559 = vmatmul.msk.f32.vlgmr.msrb.gmra.mxu3 %vm1679_vm10, %v1767_v21 }
 0x826   : > { %v1920_v60 = vpop.xlane.xlu1 %1919 }
 0x827   : > { %v1921_v61 = vmax.f32 %v3237_v36, %v1920_v60 }
 0x829   : > { %v1922_v29 = vsub.f32 %v3237_v36, %v1921_v61 }
 0x82b   : > { %v1923_v30 = vmul.f32 1.442695, %v1922_v29 }
 0x83e   : > { %v2708_v9 = vpop.permute.xlu1 %2707 }
 0x83f   : > { %v2709_v14 = vunpack.i.l.bf16 %v2708_v9  ;;  %v2710_v15 = vunpack.i.h.bf16 %v2708_v9 }
 0x846   : > { %v2716_v11 = vpop.permute.xlu1 %2715 }
 0x847   : > { %v2717_v16 = vunpack.i.l.bf16 %v2716_v11  ;;  %v2718_v19 = vunpack.i.h.bf16 %v2716_v11  ;;  %v1676_v11 = vld [vmem:[#allocation4] sm:$0xff] }
 0x84e   : > { %v2726_v6 = vpop.permute.xlu1 %2725 }
 0x84f   : > { %v2727_v21 = vunpack.i.l.bf16 %v2726_v6  ;;  %v2728_v22 = vunpack.i.h.bf16 %v2726_v6 }
 0x856   : > { %v1739_v60 = vpop.permute.xlu1 %1738 }
 0x896   : > { %v2021_v52 = vpop.f32.mrf.mxu1 }
 0x897   : > { %v3260_v53 = vmul.f32 0.5, %v2021_v52 }
 0x899   : > { %v2025_v54 = vsel %vm3386_vm0, %v3260_v53, -inf }
 0x89a   : > { %2026 = vmax.xlane.f32.xlu2 %v2025_v54 }
 0x89c   : > { %v3264_v55 = vpop.f32.mrf.mxu3 }
 0x8a4   : > { %v1803_v57 = vpop.f32.mrf.mxu3 }
 0x8a5   : > { %v3266_v58 = vmul.f32 0.5, %v1803_v57 }
 0x8a7   : > { %v1807_v59 = vsel %vm3386_vm0, %v3266_v58, -inf }
 0x8a8   : > { %1808 = vmax.xlane.f32.xlu0 %v1807_v59 }
 0x8bc   : > { %2702 = vrot.lane.b32.xlu0 %v2714_v43, %s2861_s10  ;;  %s2870_s10 = smov 12  }
 0x8c4   : > { %1927 = vperm.xlu0 %2711, %v1921_v61  }
 0x8cc   : > { %2730 = vrot.lane.b32.xlu0 %v2706_v42, %s2863_s16 }
 0x8cd   : > { %2737 = vset.pattern.permute.xlu0 %v2867_v63 }
 0x90d   : > { %v2027_v0 = vpop.xlane.xlu2 %2026 }
 0x90e   : > { %v3275_v3 = vmax.f32 %v3237_v36, %v2027_v0 }
 0x910   : > { %v2029_v57 = vsub.f32 %v3237_v36, %v3275_v3 }
 0x912   : > { %v2030_v59 = vmul.f32 1.442695, %v2029_v57 }
 0x91b   : > { %v1809_v1 = vpop.xlane.xlu0 %1808 }
 0x91c   : > { %v1810_v2 = vmax.f32 %v3237_v36, %v1809_v1 }
 0x91e   : > { %v2092_v4 = vsel %vm2091_vm11, %v1719_v38, %v1810_v2  ;;  %1816 = vperm.xlu2 %2712, %v1810_v2   ;;  %v1811_v25 = vsub.f32 %v3237_v36, %v1810_v2 }
 0x91f   : > { %v2094_v5 = vsel %vm2093_vm12, %v2092_v4, %v1921_v61 }
 0x920   : > { %v2096_v8 = vsel %vm2095_vm13, %v2094_v5, %v3275_v3  ;;  %v1812_v26 = vmul.f32 1.442695, %v1811_v25 }
 0x921   : > { %2097 = vst.msk [vmem:[#allocation5] sm:$0xff] %vm1679_vm10, %v2096_v8 }
 0x926   : > { %2713 = vset.pattern.permute.xlu2 %v2867_v63 }
 0x927   : > { %2034 = vperm.xlu2 %2713, %v3275_v3  }
 0x92e   : > { %v2703_v10 = vpop.permute.xlu0 %2702 }
 0x92f   : > { %2720 = vrot.lane.b32.xlu2 %v2714_v43, %s2863_s16  ;;  %v2704_v12 = vunpack.i.l.bf16 %v2703_v10  ;;  %v2705_v13 = vunpack.i.h.bf16 %v2703_v10  ;;  %s3417_s16 = sld [smem:[#allocation17_spill]] (!%p2573_p8) }
 0x930   : > { %2735 = vset.pattern.permute.xlu2 %v2865_v56 }
 0x931   : > { %1864 = vmatpush.msrb.mxu2 %v2704_v12 }
 0x933   : > { %1865 = vmatpush.msrb.mxu2 %v2705_v13 }
 0x935   : > { %1866 = vmatpush.msrb.mxu2 %v2709_v14  ;;  %v1741_v14 = vmul.f32 %v1739_v60, %v1676_v11 }
 0x936   : > { %v1928_v17 = vpop.permute.xlu0 %1927 }
 0x937   : > { %v1930_v18 = vsub.f32 %v3242_v40, %v1928_v17  ;;  %1867 = vmatpush.msrb.mxu2 %v2710_v15  ;;  %v1765_v17 = vadd.f32 %v3264_v55, %v1741_v14 }
 0x939   : > { %1971 = vmatpush.msra.mxu2 %v2717_v16  ;;  %v1931_v20 = vmul.f32 1.442695, %v1930_v18 }
 0x93b   : > { %1972 = vmatpush.msra.mxu2 %v2718_v19  ;;  %2744 = vpow2.f32 %v1931_v20 }
 0x93c   : > { %2746 = vpow2.f32 %v1812_v26 }
 0x93d   : > { %1973 = vmatpush.msra.mxu2 %v2727_v21  ;;  %2748 = vpow2.f32 %v1923_v30 }
 0x93e   : > { %v2731_v43 = vpop.permute.xlu0 %2730 }
 0x93f   : > { %1974 = vmatpush.msra.mxu2 %v2728_v22  ;;  %v2732_v45 = vunpack.i.l.bf16 %v2731_v43  ;;  %v2733_v46 = vunpack.i.h.bf16 %v2731_v43 }
 0x941   : > { %v2745_v23 = vpop.eup %2744 }
 0x942   : > { %v1934_v24 = vsel %vm3386_vm0, %v2745_v23, 0.0  ;;  %v2747_v28 = vpop.eup %2746 }
 0x943   : > { %1935 = vadd.xlane.f32.xlu1 %v1934_v24  ;;  %v2749_v31 = vpop.eup %2748  ;;  %v1822_v52 = vmul.f32 %v2747_v28, %v1678_v49 }
 0x944   : > { %v1933_v1 = vmul.f32 %v2749_v31, %v1678_v49 }
 0x958   : > { %1733 = vadd.xlane.f32.xlu2 %v1732_v27 }
 0x95c   : > { %1829 = vperm.xlu1 %2736, %v2747_v28  }
 0x970   : > { %1940 = vperm.xlu2 %2735, %v2749_v31  }
 0x978   : > { %v1817_v32 = vpop.permute.xlu2 %1816 }
 0x979   : > { %v1819_v33 = vsub.f32 %v3266_v58, %v1817_v32 }
 0x97b   : > { %v1820_v34 = vmul.f32 1.442695, %v1819_v33 }
 0x97d   : > { %2750 = vpow2.f32 %v1820_v34 }
 0x981   : > { %v2035_v35 = vpop.permute.xlu2 %2034 }
 0x982   : > { %v2037_v38 = vsub.f32 %v3260_v53, %v2035_v35 }
 0x983   : > { %v2751_v37 = vpop.eup %2750 }
 0x984   : > { %2560 = vmatmul.msk.f32.vlgmr.msrb.gmra.mxu2 %vm3386_vm0, %v2751_v37  ;;  %v1823_v39 = vsel %vm3386_vm0, %v2751_v37, 0.0  ;;  %v2038_v40 = vmul.f32 1.442695, %v2037_v38 }
 0x985   : > { %1824 = vadd.xlane.f32.xlu0 %v1823_v39 }
 0x986   : > { %2752 = vpow2.f32 %v2038_v40 }
 0x987   : > { %2754 = vpow2.f32 %v2030_v59 }
 0x989   : > { %v2721_v41 = vpop.permute.xlu2 %2720 }
 0x98a   : > { %v2722_v42 = vunpack.i.l.bf16 %v2721_v41  ;;  %v2723_v44 = vunpack.i.h.bf16 %v2721_v41 }
 0x98c   : > { %2566 = vmatmul.msk.f32.vlgmr.msra.gmra.mxu2 %vm3386_vm0, %v2745_v23  ;;  %2078 = vmatpush.msra.mxu3 %v2722_v42  ;;  %v2753_v47 = vpop.eup %2752 }
 0x98d   : > { %v2041_v48 = vsel %vm3386_vm0, %v2753_v47, 0.0  ;;  %v2755_v63 = vpop.eup %2754 }
 0x98e   : > { %2079 = vmatpush.msra.mxu3 %v2723_v44  ;;  %v2040_v7 = vmul.f32 %v2755_v63, %v1678_v49 }
 0x990   : > { %2080 = vmatpush.msra.mxu3 %v2732_v45 }
 0x992   : > { %2081 = vmatpush.msra.mxu3 %v2733_v46 }
 0x993   : > { %2572 = vmatmul.msk.f32.vlgmr.msra.gmra.mxu3 %vm3386_vm0, %v2753_v47 }
 0x999   : > { %2042 = vadd.xlane.f32.xlu2 %v2041_v48 }
 0x9b6   : > { %v1936_v0 = vpop.xlane.xlu1 %1935 }
 0x9b7   : > { %v1937_v2 = vadd.f32 %v1936_v0, %v1933_v1 }
 0x9cb   : > { %v1734_v50 = vpop.xlane.xlu2 %1733 }
 0x9cc   : > { %v1735_v54 = vadd.f32 %v1734_v50, %v1731_v51 }
 0x9ce   : > { %v1830_v10 = vpop.permute.xlu1 %1829 }
 0x9cf   : > { %v1832_v13 = vmul.f32 %v1830_v10, %v1676_v11 }
 0x9d3   : > { %v1941_v61 = vpop.permute.xlu2 %1940 }
 0x9d4   : > { %v1943_v16 = vmul.f32 %v1941_v61, %v1676_v11 }
 0x9f8   : > { %v1825_v53 = vpop.xlane.xlu0 %1824 }
 0x9f9   : > { %v1826_v56 = vadd.f32 %v1825_v53, %v1822_v52 }
 0x9fb   : > { %v2098_v58 = vsel %vm2091_vm11, %v1735_v54, %v1826_v56 }
 0x9fc   : > { %v2099_v8 = vsel %vm2093_vm12, %v2098_v58, %v1937_v2 }
 0xa07   : > { %v1869_v62 = vpop.f32.mrf.mxu2 }
 0xa08   : > { %1873 = vrot.lane.b32.xlu1 %v1869_v62, %s2868_s26  ;;  %s3418_s26 = smov (!%p2573_p8), %s3417_s16 }
 0xa0c   : > { %v2043_v4 = vpop.xlane.xlu2 %2042 }
 0xa0d   : > { %v2044_v5 = vadd.f32 %v2043_v4, %v2040_v7 }
 0xa0f   : > { %v2100_v36 = vsel %vm2095_vm13, %v2099_v8, %v2044_v5  ;;  %v1976_v3 = vpop.f32.mrf.mxu2 }
 0xa10   : > { %2101 = vst.msk [vmem:[#allocation6] sm:$0xff] %vm1679_vm10, %v2100_v36  ;;  %1980 = vrot.lane.b32.xlu0 %v1976_v3, %s2869_s7  ;;  %s3419_s7 = sld [smem:[#allocation19_spill]] (!%p2573_p8) }
 0xa16   : > { %v2083_v9 = vpop.f32.mrf.mxu3 }
 0xa17   : > { %2087 = vrot.lane.b32.xlu1 %v2083_v9, %s2870_s10  ;;  %s3421_s10 = sld [smem:[#allocation15_spill]] (!%p2573_p8) }
 0xa18   : > { %2047 = vperm.xlu0 %2737, %v2755_v63  }
 0xa7a   : > { %v1874_v12 = vpop.permute.xlu1 %1873 }
 0xa7b   : > { %v1876_v15 = vadd.f32 %v1874_v12, %v1832_v13 }
 0xa7d   : > { %v2102_v6 = vsel %vm1679_vm10, %v1765_v17, %v1876_v15 }
 0xa82   : > { %v1981_v18 = vpop.permute.xlu0 %1980 }
 0xa83   : > { %v1983_v19 = vadd.f32 %v1981_v18, %v1943_v16 }
 0xa85   : > { %v2104_v20 = vsel %vm2103_vm14, %v2102_v6, %v1983_v19 }
 0xa89   : > { %v2088_v23 = vpop.permute.xlu1 %2087 }
 0xa8a   : > { %v2048_v21 = vpop.permute.xlu0 %2047 }
 0xa8b   : > { %v2050_v22 = vmul.f32 %v2048_v21, %v1676_v11 }
 0xa8c   : > { %2112 = sbr.rel (%p2573_p8) target bundleno = 3787 (0xecb), region = 148 }
 0xa8d   : > { %v2090_v24 = vadd.f32 %v2088_v23, %v2050_v22 }
 0xa8f   : > { %v2106_v25 = vsel %vm2105_vm15, %v2104_v20, %v2090_v24 }
 0xa90   : > { %2108 = vst.msk [vmem:[#allocation4] sm:$0xff] %vm2107_vm2, %v2106_v25 }
 0xa91   : > { %v2114_v55 = vld [vmem:[#allocation6] sm:$0xff]  ;;  %v2871_v26 = vmov 2   ;;  %v2872_v27 = vmov 0   ;;  %v2873_v28 = vmov 3   ;;  %v2874_v29 = vmov 1   ;;  %v2196_v30 = vld [vmem:[%s3409_s22 + $0x8] sm:$0xff] }
 0xa92   : > { %2758 = vset.pattern.permute.xlu1 %v2871_v26  ;;  %2756 = vset.pattern.permute.xlu0 %v2872_v27  ;;  %v2195_v31 = vld [vmem:[%s3410_s0] sm:$0xff]  ;;  %s3422_s22 = sld [smem:[#allocation16_spill]]  ;;  %v2299_v7 = vld [vmem:[%s3419_s7 + $0x10] sm:$0xff] }
 0xa93   : > { %2155 = vperm.xlu1 %2758, %v2114_v55   ;;  %2117 = vperm.xlu0 %2756, %v2114_v55   ;;  %v2761_v23 = vld [vmem:[%s3415_s15] ss:$0 sm:$0xff]  ;;  %s3423_s15 = sld [smem:[#allocation18_spill]] }
 0xa94   : > { %2218 = vmatpush.msra.mxu0 %v2196_v30  ;;  %v2224_v25 = vld [vmem:[#allocation2] sm:$0xff] }
 0xa95   : > { %v2762_v60 = vld [vmem:[%s3421_s10] ss:$0 sm:$0xff] }
 0xa96   : > { %2219 = vmatpush.msra.mxu0 %v2195_v31 }
 0xa97   : > { %v2113_v9 = vld [vmem:[#allocation4] sm:$0xff] }
 0xa9b   : > { %2759 = vset.pattern.permute.xlu1 %v2873_v28  ;;  %2757 = vset.pattern.permute.xlu0 %v2874_v29 }
 0xa9c   : > { %2174 = vperm.xlu1 %2759, %v2114_v55   ;;  %2136 = vperm.xlu0 %2757, %v2114_v55  }
 0xaa4   : > { %2760 = vset.pattern.permute.xlu0 %v2873_v28  ;;  %v2875_v28 = vmov 32.0  }
 0xb05   : > { %v2156_v32 = vpop.permute.xlu1 %2155  ;;  %v2118_v33 = vpop.permute.xlu0 %2117 }
 0xb06   : > { %2768 = vrcp.f32 %v2156_v32  ;;  %v2169_v46 = vand.u32 2147483648, %v2156_v32  ;;  %vm2163_vm3 = vweird.f32 %v2156_v32  ;;  %vm2125_vm4 = vweird.f32 %v2118_v33 }
 0xb07   : > { %2770 = vrcp.f32 %v2118_v33  ;;  %v2131_v49 = vand.u32 2147483648, %v2118_v33  ;;  %v2129_v53 = vand.u32 2147483647, %v2118_v33  ;;  %v2167_v58 = vand.u32 2147483647, %v2156_v32 }
 0xb08   : > { %v2170_v59 = vor.u32 1.1754944e-38, %v2169_v46  ;;  %v2303_v46 = vld [vmem:[%s3419_s7 + $0x30] sm:$0xff] }
 0xb09   : > { %v2132_v4 = vor.u32 1.1754944e-38, %v2131_v49  ;;  %vm2130_vm13 = vcmp.eq.f32.partialorder %v2129_v53, 8.507059e+37 }
 0xb0c   : > { %v2769_v34 = vpop.eup %2768 }
 0xb0d   : > { %v2771_v35 = vpop.eup %2770  ;;  %v2159_v37 = vmul.f32 %v2769_v34, %v2156_v32  ;;  %vm2164_vm6 = vweird.f32 %v2769_v34 }
 0xb0e   : > { %v2121_v38 = vmul.f32 %v2771_v35, %v2118_v33  ;;  %v2175_v39 = vpop.permute.xlu1 %2174  ;;  %v2137_v40 = vpop.permute.xlu0 %2136  ;;  %vm2126_vm5 = vweird.f32 %v2771_v35  ;;  %vm3319_vm9 = vmor %vm2163_vm3, %vm2164_vm6 }
 0xb0f   : > { %2772 = vrcp.f32 %v2175_v39  ;;  %v2160_v41 = vsub.f32 1.0, %v2159_v37  ;;  %v2148_v57 = vand.u32 2147483647, %v2137_v40  ;;  %vm3312_vm1 = vmor %vm2125_vm4, %vm2126_vm5  ;;  %v2150_v62 = vand.u32 2147483648, %v2137_v40 }
 0xb10   : > { %v2122_v42 = vsub.f32 1.0, %v2121_v38  ;;  %2774 = vrcp.f32 %v2137_v40  ;;  %v2188_v63 = vand.u32 2147483648, %v2175_v39  ;;  %v2186_v2 = vand.u32 2147483647, %v2175_v39 }
 0xb11   : > { %v2161_v44 = vmul.f32 %v2769_v34, %v2160_v41  ;;  %vm2182_vm11 = vweird.f32 %v2175_v39  ;;  %vm2144_vm12 = vweird.f32 %v2137_v40  ;;  %vm2168_vm4 = vcmp.eq.f32.partialorder %v2167_v58, 8.507059e+37  ;;  %v2268_v41 = vld [vmem:[%s3417_s16 + $0x18] sm:$0xff] }
 0xb12   : > { %v2123_v43 = vmul.f32 %v2771_v35, %v2122_v42  ;;  %v2151_v3 = vor.u32 1.1754944e-38, %v2150_v62  ;;  %v2189_v12 = vor.u32 1.1754944e-38, %v2188_v63  ;;  %vm2149_vm3 = vcmp.eq.f32.partialorder %v2148_v57, 8.507059e+37  ;;  %v2267_v42 = vld [vmem:[%s3418_s26 + $0x10] sm:$0xff]  ;;  %2288 = vmatpush.msra.mxu1 %v2268_v41  ;;  %v2763_v63 = vld [vmem:[%s3422_s22] ss:$0 sm:$0xff] }
 0xb13   : > { %v2162_v54 = vadd.f32 %v2769_v34, %v2161_v44  ;;  %vm2187_vm6 = vcmp.eq.f32.partialorder %v2186_v2, 8.507059e+37  ;;  %2776 = vrcp.f32 %v2875_v28  ;;  %v2265_v44 = vld [vmem:[%s3418_s26] sm:$0xff]  ;;  %v2298_v2 = vld [vmem:[%s3419_s7 + $0x8] sm:$0xff] }
 0xb14   : > { %v2124_v51 = vadd.f32 %v2771_v35, %v2123_v43  ;;  %v2266_v43 = vld [vmem:[%s3418_s26 + $0x8] sm:$0xff]  ;;  %2289 = vmatpush.msra.mxu1 %v2267_v42  ;;  %v2767_v28 = vld [vmem:[%s3029_s4] ss:$0 sm:$0xff] }
 0xb15   : > { %v2773_v45 = vpop.eup %2772  ;;  %v2166_v5 = vsel %vm3319_vm9, %v2769_v34, %v2162_v54 }
 0xb16   : > { %v2775_v47 = vpop.eup %2774  ;;  %v2178_v48 = vmul.f32 %v2773_v45, %v2175_v39  ;;  %vm2183_vm7 = vweird.f32 %v2773_v45  ;;  %v2128_v1 = vsel %vm3312_vm1, %v2771_v35, %v2124_v51  ;;  %v2171_v14 = vsel %vm2168_vm4, %v2170_v59, %v2166_v5  ;;  %2290 = vmatpush.msra.mxu1 %v2266_v43  ;;  %v2764_v5 = vld [vmem:[%s3423_s15] ss:$0 sm:$0xff] }
 0xb17   : > { %v2140_v50 = vmul.f32 %v2775_v47, %v2137_v40  ;;  %vm2145_vm8 = vweird.f32 %v2775_v47  ;;  %vm2184_vm5 = vmor %vm2182_vm11, %vm2183_vm7  ;;  %v2133_v10 = vsel %vm2130_vm13, %v2132_v4, %v2128_v1  ;;  %v2172_v19 = vmul.f32 %v2171_v14, %v2113_v9  ;;  %v2297_v4 = vld [vmem:[%s3419_s7] sm:$0xff] }
 0xb18   : > { %v2179_v52 = vsub.f32 1.0, %v2178_v48  ;;  %vm2146_vm0 = vmor %vm2144_vm12, %vm2145_vm8  ;;  %v2134_v17 = vmul.f32 %v2133_v10, %v2113_v9  ;;  %2291 = vmatpush.msra.mxu1 %v2265_v44  ;;  %vm2309_vm8 = vcmask 523264  }
 0xb19   : > { %v2141_v56 = vsub.f32 1.0, %v2140_v50  ;;  %v2777_v29 = vpop.eup %2776  ;;  %v2301_v50 = vld [vmem:[%s3419_s7 + $0x20] sm:$0xff] }
 0xb1a   : > { %v2180_v61 = vmul.f32 %v2773_v45, %v2179_v52  ;;  %v2232_v30 = vmul.f32 32.0, %v2777_v29  ;;  %v2300_v52 = vld [vmem:[%s3419_s7 + $0x18] sm:$0xff] }
 0xb1b   : > { %v2142_v0 = vmul.f32 %v2775_v47, %v2141_v56 }
 0xb1c   : > { %v2181_v8 = vadd.f32 %v2773_v45, %v2180_v61  ;;  %v2233_v31 = vsub.f32 1.0, %v2232_v30 }
 0xb1d   : > { %v2143_v36 = vadd.f32 %v2775_v47, %v2142_v0 }
 0xb1e   : > { %v2185_v11 = vsel %vm2184_vm5, %v2773_v45, %v2181_v8  ;;  %v2234_v32 = vmul.f32 %v2777_v29, %v2233_v31  ;;  %v2304_v45 = vld [vmem:[%s3419_s7 + $0x38] sm:$0xff] }
 0xb1f   : > { %v2147_v13 = vsel %vm2146_vm0, %v2775_v47, %v2143_v36  ;;  %v2190_v16 = vsel %vm2187_vm6, %v2189_v12, %v2185_v11  ;;  %vm3416_vm0 = vcmask 261120   ;;  %2321 = vmatpush.msra.mxu2 %v2304_v45  ;;  %v2302_v47 = vld [vmem:[%s3419_s7 + $0x28] sm:$0xff] }
 0xb20   : > { %v2152_v15 = vsel %vm2149_vm3, %v2151_v3, %v2147_v13  ;;  %v2191_v6 = vmul.f32 %v2190_v16, %v2113_v9  ;;  %v2235_v33 = vadd.f32 %v2777_v29, %v2234_v32  ;;  %vm3424_vm7 = vmmov %vm3416_vm0 }
 0xb21   : > { %v2153_v18 = vmul.f32 %v2152_v15, %v2113_v9  ;;  %2322 = vmatpush.msra.mxu2 %v2303_v46  ;;  %v2765_v9 = vld [vmem:[%s3019_s20] ss:$0 sm:$0xff]  ;;  %vm3425_vm9 = vmmov %vm3416_vm0 }
 0xb22   : > { %vm3426_vm11 = vmmov %vm3416_vm0 }
 0xb23   : > { %v2192_v20 = vsel %vm1679_vm10, %v2134_v17, %v2153_v18  ;;  %vm2236_vm10 = vweird.f32 %v2777_v29  ;;  %2323 = vmatpush.msra.mxu2 %v2302_v47  ;;  %vm3427_vm5 = vmmov %vm3416_vm0 }
 0xb24   : > { %v2193_v21 = vsel %vm2103_vm14, %v2192_v20, %v2172_v19  ;;  %v3332_v34 = vsel %vm2236_vm10, %v2777_v29, %v2235_v33  ;;  %vm3420_vm14 = vmmov %vm3416_vm0 }
 0xb25   : > { %v2194_v22 = vsel %vm2105_vm15, %v2193_v21, %v2191_v6  ;;  %2324 = vmatpush.msra.mxu2 %v2301_v50 }
 0xb26   : > { %2574 = vmatmul.msk.f32.vlgmr.msra.gmra.mxu0 %vm2107_vm2, %v2194_v22 }
 0xb27   : > { %2325 = vmatpush.msra.mxu2 %v2300_v52 }
 0xb29   : > { %2326 = vmatpush.msra.mxu2 %v2299_v7 }
 0xb2b   : > { %2327 = vmatpush.msra.mxu2 %v2298_v2 }
 0xb2d   : > { %2328 = vmatpush.msra.mxu2 %v2297_v4 }
 0xba3   : > { %v2221_v24 = vpop.f32.mrf.mxu0 }
 0xba4   : > { %v2222_v55 = vadd.f32 %v2761_v23, %v2221_v24 }
 0xba6   : > { %v2225_v26 = vadd.f32 %v2224_v25, %v2222_v55 }
 0xba8   : > { %v2228_v27 = vsel %vm3416_vm0, %v2225_v26, 0.0 }
 0xba9   : > { %2229 = vadd.xlane.f32.xlu2 %v2228_v27 }
 0xc1c   : > { %v2230_v35 = vpop.xlane.xlu2 %2229 }
 0xc1d   : > { %v2238_v37 = vmul.f32 %v3332_v34, %v2230_v35 }
 0xc1f   : > { %v2239_v38 = vsub.f32 %v2225_v26, %v2238_v37  ;;  %v2766_v26 = vld [vmem:[%s3024_s27] ss:$0 sm:$0xff] }
 0xc21   : > { %v2240_v39 = vmul.f32 %v2239_v38, %v2239_v38 }
 0xc23   : > { %v2241_v40 = vsel %vm3420_vm14, %v2240_v39, 0.0 }
 0xc24   : > { %2242 = vadd.xlane.f32.xlu2 %v2241_v40 }
 0xc97   : > { %v2243_v48 = vpop.xlane.xlu2 %2242 }
 0xc98   : > { %v2244_v49 = vmul.f32 %v2243_v48, %v3332_v34 }
 0xc9a   : > { %v2245_v51 = vadd.f32 1e-05, %v2244_v49 }
 0xc9c   : > { %2778 = vrsqrt.f32 %v2245_v51  ;;  %vm2252_vm2 = vweird.f32 %v2245_v51 }
 0xca2   : > { %v2779_v53 = vpop.eup %2778 }
 0xca3   : > { %v2247_v54 = vmul.f32 %v2779_v53, %v2245_v51  ;;  %vm2253_vm15 = vweird.f32 %v2779_v53 }
 0xca4   : > { %vm2254_vm1 = vmor %vm2252_vm2, %vm2253_vm15 }
 0xca5   : > { %v2248_v56 = vmul.f32 %v2779_v53, %v2247_v54 }
 0xca7   : > { %v2249_v57 = vmul.f32 0.5, %v2248_v56 }
 0xca9   : > { %v2250_v58 = vsub.f32 1.5, %v2249_v57 }
 0xcab   : > { %v2251_v59 = vmul.f32 %v2779_v53, %v2250_v58 }
 0xcad   : > { %v2255_v61 = vsel %vm2254_vm1, %v2779_v53, %v2251_v59 }
 0xcae   : > { %v2256_v62 = vmul.f32 %v2255_v61, %v2239_v38 }
 0xcb0   : > { %v2260_v0 = vmul.f32 %v2762_v60, %v2256_v62 }
 0xcb2   : > { %v2264_v1 = vadd.f32 %v2763_v63, %v2260_v0 }
 0xcb4   : > { %2575 = vmatmul.msk.f32.vlgmr.msra.gmra.mxu1 %vm3424_vm7, %v2264_v1 }
 0xd31   : > { %v2293_v8 = vpop.f32.mrf.mxu1 }
 0xd32   : > { %v2294_v36 = vadd.f32 %v2764_v5, %v2293_v8 }
 0xd34   : > { %v2296_v3 = vmax.f32 %v2294_v36, 0.0 }
 0xd36   : > { %2576 = vmatmul.msk.f32.vlgmr.msra.gmra.mxu2 %vm2309_vm8, %v2296_v3 }
 0xdb9   : > { %v2330_v10 = vpop.f32.mrf.mxu2 }
 0xdba   : > { %v2331_v11 = vadd.f32 %v2765_v9, %v2330_v10 }
 0xdbc   : > { %v2333_v12 = vadd.f32 %v2331_v11, %v2264_v1 }
 0xdbe   : > { %v2336_v13 = vsel %vm3425_vm9, %v2333_v12, 0.0 }
 0xdbf   : > { %2337 = vadd.xlane.f32.xlu1 %v2336_v13 }
 0xe32   : > { %v2338_v14 = vpop.xlane.xlu1 %2337 }
 0xe33   : > { %v2339_v15 = vmul.f32 %v2338_v14, %v3332_v34 }
 0xe35   : > { %v2340_v16 = vsub.f32 %v2333_v12, %v2339_v15 }
 0xe37   : > { %v2341_v17 = vmul.f32 %v2340_v16, %v2340_v16 }
 0xe39   : > { %v2342_v18 = vsel %vm3426_vm11, %v2341_v17, 0.0 }
 0xe3a   : > { %2343 = vadd.xlane.f32.xlu2 %v2342_v18 }
 0xead   : > { %v2344_v19 = vpop.xlane.xlu2 %2343 }
 0xeae   : > { %v2345_v6 = vmul.f32 %v2344_v19, %v3332_v34 }
 0xeb0   : > { %v2346_v20 = vadd.f32 1e-05, %v2345_v6 }
 0xeb2   : > { %2780 = vrsqrt.f32 %v2346_v20  ;;  %vm2353_vm13 = vweird.f32 %v2346_v20 }
 0xeb8   : > { %v2781_v21 = vpop.eup %2780 }
 0xeb9   : > { %v2348_v22 = vmul.f32 %v2781_v21, %v2346_v20  ;;  %vm2354_vm12 = vweird.f32 %v2781_v21 }
 0xeba   : > { %vm2355_vm4 = vmor %vm2353_vm13, %vm2354_vm12 }
 0xebb   : > { %v2349_v23 = vmul.f32 %v2781_v21, %v2348_v22 }
 0xebd   : > { %v2350_v24 = vmul.f32 0.5, %v2349_v23 }
 0xebf   : > { %v2351_v25 = vsub.f32 1.5, %v2350_v24 }
 0xec1   : > { %v2352_v55 = vmul.f32 %v2781_v21, %v2351_v25 }
 0xec3   : > { %v2356_v27 = vsel %vm2355_vm4, %v2781_v21, %v2352_v55 }
 0xec4   : > { %v2357_v29 = vmul.f32 %v2356_v27, %v2340_v16 }
 0xec6   : > { %v2361_v30 = vmul.f32 %v2766_v26, %v2357_v29 }
 0xec8   : > { %v2365_v31 = vadd.f32 %v2767_v28, %v2361_v30 }
 0xeca   : > { %2366 = vst.msk [vmem:[%s1026_s11] sm:$0xff] %vm3427_vm5, %v2365_v31 }
 0xecb PF: > { %s71_s23 = sadd.s32 1, %s2820_s23   ;;  %s3428_s16 = sld [smem:[#allocation20_spill]] }
 0xecc   : > { %p68_p9 = scmp.ge.s32.totalorder %s71_s23, 6   ;;  %s3429_s10 = sld [smem:[#allocation21_spill]] }
 0xecd   : > { %s3430_s22 = sld [smem:[#allocation22_spill]]  ;;  %s3431_s15 = smov %s2812_s18 }
 0xece   :  { %70 = sbr.rel (!%p68_p9) target bundleno = 48 (0x30), region = 217 }
 0xed2   : > { %s3432_s18 = smov %s3429_s10 }

</bundles_post_ra>
